<compile_context>
chip_gen: v7x
topology: tpu7x:2x2x1
jax: 0.10.0
libtpu: 0.0.40
codegen_flags: <defaults>
</compile_context>

<pallas_src>
import functools

import jax
import jax.numpy as jnp
from jax.experimental import pallas as pl
from jax.experimental.pallas import tpu as pltpu


def _leaky_relu(x, slope=0.2):
    return jnp.where(x > 0, x, slope * x)


def _round_up(x, m):
    return ((x + m - 1) // m) * m


def _disc_kernel(x_ref, w1_ref, b1_ref, w2_ref, b2_ref, w3_ref, b3_ref,
                 w4t_ref, b4_ref, o_ref, acc_ref, *, batch, tile_b, apply_mask):
    i = pl.program_id(0)

    @pl.when(i == 0)
    def _():
        acc_ref[...] = jnp.zeros_like(acc_ref)

    # Layer 1: (TILE_B, 128) @ (128, 2048), bf16 operands, f32 accumulate.
    h = jnp.dot(x_ref[...], w1_ref[...], preferred_element_type=jnp.float32)
    h = _leaky_relu(h + b1_ref[...]).astype(jnp.bfloat16)
    # Layer 2: (TILE_B, 2048) @ (2048, 1024)
    h = jnp.dot(h, w2_ref[...], preferred_element_type=jnp.float32)
    h = _leaky_relu(h + b2_ref[...]).astype(jnp.bfloat16)
    # Layer 3: (TILE_B, 1024) @ (1024, 1024) -- keep f32, it is only reduced.
    h = jnp.dot(h, w3_ref[...], preferred_element_type=jnp.float32)
    h3 = _leaky_relu(h + b3_ref[...])

    if apply_mask:  # zero out batch-padding rows (static switch)
        row = jax.lax.broadcasted_iota(jnp.int32, (tile_b, 1), 0) + i * tile_b
        h3 = h3 * (row < batch).astype(jnp.float32)

    # Partial batch-sum of layer-3 activations.  Layer 4 is linear, so
    # mean(h3 @ w4 + b4) == mean(h3) @ w4 + b4: fuse it in the epilogue.
    acc_ref[...] += jnp.sum(h3, axis=0, keepdims=True)

    @pl.when(i == pl.num_programs(0) - 1)
    def _():
        mean_h3 = acc_ref[...] * (1.0 / batch)                     # (1, 1024)
        out = jnp.sum(mean_h3 * w4t_ref[...].astype(jnp.float32),  # VPU mul +
                      axis=1, keepdims=True) + b4_ref[...]         # lane reduce
        o_ref[...] = out                                           # (1, 1)


def discriminator_forward(x, params):
    """x: [B, 59] float32.  Returns shape (1,), matching PyTorch .mean(0)."""
    w1, b1, w2, b2, w3, b3, w4t, b4 = params
    B, F = x.shape
    f_pad = w1.shape[0]                      # 128, pre-padded at init
    assert F <= f_pad

    tile_b = 256 if B >= 256 else _round_up(B, 8)
    b_pad = _round_up(B, tile_b)
    num_tiles = b_pad // tile_b

    x_p = jnp.pad(x, ((0, b_pad - B), (0, f_pad - F))).astype(jnp.bfloat16)

    const = lambda i: (0, 0)
    kernel = functools.partial(_disc_kernel, batch=B, tile_b=tile_b,
                               apply_mask=(b_pad != B))

    out = pl.pallas_call(
        kernel,
        out_shape=jax.ShapeDtypeStruct((1, 1), jnp.float32),
        grid=(num_tiles,),
        in_specs=[
            pl.BlockSpec((tile_b, f_pad), lambda i: (i, 0)),   # x batch tile
            pl.BlockSpec(w1.shape, const),                     # weights/biases
            pl.BlockSpec(b1.shape, const),                     # stay VMEM-
            pl.BlockSpec(w2.shape, const),                     # resident
            pl.BlockSpec(b2.shape, const),                     # (constant block
            pl.BlockSpec(w3.shape, const),                     #  index)
            pl.BlockSpec(b3.shape, const),
            pl.BlockSpec(w4t.shape, const),
            pl.BlockSpec(b4.shape, const),
        ],
        out_specs=pl.BlockSpec((1, 1), const),
        scratch_shapes=[pltpu.VMEM((1, 1024), jnp.float32)],   # sum(h3) accum
        compiler_params=pltpu.CompilerParams(
            dimension_semantics=("arbitrary",),  # batch axis reduces into one block
            vmem_limit_bytes=32 << 20,
        ),
    )(x_p, w1, b1, w2, b2, w3, b3, w4t, b4)

    return out.reshape((1,))


def init_params(key, input_shape=59, f_pad=128):
    """nn.Linear-equivalent params, pre-transposed to [in, out].
    Weights are stored bf16 (halves weight DMA; MXU is natively bf16);
    biases stay f32.  Layer-1 weight is zero-padded to f_pad input rows once,
    here; layer-4 weight is stored transposed as (1, 1024) for the fused
    mean/VPU epilogue."""
    dims = [(input_shape, 2048), (2048, 1024), (1024, 1024), (1024, 1)]
    params = []
    for li, (fi, fo) in enumerate(dims):
        kw, kb, key = jax.random.split(key, 3)
        bound = 1.0 / (fi ** 0.5)            # PyTorch default Linear init range
        w = jax.random.uniform(kw, (fi, fo), jnp.float32, -bound, bound)
        b = jax.random.uniform(kb, (1, fo), jnp.float32, -bound, bound)
        if li == 0:
            w = jnp.pad(w, ((0, f_pad - fi), (0, 0)))   # exact: zero rows
        if li == 3:
            w = w.T                                     # (1, 1024)
        params += [w.astype(jnp.bfloat16), b]
    return tuple(params)


def reference_forward(x, params):
    """Plain-JAX reference using the same bf16 weights / casts."""
    w1, b1, w2, b2, w3, b3, w4t, b4 = params
    f_pad = w1.shape[0]
    xb = jnp.pad(x, ((0, 0), (0, f_pad - x.shape[1]))).astype(jnp.bfloat16)
    h = _leaky_relu(jnp.dot(xb, w1, preferred_element_type=jnp.float32) + b1)
    h = _leaky_relu(jnp.dot(h.astype(jnp.bfloat16), w2,
                            preferred_element_type=jnp.float32) + b2)
    h3 = _leaky_relu(jnp.dot(h.astype(jnp.bfloat16), w3,
                             preferred_element_type=jnp.float32) + b3)
    out = jnp.dot(h3, w4t.astype(jnp.float32).T) + b4   # (B, 1)
    return jnp.mean(out, axis=0)                        # (1,)


if __name__ == "__main__":
    key = jax.random.PRNGKey(0)
    kx, kp = jax.random.split(key)

    B, F = 8, 59
    x = jax.random.normal(kx, (B, F), jnp.float32)
    params = init_params(kp, input_shape=F)

    result = discriminator_forward(x, params)
    jax.block_until_ready(result)

    ref = reference_forward(x, params)
    assert result.shape == (1,), result.shape
    assert jnp.allclose(result, ref, atol=2e-3, rtol=2e-2), (result, ref)

    print("KERNEL_OK")
</pallas_src>

<mosaic_0001>
module attributes {stable_mosaic.version = 11 : i64} {
  func.func @_disc_kernel(%arg0: i32, %arg1: memref<8x128xbf16, #tpu.memory_space<vmem>>, %arg2: memref<128x2048xbf16, #tpu.memory_space<vmem>>, %arg3: memref<1x2048xf32, #tpu.memory_space<vmem>>, %arg4: memref<2048x1024xbf16, #tpu.memory_space<vmem>>, %arg5: memref<1x1024xf32, #tpu.memory_space<vmem>>, %arg6: memref<1024x1024xbf16, #tpu.memory_space<vmem>>, %arg7: memref<1x1024xf32, #tpu.memory_space<vmem>>, %arg8: memref<1x1024xbf16, #tpu.memory_space<vmem>>, %arg9: memref<1x1xf32, #tpu.memory_space<vmem>>, %arg10: memref<1x1xf32, #tpu.memory_space<vmem>>, %arg11: memref<1x1024xf32, #tpu.memory_space<vmem>>) attributes {dimension_semantics = [#tpu.dimension_semantics<arbitrary>], iteration_bounds = array<i64: 1>, scalar_prefetch = 0 : i64, scratch_operands = 1 : i64, tpu.core_type = #tpu.core_type<tc>, window_params = [{transform_indices = @transform_0, window_bounds = array<i64: 8, 128>}, {pipeline_mode = #tpu.pipeline_mode<synchronous>, transform_indices = @transform_1, window_bounds = array<i64: 128, 2048>}, {pipeline_mode = #tpu.pipeline_mode<synchronous>, transform_indices = @transform_2, window_bounds = array<i64: 1, 2048>}, {pipeline_mode = #tpu.pipeline_mode<synchronous>, transform_indices = @transform_3, window_bounds = array<i64: 2048, 1024>}, {pipeline_mode = #tpu.pipeline_mode<synchronous>, transform_indices = @transform_4, window_bounds = array<i64: 1, 1024>}, {pipeline_mode = #tpu.pipeline_mode<synchronous>, transform_indices = @transform_5, window_bounds = array<i64: 1024, 1024>}, {pipeline_mode = #tpu.pipeline_mode<synchronous>, transform_indices = @transform_6, window_bounds = array<i64: 1, 1024>}, {pipeline_mode = #tpu.pipeline_mode<synchronous>, transform_indices = @transform_7, window_bounds = array<i64: 1, 1024>}, {pipeline_mode = #tpu.pipeline_mode<synchronous>, transform_indices = @transform_8, window_bounds = array<i64: 1, 1>}, {pipeline_mode = #tpu.pipeline_mode<synchronous>, transform_indices = @transform_9, window_bounds = array<i64: 1, 1>}]} {
    %c0_i32 = arith.constant 0 : i32
    %0 = arith.cmpi eq, %arg0, %c0_i32 : i32
    %1 = arith.extui %0 : i1 to i32
    %c0_i32_0 = arith.constant 0 : i32
    %2 = arith.cmpi ne, %1, %c0_i32_0 : i32
    scf.if %2 {
      %cst_29 = arith.constant 0.000000e+00 : f32
      %44 = vector.broadcast %cst_29 : f32 to vector<1x1024xf32>
      %c0_30 = arith.constant 0 : index
      %c0_31 = arith.constant 0 : index
      %45 = vector.load %arg11[%c0_30, %c0_31] : memref<1x1024xf32, #tpu.memory_space<vmem>>, vector<1x1024xf32>
      tpu.vector_store %arg11[%c0_30, %c0_31], %44 {strides = array<i32>} : memref<1x1024xf32, #tpu.memory_space<vmem>>, vector<1x1024xf32>,
    } else {
    }
    %c0 = arith.constant 0 : index
    %c0_1 = arith.constant 0 : index
    %3 = vector.load %arg1[%c0, %c0_1] : memref<8x128xbf16, #tpu.memory_space<vmem>>, vector<8x128xbf16>
    %c0_2 = arith.constant 0 : index
    %c0_3 = arith.constant 0 : index
    %4 = vector.load %arg2[%c0_2, %c0_3] : memref<128x2048xbf16, #tpu.memory_space<vmem>>, vector<128x2048xbf16>
    %cst = arith.constant dense<0.000000e+00> : vector<8x2048xf32>
    %5 = tpu.matmul %3, %4, %cst {dimension_numbers = #tpu.dot_dimension_numbers<[1], [0], [0], [1], [0, 0, 1, 1], [], []>} : vector<8x128xbf16>, vector<128x2048xbf16>, vector<8x2048xf32> -> vector<8x2048xf32>
    %c0_4 = arith.constant 0 : index
    %c0_5 = arith.constant 0 : index
    %6 = vector.load %arg3[%c0_4, %c0_5] : memref<1x2048xf32, #tpu.memory_space<vmem>>, vector<1x2048xf32>
    %7 = vector.broadcast %6 : vector<1x2048xf32> to vector<8x2048xf32>
    %8 = arith.addf %5, %7 : vector<8x2048xf32>
    %cst_6 = arith.constant 0.000000e+00 : f32
    %9 = vector.broadcast %cst_6 : f32 to vector<8x2048xf32>
    %10 = arith.cmpf ogt, %8, %9 : vector<8x2048xf32>
    %cst_7 = arith.constant 2.000000e-01 : f32
    %11 = vector.broadcast %cst_7 : f32 to vector<8x2048xf32>
    %12 = arith.mulf %11, %8 : vector<8x2048xf32>
    %13 = arith.select %10, %8, %12 : vector<8x2048xi1>, vector<8x2048xf32>
    %14 = arith.truncf %13 : vector<8x2048xf32> to vector<8x2048xbf16>
    %c0_8 = arith.constant 0 : index
    %c0_9 = arith.constant 0 : index
    %15 = vector.load %arg4[%c0_8, %c0_9] : memref<2048x1024xbf16, #tpu.memory_space<vmem>>, vector<2048x1024xbf16>
    %cst_10 = arith.constant dense<0.000000e+00> : vector<8x1024xf32>
    %16 = tpu.matmul %14, %15, %cst_10 {dimension_numbers = #tpu.dot_dimension_numbers<[1], [0], [0], [1], [0, 0, 1, 1], [], []>} : vector<8x2048xbf16>, vector<2048x1024xbf16>, vector<8x1024xf32> -> vector<8x1024xf32>
    %c0_11 = arith.constant 0 : index
    %c0_12 = arith.constant 0 : index
    %17 = vector.load %arg5[%c0_11, %c0_12] : memref<1x1024xf32, #tpu.memory_space<vmem>>, vector<1x1024xf32>
    %18 = vector.broadcast %17 : vector<1x1024xf32> to vector<8x1024xf32>
    %19 = arith.addf %16, %18 : vector<8x1024xf32>
    %cst_13 = arith.constant 0.000000e+00 : f32
    %20 = vector.broadcast %cst_13 : f32 to vector<8x1024xf32>
    %21 = arith.cmpf ogt, %19, %20 : vector<8x1024xf32>
    %cst_14 = arith.constant 2.000000e-01 : f32
    %22 = vector.broadcast %cst_14 : f32 to vector<8x1024xf32>
    %23 = arith.mulf %22, %19 : vector<8x1024xf32>
    %24 = arith.select %21, %19, %23 : vector<8x1024xi1>, vector<8x1024xf32>
    %25 = arith.truncf %24 : vector<8x1024xf32> to vector<8x1024xbf16>
    %c0_15 = arith.constant 0 : index
    %c0_16 = arith.constant 0 : index
    %26 = vector.load %arg6[%c0_15, %c0_16] : memref<1024x1024xbf16, #tpu.memory_space<vmem>>, vector<1024x1024xbf16>
    %cst_17 = arith.constant dense<0.000000e+00> : vector<8x1024xf32>
    %27 = tpu.matmul %25, %26, %cst_17 {dimension_numbers = #tpu.dot_dimension_numbers<[1], [0], [0], [1], [0, 0, 1, 1], [], []>} : vector<8x1024xbf16>, vector<1024x1024xbf16>, vector<8x1024xf32> -> vector<8x1024xf32>
    %c0_18 = arith.constant 0 : index
    %c0_19 = arith.constant 0 : index
    %28 = vector.load %arg7[%c0_18, %c0_19] : memref<1x1024xf32, #tpu.memory_space<vmem>>, vector<1x1024xf32>
    %29 = vector.broadcast %28 : vector<1x1024xf32> to vector<8x1024xf32>
    %30 = arith.addf %27, %29 : vector<8x1024xf32>
    %cst_20 = arith.constant 0.000000e+00 : f32
    %31 = vector.broadcast %cst_20 : f32 to vector<8x1024xf32>
    %32 = arith.cmpf ogt, %30, %31 : vector<8x1024xf32>
    %cst_21 = arith.constant 2.000000e-01 : f32
    %33 = vector.broadcast %cst_21 : f32 to vector<8x1024xf32>
    %34 = arith.mulf %33, %30 : vector<8x1024xf32>
    %35 = arith.select %32, %30, %34 : vector<8x1024xi1>, vector<8x1024xf32>
    %c0_22 = arith.constant 0 : index
    %c0_23 = arith.constant 0 : index
    %36 = vector.load %arg11[%c0_22, %c0_23] : memref<1x1024xf32, #tpu.memory_space<vmem>>, vector<1x1024xf32>
    %cst_24 = arith.constant dense<0.000000e+00> : vector<1024xf32>
    %37 = vector.multi_reduction <add>, %35, %cst_24 [0] : vector<8x1024xf32> to vector<1024xf32>
    %38 = vector.shape_cast %37 : vector<1024xf32> to vector<1x1024xf32>
    %39 = arith.addf %36, %38 : vector<1x1024xf32>
    %c0_25 = arith.constant 0 : index
    %c0_26 = arith.constant 0 : index
    %40 = vector.load %arg11[%c0_25, %c0_26] : memref<1x1024xf32, #tpu.memory_space<vmem>>, vector<1x1024xf32>
    tpu.vector_store %arg11[%c0_25, %c0_26], %39 {strides = array<i32>} : memref<1x1024xf32, #tpu.memory_space<vmem>>, vector<1x1024xf32>,
    %c0_i32_27 = arith.constant 0 : i32
    %41 = arith.cmpi eq, %arg0, %c0_i32_27 : i32
    %42 = arith.extui %41 : i1 to i32
    %c0_i32_28 = arith.constant 0 : i32
    %43 = arith.cmpi ne, %42, %c0_i32_28 : i32
    scf.if %43 {
      %c0_29 = arith.constant 0 : index
      %c0_30 = arith.constant 0 : index
      %44 = vector.load %arg11[%c0_29, %c0_30] : memref<1x1024xf32, #tpu.memory_space<vmem>>, vector<1x1024xf32>
      %cst_31 = arith.constant 1.250000e-01 : f32
      %45 = vector.broadcast %cst_31 : f32 to vector<1x1024xf32>
      %46 = arith.mulf %44, %45 : vector<1x1024xf32>
      %c0_32 = arith.constant 0 : index
      %c0_33 = arith.constant 0 : index
      %47 = vector.load %arg8[%c0_32, %c0_33] : memref<1x1024xbf16, #tpu.memory_space<vmem>>, vector<1x1024xbf16>
      %48 = arith.extf %47 : vector<1x1024xbf16> to vector<1x1024xf32>
      %49 = arith.mulf %46, %48 : vector<1x1024xf32>
      %cst_34 = arith.constant dense<0.000000e+00> : vector<1xf32>
      %50 = vector.multi_reduction <add>, %49, %cst_34 [1] : vector<1x1024xf32> to vector<1xf32>
      %51 = vector.shape_cast %50 : vector<1xf32> to vector<1x1xf32>
      %c0_35 = arith.constant 0 : index
      %c0_36 = arith.constant 0 : index
      %52 = vector.load %arg9[%c0_35, %c0_36] : memref<1x1xf32, #tpu.memory_space<vmem>>, vector<1x1xf32>
      %53 = arith.addf %51, %52 : vector<1x1xf32>
      %c0_37 = arith.constant 0 : index
      %c0_38 = arith.constant 0 : index
      %54 = vector.load %arg10[%c0_37, %c0_38] : memref<1x1xf32, #tpu.memory_space<vmem>>, vector<1x1xf32>
      tpu.vector_store %arg10[%c0_37, %c0_38], %53 {strides = array<i32>} : memref<1x1xf32, #tpu.memory_space<vmem>>, vector<1x1xf32>,
    } else {
    }
    return
  }
  func.func @transform_0(%arg0: i32) -> (i32, i32) {
    %c0_i32 = arith.constant 0 : i32
    %c0_i32_0 = arith.constant 0 : i32
    return %arg0, %c0_i32 : i32, i32
  }
  func.func @transform_1(%arg0: i32) -> (i32, i32) {
    %c0_i32 = arith.constant 0 : i32
    %c0_i32_0 = arith.constant 0 : i32
    %c0_i32_1 = arith.constant 0 : i32
    return %c0_i32, %c0_i32_0 : i32, i32
  }
  func.func @transform_2(%arg0: i32) -> (i32, i32) {
    %c0_i32 = arith.constant 0 : i32
    %c0_i32_0 = arith.constant 0 : i32
    %c0_i32_1 = arith.constant 0 : i32
    return %c0_i32, %c0_i32_0 : i32, i32
  }
  func.func @transform_3(%arg0: i32) -> (i32, i32) {
    %c0_i32 = arith.constant 0 : i32
    %c0_i32_0 = arith.constant 0 : i32
    %c0_i32_1 = arith.constant 0 : i32
    return %c0_i32, %c0_i32_0 : i32, i32
  }
  func.func @transform_4(%arg0: i32) -> (i32, i32) {
    %c0_i32 = arith.constant 0 : i32
    %c0_i32_0 = arith.constant 0 : i32
    %c0_i32_1 = arith.constant 0 : i32
    return %c0_i32, %c0_i32_0 : i32, i32
  }
  func.func @transform_5(%arg0: i32) -> (i32, i32) {
    %c0_i32 = arith.constant 0 : i32
    %c0_i32_0 = arith.constant 0 : i32
    %c0_i32_1 = arith.constant 0 : i32
    return %c0_i32, %c0_i32_0 : i32, i32
  }
  func.func @transform_6(%arg0: i32) -> (i32, i32) {
    %c0_i32 = arith.constant 0 : i32
    %c0_i32_0 = arith.constant 0 : i32
    %c0_i32_1 = arith.constant 0 : i32
    return %c0_i32, %c0_i32_0 : i32, i32
  }
  func.func @transform_7(%arg0: i32) -> (i32, i32) {
    %c0_i32 = arith.constant 0 : i32
    %c0_i32_0 = arith.constant 0 : i32
    %c0_i32_1 = arith.constant 0 : i32
    return %c0_i32, %c0_i32_0 : i32, i32
  }
  func.func @transform_8(%arg0: i32) -> (i32, i32) {
    %c0_i32 = arith.constant 0 : i32
    %c0_i32_0 = arith.constant 0 : i32
    %c0_i32_1 = arith.constant 0 : i32
    return %c0_i32, %c0_i32_0 : i32, i32
  }
  func.func @transform_9(%arg0: i32) -> (i32, i32) {
    %c0_i32 = arith.constant 0 : i32
    %c0_i32_0 = arith.constant 0 : i32
    %c0_i32_1 = arith.constant 0 : i32
    return %c0_i32, %c0_i32_0 : i32, i32
  }
}

</mosaic_0001>

<bundles_post_ra>
// kernel: tpu_custom_call.1
= control target key start
LH: loop header
LB: loop body
LE: loop exit
PB: predicated region body
PF: predicated region fallthrough
CT: control target
= control target key end

     0   :  { %s15569_s0 = inlined_call_operand.hbm [shape: bf16[8,128], index: 0, kind: input, shape index: {}]   ;;  %s15570_s1 = inlined_call_operand.hbm [shape: bf16[128,2048], index: 1, kind: input, shape index: {}]   ;;  %s15571_s2 = inlined_call_operand.hbm [shape: f32[1,2048], index: 2, kind: input, shape index: {}]   ;;  %s15572_s3 = inlined_call_operand.hbm [shape: bf16[2048,1024], index: 3, kind: input, shape index: {}]   ;;  %s15573_s4 = inlined_call_operand.hbm [shape: f32[1,1024], index: 4, kind: input, shape index: {}]   ;;  %s15574_s5 = inlined_call_operand.hbm [shape: bf16[1024,1024], index: 5, kind: input, shape index: {}]   ;;  %s15575_s6 = inlined_call_operand.hbm [shape: f32[1,1024], index: 6, kind: input, shape index: {}]   ;;  %s15576_s7 = inlined_call_operand.hbm [shape: bf16[1,1024], index: 7, kind: input, shape index: {}]   ;;  %s15577_s8 = inlined_call_operand.<no memory space> [shape: f32[1,1], index: 8, kind: input, shape index: {}]   ;;  %s15578_s9 = inlined_call_operand.hbm [shape: f32[1,1], index: 9, kind: output, shape index: {}]  }
   0x1   :  { %v14_v0 = vstv %s15577_s8 }
   0x2   :  { %15 = vst [vmem:[#allocation3] sm:$0x1] %v14_v0 }
   0x3   :  { %16 = vsyncpa [#allocation5], 0 }
   0x4   :  { %17 = vsyncpa [#allocation8], 0 }
   0x5   :  { %18 = vsyncpa [#allocation11], 0 }
   0x6   :  { %19 = vsyncpa [#allocation14], 0 }
   0x7   :  { %20 = vsyncpa [#allocation17], 0 }
   0x8   :  { %21 = vsyncpa [#allocation6], 0  ;;  %s14995_s11 = smov [#allocation7]   ;;  %s14785_s15 = scalar_lea.hbm %s15570_s1, 16384 }
   0x9   :  { %s37_s12 = sshll.u32 %s14995_s11, 4  ;;  %p14786_p0 = scmp.ne.s32.totalorder %s15570_s1, %s14785_s15  ;;  %s38_s12 = int_to_ptr.vmem [resolvable:$true] %s37_s12 }
   0xa   :  { %p14789_p1 = scmp.lt.u32.totalorder %s14785_s15, %s15570_s1 }
   0xc   :  { %p14791_p2 = pnand %p14789_p1, %p14786_p0 }
   0xe   :  { %14794 = shalt.err (!%p14791_p2)
}
   0xf   :  { %s14795_s19 = scalar_lea.vmem %s38_s12, 16384  ;;  %p14800_p4 = scmp.lt.s32.totalorder %s38_s12, %s38_s12 }
  0x10   :  { %p14796_p3 = scmp.ne.s32.totalorder %s38_s12, %s14795_s19  ;;  %p14801_p5 = scmp.lt.s32.totalorder %s14795_s19, %s14795_s19 }
  0x12   :  { %p14802_p6 = por %p14801_p5, %p14800_p4 }
  0x14   :  { %p14803_p7 = pnand %p14802_p6, %p14796_p3 }
  0x16   :  { %14806 = shalt.err (!%p14803_p7)
}
  0x17   :  { %s14996_s20 = smov 1024   ;;  %s14997_s21 = smov 64  }
  0x18   :  { %43 = dma.hbm_to_vmem [thread:$0]  %s15570_s1, 16384, %s38_s12, [#allocation8], %s14996_s20, %s14996_s20, %s14997_s21  }
  0x19   :  { %s14998_s24 = smov [#allocation10]   ;;  %s14807_s28 = scalar_lea.hbm %s15572_s3, 131072 }
  0x1a   :  { %s59_s25 = sshll.u32 %s14998_s24, 4  ;;  %p14808_p8 = scmp.ne.s32.totalorder %s15572_s3, %s14807_s28  ;;  %s60_s25 = int_to_ptr.vmem [resolvable:$true] %s59_s25 }
  0x1b   :  { %p14811_p9 = scmp.lt.u32.totalorder %s14807_s28, %s15572_s3 }
  0x1d   :  { %p14813_p10 = pnand %p14811_p9, %p14808_p8 }
  0x1f   :  { %14816 = shalt.err (!%p14813_p10)
}
  0x20   :  { %s14817_s13 = scalar_lea.vmem %s60_s25, 131072  ;;  %p14822_p12 = scmp.lt.s32.totalorder %s60_s25, %s60_s25 }
  0x21   :  { %p14818_p11 = scmp.ne.s32.totalorder %s60_s25, %s14817_s13  ;;  %p14823_p13 = scmp.lt.s32.totalorder %s14817_s13, %s14817_s13 }
  0x23   :  { %p14824_p0 = por %p14823_p13, %p14822_p12 }
  0x25   :  { %p14825_p1 = pnand %p14824_p0, %p14818_p11 }
  0x27   :  { %14828 = shalt.err (!%p14825_p1)
}
  0x28   :  { %s14999_s1 = smov 512   ;;  %s15000_s12 = smov 32  }
  0x29   :  { %65 = dma.hbm_to_vmem [thread:$0]  %s15572_s3, 131072, %s60_s25, [#allocation11], %s14999_s1, %s14999_s1, %s15000_s12  }
  0x2a   :  { %s15001_s16 = smov [#allocation13]   ;;  %s15002_s18 = smov [#allocation4]  }
  0x2b   :  { %s81_s17 = sshll.u32 %s15001_s16, 4  ;;  %s28_s8 = sshll.u32 %s15002_s18, 4  ;;  %s82_s17 = int_to_ptr.vmem [resolvable:$true] %s81_s17  ;;  %s29_s8 = int_to_ptr.vmem [resolvable:$true] %s28_s8 }
  0x2c   :  { %s14829_s21 = scalar_lea.hbm %s15574_s5, 65536 }
  0x2d   :  { %p14830_p2 = scmp.ne.s32.totalorder %s15574_s5, %s14829_s21  ;;  %p14833_p3 = scmp.lt.u32.totalorder %s14829_s21, %s15574_s5 }
  0x2f   :  { %p14835_p4 = pnand %p14833_p3, %p14830_p2 }
  0x31   :  { %14838 = shalt.err (!%p14835_p4)
}
  0x32   :  { %s14839_s3 = scalar_lea.vmem %s82_s17, 65536  ;;  %p14844_p6 = scmp.lt.s32.totalorder %s82_s17, %s82_s17 }
  0x33   :  { %p14840_p5 = scmp.ne.s32.totalorder %s82_s17, %s14839_s3  ;;  %p14845_p7 = scmp.lt.s32.totalorder %s14839_s3, %s14839_s3 }
  0x35   :  { %p14846_p8 = por %p14845_p7, %p14844_p6 }
  0x37   :  { %p14847_p9 = pnand %p14846_p8, %p14840_p5 }
  0x39   :  { %14850 = shalt.err (!%p14847_p9)
}
  0x3a   :  { %87 = dma.hbm_to_vmem [thread:$0]  %s15574_s5, 65536, %s82_s17, [#allocation14], %s14999_s1, %s14999_s1, %s15000_s12  }
  0x3b   :  { %s14851_s30 = scalar_lea.hbm %s15569_s0, 64 }
  0x3c   :  { %p14852_p10 = scmp.ne.s32.totalorder %s15569_s0, %s14851_s30  ;;  %p14855_p11 = scmp.lt.u32.totalorder %s14851_s30, %s15569_s0 }
  0x3e   :  { %p14857_p12 = pnand %p14855_p11, %p14852_p10 }
  0x40   :  { %14860 = shalt.err (!%p14857_p12)
}
  0x41   :  { %s14861_s15 = scalar_lea.vmem %s29_s8, 64  ;;  %p14866_p0 = scmp.lt.s32.totalorder %s29_s8, %s29_s8 }
  0x42   :  { %p14862_p13 = scmp.ne.s32.totalorder %s29_s8, %s14861_s15  ;;  %p14867_p1 = scmp.lt.s32.totalorder %s14861_s15, %s14861_s15 }
  0x44   :  { %p14868_p2 = por %p14867_p1, %p14866_p0 }
  0x46   :  { %p14869_p3 = pnand %p14868_p2, %p14862_p13 }
  0x48   :  { %14872 = shalt.err (!%p14869_p3)
}
  0x49   :  { %31 = dma.hbm_to_vmem [thread:$0]  %s15569_s0, 64, %s29_s8, [#allocation5]  }
  0x4a   :  { %s15003_s12 = smov [#allocation9]   ;;  %s15004_s17 = smov [#allocation12]  }
  0x4b   :  { %s50_s16 = sshll.u32 %s15003_s12, 4  ;;  %s72_s18 = sshll.u32 %s15004_s17, 4  ;;  %s51_s16 = int_to_ptr.vmem [resolvable:$true] %s50_s16  ;;  %s73_s18 = int_to_ptr.vmem [resolvable:$true] %s72_s18 }
  0x4c   :  { %s14873_s21 = scalar_lea.hbm %s15571_s2, 256 }
  0x4d   :  { %p14874_p4 = scmp.ne.s32.totalorder %s15571_s2, %s14873_s21  ;;  %p14877_p5 = scmp.lt.u32.totalorder %s14873_s21, %s15571_s2 }
  0x4f   :  { %p14879_p6 = pnand %p14877_p5, %p14874_p4 }
  0x51   :  { %14882 = shalt.err (!%p14879_p6)
}
  0x52   :  { %s14883_s0 = scalar_lea.vmem %s51_s16, 256  ;;  %p14888_p8 = scmp.lt.s32.totalorder %s51_s16, %s51_s16 }
  0x53   :  { %p14884_p7 = scmp.ne.s32.totalorder %s51_s16, %s14883_s0  ;;  %p14889_p9 = scmp.lt.s32.totalorder %s14883_s0, %s14883_s0 }
  0x55   :  { %p14890_p10 = por %p14889_p9, %p14888_p8 }
  0x57   :  { %p14891_p11 = pnand %p14890_p10, %p14884_p7 }
  0x59   :  { %14894 = shalt.err (!%p14891_p11)
}
  0x5a   :  { %53 = dma.hbm_to_vmem [thread:$0]  %s15571_s2, 256, %s51_s16, [#allocation8]  }
  0x5b   :  { %s14895_s28 = scalar_lea.hbm %s15573_s4, 128 }
  0x5c   :  { %p14896_p12 = scmp.ne.s32.totalorder %s15573_s4, %s14895_s28  ;;  %p14899_p13 = scmp.lt.u32.totalorder %s14895_s28, %s15573_s4 }
  0x5e   :  { %p14901_p0 = pnand %p14899_p13, %p14896_p12 }
  0x60   :  { %14904 = shalt.err (!%p14901_p0)
}
  0x61   :  { %s14905_s13 = scalar_lea.vmem %s73_s18, 128  ;;  %p14910_p2 = scmp.lt.s32.totalorder %s73_s18, %s73_s18 }
  0x62   :  { %p14906_p1 = scmp.ne.s32.totalorder %s73_s18, %s14905_s13  ;;  %p14911_p3 = scmp.lt.s32.totalorder %s14905_s13, %s14905_s13 }
  0x64   :  { %p14912_p4 = por %p14911_p3, %p14910_p2 }
  0x66   :  { %p14913_p5 = pnand %p14912_p4, %p14906_p1 }
  0x68   :  { %14916 = shalt.err (!%p14913_p5)
}
  0x69   :  { %75 = dma.hbm_to_vmem [thread:$0]  %s15573_s4, 128, %s73_s18, [#allocation11]  }
  0x6a   :  { %s15005_s15 = smov [#allocation15]   ;;  %s15006_s1 = smov [#allocation16]  }
  0x6b   :  { %s94_s5 = sshll.u32 %s15005_s15, 4  ;;  %s104_s12 = sshll.u32 %s15006_s1, 4  ;;  %s95_s5 = int_to_ptr.vmem [resolvable:$true] %s94_s5  ;;  %s105_s12 = int_to_ptr.vmem [resolvable:$true] %s104_s12 }
  0x6c   :  { %s14917_s19 = scalar_lea.hbm %s15575_s6, 128 }
  0x6d   :  { %p14918_p6 = scmp.ne.s32.totalorder %s15575_s6, %s14917_s19  ;;  %p14921_p7 = scmp.lt.u32.totalorder %s14917_s19, %s15575_s6 }
  0x6f   :  { %p14923_p8 = pnand %p14921_p7, %p14918_p6 }
  0x71   :  { %14926 = shalt.err (!%p14923_p8)
}
  0x72   :  { %s14927_s4 = scalar_lea.vmem %s95_s5, 128  ;;  %p14932_p10 = scmp.lt.s32.totalorder %s95_s5, %s95_s5 }
  0x73   :  { %p14928_p9 = scmp.ne.s32.totalorder %s95_s5, %s14927_s4  ;;  %p14933_p11 = scmp.lt.s32.totalorder %s14927_s4, %s14927_s4 }
  0x75   :  { %p14934_p12 = por %p14933_p11, %p14932_p10 }
  0x77   :  { %p14935_p13 = pnand %p14934_p12, %p14928_p9 }
  0x79   :  { %14938 = shalt.err (!%p14935_p13)
}
  0x7a   :  { %97 = dma.hbm_to_vmem [thread:$0]  %s15575_s6, 128, %s95_s5, [#allocation14]  }
  0x7b   :  { %s14939_s8 = scalar_lea.hbm %s15576_s7, 128 }
  0x7c   :  { %p14940_p0 = scmp.ne.s32.totalorder %s15576_s7, %s14939_s8  ;;  %p14943_p1 = scmp.lt.u32.totalorder %s14939_s8, %s15576_s7 }
  0x7e   :  { %p14945_p2 = pnand %p14943_p1, %p14940_p0 }
  0x80   :  { %14948 = shalt.err (!%p14945_p2)
}
  0x81   :  { %s14949_s29 = scalar_lea.vmem %s105_s12, 128  ;;  %p14954_p4 = scmp.lt.s32.totalorder %s105_s12, %s105_s12 }
  0x82   :  { %p14950_p3 = scmp.ne.s32.totalorder %s105_s12, %s14949_s29  ;;  %p14955_p5 = scmp.lt.s32.totalorder %s14949_s29, %s14949_s29 }
  0x84   :  { %p14956_p6 = por %p14955_p5, %p14954_p4 }
  0x86   :  { %p14957_p7 = pnand %p14956_p6, %p14950_p3 }
  0x88   :  { %14960 = shalt.err (!%p14957_p7)
}
  0x89   :  { %107 = dma.hbm_to_vmem [thread:$0]  %s15576_s7, 128, %s105_s12, [#allocation17]  }
  0x8a   :  { %14983 = dma.done.wait [#allocation5], 64  }
  0x8b   :  { %14984 = vsyncadd [#allocation5], 4294967232 }
  0x8c   :  { %14985 = dma.done.wait [#allocation8], 16640  }
  0x8d   :  { %14986 = vsyncadd [#allocation8], 4294950656 }
  0x8e   :  { %14987 = dma.done.wait [#allocation11], 131200  }
  0x8f   :  { %14988 = vsyncadd [#allocation11], 4294836096 }
  0x90   :  { %14989 = dma.done.wait [#allocation14], 65664  }
  0x91   :  { %14990 = vsyncadd [#allocation14], 4294901632 }
  0x92   :  { %14991 = dma.done.wait [#allocation17], 128  }
  0x93   :  { %14992 = vsyncadd [#allocation17], 4294967168  ;;  %v15007_v1 = vmov 0   ;;  %v141_v2 = vld [vmem:[#allocation7] sm:$0xff]  ;;  %v142_v15 = vld [vmem:[#allocation7 + $0x8] sm:$0xff]  ;;  %s15009_s7 = smov [#allocation18]  }
  0x94   :  { %1025 = vmatprep.mubr.bf16.mxu0 %v15007_v1  ;;  %1066 = vmatprep.mubr.bf16.mxu1 %v15007_v1  ;;  %v149_v3 = vld [vmem:[#allocation7 + $0x40] sm:$0xff]  ;;  %v150_v16 = vld [vmem:[#allocation7 + $0x48] sm:$0xff]  ;;  %v143_v59 = vld [vmem:[#allocation7 + $0x10] sm:$0xff]  ;;  %s12914_s10 = sshll.u32 %s15009_s7, 4  ;;  %s12915_s10 = int_to_ptr.vmem [resolvable:$true] %s12914_s10 }
  0x95   :  { %v157_v4 = vld [vmem:[#allocation7 + $0x80] sm:$0xff]  ;;  %v12928_v5 = vcombine.high %v141_v2, %v149_v3  ;;  %v12927_v6 = vcombine.low %v141_v2, %v149_v3  ;;  %v158_v17 = vld [vmem:[#allocation7 + $0x88] sm:$0xff]  ;;  %v12930_v19 = vcombine.high %v142_v15, %v150_v16  ;;  %v12929_v20 = vcombine.low %v142_v15, %v150_v16  ;;  %v151_v60 = vld [vmem:[#allocation7 + $0x50] sm:$0xff]  ;;  %s14961_s11 = scalar_lea.vmem %s12915_s10, 16  ;;  %s14965_s13 = scalar_lea.vmem %s12915_s10, 32 }
  0x96   :  { %v165_v7 = vld [vmem:[#allocation7 + $0xc0] sm:$0xff]  ;;  %v166_v18 = vld [vmem:[#allocation7 + $0xc8] sm:$0xff]  ;;  %v12932_v2 = vcombine.high %v143_v59, %v151_v60  ;;  %p14962_p8 = scmp.ne.s32.totalorder %s12915_s10, %s14961_s11  ;;  %p14966_p9 = scmp.lt.s32.totalorder %s12915_s10, %s12915_s10 }
  0x97   :  { %v12944_v8 = vcombine.high %v157_v4, %v165_v7  ;;  %v173_v9 = vld [vmem:[#allocation7 + $0x100] sm:$0xff]  ;;  %993 = vmatprep.subr.bf16.mxu0 %v12928_v5  ;;  %v12943_v11 = vcombine.low %v157_v4, %v165_v7  ;;  %v12946_v21 = vcombine.high %v158_v17, %v166_v18  ;;  %v174_v23 = vld [vmem:[#allocation7 + $0x108] sm:$0xff]  ;;  %1034 = vmatprep.subr.bf16.mxu1 %v12930_v19  ;;  %v159_v4 = vld [vmem:[#allocation7 + $0x90] sm:$0xff]  ;;  %p14967_p10 = scmp.lt.s32.totalorder %s14965_s13, %s14961_s11 }
  0x98   :  { %v181_v10 = vld [vmem:[#allocation7 + $0x140] sm:$0xff]  ;;  %994 = vmatpush1.bf16.msra.mxu0 %v12927_v6  ;;  %v182_v24 = vld [vmem:[#allocation7 + $0x148] sm:$0xff]  ;;  %1035 = vmatpush1.bf16.msra.mxu1 %v12929_v20  ;;  %v12945_v28 = vcombine.low %v158_v17, %v166_v18  ;;  %v167_v5 = vld [vmem:[#allocation7 + $0xd0] sm:$0xff] }
  0x99   :  { %995 = vmatprep.subr.bf16.mxu0 %v12944_v8  ;;  %v12960_v12 = vcombine.high %v173_v9, %v181_v10  ;;  %v189_v13 = vld [vmem:[#allocation7 + $0x180] sm:$0xff]  ;;  %v12959_v22 = vcombine.low %v173_v9, %v181_v10  ;;  %1036 = vmatprep.subr.bf16.mxu1 %v12946_v21  ;;  %v12962_v29 = vcombine.high %v174_v23, %v182_v24  ;;  %v190_v31 = vld [vmem:[#allocation7 + $0x188] sm:$0xff]  ;;  %v15161_v7 = vld [vmem:[#allocation4] sm:$0xf]  ;;  %p14968_p11 = por %p14967_p10, %p14966_p9 }
  0x9a   :  { %v197_v14 = vld [vmem:[#allocation7 + $0x1c0] sm:$0xff]  ;;  %v198_v32 = vld [vmem:[#allocation7 + $0x1c8] sm:$0xff]  ;;  %v12961_v36 = vcombine.low %v174_v23, %v182_v24  ;;  %v12931_v8 = vcombine.low %v143_v59, %v151_v60  ;;  %v144_v9 = vld [vmem:[#allocation7 + $0x18] sm:$0xff]  ;;  %v12947_v16 = vcombine.low %v159_v4, %v167_v5 }
  0x9b   :  { %v12976_v25 = vcombine.high %v189_v13, %v197_v14  ;;  %v205_v26 = vld [vmem:[#allocation7 + $0x200] sm:$0xff]  ;;  %v12975_v30 = vcombine.low %v189_v13, %v197_v14  ;;  %v12978_v37 = vcombine.high %v190_v31, %v198_v32  ;;  %v206_v39 = vld [vmem:[#allocation7 + $0x208] sm:$0xff]  ;;  %v12977_v44 = vcombine.low %v190_v31, %v198_v32  ;;  %v152_v10 = vld [vmem:[#allocation7 + $0x58] sm:$0xff]  ;;  %p14969_p12 = pnand %p14968_p11, %p14962_p8 }
  0x9c   :  { %996 = vmatpush1.bf16.msra.mxu0 %v12943_v11  ;;  %v213_v27 = vld [vmem:[#allocation7 + $0x240] sm:$0xff]  ;;  %1037 = vmatpush1.bf16.msra.mxu1 %v12945_v28  ;;  %v214_v40 = vld [vmem:[#allocation7 + $0x248] sm:$0xff]  ;;  %v12948_v11 = vcombine.high %v159_v4, %v167_v5  ;;  %v175_v13 = vld [vmem:[#allocation7 + $0x110] sm:$0xff]  ;;  %v12934_v15 = vcombine.high %v144_v9, %v152_v10  ;;  %v12933_v20 = vcombine.low %v144_v9, %v152_v10 }
  0x9d   :  { %997 = vmatprep.subr.bf16.mxu0 %v12960_v12  ;;  %v12992_v33 = vcombine.high %v205_v26, %v213_v27  ;;  %v221_v34 = vld [vmem:[#allocation7 + $0x280] sm:$0xff]  ;;  %1038 = vmatprep.subr.bf16.mxu1 %v12962_v29  ;;  %v12991_v38 = vcombine.low %v205_v26, %v213_v27  ;;  %v12994_v45 = vcombine.high %v206_v39, %v214_v40  ;;  %v222_v47 = vld [vmem:[#allocation7 + $0x288] sm:$0xff]  ;;  %v183_v14 = vld [vmem:[#allocation7 + $0x150] sm:$0xff] }
  0x9e   :  { %v229_v35 = vld [vmem:[#allocation7 + $0x2c0] sm:$0xff]  ;;  %v230_v48 = vld [vmem:[#allocation7 + $0x2c8] sm:$0xff]  ;;  %v12993_v52 = vcombine.low %v206_v39, %v214_v40  ;;  %v160_v17 = vld [vmem:[#allocation7 + $0x98] sm:$0xff]  ;;  %v12964_v19 = vcombine.high %v175_v13, %v183_v14  ;;  %v12963_v24 = vcombine.low %v175_v13, %v183_v14 }
  0x9f   :  { %v13008_v41 = vcombine.high %v221_v34, %v229_v35  ;;  %v237_v42 = vld [vmem:[#allocation7 + $0x300] sm:$0xff]  ;;  %v13007_v46 = vcombine.low %v221_v34, %v229_v35  ;;  %v13010_v53 = vcombine.high %v222_v47, %v230_v48  ;;  %v238_v55 = vld [vmem:[#allocation7 + $0x308] sm:$0xff]  ;;  %v13009_v58 = vcombine.low %v222_v47, %v230_v48  ;;  %v168_v18 = vld [vmem:[#allocation7 + $0xd8] sm:$0xff] }
  0xa0   :  { %998 = vmatpush1.bf16.msra.mxu0 %v12959_v22  ;;  %v245_v43 = vld [vmem:[#allocation7 + $0x340] sm:$0xff]  ;;  %1039 = vmatpush1.bf16.msra.mxu1 %v12961_v36  ;;  %v246_v56 = vld [vmem:[#allocation7 + $0x348] sm:$0xff]  ;;  %v191_v21 = vld [vmem:[#allocation7 + $0x190] sm:$0xff]  ;;  %v12950_v23 = vcombine.high %v160_v17, %v168_v18  ;;  %v12949_v28 = vcombine.low %v160_v17, %v168_v18 }
  0xa1   :  { %999 = vmatprep.subr.bf16.mxu0 %v12976_v25  ;;  %1040 = vmatprep.subr.bf16.mxu1 %v12978_v37  ;;  %v13024_v49 = vcombine.high %v237_v42, %v245_v43  ;;  %v253_v50 = vld [vmem:[#allocation7 + $0x380] sm:$0xff]  ;;  %v13023_v54 = vcombine.low %v237_v42, %v245_v43  ;;  %v13026_v61 = vcombine.high %v238_v55, %v246_v56  ;;  %v254_v63 = vld [vmem:[#allocation7 + $0x388] sm:$0xff]  ;;  %v199_v22 = vld [vmem:[#allocation7 + $0x1d0] sm:$0xff] }
  0xa2   :  { %v261_v51 = vld [vmem:[#allocation7 + $0x3c0] sm:$0xff]  ;;  %v262_v0 = vld [vmem:[#allocation7 + $0x3c8] sm:$0xff]  ;;  %v13025_v3 = vcombine.low %v238_v55, %v246_v56  ;;  %v176_v25 = vld [vmem:[#allocation7 + $0x118] sm:$0xff]  ;;  %v12980_v27 = vcombine.high %v191_v21, %v199_v22  ;;  %v12979_v32 = vcombine.low %v191_v21, %v199_v22 }
  0xa3   :  { %v13040_v57 = vcombine.high %v253_v50, %v261_v51  ;;  %v13039_v62 = vcombine.low %v253_v50, %v261_v51  ;;  %v13042_v6 = vcombine.high %v254_v63, %v262_v0  ;;  %v13041_v12 = vcombine.low %v254_v63, %v262_v0  ;;  %v184_v26 = vld [vmem:[#allocation7 + $0x158] sm:$0xff]  ;;  %v207_v29 = vld [vmem:[#allocation7 + $0x210] sm:$0xff] }
  0xa4   :  { %1000 = vmatpush1.bf16.msra.mxu0 %v12975_v30  ;;  %1041 = vmatpush1.bf16.msra.mxu1 %v12977_v44  ;;  %v215_v30 = vld [vmem:[#allocation7 + $0x250] sm:$0xff]  ;;  %v12966_v31 = vcombine.high %v176_v25, %v184_v26  ;;  %v200_v34 = vld [vmem:[#allocation7 + $0x1d8] sm:$0xff]  ;;  %v12965_v36 = vcombine.low %v176_v25, %v184_v26 }
  0xa5   :  { %1001 = vmatprep.subr.bf16.mxu0 %v12992_v33  ;;  %1042 = vmatprep.subr.bf16.mxu1 %v12994_v45  ;;  %v192_v33 = vld [vmem:[#allocation7 + $0x198] sm:$0xff]  ;;  %v12996_v35 = vcombine.high %v207_v29, %v215_v30  ;;  %v223_v37 = vld [vmem:[#allocation7 + $0x290] sm:$0xff]  ;;  %v12995_v40 = vcombine.low %v207_v29, %v215_v30 }
  0xa6   :  { %v12982_v39 = vcombine.high %v192_v33, %v200_v34  ;;  %v216_v42 = vld [vmem:[#allocation7 + $0x258] sm:$0xff]  ;;  %v12981_v44 = vcombine.low %v192_v33, %v200_v34  ;;  %v239_v45 = vld [vmem:[#allocation7 + $0x310] sm:$0xff] }
  0xa7   :  { %v232_v50 = vld [vmem:[#allocation7 + $0x2d8] sm:$0xff] }
  0xa8   :  { %1002 = vmatpush1.bf16.msra.mxu0 %v12991_v38  ;;  %1043 = vmatpush1.bf16.msra.mxu1 %v12993_v52  ;;  %v231_v38 = vld [vmem:[#allocation7 + $0x2d0] sm:$0xff] }
  0xa9   :  { %1003 = vmatprep.subr.bf16.mxu0 %v13008_v41  ;;  %1044 = vmatprep.subr.bf16.mxu1 %v13010_v53  ;;  %v208_v41 = vld [vmem:[#allocation7 + $0x218] sm:$0xff]  ;;  %v13012_v43 = vcombine.high %v223_v37, %v231_v38  ;;  %v13011_v48 = vcombine.low %v223_v37, %v231_v38  ;;  %v255_v53 = vld [vmem:[#allocation7 + $0x390] sm:$0xff] }
  0xaa   :  { %v12998_v47 = vcombine.high %v208_v41, %v216_v42  ;;  %v12997_v52 = vcombine.low %v208_v41, %v216_v42 }
  0xac   :  { %1004 = vmatpush1.bf16.msra.mxu0 %v13007_v46  ;;  %1045 = vmatpush1.bf16.msra.mxu1 %v13009_v58  ;;  %v247_v46 = vld [vmem:[#allocation7 + $0x350] sm:$0xff]  ;;  %v248_v58 = vld [vmem:[#allocation7 + $0x358] sm:$0xff] }
  0xad   :  { %1005 = vmatprep.subr.bf16.mxu0 %v13024_v49  ;;  %1046 = vmatprep.subr.bf16.mxu1 %v13026_v61  ;;  %v224_v49 = vld [vmem:[#allocation7 + $0x298] sm:$0xff]  ;;  %v13028_v51 = vcombine.high %v239_v45, %v247_v46  ;;  %v13027_v56 = vcombine.low %v239_v45, %v247_v46  ;;  %v145_v61 = vld [vmem:[#allocation7 + $0x20] sm:$0xff] }
  0xae   :  { %v13014_v55 = vcombine.high %v224_v49, %v232_v50  ;;  %v13013_v60 = vcombine.low %v224_v49, %v232_v50 }
  0xb0   :  { %1006 = vmatpush1.bf16.msra.mxu0 %v13023_v54  ;;  %1047 = vmatpush1.bf16.msra.mxu1 %v13025_v3  ;;  %v263_v54 = vld [vmem:[#allocation7 + $0x3d0] sm:$0xff]  ;;  %v264_v3 = vld [vmem:[#allocation7 + $0x3d8] sm:$0xff] }
  0xb1   :  { %1007 = vmatprep.subr.bf16.mxu0 %v13040_v57  ;;  %1048 = vmatprep.subr.bf16.mxu1 %v13042_v6  ;;  %v240_v57 = vld [vmem:[#allocation7 + $0x318] sm:$0xff]  ;;  %v13044_v59 = vcombine.high %v255_v53, %v263_v54  ;;  %v13043_v0 = vcombine.low %v255_v53, %v263_v54  ;;  %v161_v6 = vld [vmem:[#allocation7 + $0xa0] sm:$0xff] }
  0xb2   :  { %v13030_v63 = vcombine.high %v240_v57, %v248_v58  ;;  %v13029_v5 = vcombine.low %v240_v57, %v248_v58 }
  0xb4   :  { %1008 = vmatpush1.bf16.msra.mxu0 %v13039_v62  ;;  %1049 = vmatpush1.bf16.msra.mxu1 %v13041_v12  ;;  %v153_v62 = vld [vmem:[#allocation7 + $0x60] sm:$0xff]  ;;  %v154_v12 = vld [vmem:[#allocation7 + $0x68] sm:$0xff] }
  0xb5   :  { %1075 = vmatprep.subr.bf16.mxu0 %v12932_v2  ;;  %1116 = vmatprep.subr.bf16.mxu1 %v12934_v15  ;;  %v256_v2 = vld [vmem:[#allocation7 + $0x398] sm:$0xff]  ;;  %v12936_v4 = vcombine.high %v145_v61, %v153_v62  ;;  %v12935_v10 = vcombine.low %v145_v61, %v153_v62  ;;  %v177_v15 = vld [vmem:[#allocation7 + $0x120] sm:$0xff] }
  0xb6   :  { %v13046_v9 = vcombine.high %v256_v2, %v264_v3  ;;  %v13045_v14 = vcombine.low %v256_v2, %v264_v3 }
  0xb7   :  { %1026 = vmatmul.mubr.bf16.vlgmr.msra.gmra.mrb[0].mxu0 %v15161_v7  ;;  %1067 = vmatmul.mubr.bf16.vlgmr.msra.gmra.mrb[0].mxu1 %v15161_v7 }
  0xb8   :  { %1076 = vmatpush1.bf16.msra.mxu0 %v12931_v8  ;;  %1107 = vmatprep.mubr.bf16.mxu0 %v15007_v1  ;;  %v169_v8 = vld [vmem:[#allocation7 + $0xe0] sm:$0xff] }
  0xb9   :  { %1077 = vmatprep.subr.bf16.mxu0 %v12948_v11  ;;  %1117 = vmatpush1.bf16.msra.mxu1 %v12933_v20  ;;  %v146_v11 = vld [vmem:[#allocation7 + $0x28] sm:$0xff]  ;;  %v12952_v13 = vcombine.high %v161_v6, %v169_v8  ;;  %v12951_v18 = vcombine.low %v161_v6, %v169_v8 }
  0xba   :  { %1148 = vmatprep.mubr.bf16.mxu1 %v15007_v1  ;;  %1118 = vmatprep.subr.bf16.mxu1 %v12950_v23  ;;  %v12938_v17 = vcombine.high %v146_v11, %v154_v12  ;;  %v170_v20 = vld [vmem:[#allocation7 + $0xe8] sm:$0xff]  ;;  %v12937_v22 = vcombine.low %v146_v11, %v154_v12  ;;  %v193_v23 = vld [vmem:[#allocation7 + $0x1a0] sm:$0xff] }
  0xbc   :  { %1078 = vmatpush1.bf16.msra.mxu0 %v12947_v16  ;;  %v185_v16 = vld [vmem:[#allocation7 + $0x160] sm:$0xff] }
  0xbd   :  { %1079 = vmatprep.subr.bf16.mxu0 %v12964_v19  ;;  %1119 = vmatpush1.bf16.msra.mxu1 %v12949_v28  ;;  %v162_v19 = vld [vmem:[#allocation7 + $0xa8] sm:$0xff]  ;;  %v12968_v21 = vcombine.high %v177_v15, %v185_v16  ;;  %v12967_v26 = vcombine.low %v177_v15, %v185_v16 }
  0xbe   :  { %1120 = vmatprep.subr.bf16.mxu1 %v12966_v31  ;;  %v12954_v25 = vcombine.high %v162_v19, %v170_v20  ;;  %v186_v28 = vld [vmem:[#allocation7 + $0x168] sm:$0xff]  ;;  %v12953_v30 = vcombine.low %v162_v19, %v170_v20  ;;  %v209_v31 = vld [vmem:[#allocation7 + $0x220] sm:$0xff] }
  0xc0   :  { %1080 = vmatpush1.bf16.msra.mxu0 %v12963_v24  ;;  %v201_v24 = vld [vmem:[#allocation7 + $0x1e0] sm:$0xff] }
  0xc1   :  { %1081 = vmatprep.subr.bf16.mxu0 %v12980_v27  ;;  %1121 = vmatpush1.bf16.msra.mxu1 %v12965_v36  ;;  %v178_v27 = vld [vmem:[#allocation7 + $0x128] sm:$0xff]  ;;  %v12984_v29 = vcombine.high %v193_v23, %v201_v24  ;;  %v12983_v34 = vcombine.low %v193_v23, %v201_v24 }
  0xc2   :  { %1122 = vmatprep.subr.bf16.mxu1 %v12982_v39  ;;  %v12970_v33 = vcombine.high %v178_v27, %v186_v28  ;;  %v202_v36 = vld [vmem:[#allocation7 + $0x1e8] sm:$0xff]  ;;  %v12969_v38 = vcombine.low %v178_v27, %v186_v28  ;;  %v225_v39 = vld [vmem:[#allocation7 + $0x2a0] sm:$0xff] }
  0xc4   :  { %1082 = vmatpush1.bf16.msra.mxu0 %v12979_v32  ;;  %v217_v32 = vld [vmem:[#allocation7 + $0x260] sm:$0xff] }
  0xc5   :  { %1083 = vmatprep.subr.bf16.mxu0 %v12996_v35  ;;  %1123 = vmatpush1.bf16.msra.mxu1 %v12981_v44  ;;  %v194_v35 = vld [vmem:[#allocation7 + $0x1a8] sm:$0xff]  ;;  %v13000_v37 = vcombine.high %v209_v31, %v217_v32  ;;  %v12999_v42 = vcombine.low %v209_v31, %v217_v32 }
  0xc6   :  { %1124 = vmatprep.subr.bf16.mxu1 %v12998_v47  ;;  %v12986_v41 = vcombine.high %v194_v35, %v202_v36  ;;  %v218_v44 = vld [vmem:[#allocation7 + $0x268] sm:$0xff]  ;;  %v12985_v46 = vcombine.low %v194_v35, %v202_v36  ;;  %v241_v47 = vld [vmem:[#allocation7 + $0x320] sm:$0xff] }
  0xc8   :  { %1084 = vmatpush1.bf16.msra.mxu0 %v12995_v40  ;;  %v233_v40 = vld [vmem:[#allocation7 + $0x2e0] sm:$0xff] }
  0xc9   :  { %1085 = vmatprep.subr.bf16.mxu0 %v13012_v43  ;;  %1125 = vmatpush1.bf16.msra.mxu1 %v12997_v52  ;;  %v210_v43 = vld [vmem:[#allocation7 + $0x228] sm:$0xff]  ;;  %v13016_v45 = vcombine.high %v225_v39, %v233_v40  ;;  %v13015_v50 = vcombine.low %v225_v39, %v233_v40 }
  0xca   :  { %1126 = vmatprep.subr.bf16.mxu1 %v13014_v55  ;;  %v13002_v49 = vcombine.high %v210_v43, %v218_v44  ;;  %v234_v52 = vld [vmem:[#allocation7 + $0x2e8] sm:$0xff]  ;;  %v13001_v54 = vcombine.low %v210_v43, %v218_v44  ;;  %v257_v55 = vld [vmem:[#allocation7 + $0x3a0] sm:$0xff] }
  0xcc   :  { %1086 = vmatpush1.bf16.msra.mxu0 %v13011_v48  ;;  %v249_v48 = vld [vmem:[#allocation7 + $0x360] sm:$0xff] }
  0xcd   :  { %1087 = vmatprep.subr.bf16.mxu0 %v13028_v51  ;;  %1127 = vmatpush1.bf16.msra.mxu1 %v13013_v60  ;;  %v226_v51 = vld [vmem:[#allocation7 + $0x2a8] sm:$0xff]  ;;  %v13032_v53 = vcombine.high %v241_v47, %v249_v48  ;;  %v13031_v58 = vcombine.low %v241_v47, %v249_v48  ;;  %v243_v48 = vld [vmem:[#allocation7 + $0x330] sm:$0xff] }
  0xce   :  { %1128 = vmatprep.subr.bf16.mxu1 %v13030_v63  ;;  %v13018_v57 = vcombine.high %v226_v51, %v234_v52  ;;  %v250_v60 = vld [vmem:[#allocation7 + $0x368] sm:$0xff]  ;;  %v13017_v62 = vcombine.low %v226_v51, %v234_v52  ;;  %v147_v63 = vld [vmem:[#allocation7 + $0x30] sm:$0xff]  ;;  %v228_v52 = vld [vmem:[#allocation7 + $0x2b8] sm:$0xff] }
  0xd0   :  { %1088 = vmatpush1.bf16.msra.mxu0 %v13027_v56  ;;  %v265_v56 = vld [vmem:[#allocation7 + $0x3e0] sm:$0xff] }
  0xd1   :  { %1089 = vmatprep.subr.bf16.mxu0 %v13044_v59  ;;  %1129 = vmatpush1.bf16.msra.mxu1 %v13029_v5  ;;  %v242_v59 = vld [vmem:[#allocation7 + $0x328] sm:$0xff]  ;;  %v13048_v61 = vcombine.high %v257_v55, %v265_v56  ;;  %v13047_v3 = vcombine.low %v257_v55, %v265_v56  ;;  %v259_v56 = vld [vmem:[#allocation7 + $0x3b0] sm:$0xff] }
  0xd2   :  { %1130 = vmatprep.subr.bf16.mxu1 %v13046_v9  ;;  %v13034_v2 = vcombine.high %v242_v59, %v250_v60  ;;  %v266_v5 = vld [vmem:[#allocation7 + $0x3e8] sm:$0xff]  ;;  %v13033_v8 = vcombine.low %v242_v59, %v250_v60  ;;  %v163_v9 = vld [vmem:[#allocation7 + $0xb0] sm:$0xff]  ;;  %v244_v60 = vld [vmem:[#allocation7 + $0x338] sm:$0xff] }
  0xd4   :  { %1090 = vmatpush1.bf16.msra.mxu0 %v13043_v0  ;;  %v155_v0 = vld [vmem:[#allocation7 + $0x70] sm:$0xff] }
  0xd5   :  { %1157 = vmatprep.subr.bf16.mxu0 %v12936_v4  ;;  %1131 = vmatpush1.bf16.msra.mxu1 %v13045_v14  ;;  %v258_v4 = vld [vmem:[#allocation7 + $0x3a8] sm:$0xff]  ;;  %v12940_v6 = vcombine.high %v147_v63, %v155_v0  ;;  %v12939_v12 = vcombine.low %v147_v63, %v155_v0  ;;  %v156_v14 = vld [vmem:[#allocation7 + $0x78] sm:$0xff]  ;;  %v1385_v0 = vld [vmem:[#allocation10] sm:$0xff] }
  0xd6   :  { %1198 = vmatprep.subr.bf16.mxu1 %v12938_v17  ;;  %v13050_v11 = vcombine.high %v258_v4, %v266_v5  ;;  %v13049_v16 = vcombine.low %v258_v4, %v266_v5  ;;  %v179_v17 = vld [vmem:[#allocation7 + $0x130] sm:$0xff]  ;;  %v260_v4 = vld [vmem:[#allocation7 + $0x3b8] sm:$0xff] }
  0xd7   :  { %1108 = vmatmul.mubr.bf16.vlgmr.msra.gmra.mrb[4].mxu0 %v15161_v7 }
  0xd8   :  { %1158 = vmatpush1.bf16.msra.mxu0 %v12935_v10  ;;  %1189 = vmatprep.mubr.bf16.mxu0 %v15007_v1  ;;  %v171_v10 = vld [vmem:[#allocation7 + $0xf0] sm:$0xff] }
  0xd9   :  { %1159 = vmatprep.subr.bf16.mxu0 %v12952_v13  ;;  %1149 = vmatmul.mubr.bf16.vlgmr.msra.gmra.mrb[4].mxu1 %v15161_v7  ;;  %v148_v13 = vld [vmem:[#allocation7 + $0x38] sm:$0xff]  ;;  %v12956_v15 = vcombine.high %v163_v9, %v171_v10  ;;  %v12955_v20 = vcombine.low %v163_v9, %v171_v10  ;;  %v15177_v9 = vld [vmem:[#allocation10 + $0x420] sm:$0xff] }
  0xda   :  { %1199 = vmatpush1.bf16.msra.mxu1 %v12937_v22  ;;  %1230 = vmatprep.mubr.bf16.mxu1 %v15007_v1  ;;  %v12942_v19 = vcombine.high %v148_v13, %v156_v14  ;;  %v172_v22 = vld [vmem:[#allocation7 + $0xf8] sm:$0xff]  ;;  %v12941_v24 = vcombine.low %v148_v13, %v156_v14  ;;  %v1397_v13 = vld [vmem:[#allocation10 + $0x60] sm:$0xff] }
  0xdb   :  { %1200 = vmatprep.subr.bf16.mxu1 %v12954_v25  ;;  %v195_v25 = vld [vmem:[#allocation7 + $0x1b0] sm:$0xff] }
  0xdc   :  { %1160 = vmatpush1.bf16.msra.mxu0 %v12951_v18  ;;  %v187_v18 = vld [vmem:[#allocation7 + $0x170] sm:$0xff] }
  0xdd   :  { %1161 = vmatprep.subr.bf16.mxu0 %v12968_v21  ;;  %v164_v21 = vld [vmem:[#allocation7 + $0xb8] sm:$0xff]  ;;  %v12972_v23 = vcombine.high %v179_v17, %v187_v18  ;;  %v12971_v28 = vcombine.low %v179_v17, %v187_v18 }
  0xde   :  { %1201 = vmatpush1.bf16.msra.mxu1 %v12953_v30  ;;  %v12958_v27 = vcombine.high %v164_v21, %v172_v22  ;;  %v188_v30 = vld [vmem:[#allocation7 + $0x178] sm:$0xff]  ;;  %v12957_v32 = vcombine.low %v164_v21, %v172_v22  ;;  %v1401_v21 = vld [vmem:[#allocation10 + $0x80] sm:$0xff] }
  0xdf   :  { %1202 = vmatprep.subr.bf16.mxu1 %v12970_v33  ;;  %v211_v33 = vld [vmem:[#allocation7 + $0x230] sm:$0xff]  ;;  %v1386_v17 = vld [vmem:[#allocation10 + $0x8] sm:$0xff] }
  0xe0   :  { %1162 = vmatpush1.bf16.msra.mxu0 %v12967_v26  ;;  %v203_v26 = vld [vmem:[#allocation7 + $0x1f0] sm:$0xff]  ;;  %v1390_v18 = vld [vmem:[#allocation10 + $0x28] sm:$0xff] }
  0xe1   :  { %1163 = vmatprep.subr.bf16.mxu0 %v12984_v29  ;;  %v180_v29 = vld [vmem:[#allocation7 + $0x138] sm:$0xff]  ;;  %v12988_v31 = vcombine.high %v195_v25, %v203_v26  ;;  %v12987_v36 = vcombine.low %v195_v25, %v203_v26  ;;  %v1405_v22 = vld [vmem:[#allocation10 + $0xa0] sm:$0xff] }
  0xe2   :  { %1203 = vmatpush1.bf16.msra.mxu1 %v12969_v38  ;;  %v12974_v35 = vcombine.high %v180_v29, %v188_v30  ;;  %v204_v38 = vld [vmem:[#allocation7 + $0x1f8] sm:$0xff]  ;;  %v12973_v40 = vcombine.low %v180_v29, %v188_v30  ;;  %v1409_v29 = vld [vmem:[#allocation10 + $0xc0] sm:$0xff] }
  0xe3   :  { %1204 = vmatprep.subr.bf16.mxu1 %v12986_v41  ;;  %v227_v41 = vld [vmem:[#allocation7 + $0x2b0] sm:$0xff]  ;;  %v1394_v25 = vld [vmem:[#allocation10 + $0x48] sm:$0xff] }
  0xe4   :  { %1164 = vmatpush1.bf16.msra.mxu0 %v12983_v34  ;;  %v219_v34 = vld [vmem:[#allocation7 + $0x270] sm:$0xff]  ;;  %v1398_v26 = vld [vmem:[#allocation10 + $0x68] sm:$0xff] }
  0xe5   :  { %1165 = vmatprep.subr.bf16.mxu0 %v13000_v37  ;;  %v196_v37 = vld [vmem:[#allocation7 + $0x1b8] sm:$0xff]  ;;  %v13004_v39 = vcombine.high %v211_v33, %v219_v34  ;;  %v13003_v44 = vcombine.low %v211_v33, %v219_v34  ;;  %v1413_v30 = vld [vmem:[#allocation10 + $0xe0] sm:$0xff] }
  0xe6   :  { %1205 = vmatpush1.bf16.msra.mxu1 %v12985_v46  ;;  %v12990_v43 = vcombine.high %v196_v37, %v204_v38  ;;  %v220_v46 = vld [vmem:[#allocation7 + $0x278] sm:$0xff]  ;;  %v12989_v47 = vcombine.low %v196_v37, %v204_v38  ;;  %v1417_v37 = vld [vmem:[#allocation10 + $0x100] sm:$0xff] }
  0xe7   :  { %1206 = vmatprep.subr.bf16.mxu1 %v13002_v49  ;;  %v251_v49 = vld [vmem:[#allocation7 + $0x370] sm:$0xff]  ;;  %v1402_v33 = vld [vmem:[#allocation10 + $0x88] sm:$0xff] }
  0xe8   :  { %1166 = vmatpush1.bf16.msra.mxu0 %v12999_v42  ;;  %v235_v42 = vld [vmem:[#allocation7 + $0x2f0] sm:$0xff]  ;;  %v13035_v59 = vcombine.low %v243_v48, %v251_v49  ;;  %v1406_v34 = vld [vmem:[#allocation10 + $0xa8] sm:$0xff] }
  0xe9   :  { %1167 = vmatprep.subr.bf16.mxu0 %v13016_v45  ;;  %v212_v45 = vld [vmem:[#allocation7 + $0x238] sm:$0xff]  ;;  %v13019_v51 = vcombine.low %v227_v41, %v235_v42  ;;  %v1421_v38 = vld [vmem:[#allocation10 + $0x120] sm:$0xff] }
  0xea   :  { %1207 = vmatpush1.bf16.msra.mxu1 %v13001_v54  ;;  %v13036_v54 = vcombine.high %v243_v48, %v251_v49  ;;  %v13005_v55 = vcombine.low %v212_v45, %v220_v46  ;;  %v1422_v48 = vld [vmem:[#allocation10 + $0x128] sm:$0xff] }
  0xeb   :  { %1208 = vmatprep.subr.bf16.mxu1 %v13018_v57  ;;  %v267_v57 = vld [vmem:[#allocation7 + $0x3f0] sm:$0xff] }
  0xec   :  { %1168 = vmatpush1.bf16.msra.mxu0 %v13015_v50  ;;  %v13006_v50 = vcombine.high %v212_v45, %v220_v46  ;;  %v13051_v5 = vcombine.low %v259_v56, %v267_v57  ;;  %v1425_v45 = vld [vmem:[#allocation10 + $0x140] sm:$0xff] }
  0xed   :  { %1169 = vmatprep.subr.bf16.mxu0 %v13032_v53  ;;  %v236_v53 = vld [vmem:[#allocation7 + $0x2f8] sm:$0xff]  ;;  %v1429_v46 = vld [vmem:[#allocation10 + $0x160] sm:$0xff] }
  0xee   :  { %1209 = vmatpush1.bf16.msra.mxu1 %v13017_v62  ;;  %v13052_v62 = vcombine.high %v259_v56, %v267_v57  ;;  %v13021_v63 = vcombine.low %v228_v52, %v236_v53  ;;  %v13096_v49 = vcombine.high %v1425_v45, %v1429_v46  ;;  %v1430_v56 = vld [vmem:[#allocation10 + $0x168] sm:$0xff] }
  0xef   :  { %1210 = vmatprep.subr.bf16.mxu1 %v13034_v2  ;;  %v1389_v2 = vld [vmem:[#allocation10 + $0x20] sm:$0xff] }
  0xf0   :  { %1170 = vmatpush1.bf16.msra.mxu0 %v13031_v58  ;;  %v13022_v58 = vcombine.high %v228_v52, %v236_v53  ;;  %v13056_v10 = vcombine.high %v1385_v0, %v1389_v2  ;;  %v1437_v52 = vld [vmem:[#allocation10 + $0x1a0] sm:$0xff] }
  0xf1   :  { %1171 = vmatprep.subr.bf16.mxu0 %v13048_v61  ;;  %v252_v61 = vld [vmem:[#allocation7 + $0x378] sm:$0xff] }
  0xf2   :  { %1211 = vmatpush1.bf16.msra.mxu1 %v13033_v8  ;;  %v15175_v8 = vld [vmem:[#allocation10 + $0x400] sm:$0xff] }
  0xf3   :  { %1212 = vmatprep.subr.bf16.mxu1 %v13050_v11  ;;  %v13037_v11 = vcombine.low %v244_v60, %v252_v61  ;;  %v13183_v14 = vcombine.low %v15175_v8, %v15177_v9 }
  0xf4   :  { %1172 = vmatpush1.bf16.msra.mxu0 %v13047_v3  ;;  %v13038_v3 = vcombine.high %v244_v60, %v252_v61  ;;  %v1445_v60 = vld [vmem:[#allocation10 + $0x1e0] sm:$0xff] }
  0xf5   :  { %1239 = vmatprep.subr.bf16.mxu0 %v12940_v6  ;;  %v268_v6 = vld [vmem:[#allocation7 + $0x3f8] sm:$0xff] }
  0xf6   :  { %1213 = vmatpush1.bf16.msra.mxu1 %v13049_v16  ;;  %v13055_v16 = vcombine.low %v1385_v0, %v1389_v2  ;;  %v1438_v0 = vld [vmem:[#allocation10 + $0x1a8] sm:$0xff] }
  0xf7   :  { %1190 = vmatmul.mubr.bf16.vlgmr.msra.gmra.mrb[8].mxu0 %v15161_v7  ;;  %1280 = vmatprep.subr.bf16.mxu1 %v12942_v19 }
  0xf8   :  { %1240 = vmatpush1.bf16.msra.mxu0 %v12939_v12  ;;  %1271 = vmatprep.mubr.bf16.mxu0 %v15007_v1  ;;  %v1393_v12 = vld [vmem:[#allocation10 + $0x40] sm:$0xff] }
  0xf9   :  { %1241 = vmatprep.subr.bf16.mxu0 %v12956_v15  ;;  %1231 = vmatmul.mubr.bf16.vlgmr.msra.gmra.mrb[8].mxu1 %v15161_v7  ;;  %v13054_v15 = vcombine.high %v260_v4, %v268_v6  ;;  %v13064_v19 = vcombine.high %v1393_v12, %v1397_v13 }
  0xfa   :  { %1281 = vmatpush1.bf16.msra.mxu1 %v12941_v24  ;;  %1312 = vmatprep.mubr.bf16.mxu1 %v15007_v1  ;;  %v13020_v1 = vcombine.high %v227_v41, %v235_v42  ;;  %v13063_v24 = vcombine.low %v1393_v12, %v1397_v13  ;;  %v1410_v41 = vld [vmem:[#allocation10 + $0xc8] sm:$0xff] }
  0xfb   :  { %1282 = vmatprep.subr.bf16.mxu1 %v12958_v27  ;;  %v13072_v27 = vcombine.high %v1401_v21, %v1405_v22  ;;  %v1414_v42 = vld [vmem:[#allocation10 + $0xe8] sm:$0xff] }
  0xfc   :  { %1242 = vmatpush1.bf16.msra.mxu0 %v12955_v20  ;;  %v13053_v20 = vcombine.low %v260_v4, %v268_v6  ;;  %v1449_v4 = vld [vmem:[#allocation10 + $0x200] sm:$0xff]  ;;  %v1446_v12 = vld [vmem:[#allocation10 + $0x1e8] sm:$0xff] }
  0xfd   :  { %1243 = vmatprep.subr.bf16.mxu0 %v12972_v23  ;;  %v13058_v23 = vcombine.high %v1386_v17, %v1390_v18 }
  0xfe   :  { %1283 = vmatpush1.bf16.msra.mxu1 %v12957_v32  ;;  %v13071_v32 = vcombine.low %v1401_v21, %v1405_v22  ;;  %v1454_v21 = vld [vmem:[#allocation10 + $0x228] sm:$0xff] }
  0xff   :  { %1284 = vmatprep.subr.bf16.mxu1 %v12974_v35  ;;  %v13080_v35 = vcombine.high %v1409_v29, %v1413_v30 }
 0x100   :  { %1244 = vmatpush1.bf16.msra.mxu0 %v12971_v28  ;;  %v13057_v28 = vcombine.low %v1386_v17, %v1390_v18  ;;  %v1461_v17 = vld [vmem:[#allocation10 + $0x260] sm:$0xff] }
 0x101   :  { %1245 = vmatprep.subr.bf16.mxu0 %v12988_v31  ;;  %v13066_v31 = vcombine.high %v1394_v25, %v1398_v26 }
 0x102   :  { %1285 = vmatpush1.bf16.msra.mxu1 %v12973_v40  ;;  %v13079_v40 = vcombine.low %v1409_v29, %v1413_v30  ;;  %v1462_v29 = vld [vmem:[#allocation10 + $0x268] sm:$0xff] }
 0x103   :  { %1286 = vmatprep.subr.bf16.mxu1 %v12990_v43  ;;  %v13088_v43 = vcombine.high %v1417_v37, %v1421_v38 }
 0x104   :  { %1246 = vmatpush1.bf16.msra.mxu0 %v12987_v36  ;;  %v13065_v36 = vcombine.low %v1394_v25, %v1398_v26  ;;  %v1469_v25 = vld [vmem:[#allocation10 + $0x2a0] sm:$0xff] }
 0x105   :  { %1247 = vmatprep.subr.bf16.mxu0 %v13004_v39  ;;  %v13074_v39 = vcombine.high %v1402_v33, %v1406_v34 }
 0x106   :  { %1287 = vmatpush1.bf16.msra.mxu1 %v12989_v47  ;;  %v1418_v47 = vld [vmem:[#allocation10 + $0x108] sm:$0xff] }
 0x107   :  { %1288 = vmatprep.subr.bf16.mxu1 %v13006_v50  ;;  %v13081_v50 = vcombine.low %v1410_v41, %v1414_v42  ;;  %v13090_v53 = vcombine.high %v1418_v47, %v1422_v48 }
 0x108   :  { %1248 = vmatpush1.bf16.msra.mxu0 %v13003_v44  ;;  %v13073_v44 = vcombine.low %v1402_v33, %v1406_v34  ;;  %v1477_v33 = vld [vmem:[#allocation10 + $0x2e0] sm:$0xff] }
 0x109   :  { %1249 = vmatprep.subr.bf16.mxu0 %v13020_v1  ;;  %v13087_v1 = vcombine.low %v1417_v37, %v1421_v38  ;;  %v1470_v37 = vld [vmem:[#allocation10 + $0x2a8] sm:$0xff] }
 0x10a   :  { %1289 = vmatpush1.bf16.msra.mxu1 %v13005_v55  ;;  %v1426_v55 = vld [vmem:[#allocation10 + $0x148] sm:$0xff] }
 0x10b   :  { %1290 = vmatprep.subr.bf16.mxu1 %v13022_v58  ;;  %v13089_v58 = vcombine.low %v1418_v47, %v1422_v48  ;;  %v13098_v61 = vcombine.high %v1426_v55, %v1430_v56  ;;  %v1493_v47 = vld [vmem:[#allocation10 + $0x360] sm:$0xff] }
 0x10c   :  { %1250 = vmatpush1.bf16.msra.mxu0 %v13019_v51  ;;  %v1433_v51 = vld [vmem:[#allocation10 + $0x180] sm:$0xff] }
 0x10d   :  { %1251 = vmatprep.subr.bf16.mxu0 %v13036_v54  ;;  %v13095_v54 = vcombine.low %v1425_v45, %v1429_v46  ;;  %v13104_v57 = vcombine.high %v1433_v51, %v1437_v52  ;;  %v1478_v45 = vld [vmem:[#allocation10 + $0x2e8] sm:$0xff] }
 0x10e   :  { %1291 = vmatpush1.bf16.msra.mxu1 %v13021_v63  ;;  %v1434_v63 = vld [vmem:[#allocation10 + $0x188] sm:$0xff] }
 0x10f   :  { %1292 = vmatprep.subr.bf16.mxu1 %v13038_v3  ;;  %v13097_v3 = vcombine.low %v1426_v55, %v1430_v56  ;;  %v13106_v6 = vcombine.high %v1434_v63, %v1438_v0  ;;  %v1501_v55 = vld [vmem:[#allocation10 + $0x3a0] sm:$0xff] }
 0x110   :  { %1252 = vmatpush1.bf16.msra.mxu0 %v13035_v59  ;;  %v1441_v59 = vld [vmem:[#allocation10 + $0x1c0] sm:$0xff] }
 0x111   :  { %1253 = vmatprep.subr.bf16.mxu0 %v13052_v62  ;;  %v13103_v62 = vcombine.low %v1433_v51, %v1437_v52  ;;  %v13112_v2 = vcombine.high %v1441_v59, %v1445_v60  ;;  %v1486_v51 = vld [vmem:[#allocation10 + $0x328] sm:$0xff] }
 0x112   :  { %1293 = vmatpush1.bf16.msra.mxu1 %v13037_v11  ;;  %v1442_v11 = vld [vmem:[#allocation10 + $0x1c8] sm:$0xff] }
 0x113   :  { %1294 = vmatprep.subr.bf16.mxu1 %v13054_v15  ;;  %v13105_v15 = vcombine.low %v1434_v63, %v1438_v0  ;;  %v13114_v18 = vcombine.high %v1442_v11, %v1446_v12  ;;  %v1509_v63 = vld [vmem:[#allocation10 + $0x3e0] sm:$0xff] }
 0x114   :  { %1254 = vmatpush1.bf16.msra.mxu0 %v13051_v5  ;;  %v1453_v5 = vld [vmem:[#allocation10 + $0x220] sm:$0xff] }
 0x115   :  { %7571 = vmatprep.subr.bf16.mxu0 %v13056_v10  ;;  %v13111_v10 = vcombine.low %v1441_v59, %v1445_v60  ;;  %v13120_v13 = vcombine.high %v1449_v4, %v1453_v5  ;;  %v1494_v59 = vld [vmem:[#allocation10 + $0x368] sm:$0xff] }
 0x116   :  { %1295 = vmatpush1.bf16.msra.mxu1 %v13053_v20  ;;  %v1450_v20 = vld [vmem:[#allocation10 + $0x208] sm:$0xff] }
 0x117   :  { %1272 = vmatmul.mubr.bf16.vlgmr.msra.gmra.mrb[12].mxu0 %v15161_v7  ;;  %7899 = vmatprep.subr.bf16.mxu1 %v13058_v23  ;;  %v13113_v23 = vcombine.low %v1442_v11, %v1446_v12  ;;  %v13122_v26 = vcombine.high %v1450_v20, %v1454_v21  ;;  %v1506_v12 = vld [vmem:[#allocation10 + $0x3c8] sm:$0xff] }
 0x118   :  { %7572 = vmatpush1.bf16.msra.mxu0 %v13055_v16  ;;  %v1457_v16 = vld [vmem:[#allocation10 + $0x240] sm:$0xff] }
 0x119   :  { %7573 = vmatprep.subr.bf16.mxu0 %v13064_v19  ;;  %1313 = vmatmul.mubr.bf16.vlgmr.msra.gmra.mrb[12].mxu1 %v15161_v7  ;;  %v13082_v7 = vcombine.high %v1410_v41, %v1414_v42  ;;  %v13119_v19 = vcombine.low %v1449_v4, %v1453_v5  ;;  %v13128_v22 = vcombine.high %v1457_v16, %v1461_v17  ;;  %v1485_v41 = vld [vmem:[#allocation10 + $0x320] sm:$0xff]  ;;  %v1502_v4 = vld [vmem:[#allocation10 + $0x3a8] sm:$0xff] }
 0x11a   :  { %7900 = vmatpush1.bf16.msra.mxu1 %v13057_v28  ;;  %v1458_v28 = vld [vmem:[#allocation10 + $0x248] sm:$0xff] }
 0x11b   :  { %7901 = vmatprep.subr.bf16.mxu1 %v13066_v31  ;;  %v13121_v31 = vcombine.low %v1450_v20, %v1454_v21  ;;  %v13130_v34 = vcombine.high %v1458_v28, %v1462_v29 }
 0x11c   :  { %7574 = vmatpush1.bf16.msra.mxu0 %v13063_v24  ;;  %v1465_v24 = vld [vmem:[#allocation10 + $0x280] sm:$0xff] }
 0x11d   :  { %7575 = vmatprep.subr.bf16.mxu0 %v13072_v27  ;;  %v13127_v27 = vcombine.low %v1457_v16, %v1461_v17  ;;  %v13136_v30 = vcombine.high %v1465_v24, %v1469_v25 }
 0x11e   :  { %7902 = vmatpush1.bf16.msra.mxu1 %v13065_v36  ;;  %v1466_v36 = vld [vmem:[#allocation10 + $0x288] sm:$0xff] }
 0x11f   :  { %7903 = vmatprep.subr.bf16.mxu1 %v13074_v39  ;;  %v13129_v39 = vcombine.low %v1458_v28, %v1462_v29  ;;  %v13138_v42 = vcombine.high %v1466_v36, %v1470_v37 }
 0x120   :  { %7576 = vmatpush1.bf16.msra.mxu0 %v13071_v32  ;;  %v1473_v32 = vld [vmem:[#allocation10 + $0x2c0] sm:$0xff] }
 0x121   :  { %7577 = vmatprep.subr.bf16.mxu0 %v13080_v35  ;;  %v13135_v35 = vcombine.low %v1465_v24, %v1469_v25  ;;  %v13144_v38 = vcombine.high %v1473_v32, %v1477_v33  ;;  %v15190_v25 = vld [vmem:[#allocation9] sm:$0xff] }
 0x122   :  { %7904 = vmatpush1.bf16.msra.mxu1 %v13073_v44  ;;  %v1474_v44 = vld [vmem:[#allocation10 + $0x2c8] sm:$0xff] }
 0x123   :  { %7905 = vmatprep.subr.bf16.mxu1 %v13082_v7  ;;  %v13137_v7 = vcombine.low %v1466_v36, %v1470_v37  ;;  %v13146_v48 = vcombine.high %v1474_v44, %v1478_v45 }
 0x124   :  { %7578 = vmatpush1.bf16.msra.mxu0 %v13079_v40  ;;  %v1481_v40 = vld [vmem:[#allocation10 + $0x300] sm:$0xff] }
 0x125   :  { %7579 = vmatprep.subr.bf16.mxu0 %v13088_v43  ;;  %v13143_v43 = vcombine.low %v1473_v32, %v1477_v33  ;;  %v13152_v46 = vcombine.high %v1481_v40, %v1485_v41 }
 0x126   :  { %7906 = vmatpush1.bf16.msra.mxu1 %v13081_v50  ;;  %v1482_v50 = vld [vmem:[#allocation10 + $0x308] sm:$0xff] }
 0x127   :  { %7907 = vmatprep.subr.bf16.mxu1 %v13090_v53  ;;  %v13145_v53 = vcombine.low %v1474_v44, %v1478_v45  ;;  %v13154_v56 = vcombine.high %v1482_v50, %v1486_v51 }
 0x128   :  { %7580 = vmatpush1.bf16.msra.mxu0 %v13087_v1  ;;  %v1489_v1 = vld [vmem:[#allocation10 + $0x340] sm:$0xff] }
 0x129   :  { %7581 = vmatprep.subr.bf16.mxu0 %v13096_v49  ;;  %v13151_v49 = vcombine.low %v1481_v40, %v1485_v41  ;;  %v13160_v52 = vcombine.high %v1489_v1, %v1493_v47  ;;  %v1525_v41 = vld [vmem:[#allocation10 + $0x460] sm:$0xff] }
 0x12a   :  { %7908 = vmatpush1.bf16.msra.mxu1 %v13089_v58  ;;  %v1490_v58 = vld [vmem:[#allocation10 + $0x348] sm:$0xff] }
 0x12b   :  { %7909 = vmatprep.subr.bf16.mxu1 %v13098_v61  ;;  %v13153_v61 = vcombine.low %v1482_v50, %v1486_v51  ;;  %v13162_v0 = vcombine.high %v1490_v58, %v1494_v59  ;;  %v1529_v50 = vld [vmem:[#allocation10 + $0x480] sm:$0xff] }
 0x12c   :  { %7582 = vmatpush1.bf16.msra.mxu0 %v13095_v54  ;;  %v1497_v54 = vld [vmem:[#allocation10 + $0x380] sm:$0xff] }
 0x12d   :  { %7583 = vmatprep.subr.bf16.mxu0 %v13104_v57  ;;  %v13159_v57 = vcombine.low %v1489_v1, %v1493_v47  ;;  %v13168_v60 = vcombine.high %v1497_v54, %v1501_v55 }
 0x12e   :  { %7910 = vmatpush1.bf16.msra.mxu1 %v13097_v3  ;;  %v1498_v3 = vld [vmem:[#allocation10 + $0x388] sm:$0xff] }
 0x12f   :  { %7911 = vmatprep.subr.bf16.mxu1 %v13106_v6  ;;  %v13161_v6 = vcombine.low %v1490_v58, %v1494_v59  ;;  %v13169_v16 = vcombine.low %v1498_v3, %v1502_v4 }
 0x130   :  { %7584 = vmatpush1.bf16.msra.mxu0 %v13103_v62  ;;  %v1505_v62 = vld [vmem:[#allocation10 + $0x3c0] sm:$0xff] }
 0x131   :  { %7585 = vmatprep.subr.bf16.mxu0 %v13112_v2  ;;  %v13167_v2 = vcombine.low %v1497_v54, %v1501_v55  ;;  %v13176_v5 = vcombine.high %v1505_v62, %v1509_v63  ;;  %v13175_v11 = vcombine.low %v1505_v62, %v1509_v63  ;;  %v1530_v54 = vld [vmem:[#allocation10 + $0x488] sm:$0xff]  ;;  %v1537_v62 = vld [vmem:[#allocation10 + $0x4c0] sm:$0xff] }
 0x132   :  { %7912 = vmatpush1.bf16.msra.mxu1 %v13105_v15  ;;  %v13184_v15 = vcombine.high %v15175_v8, %v15177_v9  ;;  %v1534_v55 = vld [vmem:[#allocation10 + $0x4a8] sm:$0xff] }
 0x133   :  { %7913 = vmatprep.subr.bf16.mxu1 %v13114_v18  ;;  %v1514_v18 = vld [vmem:[#allocation10 + $0x408] sm:$0xff] }
 0x134   :  { %7586 = vmatpush1.bf16.msra.mxu0 %v13111_v10  ;;  %v13170_v10 = vcombine.high %v1498_v3, %v1502_v4  ;;  %v1542_v3 = vld [vmem:[#allocation10 + $0x4e8] sm:$0xff] }
 0x135   :  { %7587 = vmatprep.subr.bf16.mxu0 %v13120_v13  ;;  %v1510_v13 = vld [vmem:[#allocation10 + $0x3e8] sm:$0xff] }
 0x136   :  { %7914 = vmatpush1.bf16.msra.mxu1 %v13113_v23  ;;  %v13178_v17 = vcombine.high %v1506_v12, %v1510_v13  ;;  %v13177_v20 = vcombine.low %v1506_v12, %v1510_v13  ;;  %v1550_v12 = vld [vmem:[#allocation10 + $0x528] sm:$0xff] }
 0x137   :  { %7915 = vmatprep.subr.bf16.mxu1 %v13122_v26 }
 0x138   :  { %7588 = vmatpush1.bf16.msra.mxu0 %v13119_v19  ;;  %v1518_v19 = vld [vmem:[#allocation10 + $0x428] sm:$0xff] }
 0x139   :  { %7589 = vmatprep.subr.bf16.mxu0 %v13128_v22  ;;  %v13186_v21 = vcombine.high %v1514_v18, %v1518_v19  ;;  %v273_v22 = vlaneseq }
 0x13a   :  { %7916 = vmatpush1.bf16.msra.mxu1 %v13121_v31 }
 0x13b   :  { %7917 = vmatprep.subr.bf16.mxu1 %v13130_v34  ;;  %v15185_v23 = vshrl.u32 %v273_v22, 7 }
 0x13c   :  { %7590 = vmatpush1.bf16.msra.mxu0 %v13127_v27 }
 0x13d   :  { %7591 = vmatprep.subr.bf16.mxu0 %v13136_v30  ;;  %v15188_v24 = vsub.s32 0, %v15185_v23  ;;  %v15193_v26 = vsub.s32 1, %v15185_v23  ;;  %v15200_v30 = vsub.s32 3, %v15185_v23 }
 0x13e   :  { %7918 = vmatpush1.bf16.msra.mxu1 %v13129_v39 }
 0x13f   :  { %7919 = vmatprep.subr.bf16.mxu1 %v13138_v42  ;;  %v276_v27 = vrot.slane %v15190_v25, %v15188_v24  ;;  %v280_v28 = vrot.slane %v15190_v25, %v15193_v26  ;;  %v288_v39 = vrot.slane %v15190_v25, %v15200_v30  ;;  %v1522_v42 = vld [vmem:[#allocation10 + $0x448] sm:$0xff] }
 0x140   :  { %7592 = vmatpush1.bf16.msra.mxu0 %v13135_v35 }
 0x141   :  { %7593 = vmatprep.subr.bf16.mxu0 %v13144_v38  ;;  %v1521_v38 = vld [vmem:[#allocation10 + $0x440] sm:$0xff] }
 0x142   :  { %7920 = vmatpush1.bf16.msra.mxu1 %v13137_v7  ;;  %v13185_v7 = vcombine.low %v1514_v18, %v1518_v19  ;;  %v13191_v58 = vcombine.low %v1521_v38, %v1525_v41  ;;  %v1553_v18 = vld [vmem:[#allocation10 + $0x540] sm:$0xff] }
 0x143   :  { %7921 = vmatprep.subr.bf16.mxu1 %v13146_v48  ;;  %v13192_v48 = vcombine.high %v1521_v38, %v1525_v41  ;;  %v1557_v19 = vld [vmem:[#allocation10 + $0x560] sm:$0xff]  ;;  %v1570_v41 = vld [vmem:[#allocation10 + $0x5c8] sm:$0xff] }
 0x144   :  { %7594 = vmatpush1.bf16.msra.mxu0 %v13143_v43  ;;  %v1526_v43 = vld [vmem:[#allocation10 + $0x468] sm:$0xff] }
 0x145   :  { %7595 = vmatprep.subr.bf16.mxu0 %v13152_v46  ;;  %v13193_v59 = vcombine.low %v1522_v42, %v1526_v43 }
 0x146   :  { %7922 = vmatpush1.bf16.msra.mxu1 %v13145_v53  ;;  %v1533_v53 = vld [vmem:[#allocation10 + $0x4a0] sm:$0xff] }
 0x147   :  { %7923 = vmatprep.subr.bf16.mxu1 %v13154_v56 }
 0x148   :  { %7596 = vmatpush1.bf16.msra.mxu0 %v13151_v49  ;;  %v13194_v49 = vcombine.high %v1522_v42, %v1526_v43  ;;  %v1574_v42 = vld [vmem:[#allocation10 + $0x5e8] sm:$0xff] }
 0x149   :  { %7597 = vmatprep.subr.bf16.mxu0 %v13160_v52 }
 0x14a   :  { %7924 = vmatpush1.bf16.msra.mxu1 %v13153_v61  ;;  %v13202_v61 = vcombine.high %v1530_v54, %v1534_v55 }
 0x14b   :  { %7925 = vmatprep.subr.bf16.mxu1 %v13162_v0  ;;  %v1541_v0 = vld [vmem:[#allocation10 + $0x4e0] sm:$0xff] }
 0x14c   :  { %7598 = vmatpush1.bf16.msra.mxu0 %v13159_v57  ;;  %v13208_v8 = vcombine.high %v1537_v62, %v1541_v0  ;;  %v13207_v13 = vcombine.low %v1537_v62, %v1541_v0  ;;  %v1586_v62 = vld [vmem:[#allocation10 + $0x648] sm:$0xff] }
 0x14d   :  { %7599 = vmatprep.subr.bf16.mxu0 %v13168_v60  ;;  %v13200_v60 = vcombine.high %v1529_v50, %v1533_v53 }
 0x14e   :  { %7926 = vmatpush1.bf16.msra.mxu1 %v13161_v6  ;;  %v13201_v6 = vcombine.low %v1530_v54, %v1534_v55 }
 0x14f   :  { %7927 = vmatprep.subr.bf16.mxu1 %v13170_v10  ;;  %v1549_v10 = vld [vmem:[#allocation10 + $0x520] sm:$0xff] }
 0x150   :  { %7600 = vmatpush1.bf16.msra.mxu0 %v13167_v2  ;;  %v1538_v2 = vld [vmem:[#allocation10 + $0x4c8] sm:$0xff] }
 0x151   :  { %7601 = vmatprep.subr.bf16.mxu0 %v13176_v5  ;;  %v13199_v5 = vcombine.low %v1529_v50, %v1533_v53  ;;  %v13210_v9 = vcombine.high %v1538_v2, %v1542_v3  ;;  %v1581_v50 = vld [vmem:[#allocation10 + $0x620] sm:$0xff] }
 0x152   :  { %7928 = vmatpush1.bf16.msra.mxu1 %v13169_v16 }
 0x153   :  { %7929 = vmatprep.subr.bf16.mxu1 %v13178_v17 }
 0x154   :  { %7602 = vmatpush1.bf16.msra.mxu0 %v13175_v11  ;;  %v1546_v11 = vld [vmem:[#allocation10 + $0x508] sm:$0xff] }
 0x155   :  { %7612 = vmatprep.subr.bf16.mxu0 %v13184_v15  ;;  %v13209_v15 = vcombine.low %v1538_v2, %v1542_v3  ;;  %v13218_v17 = vcombine.high %v1546_v11, %v1550_v12 }
 0x156   :  { %7930 = vmatpush1.bf16.msra.mxu1 %v13177_v20  ;;  %v1554_v20 = vld [vmem:[#allocation10 + $0x548] sm:$0xff] }
 0x157   :  { %7940 = vmatprep.subr.bf16.mxu1 %v13186_v21  ;;  %v1558_v21 = vld [vmem:[#allocation10 + $0x568] sm:$0xff] }
 0x18a   :  { %v1027_v29 = vpop.f32.mrb[0].mxu0  ;;  %v15204_v45 = vpop.f32.mrb[0].mxu1 }
 0x18b   :  { %v1028_v31 = vadd.f32 %v1027_v29, %v276_v27  ;;  %v1029_v32 = vpop.f32.mrb[1].mxu0  ;;  %v1070_v1 = vpop.f32.mrb[1].mxu1  ;;  %v13217_v27 = vcombine.low %v1546_v11, %v1550_v12  ;;  %v13226_v29 = vcombine.high %v1554_v20, %v1558_v21  ;;  %v1594_v11 = vld [vmem:[#allocation10 + $0x688] sm:$0xff] }
 0x18c   :  { %v1030_v33 = vadd.f32 %v1029_v32, %v280_v28  ;;  %v1031_v34 = vpop.f32.mrb[2].mxu0  ;;  %v1071_v51 = vadd.f32 %v1070_v1, %v288_v39  ;;  %v1072_v52 = vpop.f32.mrb[2].mxu1  ;;  %v13224_v28 = vcombine.high %v1553_v18, %v1557_v19  ;;  %v1565_v32 = vld [vmem:[#allocation10 + $0x5a0] sm:$0xff]  ;;  %v13242_v1 = vcombine.high %v1570_v41, %v1574_v42  ;;  %v1598_v12 = vld [vmem:[#allocation10 + $0x6a8] sm:$0xff] }
 0x18d   :  { %vm1321_vm0 = vcmp.gt.f32.partialorder %v1028_v31, 0.0  ;;  %v1337_v35 = vmul.f32 0.2, %v1028_v31  ;;  %v1032_v36 = vpop.f32.mrb[3].mxu0  ;;  %v1073_v56 = vpop.f32.mrb[3].mxu1  ;;  %v1566_v34 = vld [vmem:[#allocation10 + $0x5a8] sm:$0xff] }
 0x18e   :  { %vm1322_vm1 = vcmp.gt.f32.partialorder %v1030_v33, 0.0  ;;  %v1338_v37 = vmul.f32 0.2, %v1030_v33  ;;  %vm1324_vm2 = vcmp.gt.f32.partialorder %v1071_v51, 0.0  ;;  %v1340_v57 = vmul.f32 0.2, %v1071_v51 }
 0x18f   :  { %v1353_v40 = vsel %vm1321_vm0, %v1028_v31, %v1337_v35  ;;  %v1561_v31 = vld [vmem:[#allocation10 + $0x580] sm:$0xff]  ;;  %v13223_v35 = vcombine.low %v1553_v18, %v1557_v19  ;;  %v13225_v36 = vcombine.low %v1554_v20, %v1558_v21  ;;  %v1582_v52 = vld [vmem:[#allocation10 + $0x628] sm:$0xff]  ;;  %v13241_v56 = vcombine.low %v1570_v41, %v1574_v42 }
 0x190   :  { %v1354_v44 = vsel %vm1322_vm1, %v1030_v33, %v1338_v37  ;;  %v15208_v47 = vpack.c.bf16 %v1353_v40, %v1353_v40  ;;  %v1356_v63 = vsel %vm1324_vm2, %v1071_v51, %v1340_v57  ;;  %v1562_v33 = vld [vmem:[#allocation10 + $0x588] sm:$0xff]  ;;  %v13232_v37 = vcombine.high %v1561_v31, %v1565_v32  ;;  %v1569_v39 = vld [vmem:[#allocation10 + $0x5c0] sm:$0xff] }
 0x191   :  { %v15206_v46 = vpack.c.bf16 %v1354_v44, %v1354_v44  ;;  %v15217_v4 = vpack.c.bf16 %v1356_v63, %v1356_v63  ;;  %v13234_v38 = vcombine.high %v1562_v33, %v1566_v34  ;;  %v1573_v40 = vld [vmem:[#allocation10 + $0x5e0] sm:$0xff]  ;;  %v13231_v43 = vcombine.low %v1561_v31, %v1565_v32  ;;  %v1578_v51 = vld [vmem:[#allocation10 + $0x608] sm:$0xff] }
 0x192   :  { %v13233_v44 = vcombine.low %v1562_v33, %v1566_v34  ;;  %v13239_v55 = vcombine.low %v1569_v39, %v1573_v40  ;;  %v1590_v63 = vld [vmem:[#allocation10 + $0x668] sm:$0xff]  ;;  %v13249_v3 = vcombine.low %v1578_v51, %v1582_v52  ;;  %v13266_v18 = vcombine.high %v1594_v11, %v1598_v12  ;;  %v1601_v19 = vld [vmem:[#allocation10 + $0x6c0] sm:$0xff] }
 0x193   :  { %7603 = vmatprep.mubr.bf16.mxu0 %v15206_v46  ;;  %7931 = vmatprep.mubr.bf16.mxu1 %v15206_v46  ;;  %v1605_v20 = vld [vmem:[#allocation10 + $0x6e0] sm:$0xff]  ;;  %v1602_v21 = vld [vmem:[#allocation10 + $0x6c8] sm:$0xff]  ;;  %v15230_v41 = vsub.s32 2, %v15185_v23 }
 0x194   :  { %7604 = vmatmul.mubr.bf16.vlgmr.msra.gmra.mrb[16].mxu0 %v15208_v47  ;;  %7932 = vmatmul.mubr.bf16.vlgmr.msra.gmra.mrb[16].mxu1 %v15208_v47  ;;  %v1609_v32 = vld [vmem:[#allocation10 + $0x700] sm:$0xff]  ;;  %v1610_v34 = vld [vmem:[#allocation10 + $0x708] sm:$0xff] }
 0x195   :  { %7613 = vmatpush1.bf16.msra.mxu0 %v13183_v14  ;;  %7941 = vmatpush1.bf16.msra.mxu1 %v13185_v7  ;;  %v1545_v14 = vld [vmem:[#allocation10 + $0x500] sm:$0xff]  ;;  %v13240_v7 = vcombine.high %v1569_v39, %v1573_v40 }
 0x196   :  { %7614 = vmatprep.subr.bf16.mxu0 %v13192_v48  ;;  %7942 = vmatprep.subr.bf16.mxu1 %v13194_v49  ;;  %v13216_v16 = vcombine.high %v1545_v14, %v1549_v10  ;;  %v13215_v22 = vcombine.low %v1545_v14, %v1549_v10  ;;  %v1577_v48 = vld [vmem:[#allocation10 + $0x600] sm:$0xff] }
 0x197   :  { %7644 = vmatprep.mubr.bf16.mxu0 %v15217_v4  ;;  %7972 = vmatprep.mubr.bf16.mxu1 %v15217_v4  ;;  %v13247_v2 = vcombine.low %v1577_v48, %v1581_v50  ;;  %v1597_v10 = vld [vmem:[#allocation10 + $0x6a0] sm:$0xff] }
 0x198   :  { %v1613_v33 = vld [vmem:[#allocation10 + $0x720] sm:$0xff] }
 0x199   :  { %7615 = vmatpush1.bf16.msra.mxu0 %v13191_v58  ;;  %7943 = vmatpush1.bf16.msra.mxu1 %v13193_v59  ;;  %v13248_v58 = vcombine.high %v1577_v48, %v1581_v50  ;;  %v13250_v59 = vcombine.high %v1578_v51, %v1582_v52  ;;  %v1617_v40 = vld [vmem:[#allocation10 + $0x740] sm:$0xff] }
 0x19a   :  { %7616 = vmatprep.subr.bf16.mxu0 %v13200_v60  ;;  %7944 = vmatprep.subr.bf16.mxu1 %v13202_v61  ;;  %v1585_v60 = vld [vmem:[#allocation10 + $0x640] sm:$0xff] }
 0x19b   :  { %v1589_v61 = vld [vmem:[#allocation10 + $0x660] sm:$0xff] }
 0x19c   :  { %v1621_v42 = vld [vmem:[#allocation10 + $0x760] sm:$0xff] }
 0x19d   :  { %7617 = vmatpush1.bf16.msra.mxu0 %v13199_v5  ;;  %7945 = vmatpush1.bf16.msra.mxu1 %v13201_v6  ;;  %v13256_v6 = vcombine.high %v1585_v60, %v1589_v61  ;;  %v13288_v50 = vcombine.high %v1617_v40, %v1621_v42  ;;  %v1625_v52 = vld [vmem:[#allocation10 + $0x780] sm:$0xff] }
 0x19e   :  { %7618 = vmatprep.subr.bf16.mxu0 %v13208_v8  ;;  %7946 = vmatprep.subr.bf16.mxu1 %v13210_v9  ;;  %v13258_v8 = vcombine.high %v1586_v62, %v1590_v63  ;;  %v1593_v9 = vld [vmem:[#allocation10 + $0x680] sm:$0xff] }
 0x1a1   :  { %7619 = vmatpush1.bf16.msra.mxu0 %v13207_v13  ;;  %7947 = vmatpush1.bf16.msra.mxu1 %v13209_v15  ;;  %v13255_v15 = vcombine.low %v1585_v60, %v1589_v61 }
 0x1a2   :  { %7620 = vmatprep.subr.bf16.mxu0 %v13216_v16  ;;  %7948 = vmatprep.subr.bf16.mxu1 %v13218_v17  ;;  %v13257_v16 = vcombine.low %v1586_v62, %v1590_v63  ;;  %v13264_v17 = vcombine.high %v1593_v9, %v1597_v10  ;;  %v1633_v63 = vld [vmem:[#allocation10 + $0x7c0] sm:$0xff] }
 0x1a5   :  { %7621 = vmatpush1.bf16.msra.mxu0 %v13215_v22  ;;  %7949 = vmatpush1.bf16.msra.mxu1 %v13217_v27  ;;  %v1606_v22 = vld [vmem:[#allocation10 + $0x6e8] sm:$0xff]  ;;  %v13263_v27 = vcombine.low %v1593_v9, %v1597_v10 }
 0x1a6   :  { %7622 = vmatprep.subr.bf16.mxu0 %v13224_v28  ;;  %7950 = vmatprep.subr.bf16.mxu1 %v13226_v29  ;;  %v13265_v28 = vcombine.low %v1594_v11, %v1598_v12  ;;  %v13272_v29 = vcombine.high %v1601_v19, %v1605_v20  ;;  %v13274_v31 = vcombine.high %v1602_v21, %v1606_v22 }
 0x1a9   :  { %7623 = vmatpush1.bf16.msra.mxu0 %v13223_v35  ;;  %7951 = vmatpush1.bf16.msra.mxu1 %v13225_v36  ;;  %v1614_v35 = vld [vmem:[#allocation10 + $0x728] sm:$0xff]  ;;  %v13271_v36 = vcombine.low %v1601_v19, %v1605_v20 }
 0x1aa   :  { %7624 = vmatprep.subr.bf16.mxu0 %v13232_v37  ;;  %7952 = vmatprep.subr.bf16.mxu1 %v13234_v38  ;;  %v15221_v49 = vpop.f32.mrb[4].mxu0  ;;  %v13273_v37 = vcombine.low %v1602_v21, %v1606_v22  ;;  %v13280_v38 = vcombine.high %v1609_v32, %v1613_v33  ;;  %v13282_v39 = vcombine.high %v1610_v34, %v1614_v35 }
 0x1ab   :  { %v15223_v53 = vpop.f32.mrb[5].mxu0  ;;  %v13281_v48 = vcombine.low %v1610_v34, %v1614_v35  ;;  %v1653_v34 = vld [vmem:[#allocation10 + $0x860] sm:$0xff] }
 0x1ac   :  { %v1113_v54 = vpop.f32.mrb[6].mxu0  ;;  %v15225_v0 = vpop.f32.mrb[4].mxu1 }
 0x1ad   :  { %7625 = vmatpush1.bf16.msra.mxu0 %v13231_v43  ;;  %7953 = vmatpush1.bf16.msra.mxu1 %v13233_v44  ;;  %v1114_v57 = vpop.f32.mrb[7].mxu0  ;;  %v15227_v5 = vpop.f32.mrb[5].mxu1  ;;  %v1618_v43 = vld [vmem:[#allocation10 + $0x748] sm:$0xff]  ;;  %v284_v54 = vrot.slane %v15190_v25, %v15230_v41 }
 0x1ae   :  { %7626 = vmatprep.subr.bf16.mxu0 %v13240_v7  ;;  %7954 = vmatprep.subr.bf16.mxu1 %v13242_v1  ;;  %v1154_v14 = vpop.f32.mrb[6].mxu1  ;;  %v1622_v44 = vld [vmem:[#allocation10 + $0x768] sm:$0xff]  ;;  %v15233_v7 = vsub.s32 5, %v15185_v23  ;;  %v13279_v1 = vcombine.low %v1609_v32, %v1613_v33  ;;  %v1649_v33 = vld [vmem:[#allocation10 + $0x840] sm:$0xff] }
 0x1af   :  { %v1155_v13 = vpop.f32.mrb[7].mxu1  ;;  %v13290_v51 = vcombine.high %v1618_v43, %v1622_v44  ;;  %v1630_v57 = vld [vmem:[#allocation10 + $0x7a8] sm:$0xff]  ;;  %v13289_v60 = vcombine.low %v1618_v43, %v1622_v44  ;;  %v13320_v44 = vcombine.high %v1649_v33, %v1653_v34 }
 0x1b0   :  { %v1641_v13 = vld [vmem:[#allocation10 + $0x800] sm:$0xff] }
 0x1b1   :  { %7627 = vmatpush1.bf16.msra.mxu0 %v13239_v55  ;;  %7955 = vmatpush1.bf16.msra.mxu1 %v13241_v56  ;;  %v1629_v55 = vld [vmem:[#allocation10 + $0x7a0] sm:$0xff]  ;;  %v1626_v56 = vld [vmem:[#allocation10 + $0x788] sm:$0xff] }
 0x1b2   :  { %7628 = vmatprep.subr.bf16.mxu0 %v13248_v58  ;;  %7956 = vmatprep.subr.bf16.mxu1 %v13250_v59  ;;  %v296_v58 = vrot.slane %v15190_v25, %v15233_v7  ;;  %v13287_v59 = vcombine.low %v1617_v40, %v1621_v42  ;;  %v13296_v61 = vcombine.high %v1625_v52, %v1629_v55 }
 0x1b3   :  { %v13298_v62 = vcombine.high %v1626_v56, %v1630_v57  ;;  %v13295_v14 = vcombine.low %v1625_v52, %v1629_v55  ;;  %v13297_v10 = vcombine.low %v1626_v56, %v1630_v57  ;;  %v1657_v52 = vld [vmem:[#allocation10 + $0x880] sm:$0xff]  ;;  %v1658_v57 = vld [vmem:[#allocation10 + $0x888] sm:$0xff] }
 0x1b4   :  { %v1112_v9 = vadd.f32 %v15223_v53, %v296_v58  ;;  %v15245_v53 = vld [vmem:[#allocation9 + $0x8] sm:$0xff]  ;;  %v1661_v56 = vld [vmem:[#allocation10 + $0x8a0] sm:$0xff]  ;;  %v1662_v58 = vld [vmem:[#allocation10 + $0x8a8] sm:$0xff] }
 0x1b5   :  { %7629 = vmatpush1.bf16.msra.mxu0 %v13247_v2  ;;  %7957 = vmatpush1.bf16.msra.mxu1 %v13249_v3  ;;  %v1069_v2 = vadd.f32 %v15204_v45, %v284_v54  ;;  %v1637_v3 = vld [vmem:[#allocation10 + $0x7e0] sm:$0xff]  ;;  %v1646_v45 = vld [vmem:[#allocation10 + $0x828] sm:$0xff]  ;;  %v320_v35 = vrot.slane %v15245_v53, %v15200_v30 }
 0x1b6   :  { %7630 = vmatprep.subr.bf16.mxu0 %v13256_v6  ;;  %7958 = vmatprep.subr.bf16.mxu1 %v13258_v8  ;;  %v1634_v6 = vld [vmem:[#allocation10 + $0x7c8] sm:$0xff]  ;;  %v13304_v11 = vcombine.high %v1633_v63, %v1637_v3  ;;  %v1342_v20 = vmul.f32 0.2, %v1112_v9  ;;  %v13303_v22 = vcombine.low %v1633_v63, %v1637_v3  ;;  %vm1326_vm4 = vcmp.gt.f32.partialorder %v1112_v9, 0.0  ;;  %v1665_v3 = vld [vmem:[#allocation10 + $0x8c0] sm:$0xff] }
 0x1b7   :  { %v1638_v8 = vld [vmem:[#allocation10 + $0x7e8] sm:$0xff]  ;;  %vm1323_vm3 = vcmp.gt.f32.partialorder %v1069_v2, 0.0  ;;  %v13328_v63 = vcombine.high %v1657_v52, %v1661_v56 }
 0x1b8   :  { %v13306_v12 = vcombine.high %v1634_v6, %v1638_v8  ;;  %v1358_v40 = vsel %vm1326_vm4, %v1112_v9, %v1342_v20  ;;  %v1670_v9 = vld [vmem:[#allocation10 + $0x8e8] sm:$0xff] }
 0x1b9   :  { %7631 = vmatpush1.bf16.msra.mxu0 %v13255_v15  ;;  %7959 = vmatpush1.bf16.msra.mxu1 %v13257_v16  ;;  %v1339_v16 = vmul.f32 0.2, %v1069_v2 }
 0x1ba   :  { %7632 = vmatprep.subr.bf16.mxu0 %v13264_v17  ;;  %7960 = vmatprep.subr.bf16.mxu1 %v13266_v18  ;;  %v1645_v17 = vld [vmem:[#allocation10 + $0x820] sm:$0xff]  ;;  %v1642_v18 = vld [vmem:[#allocation10 + $0x808] sm:$0xff] }
 0x1bb   :  { %v13314_v32 = vcombine.high %v1642_v18, %v1646_v45  ;;  %v13313_v43 = vcombine.low %v1642_v18, %v1646_v45  ;;  %v1678_v18 = vld [vmem:[#allocation10 + $0x928] sm:$0xff] }
 0x1bd   :  { %7633 = vmatpush1.bf16.msra.mxu0 %v13263_v27  ;;  %7961 = vmatpush1.bf16.msra.mxu1 %v13265_v28  ;;  %v13305_v27 = vcombine.low %v1634_v6, %v1638_v8  ;;  %v1669_v6 = vld [vmem:[#allocation10 + $0x8e0] sm:$0xff]  ;;  %v1666_v8 = vld [vmem:[#allocation10 + $0x8c8] sm:$0xff] }
 0x1be   :  { %7634 = vmatprep.subr.bf16.mxu0 %v13272_v29  ;;  %7962 = vmatprep.subr.bf16.mxu1 %v13274_v31  ;;  %v316_v29 = vrot.slane %v15245_v53, %v15230_v41  ;;  %v13312_v31 = vcombine.high %v1641_v13, %v1645_v17  ;;  %v13335_v45 = vcombine.low %v1665_v3, %v1669_v6 }
 0x1bf   :  { %v13337_v20 = vcombine.low %v1666_v8, %v1670_v9 }
 0x1c1   :  { %7635 = vmatpush1.bf16.msra.mxu0 %v13271_v36  ;;  %7963 = vmatpush1.bf16.msra.mxu1 %v13273_v37  ;;  %v1355_v36 = vsel %vm1323_vm3, %v1069_v2, %v1339_v16  ;;  %v1650_v37 = vld [vmem:[#allocation10 + $0x848] sm:$0xff]  ;;  %v13330_v2 = vcombine.high %v1658_v57, %v1662_v58  ;;  %v1677_v16 = vld [vmem:[#allocation10 + $0x920] sm:$0xff] }
 0x1c2   :  { %7636 = vmatprep.subr.bf16.mxu0 %v13280_v38  ;;  %7964 = vmatprep.subr.bf16.mxu1 %v13282_v39  ;;  %v1654_v38 = vld [vmem:[#allocation10 + $0x868] sm:$0xff]  ;;  %v13311_v39 = vcombine.low %v1641_v13, %v1645_v17  ;;  %v1673_v13 = vld [vmem:[#allocation10 + $0x900] sm:$0xff] }
 0x1c3   :  { %v1674_v17 = vld [vmem:[#allocation10 + $0x908] sm:$0xff] }
 0x1c5   :  { %7637 = vmatpush1.bf16.msra.mxu0 %v13279_v1  ;;  %7965 = vmatpush1.bf16.msra.mxu1 %v13281_v48 }
 0x1c6   :  { %7638 = vmatprep.subr.bf16.mxu0 %v13288_v50  ;;  %7966 = vmatprep.subr.bf16.mxu1 %v13290_v51  ;;  %v15254_v50 = vpack.c.bf16 %v1355_v36, %v1355_v36  ;;  %v13322_v51 = vcombine.high %v1650_v37, %v1654_v38  ;;  %v1689_v36 = vld [vmem:[#allocation10 + $0x980] sm:$0xff] }
 0x1c9   :  { %7639 = vmatpush1.bf16.msra.mxu0 %v13287_v59  ;;  %7967 = vmatpush1.bf16.msra.mxu1 %v13289_v60  ;;  %v15258_v59 = vpack.c.bf16 %v1358_v40, %v1358_v40  ;;  %v15265_v40 = vsub.s32 4, %v15185_v23 }
 0x1ca   :  { %7640 = vmatprep.subr.bf16.mxu0 %v13296_v61  ;;  %7968 = vmatprep.subr.bf16.mxu1 %v13298_v62  ;;  %v15241_v15 = vpop.f32.mrb[8].mxu0  ;;  %v13319_v61 = vcombine.low %v1649_v33, %v1653_v34  ;;  %v13321_v62 = vcombine.low %v1650_v37, %v1654_v38  ;;  %v13345_v33 = vcombine.low %v1674_v17, %v1678_v18  ;;  %v1693_v37 = vld [vmem:[#allocation10 + $0x9a0] sm:$0xff]  ;;  %v1690_v38 = vld [vmem:[#allocation10 + $0x988] sm:$0xff] }
 0x1cb   :  { %v15243_v19 = vpop.f32.mrb[9].mxu0 }
 0x1cc   :  { %v1195_v21 = vpop.f32.mrb[10].mxu0  ;;  %v1232_v42 = vpop.f32.mrb[8].mxu1 }
 0x1cd   :  { %7641 = vmatpush1.bf16.msra.mxu0 %v13295_v14  ;;  %7969 = vmatpush1.bf16.msra.mxu1 %v13297_v10  ;;  %v1196_v28 = vpop.f32.mrb[11].mxu0  ;;  %v15252_v1 = vadd.f32 %v1232_v42, %v316_v29  ;;  %v1234_v48 = vpop.f32.mrb[9].mxu1  ;;  %v13327_v14 = vcombine.low %v1657_v52, %v1661_v56  ;;  %v13329_v10 = vcombine.low %v1658_v57, %v1662_v58  ;;  %v1682_v29 = vld [vmem:[#allocation10 + $0x948] sm:$0xff]  ;;  %v1701_v52 = vld [vmem:[#allocation10 + $0x9e0] sm:$0xff] }
 0x1ce   :  { %7642 = vmatprep.subr.bf16.mxu0 %v13304_v11  ;;  %7970 = vmatprep.subr.bf16.mxu1 %v13306_v12  ;;  %v15256_v54 = vadd.f32 %v1234_v48, %v320_v35  ;;  %v1236_v55 = vpop.f32.mrb[10].mxu1  ;;  %v13336_v11 = vcombine.high %v1665_v3, %v1669_v6  ;;  %v13338_v12 = vcombine.high %v1666_v8, %v1670_v9  ;;  %v1685_v28 = vld [vmem:[#allocation10 + $0x960] sm:$0xff]  ;;  %v1702_v56 = vld [vmem:[#allocation10 + $0x9e8] sm:$0xff] }
 0x1cf   :  { %v1237_v60 = vpop.f32.mrb[11].mxu1  ;;  %v13344_v21 = vcombine.high %v1673_v13, %v1677_v16  ;;  %v1698_v55 = vld [vmem:[#allocation10 + $0x9c8] sm:$0xff]  ;;  %v324_v57 = vrot.slane %v15245_v53, %v15265_v40  ;;  %v328_v58 = vrot.slane %v15245_v53, %v15233_v7  ;;  %v1709_v6 = vld [vmem:[#allocation10 + $0xa20] sm:$0xff]  ;;  %vm1331_vm11 = vcmp.gt.f32.partialorder %v15252_v1, 0.0 }
 0x1d0   :  { %v13359_v60 = vcombine.low %v1689_v36, %v1693_v37  ;;  %v1706_v8 = vld [vmem:[#allocation10 + $0xa08] sm:$0xff]  ;;  %vm1332_vm10 = vcmp.gt.f32.partialorder %v15256_v54, 0.0 }
 0x1d1   :  { %7643 = vmatpush1.bf16.msra.mxu0 %v13303_v22  ;;  %7971 = vmatpush1.bf16.msra.mxu1 %v13305_v27  ;;  %v13346_v22 = vcombine.high %v1674_v17, %v1678_v18  ;;  %v1681_v27 = vld [vmem:[#allocation10 + $0x940] sm:$0xff]  ;;  %v1710_v9 = vld [vmem:[#allocation10 + $0xa28] sm:$0xff]  ;;  %v13369_v18 = vcombine.low %v1698_v55, %v1702_v56 }
 0x1d2   :  { %7653 = vmatprep.subr.bf16.mxu0 %v13312_v31  ;;  %7981 = vmatprep.subr.bf16.mxu1 %v13314_v32  ;;  %v1686_v31 = vld [vmem:[#allocation10 + $0x968] sm:$0xff]  ;;  %v13343_v32 = vcombine.low %v1673_v13, %v1677_v16  ;;  %v13352_v34 = vcombine.high %v1681_v27, %v1685_v28  ;;  %v13351_v42 = vcombine.low %v1681_v27, %v1685_v28  ;;  %v1713_v27 = vld [vmem:[#allocation10 + $0xa40] sm:$0xff] }
 0x1d3   :  { %v13354_v35 = vcombine.high %v1682_v29, %v1686_v31 }
 0x1d4   :  { %7645 = vmatmul.mubr.bf16.vlgmr.msra.gmra.mrb[16].mxu0 %v15254_v50  ;;  %7973 = vmatmul.mubr.bf16.vlgmr.msra.gmra.mrb[16].mxu1 %v15254_v50 }
 0x1d5   :  { %7654 = vmatpush1.bf16.msra.mxu0 %v13311_v39  ;;  %7982 = vmatpush1.bf16.msra.mxu1 %v13313_v43  ;;  %v1694_v39 = vld [vmem:[#allocation10 + $0x9a8] sm:$0xff]  ;;  %v13353_v43 = vcombine.low %v1682_v29, %v1686_v31  ;;  %v1717_v29 = vld [vmem:[#allocation10 + $0xa60] sm:$0xff] }
 0x1d6   :  { %7655 = vmatprep.subr.bf16.mxu0 %v13320_v44  ;;  %7983 = vmatprep.subr.bf16.mxu1 %v13322_v51  ;;  %v13360_v44 = vcombine.high %v1689_v36, %v1693_v37  ;;  %v13362_v48 = vcombine.high %v1690_v38, %v1694_v39  ;;  %v1697_v51 = vld [vmem:[#allocation10 + $0x9c0] sm:$0xff]  ;;  %v1714_v31 = vld [vmem:[#allocation10 + $0xa48] sm:$0xff] }
 0x1d7   :  { %7685 = vmatprep.mubr.bf16.mxu0 %v15258_v59  ;;  %8013 = vmatprep.mubr.bf16.mxu1 %v15258_v59  ;;  %v13367_v17 = vcombine.low %v1697_v51, %v1701_v52 }
 0x1d9   :  { %7656 = vmatpush1.bf16.msra.mxu0 %v13319_v61  ;;  %7984 = vmatpush1.bf16.msra.mxu1 %v13321_v62  ;;  %v13361_v61 = vcombine.low %v1690_v38, %v1694_v39  ;;  %v13368_v62 = vcombine.high %v1697_v51, %v1701_v52  ;;  %v13384_v38 = vcombine.high %v1713_v27, %v1717_v29  ;;  %v1722_v51 = vld [vmem:[#allocation10 + $0xa88] sm:$0xff] }
 0x1da   :  { %7657 = vmatprep.subr.bf16.mxu0 %v13328_v63  ;;  %7985 = vmatprep.subr.bf16.mxu1 %v13330_v2  ;;  %v13370_v63 = vcombine.high %v1698_v55, %v1702_v56  ;;  %v1705_v2 = vld [vmem:[#allocation10 + $0xa00] sm:$0xff]  ;;  %v1726_v52 = vld [vmem:[#allocation10 + $0xaa8] sm:$0xff]  ;;  %v13383_v56 = vcombine.low %v1713_v27, %v1717_v29 }
 0x1db   :  { %v1745_v27 = vld [vmem:[#allocation10 + $0xb40] sm:$0xff]  ;;  %v1746_v29 = vld [vmem:[#allocation10 + $0xb48] sm:$0xff] }
 0x1dd   :  { %7658 = vmatpush1.bf16.msra.mxu0 %v13327_v14  ;;  %7986 = vmatpush1.bf16.msra.mxu1 %v13329_v10  ;;  %v15272_v14 = vsub.s32 6, %v15185_v23 }
 0x1de   :  { %7659 = vmatprep.subr.bf16.mxu0 %v13336_v11  ;;  %7987 = vmatprep.subr.bf16.mxu1 %v13338_v12  ;;  %v15277_v12 = vsub.s32 7, %v15185_v23 }
 0x1e0   :  { %v336_v28 = vrot.slane %v15245_v53, %v15277_v12 }
 0x1e1   :  { %7660 = vmatpush1.bf16.msra.mxu0 %v13335_v45  ;;  %7988 = vmatpush1.bf16.msra.mxu1 %v13337_v20  ;;  %v332_v20 = vrot.slane %v15245_v53, %v15272_v14 }
 0x1e2   :  { %7661 = vmatprep.subr.bf16.mxu0 %v13344_v21  ;;  %7989 = vmatprep.subr.bf16.mxu1 %v13346_v22  ;;  %v13376_v21 = vcombine.high %v1705_v2, %v1709_v6  ;;  %v13378_v22 = vcombine.high %v1706_v8, %v1710_v9 }
 0x1e5   :  { %7662 = vmatpush1.bf16.msra.mxu0 %v13343_v32  ;;  %7990 = vmatpush1.bf16.msra.mxu1 %v13345_v33  ;;  %v1718_v32 = vld [vmem:[#allocation10 + $0xa68] sm:$0xff] }
 0x1e6   :  { %7663 = vmatprep.subr.bf16.mxu0 %v13352_v34  ;;  %7991 = vmatprep.subr.bf16.mxu1 %v13354_v35  ;;  %v13375_v34 = vcombine.low %v1705_v2, %v1709_v6  ;;  %v13377_v35 = vcombine.low %v1706_v8, %v1710_v9  ;;  %v13386_v39 = vcombine.high %v1714_v31, %v1718_v32  ;;  %v1734_v2 = vld [vmem:[#allocation10 + $0xae8] sm:$0xff] }
 0x1e7   :  { %v13393_v6 = vcombine.low %v1722_v51, %v1726_v52 }
 0x1e9   :  { %7664 = vmatpush1.bf16.msra.mxu0 %v13351_v42  ;;  %7992 = vmatpush1.bf16.msra.mxu1 %v13353_v43  ;;  %v1721_v42 = vld [vmem:[#allocation10 + $0xa80] sm:$0xff] }
 0x1ea   :  { %7665 = vmatprep.subr.bf16.mxu0 %v13360_v44  ;;  %7993 = vmatprep.subr.bf16.mxu1 %v13362_v48  ;;  %v1273_v3 = vpop.f32.mrb[12].mxu0  ;;  %v1725_v48 = vld [vmem:[#allocation10 + $0xaa0] sm:$0xff] }
 0x1eb   :  { %v15274_v10 = vadd.f32 %v1273_v3, %v324_v57  ;;  %v1275_v11 = vpop.f32.mrb[13].mxu0  ;;  %v13385_v57 = vcombine.low %v1714_v31, %v1718_v32  ;;  %v13391_v3 = vcombine.low %v1721_v42, %v1725_v48  ;;  %v1750_v31 = vld [vmem:[#allocation10 + $0xb68] sm:$0xff] }
 0x1ec   :  { %v15279_v13 = vadd.f32 %v1275_v11, %v328_v58  ;;  %v1277_v16 = vpop.f32.mrb[14].mxu0  ;;  %v1314_v33 = vpop.f32.mrb[12].mxu1  ;;  %v13392_v58 = vcombine.high %v1721_v42, %v1725_v48  ;;  %v1737_v11 = vld [vmem:[#allocation10 + $0xb00] sm:$0xff]  ;;  %v1754_v42 = vld [vmem:[#allocation10 + $0xb88] sm:$0xff]  ;;  %v304_v48 = vrot.slane %v15190_v25, %v15277_v12 }
 0x1ed   :  { %7666 = vmatpush1.bf16.msra.mxu0 %v13359_v60  ;;  %7994 = vmatpush1.bf16.msra.mxu1 %v13361_v61  ;;  %v1278_v45 = vpop.f32.mrb[15].mxu0  ;;  %v15285_v36 = vadd.f32 %v1314_v33, %v332_v20  ;;  %v1316_v37 = vpop.f32.mrb[13].mxu1  ;;  %v13394_v60 = vcombine.high %v1722_v51, %v1726_v52  ;;  %v1729_v61 = vld [vmem:[#allocation10 + $0xac0] sm:$0xff]  ;;  %v13417_v52 = vcombine.low %v1746_v29, %v1750_v31  ;;  %vm1333_vm13 = vcmp.gt.f32.partialorder %v15274_v10, 0.0 }
 0x1ee   :  { %7667 = vmatprep.subr.bf16.mxu0 %v13368_v62  ;;  %7995 = vmatprep.subr.bf16.mxu1 %v13370_v63  ;;  %v15287_v43 = vadd.f32 %v1316_v37, %v336_v28  ;;  %v1318_v44 = vpop.f32.mrb[14].mxu1  ;;  %v1733_v62 = vld [vmem:[#allocation10 + $0xae0] sm:$0xff]  ;;  %v1730_v63 = vld [vmem:[#allocation10 + $0xac8] sm:$0xff]  ;;  %vm1334_vm12 = vcmp.gt.f32.partialorder %v15279_v13, 0.0 }
 0x1ef   :  { %v1319_v55 = vpop.f32.mrb[15].mxu1  ;;  %v13400_v8 = vcombine.high %v1729_v61, %v1733_v62  ;;  %v13402_v9 = vcombine.high %v1730_v63, %v1734_v2  ;;  %v1741_v16 = vld [vmem:[#allocation10 + $0xb20] sm:$0xff]  ;;  %v13399_v45 = vcombine.low %v1729_v61, %v1733_v62  ;;  %v13401_v20 = vcombine.low %v1730_v63, %v1734_v2  ;;  %v1758_v44 = vld [vmem:[#allocation10 + $0xba8] sm:$0xff] }
 0x1f0   :  { %v1749_v28 = vld [vmem:[#allocation10 + $0xb60] sm:$0xff]  ;;  %v13407_v32 = vcombine.low %v1737_v11, %v1741_v16  ;;  %v1762_v61 = vld [vmem:[#allocation10 + $0xbc8] sm:$0xff]  ;;  %v1153_v63 = vadd.f32 %v15227_v5, %v304_v48  ;;  %vm1336_vm14 = vcmp.gt.f32.partialorder %v15287_v43, 0.0  ;;  %vm1335_vm15 = vcmp.gt.f32.partialorder %v15285_v36, 0.0 }
 0x1f1   :  { %7668 = vmatpush1.bf16.msra.mxu0 %v13367_v17  ;;  %7996 = vmatpush1.bf16.msra.mxu1 %v13369_v18  ;;  %v1738_v17 = vld [vmem:[#allocation10 + $0xb08] sm:$0xff]  ;;  %v1753_v37 = vld [vmem:[#allocation10 + $0xb80] sm:$0xff]  ;;  %v13415_v51 = vcombine.low %v1745_v27, %v1749_v28 }
 0x1f2   :  { %7669 = vmatprep.subr.bf16.mxu0 %v13376_v21  ;;  %7997 = vmatprep.subr.bf16.mxu1 %v13378_v22  ;;  %v1742_v18 = vld [vmem:[#allocation10 + $0xb28] sm:$0xff]  ;;  %v13408_v21 = vcombine.high %v1737_v11, %v1741_v16  ;;  %v1773_v11 = vld [vmem:[#allocation10 + $0xc20] sm:$0xff]  ;;  %vm1328_vm6 = vcmp.gt.f32.partialorder %v1153_v63, 0.0 }
 0x1f3   :  { %v13410_v22 = vcombine.high %v1738_v17, %v1742_v18  ;;  %v13409_v33 = vcombine.low %v1738_v17, %v1742_v18  ;;  %v1766_v62 = vld [vmem:[#allocation10 + $0xbe8] sm:$0xff] }
 0x1f4   :  { %v1770_v16 = vld [vmem:[#allocation10 + $0xc08] sm:$0xff]  ;;  %v13433_v5 = vcombine.low %v1762_v61, %v1766_v62 }
 0x1f5   :  { %7670 = vmatpush1.bf16.msra.mxu0 %v13375_v34  ;;  %7998 = vmatpush1.bf16.msra.mxu1 %v13377_v35  ;;  %v13416_v34 = vcombine.high %v1745_v27, %v1749_v28  ;;  %v13418_v35 = vcombine.high %v1746_v29, %v1750_v31  ;;  %v1774_v17 = vld [vmem:[#allocation10 + $0xc28] sm:$0xff]  ;;  %v1781_v28 = vld [vmem:[#allocation10 + $0xc60] sm:$0xff] }
 0x1f6   :  { %7671 = vmatprep.subr.bf16.mxu0 %v13384_v38  ;;  %7999 = vmatprep.subr.bf16.mxu1 %v13386_v39  ;;  %v292_v38 = vrot.slane %v15190_v25, %v15265_v40  ;;  %v1757_v39 = vld [vmem:[#allocation10 + $0xba0] sm:$0xff]  ;;  %v13425_v25 = vcombine.low %v1754_v42, %v1758_v44  ;;  %v1778_v29 = vld [vmem:[#allocation10 + $0xc48] sm:$0xff] }
 0x1f7   :  { %v13424_v55 = vcombine.high %v1753_v37, %v1757_v39  ;;  %v13423_v2 = vcombine.low %v1753_v37, %v1757_v39  ;;  %v1782_v31 = vld [vmem:[#allocation10 + $0xc68] sm:$0xff]  ;;  %v1785_v39 = vld [vmem:[#allocation10 + $0xc80] sm:$0xff] }
 0x1f8   :  { %v1790_v48 = vld [vmem:[#allocation10 + $0xca8] sm:$0xff] }
 0x1f9   :  { %7672 = vmatpush1.bf16.msra.mxu0 %v13383_v56  ;;  %8000 = vmatpush1.bf16.msra.mxu1 %v13385_v57  ;;  %v13426_v56 = vcombine.high %v1754_v42, %v1758_v44  ;;  %v1761_v57 = vld [vmem:[#allocation10 + $0xbc0] sm:$0xff]  ;;  %v1786_v44 = vld [vmem:[#allocation10 + $0xc88] sm:$0xff] }
 0x1fa   :  { %7673 = vmatprep.subr.bf16.mxu0 %v13392_v58  ;;  %8001 = vmatprep.subr.bf16.mxu1 %v13394_v60  ;;  %v1110_v58 = vadd.f32 %v15221_v49, %v292_v38  ;;  %v1765_v60 = vld [vmem:[#allocation10 + $0xbe0] sm:$0xff]  ;;  %v1344_v49 = vmul.f32 0.2, %v1153_v63  ;;  %v13450_v38 = vcombine.high %v1778_v29, %v1782_v31 }
 0x1fb   :  { %v13431_v18 = vcombine.low %v1761_v57, %v1765_v60  ;;  %v1789_v42 = vld [vmem:[#allocation10 + $0xca0] sm:$0xff] }
 0x1fc   :  { %vm1325_vm5 = vcmp.gt.f32.partialorder %v1110_v58, 0.0  ;;  %v1360_v27 = vsel %vm1328_vm6, %v1153_v63, %v1344_v49  ;;  %v13457_v63 = vcombine.low %v1786_v44, %v1790_v48 }
 0x1fd   :  { %7674 = vmatpush1.bf16.msra.mxu0 %v13391_v3  ;;  %8002 = vmatpush1.bf16.msra.mxu1 %v13393_v6  ;;  %v13432_v3 = vcombine.high %v1761_v57, %v1765_v60  ;;  %v13434_v6 = vcombine.high %v1762_v61, %v1766_v62  ;;  %v1793_v57 = vld [vmem:[#allocation10 + $0xcc0] sm:$0xff]  ;;  %v1794_v60 = vld [vmem:[#allocation10 + $0xcc8] sm:$0xff]  ;;  %v13455_v62 = vcombine.low %v1785_v39, %v1789_v42 }
 0x1fe   :  { %7675 = vmatprep.subr.bf16.mxu0 %v13400_v8  ;;  %8003 = vmatprep.subr.bf16.mxu1 %v13402_v9  ;;  %v1769_v8 = vld [vmem:[#allocation10 + $0xc00] sm:$0xff]  ;;  %v1341_v9 = vmul.f32 0.2, %v1110_v58  ;;  %v1798_v61 = vld [vmem:[#allocation10 + $0xce8] sm:$0xff] }
 0x201   :  { %7676 = vmatpush1.bf16.msra.mxu0 %v13399_v45  ;;  %8004 = vmatpush1.bf16.msra.mxu1 %v13401_v20  ;;  %v13440_v45 = vcombine.high %v1769_v8, %v1773_v11  ;;  %v13442_v20 = vcombine.high %v1770_v16, %v1774_v17 }
 0x202   :  { %7677 = vmatprep.subr.bf16.mxu0 %v13408_v21  ;;  %8005 = vmatprep.subr.bf16.mxu1 %v13410_v22  ;;  %v1357_v21 = vsel %vm1325_vm5, %v1110_v58, %v1341_v9  ;;  %v1777_v22 = vld [vmem:[#allocation10 + $0xc40] sm:$0xff]  ;;  %v1806_v9 = vld [vmem:[#allocation10 + $0xd28] sm:$0xff] }
 0x203   :  { %v13448_v37 = vcombine.high %v1777_v22, %v1781_v28  ;;  %v1797_v58 = vld [vmem:[#allocation10 + $0xce0] sm:$0xff] }
 0x205   :  { %7678 = vmatpush1.bf16.msra.mxu0 %v13407_v32  ;;  %8006 = vmatpush1.bf16.msra.mxu1 %v13409_v33  ;;  %v13439_v32 = vcombine.low %v1769_v8, %v1773_v11  ;;  %v15295_v33 = vpack.c.bf16 %v1357_v21, %v1357_v21  ;;  %v1802_v8 = vld [vmem:[#allocation10 + $0xd08] sm:$0xff]  ;;  %v13463_v11 = vcombine.low %v1793_v57, %v1797_v58 }
 0x206   :  { %7679 = vmatprep.subr.bf16.mxu0 %v13416_v34  ;;  %8007 = vmatprep.subr.bf16.mxu1 %v13418_v35  ;;  %v13441_v34 = vcombine.low %v1770_v16, %v1774_v17  ;;  %v15297_v35 = vpack.c.bf16 %v1360_v27, %v1360_v27  ;;  %v13465_v16 = vcombine.low %v1794_v60, %v1798_v61 }
 0x207   :  { %v13474_v49 = vcombine.high %v1802_v8, %v1806_v9 }
 0x209   :  { %7680 = vmatpush1.bf16.msra.mxu0 %v13415_v51  ;;  %8008 = vmatpush1.bf16.msra.mxu1 %v13417_v52  ;;  %v13447_v51 = vcombine.low %v1777_v22, %v1781_v28  ;;  %v13449_v52 = vcombine.low %v1778_v29, %v1782_v31  ;;  %v13473_v22 = vcombine.low %v1802_v8, %v1806_v9  ;;  %v1817_v29 = vld [vmem:[#allocation10 + $0xd80] sm:$0xff] }
 0x20a   :  { %7681 = vmatprep.subr.bf16.mxu0 %v13424_v55  ;;  %8009 = vmatprep.subr.bf16.mxu1 %v13426_v56  ;;  %v13456_v55 = vcombine.high %v1785_v39, %v1789_v42  ;;  %v13458_v56 = vcombine.high %v1786_v44, %v1790_v48  ;;  %v1821_v31 = vld [vmem:[#allocation10 + $0xda0] sm:$0xff] }
 0x20b   :  { %v13488_v39 = vcombine.high %v1817_v29, %v1821_v31  ;;  %v1825_v44 = vld [vmem:[#allocation10 + $0xdc0] sm:$0xff] }
 0x20c   :  { %v1829_v48 = vld [vmem:[#allocation10 + $0xde0] sm:$0xff] }
 0x20d   :  { %7682 = vmatpush1.bf16.msra.mxu0 %v13423_v2  ;;  %8010 = vmatpush1.bf16.msra.mxu1 %v13425_v25  ;;  %v13464_v2 = vcombine.high %v1793_v57, %v1797_v58  ;;  %v13466_v25 = vcombine.high %v1794_v60, %v1798_v61  ;;  %v13496_v57 = vcombine.high %v1825_v44, %v1829_v48  ;;  %v1833_v60 = vld [vmem:[#allocation10 + $0xe00] sm:$0xff] }
 0x20e   :  { %7683 = vmatprep.subr.bf16.mxu0 %v13432_v3  ;;  %8011 = vmatprep.subr.bf16.mxu1 %v13434_v6  ;;  %v1801_v3 = vld [vmem:[#allocation10 + $0xd00] sm:$0xff] }
 0x20f   :  { %v1805_v6 = vld [vmem:[#allocation10 + $0xd20] sm:$0xff] }
 0x210   :  { %v13472_v17 = vcombine.high %v1801_v3, %v1805_v6  ;;  %v13471_v21 = vcombine.low %v1801_v3, %v1805_v6  ;;  %v1837_v61 = vld [vmem:[#allocation10 + $0xe20] sm:$0xff] }
 0x211   :  { %7684 = vmatpush1.bf16.msra.mxu0 %v13431_v18  ;;  %8012 = vmatpush1.bf16.msra.mxu1 %v13433_v5  ;;  %v1809_v18 = vld [vmem:[#allocation10 + $0xd40] sm:$0xff]  ;;  %v13504_v3 = vcombine.high %v1833_v60, %v1837_v61 }
 0x212   :  { %7694 = vmatprep.subr.bf16.mxu0 %v13440_v45  ;;  %8022 = vmatprep.subr.bf16.mxu1 %v13442_v20  ;;  %v1813_v5 = vld [vmem:[#allocation10 + $0xd60] sm:$0xff]  ;;  %v1810_v45 = vld [vmem:[#allocation10 + $0xd48] sm:$0xff] }
 0x213   :  { %v1814_v20 = vld [vmem:[#allocation10 + $0xd68] sm:$0xff]  ;;  %v13480_v27 = vcombine.high %v1809_v18, %v1813_v5  ;;  %v1841_v8 = vld [vmem:[#allocation10 + $0xe40] sm:$0xff] }
 0x214   :  { %7686 = vmatmul.mubr.bf16.vlgmr.msra.gmra.mrb[16].mxu0 %v15295_v33  ;;  %8014 = vmatmul.mubr.bf16.vlgmr.msra.gmra.mrb[16].mxu1 %v15295_v33  ;;  %v13482_v28 = vcombine.high %v1810_v45, %v1814_v20  ;;  %v1845_v9 = vld [vmem:[#allocation10 + $0xe60] sm:$0xff] }
 0x215   :  { %7695 = vmatpush1.bf16.msra.mxu0 %v13439_v32  ;;  %7726 = vmatprep.mubr.bf16.mxu0 %v15297_v35  ;;  %v1818_v32 = vld [vmem:[#allocation10 + $0xd88] sm:$0xff] }
 0x216   :  { %8023 = vmatpush1.bf16.msra.mxu1 %v13441_v34  ;;  %8054 = vmatprep.mubr.bf16.mxu1 %v15297_v35  ;;  %v1822_v34 = vld [vmem:[#allocation10 + $0xda8] sm:$0xff] }
 0x217   :  { %7696 = vmatprep.subr.bf16.mxu0 %v13448_v37  ;;  %8024 = vmatprep.subr.bf16.mxu1 %v13450_v38  ;;  %v13479_v37 = vcombine.low %v1809_v18, %v1813_v5  ;;  %v13481_v38 = vcombine.low %v1810_v45, %v1814_v20  ;;  %v13490_v42 = vcombine.high %v1818_v32, %v1822_v34  ;;  %v1849_v45 = vld [vmem:[#allocation10 + $0xe80] sm:$0xff] }
 0x218   :  { %v13512_v18 = vcombine.high %v1841_v8, %v1845_v9  ;;  %v1853_v20 = vld [vmem:[#allocation10 + $0xea0] sm:$0xff] }
 0x219   :  { %7697 = vmatpush1.bf16.msra.mxu0 %v13447_v51  ;;  %v1826_v51 = vld [vmem:[#allocation10 + $0xdc8] sm:$0xff] }
 0x21a   :  { %8025 = vmatpush1.bf16.msra.mxu1 %v13449_v52  ;;  %7698 = vmatprep.subr.bf16.mxu0 %v13456_v55  ;;  %v1830_v52 = vld [vmem:[#allocation10 + $0xde8] sm:$0xff]  ;;  %v13487_v55 = vcombine.low %v1817_v29, %v1821_v31  ;;  %v13520_v29 = vcombine.high %v1849_v45, %v1853_v20 }
 0x21b   :  { %8026 = vmatprep.subr.bf16.mxu1 %v13458_v56  ;;  %v13489_v56 = vcombine.low %v1818_v32, %v1822_v34  ;;  %v13498_v58 = vcombine.high %v1826_v51, %v1830_v52  ;;  %v1857_v32 = vld [vmem:[#allocation10 + $0xec0] sm:$0xff] }
 0x21c   :  { %v1861_v34 = vld [vmem:[#allocation10 + $0xee0] sm:$0xff] }
 0x21d   :  { %7699 = vmatpush1.bf16.msra.mxu0 %v13455_v62  ;;  %v1834_v62 = vld [vmem:[#allocation10 + $0xe08] sm:$0xff] }
 0x21e   :  { %8027 = vmatpush1.bf16.msra.mxu1 %v13457_v63  ;;  %7700 = vmatprep.subr.bf16.mxu0 %v13464_v2  ;;  %v1838_v63 = vld [vmem:[#allocation10 + $0xe28] sm:$0xff]  ;;  %v13495_v2 = vcombine.low %v1825_v44, %v1829_v48  ;;  %v13528_v44 = vcombine.high %v1857_v32, %v1861_v34 }
 0x21f   :  { %8028 = vmatprep.subr.bf16.mxu1 %v13466_v25  ;;  %v13497_v25 = vcombine.low %v1826_v51, %v1830_v52  ;;  %v13506_v6 = vcombine.high %v1834_v62, %v1838_v63  ;;  %v1865_v51 = vld [vmem:[#allocation10 + $0xf00] sm:$0xff] }
 0x220   :  { %v1869_v52 = vld [vmem:[#allocation10 + $0xf20] sm:$0xff] }
 0x221   :  { %7701 = vmatpush1.bf16.msra.mxu0 %v13463_v11  ;;  %v1842_v11 = vld [vmem:[#allocation10 + $0xe48] sm:$0xff] }
 0x222   :  { %8029 = vmatpush1.bf16.msra.mxu1 %v13465_v16  ;;  %7702 = vmatprep.subr.bf16.mxu0 %v13472_v17  ;;  %v1846_v16 = vld [vmem:[#allocation10 + $0xe68] sm:$0xff]  ;;  %v13503_v17 = vcombine.low %v1833_v60, %v1837_v61  ;;  %v13536_v60 = vcombine.high %v1865_v51, %v1869_v52 }
 0x223   :  { %8030 = vmatprep.subr.bf16.mxu1 %v13474_v49  ;;  %v13505_v49 = vcombine.low %v1834_v62, %v1838_v63  ;;  %v13514_v5 = vcombine.high %v1842_v11, %v1846_v16  ;;  %v1873_v62 = vld [vmem:[#allocation10 + $0xf40] sm:$0xff] }
 0x224   :  { %v1877_v63 = vld [vmem:[#allocation10 + $0xf60] sm:$0xff] }
 0x225   :  { %7703 = vmatpush1.bf16.msra.mxu0 %v13471_v21  ;;  %v1850_v21 = vld [vmem:[#allocation10 + $0xe88] sm:$0xff] }
 0x226   :  { %8031 = vmatpush1.bf16.msra.mxu1 %v13473_v22  ;;  %7704 = vmatprep.subr.bf16.mxu0 %v13480_v27  ;;  %v1854_v22 = vld [vmem:[#allocation10 + $0xea8] sm:$0xff]  ;;  %v13511_v27 = vcombine.low %v1841_v8, %v1845_v9  ;;  %v13544_v8 = vcombine.high %v1873_v62, %v1877_v63  ;;  %v14782_v9 = vld [vmem:[#allocation9] sm:$0xff] }
 0x227   :  { %8032 = vmatprep.subr.bf16.mxu1 %v13482_v28  ;;  %v13513_v28 = vcombine.low %v1842_v11, %v1846_v16  ;;  %v13522_v31 = vcombine.high %v1850_v21, %v1854_v22  ;;  %v300_v11 = vrot.slane %v14782_v9, %v15272_v14 }
 0x229   :  { %7705 = vmatpush1.bf16.msra.mxu0 %v13479_v37  ;;  %v1858_v37 = vld [vmem:[#allocation10 + $0xec8] sm:$0xff] }
 0x22a   :  { %8033 = vmatpush1.bf16.msra.mxu1 %v13481_v38  ;;  %7706 = vmatprep.subr.bf16.mxu0 %v13488_v39  ;;  %v1862_v38 = vld [vmem:[#allocation10 + $0xee8] sm:$0xff]  ;;  %v13519_v39 = vcombine.low %v1849_v45, %v1853_v20  ;;  %v312_v45 = vrot.slane %v15245_v53, %v15193_v26  ;;  %v13543_v20 = vcombine.low %v1873_v62, %v1877_v63  ;;  %v1909_v62 = vld [vmem:[#allocation10 + $0x1060] sm:$0xff] }
 0x22b   :  { %8034 = vmatprep.subr.bf16.mxu1 %v13490_v42  ;;  %v13521_v42 = vcombine.low %v1850_v21, %v1854_v22  ;;  %v13530_v48 = vcombine.high %v1858_v37, %v1862_v38 }
 0x22d   :  { %7707 = vmatpush1.bf16.msra.mxu0 %v13487_v55  ;;  %v1866_v55 = vld [vmem:[#allocation10 + $0xf08] sm:$0xff] }
 0x22e   :  { %8035 = vmatpush1.bf16.msra.mxu1 %v13489_v56  ;;  %7708 = vmatprep.subr.bf16.mxu0 %v13496_v57  ;;  %v1870_v56 = vld [vmem:[#allocation10 + $0xf28] sm:$0xff]  ;;  %v13527_v57 = vcombine.low %v1857_v32, %v1861_v34 }
 0x22f   :  { %8036 = vmatprep.subr.bf16.mxu1 %v13498_v58  ;;  %v13529_v58 = vcombine.low %v1858_v37, %v1862_v38  ;;  %v13538_v61 = vcombine.high %v1866_v55, %v1870_v56  ;;  %v1890_v32 = vld [vmem:[#allocation10 + $0xfc8] sm:$0xff]  ;;  %v1194_v37 = vadd.f32 %v15243_v19, %v312_v45 }
 0x230   :  { %v1894_v34 = vld [vmem:[#allocation10 + $0xfe8] sm:$0xff] }
 0x231   :  { %7709 = vmatpush1.bf16.msra.mxu0 %v13495_v2  ;;  %v1874_v2 = vld [vmem:[#allocation10 + $0xf48] sm:$0xff]  ;;  %vm1330_vm8 = vcmp.gt.f32.partialorder %v1194_v37, 0.0  ;;  %v13561_v19 = vcombine.low %v1890_v32, %v1894_v34 }
 0x232   :  { %8037 = vmatpush1.bf16.msra.mxu1 %v13497_v25  ;;  %7710 = vmatprep.subr.bf16.mxu0 %v13504_v3  ;;  %v1878_v25 = vld [vmem:[#allocation10 + $0xf68] sm:$0xff]  ;;  %v13535_v3 = vcombine.low %v1865_v51, %v1869_v52  ;;  %v1901_v51 = vld [vmem:[#allocation10 + $0x1020] sm:$0xff] }
 0x233   :  { %8038 = vmatprep.subr.bf16.mxu1 %v13506_v6  ;;  %v13537_v6 = vcombine.low %v1866_v55, %v1870_v56  ;;  %v13546_v16 = vcombine.high %v1874_v2, %v1878_v25  ;;  %v13545_v21 = vcombine.low %v1874_v2, %v1878_v25  ;;  %v1902_v52 = vld [vmem:[#allocation10 + $0x1028] sm:$0xff]  ;;  %v1346_v55 = vmul.f32 0.2, %v1194_v37 }
 0x234   :  { %v1906_v25 = vld [vmem:[#allocation10 + $0x1048] sm:$0xff] }
 0x235   :  { %7711 = vmatpush1.bf16.msra.mxu0 %v13503_v17  ;;  %v1881_v17 = vld [vmem:[#allocation10 + $0xf80] sm:$0xff]  ;;  %v1362_v63 = vsel %vm1330_vm8, %v1194_v37, %v1346_v55 }
 0x236   :  { %8039 = vmatpush1.bf16.msra.mxu1 %v13505_v49  ;;  %7712 = vmatprep.subr.bf16.mxu0 %v13512_v18  ;;  %v1885_v49 = vld [vmem:[#allocation10 + $0xfa0] sm:$0xff]  ;;  %v1882_v18 = vld [vmem:[#allocation10 + $0xf88] sm:$0xff] }
 0x237   :  { %8040 = vmatprep.subr.bf16.mxu1 %v13514_v5  ;;  %v1886_v5 = vld [vmem:[#allocation10 + $0xfa8] sm:$0xff]  ;;  %v13552_v22 = vcombine.high %v1881_v17, %v1885_v49  ;;  %v13551_v38 = vcombine.low %v1881_v17, %v1885_v49  ;;  %v15310_v17 = vpack.c.bf16 %v1362_v63, %v1362_v63  ;;  %v1937_v55 = vld [vmem:[#allocation10 + $0x1140] sm:$0xff] }
 0x238   :  { %v13553_v53 = vcombine.low %v1882_v18, %v1886_v5  ;;  %v1945_v63 = vld [vmem:[#allocation10 + $0x1180] sm:$0xff] }
 0x239   :  { %7713 = vmatpush1.bf16.msra.mxu0 %v13511_v27  ;;  %v1151_v27 = vadd.f32 %v15225_v0, %v300_v11  ;;  %v1898_v0 = vld [vmem:[#allocation10 + $0x1008] sm:$0xff]  ;;  %v1913_v11 = vld [vmem:[#allocation10 + $0x1080] sm:$0xff] }
 0x23a   :  { %8041 = vmatpush1.bf16.msra.mxu1 %v13513_v28  ;;  %7714 = vmatprep.subr.bf16.mxu0 %v13520_v29  ;;  %v13554_v28 = vcombine.high %v1882_v18, %v1886_v5  ;;  %v1889_v29 = vld [vmem:[#allocation10 + $0xfc0] sm:$0xff]  ;;  %v1914_v18 = vld [vmem:[#allocation10 + $0x1088] sm:$0xff] }
 0x23b   :  { %8042 = vmatprep.subr.bf16.mxu1 %v13522_v31  ;;  %v1893_v31 = vld [vmem:[#allocation10 + $0xfe0] sm:$0xff]  ;;  %vm1327_vm7 = vcmp.gt.f32.partialorder %v1151_v27, 0.0  ;;  %v1918_v5 = vld [vmem:[#allocation10 + $0x10a8] sm:$0xff] }
 0x23c   :  { %v13559_v56 = vcombine.low %v1889_v29, %v1893_v31 }
 0x23d   :  { %7715 = vmatpush1.bf16.msra.mxu0 %v13519_v39  ;;  %v13560_v39 = vcombine.high %v1889_v29, %v1893_v31  ;;  %v1922_v29 = vld [vmem:[#allocation10 + $0x10c8] sm:$0xff] }
 0x23e   :  { %8043 = vmatpush1.bf16.msra.mxu1 %v13521_v42  ;;  %7716 = vmatprep.subr.bf16.mxu0 %v13528_v44  ;;  %v1343_v42 = vmul.f32 0.2, %v1151_v27  ;;  %v13562_v44 = vcombine.high %v1890_v32, %v1894_v34  ;;  %v1926_v31 = vld [vmem:[#allocation10 + $0x10e8] sm:$0xff]  ;;  %v13585_v34 = vcombine.low %v1914_v18, %v1918_v5 }
 0x23f   :  { %8044 = vmatprep.subr.bf16.mxu1 %v13530_v48  ;;  %v1897_v48 = vld [vmem:[#allocation10 + $0x1000] sm:$0xff] }
 0x240   :  { %v13567_v2 = vcombine.low %v1897_v48, %v1901_v51 }
 0x241   :  { %7717 = vmatpush1.bf16.msra.mxu0 %v13527_v57  ;;  %v13568_v57 = vcombine.high %v1897_v48, %v1901_v51  ;;  %v13593_v51 = vcombine.low %v1922_v29, %v1926_v31 }
 0x242   :  { %8045 = vmatpush1.bf16.msra.mxu1 %v13529_v58  ;;  %7718 = vmatprep.subr.bf16.mxu0 %v13536_v60  ;;  %v1359_v58 = vsel %vm1327_vm7, %v1151_v27, %v1343_v42  ;;  %v13570_v60 = vcombine.high %v1898_v0, %v1902_v52  ;;  %v1921_v27 = vld [vmem:[#allocation10 + $0x10c0] sm:$0xff]  ;;  %v1930_v42 = vld [vmem:[#allocation10 + $0x1108] sm:$0xff] }
 0x243   :  { %8046 = vmatprep.subr.bf16.mxu1 %v13538_v61  ;;  %v1905_v61 = vld [vmem:[#allocation10 + $0x1040] sm:$0xff] }
 0x244   :  { %v13576_v9 = vcombine.high %v1905_v61, %v1909_v62  ;;  %v13575_v45 = vcombine.low %v1905_v61, %v1909_v62 }
 0x245   :  { %7719 = vmatpush1.bf16.msra.mxu0 %v13535_v3  ;;  %v1910_v3 = vld [vmem:[#allocation10 + $0x1068] sm:$0xff] }
 0x246   :  { %8047 = vmatpush1.bf16.msra.mxu1 %v13537_v6  ;;  %7720 = vmatprep.subr.bf16.mxu0 %v13544_v8  ;;  %v15308_v6 = vpack.c.bf16 %v1359_v58, %v1359_v58  ;;  %v13569_v8 = vcombine.low %v1898_v0, %v1902_v52  ;;  %v13578_v49 = vcombine.high %v1906_v25, %v1910_v3 }
 0x247   :  { %8048 = vmatprep.subr.bf16.mxu1 %v13546_v16  ;;  %v1917_v16 = vld [vmem:[#allocation10 + $0x10a0] sm:$0xff] }
 0x248   :  { %v13583_v32 = vcombine.low %v1913_v11, %v1917_v16 }
 0x249   :  { %7721 = vmatpush1.bf16.msra.mxu0 %v13543_v20  ;;  %v13577_v20 = vcombine.low %v1906_v25, %v1910_v3  ;;  %v1946_v25 = vld [vmem:[#allocation10 + $0x1188] sm:$0xff] }
 0x24a   :  { %8049 = vmatpush1.bf16.msra.mxu1 %v13545_v21  ;;  %7722 = vmatprep.subr.bf16.mxu0 %v13552_v22  ;;  %v13584_v21 = vcombine.high %v1913_v11, %v1917_v16  ;;  %v13586_v22 = vcombine.high %v1914_v18, %v1918_v5  ;;  %v1950_v3 = vld [vmem:[#allocation10 + $0x11a8] sm:$0xff]  ;;  %v1957_v18 = vld [vmem:[#allocation10 + $0x11e0] sm:$0xff] }
 0x24b   :  { %8050 = vmatprep.subr.bf16.mxu1 %v13554_v28  ;;  %v1925_v28 = vld [vmem:[#allocation10 + $0x10e0] sm:$0xff]  ;;  %v13618_v16 = vcombine.high %v1946_v25, %v1950_v3  ;;  %v1954_v5 = vld [vmem:[#allocation10 + $0x11c8] sm:$0xff] }
 0x24c   :  { %v13592_v37 = vcombine.high %v1921_v27, %v1925_v28  ;;  %v13591_v48 = vcombine.low %v1921_v27, %v1925_v28  ;;  %v1961_v28 = vld [vmem:[#allocation10 + $0x1200] sm:$0xff] }
 0x24d   :  { %7723 = vmatpush1.bf16.msra.mxu0 %v13551_v38  ;;  %v13594_v38 = vcombine.high %v1922_v29, %v1926_v31  ;;  %v1965_v29 = vld [vmem:[#allocation10 + $0x1220] sm:$0xff]  ;;  %v1962_v31 = vld [vmem:[#allocation10 + $0x1208] sm:$0xff] }
 0x24e   :  { %8051 = vmatpush1.bf16.msra.mxu1 %v13553_v53  ;;  %7724 = vmatprep.subr.bf16.mxu0 %v13560_v39  ;;  %v1929_v53 = vld [vmem:[#allocation10 + $0x1100] sm:$0xff] }
 0x24f   :  { %8052 = vmatprep.subr.bf16.mxu1 %v13562_v44  ;;  %v1933_v39 = vld [vmem:[#allocation10 + $0x1120] sm:$0xff]  ;;  %v1934_v44 = vld [vmem:[#allocation10 + $0x1128] sm:$0xff] }
 0x250   :  { %v13600_v0 = vcombine.high %v1929_v53, %v1933_v39  ;;  %v13602_v52 = vcombine.high %v1930_v42, %v1934_v44  ;;  %v13599_v58 = vcombine.low %v1929_v53, %v1933_v39  ;;  %v1969_v39 = vld [vmem:[#allocation10 + $0x1240] sm:$0xff] }
 0x251   :  { %7725 = vmatpush1.bf16.msra.mxu0 %v13559_v56  ;;  %v1941_v56 = vld [vmem:[#allocation10 + $0x1160] sm:$0xff] }
 0x252   :  { %8053 = vmatpush1.bf16.msra.mxu1 %v13561_v19  ;;  %7735 = vmatprep.subr.bf16.mxu0 %v13568_v57  ;;  %v1938_v19 = vld [vmem:[#allocation10 + $0x1148] sm:$0xff]  ;;  %v13608_v61 = vcombine.high %v1937_v55, %v1941_v56 }
 0x253   :  { %8063 = vmatprep.subr.bf16.mxu1 %v13570_v60  ;;  %v1942_v57 = vld [vmem:[#allocation10 + $0x1168] sm:$0xff]  ;;  %v13601_v60 = vcombine.low %v1930_v42, %v1934_v44  ;;  %v1973_v42 = vld [vmem:[#allocation10 + $0x1260] sm:$0xff] }
 0x254   :  { %7727 = vmatmul.mubr.bf16.vlgmr.msra.gmra.mrb[16].mxu0 %v15308_v6  ;;  %v13610_v62 = vcombine.high %v1938_v19, %v1942_v57  ;;  %v1970_v44 = vld [vmem:[#allocation10 + $0x1248] sm:$0xff] }
 0x255   :  { %8055 = vmatmul.mubr.bf16.vlgmr.msra.gmra.mrb[16].mxu1 %v15308_v6  ;;  %7736 = vmatpush1.bf16.msra.mxu0 %v13567_v2  ;;  %v1949_v2 = vld [vmem:[#allocation10 + $0x11a0] sm:$0xff] }
 0x256   :  { %7767 = vmatprep.mubr.bf16.mxu0 %v15310_v17  ;;  %8064 = vmatpush1.bf16.msra.mxu1 %v13569_v8  ;;  %v13607_v8 = vcombine.low %v1937_v55, %v1941_v56  ;;  %v13616_v11 = vcombine.high %v1945_v63, %v1949_v2  ;;  %v1977_v56 = vld [vmem:[#allocation10 + $0x1280] sm:$0xff] }
 0x257   :  { %8095 = vmatprep.mubr.bf16.mxu1 %v15310_v17  ;;  %7737 = vmatprep.subr.bf16.mxu0 %v13576_v9  ;;  %v13609_v9 = vcombine.low %v1938_v19, %v1942_v57  ;;  %v1981_v19 = vld [vmem:[#allocation10 + $0x12a0] sm:$0xff]  ;;  %v1978_v57 = vld [vmem:[#allocation10 + $0x1288] sm:$0xff] }
 0x258   :  { %8065 = vmatprep.subr.bf16.mxu1 %v13578_v49  ;;  %v1953_v49 = vld [vmem:[#allocation10 + $0x11c0] sm:$0xff] }
 0x259   :  { %7738 = vmatpush1.bf16.msra.mxu0 %v13575_v45  ;;  %v1958_v45 = vld [vmem:[#allocation10 + $0x11e8] sm:$0xff] }
 0x25a   :  { %8066 = vmatpush1.bf16.msra.mxu1 %v13577_v20  ;;  %7739 = vmatprep.subr.bf16.mxu0 %v13584_v21  ;;  %v13615_v20 = vcombine.low %v1945_v63, %v1949_v2  ;;  %v13617_v21 = vcombine.low %v1946_v25, %v1950_v3  ;;  %v13626_v27 = vcombine.high %v1954_v5, %v1958_v45  ;;  %v1985_v2 = vld [vmem:[#allocation10 + $0x12c0] sm:$0xff]  ;;  %v1986_v3 = vld [vmem:[#allocation10 + $0x12c8] sm:$0xff] }
 0x25b   :  { %8067 = vmatprep.subr.bf16.mxu1 %v13586_v22  ;;  %v13624_v22 = vcombine.high %v1953_v49, %v1957_v18  ;;  %v1989_v25 = vld [vmem:[#allocation10 + $0x12e0] sm:$0xff] }
 0x25d   :  { %7740 = vmatpush1.bf16.msra.mxu0 %v13583_v32  ;;  %v1966_v32 = vld [vmem:[#allocation10 + $0x1228] sm:$0xff] }
 0x25e   :  { %8068 = vmatpush1.bf16.msra.mxu1 %v13585_v34  ;;  %7741 = vmatprep.subr.bf16.mxu0 %v13592_v37  ;;  %v13623_v34 = vcombine.low %v1953_v49, %v1957_v18  ;;  %v13625_v37 = vcombine.low %v1954_v5, %v1958_v45  ;;  %v13634_v53 = vcombine.high %v1962_v31, %v1966_v32  ;;  %v1993_v18 = vld [vmem:[#allocation10 + $0x1300] sm:$0xff]  ;;  %v1994_v45 = vld [vmem:[#allocation10 + $0x1308] sm:$0xff] }
 0x25f   :  { %8069 = vmatprep.subr.bf16.mxu1 %v13594_v38  ;;  %v13632_v38 = vcombine.high %v1961_v28, %v1965_v29  ;;  %v1997_v5 = vld [vmem:[#allocation10 + $0x1320] sm:$0xff] }
 0x261   :  { %7742 = vmatpush1.bf16.msra.mxu0 %v13591_v48  ;;  %v1974_v48 = vld [vmem:[#allocation10 + $0x1268] sm:$0xff] }
 0x262   :  { %8070 = vmatpush1.bf16.msra.mxu1 %v13593_v51  ;;  %7743 = vmatprep.subr.bf16.mxu0 %v13600_v0  ;;  %v13631_v51 = vcombine.low %v1961_v28, %v1965_v29  ;;  %v13633_v0 = vcombine.low %v1962_v31, %v1966_v32  ;;  %v13642_v55 = vcombine.high %v1970_v44, %v1974_v48  ;;  %v2001_v29 = vld [vmem:[#allocation10 + $0x1340] sm:$0xff]  ;;  %v2002_v32 = vld [vmem:[#allocation10 + $0x1348] sm:$0xff] }
 0x263   :  { %8071 = vmatprep.subr.bf16.mxu1 %v13602_v52  ;;  %v13640_v52 = vcombine.high %v1969_v39, %v1973_v42  ;;  %v2005_v31 = vld [vmem:[#allocation10 + $0x1360] sm:$0xff] }
 0x265   :  { %7744 = vmatpush1.bf16.msra.mxu0 %v13599_v58  ;;  %v1982_v58 = vld [vmem:[#allocation10 + $0x12a8] sm:$0xff] }
 0x266   :  { %8072 = vmatpush1.bf16.msra.mxu1 %v13601_v60  ;;  %7745 = vmatprep.subr.bf16.mxu0 %v13608_v61  ;;  %v13639_v60 = vcombine.low %v1969_v39, %v1973_v42  ;;  %v13641_v61 = vcombine.low %v1970_v44, %v1974_v48  ;;  %v13650_v63 = vcombine.high %v1978_v57, %v1982_v58  ;;  %v14783_v39 = vld [vmem:[#allocation9 + $0x8] sm:$0xff]  ;;  %v2009_v48 = vld [vmem:[#allocation10 + $0x1380] sm:$0xff] }
 0x267   :  { %8073 = vmatprep.subr.bf16.mxu1 %v13610_v62  ;;  %v13648_v62 = vcombine.high %v1977_v56, %v1981_v19  ;;  %v308_v42 = vrot.slane %v14783_v39, %v15188_v24  ;;  %v2041_v39 = vld [vmem:[#allocation10 + $0x1480] sm:$0xff] }
 0x269   :  { %7746 = vmatpush1.bf16.msra.mxu0 %v13607_v8  ;;  %v1990_v8 = vld [vmem:[#allocation10 + $0x12e8] sm:$0xff] }
 0x26a   :  { %8074 = vmatpush1.bf16.msra.mxu1 %v13609_v9  ;;  %7747 = vmatprep.subr.bf16.mxu0 %v13616_v11  ;;  %v13647_v9 = vcombine.low %v1977_v56, %v1981_v19  ;;  %v13649_v11 = vcombine.low %v1978_v57, %v1982_v58  ;;  %v13658_v49 = vcombine.high %v1986_v3, %v1990_v8 }
 0x26b   :  { %8075 = vmatprep.subr.bf16.mxu1 %v13618_v16  ;;  %v13656_v16 = vcombine.high %v1985_v2, %v1989_v25  ;;  %v1192_v57 = vadd.f32 %v15241_v15, %v308_v42  ;;  %v2030_v15 = vld [vmem:[#allocation10 + $0x1428] sm:$0xff]  ;;  %v2045_v42 = vld [vmem:[#allocation10 + $0x14a0] sm:$0xff] }
 0x26d   :  { %7748 = vmatpush1.bf16.msra.mxu0 %v13615_v20  ;;  %v1998_v20 = vld [vmem:[#allocation10 + $0x1328] sm:$0xff]  ;;  %vm1329_vm9 = vcmp.gt.f32.partialorder %v1192_v57, 0.0 }
 0x26e   :  { %8076 = vmatpush1.bf16.msra.mxu1 %v13617_v21  ;;  %7749 = vmatprep.subr.bf16.mxu0 %v13624_v22  ;;  %v13655_v21 = vcombine.low %v1985_v2, %v1989_v25  ;;  %v13657_v22 = vcombine.low %v1986_v3, %v1990_v8  ;;  %v13666_v28 = vcombine.high %v1994_v45, %v1998_v20  ;;  %v1345_v8 = vmul.f32 0.2, %v1192_v57 }
 0x26f   :  { %8077 = vmatprep.subr.bf16.mxu1 %v13626_v27  ;;  %v13664_v27 = vcombine.high %v1993_v18, %v1997_v5 }
 0x271   :  { %7750 = vmatpush1.bf16.msra.mxu0 %v13623_v34  ;;  %v2006_v34 = vld [vmem:[#allocation10 + $0x1368] sm:$0xff] }
 0x272   :  { %8078 = vmatpush1.bf16.msra.mxu1 %v13625_v37  ;;  %7751 = vmatprep.subr.bf16.mxu0 %v13632_v38  ;;  %v13663_v37 = vcombine.low %v1993_v18, %v1997_v5  ;;  %v13665_v38 = vcombine.low %v1994_v45, %v1998_v20  ;;  %v13674_v44 = vcombine.high %v2002_v32, %v2006_v34  ;;  %v1348_v18 = vmul.f32 0.2, %v15256_v54 }
 0x273   :  { %8079 = vmatprep.subr.bf16.mxu1 %v13634_v53  ;;  %v13672_v53 = vcombine.high %v2001_v29, %v2005_v31  ;;  %v13673_v56 = vcombine.low %v2002_v32, %v2006_v34  ;;  %v2034_v32 = vld [vmem:[#allocation10 + $0x1448] sm:$0xff] }
 0x274   :  { %v2038_v34 = vld [vmem:[#allocation10 + $0x1468] sm:$0xff] }
 0x275   :  { %7752 = vmatpush1.bf16.msra.mxu0 %v13631_v51  ;;  %v2013_v51 = vld [vmem:[#allocation10 + $0x13a0] sm:$0xff] }
 0x276   :  { %8080 = vmatpush1.bf16.msra.mxu1 %v13633_v0  ;;  %7753 = vmatprep.subr.bf16.mxu0 %v13640_v52  ;;  %v2010_v0 = vld [vmem:[#allocation10 + $0x1388] sm:$0xff]  ;;  %v13680_v19 = vcombine.high %v2009_v48, %v2013_v51  ;;  %v13679_v2 = vcombine.low %v2009_v48, %v2013_v51  ;;  %v13706_v48 = vcombine.high %v2034_v32, %v2038_v34 }
 0x277   :  { %8081 = vmatprep.subr.bf16.mxu1 %v13642_v55  ;;  %v2014_v52 = vld [vmem:[#allocation10 + $0x13a8] sm:$0xff]  ;;  %v13671_v55 = vcombine.low %v2001_v29, %v2005_v31  ;;  %v1364_v29 = vsel %vm1332_vm10, %v15256_v54, %v1348_v18  ;;  %v2065_v18 = vld [vmem:[#allocation10 + $0x1540] sm:$0xff] }
 0x278   :  { %v13682_v58 = vcombine.high %v2010_v0, %v2014_v52  ;;  %v13681_v25 = vcombine.low %v2010_v0, %v2014_v52  ;;  %v2042_v51 = vld [vmem:[#allocation10 + $0x1488] sm:$0xff]  ;;  %v13705_v52 = vcombine.low %v2034_v32, %v2038_v34 }
 0x279   :  { %7754 = vmatpush1.bf16.msra.mxu0 %v13639_v60  ;;  %v2017_v60 = vld [vmem:[#allocation10 + $0x13c0] sm:$0xff]  ;;  %v2046_v54 = vld [vmem:[#allocation10 + $0x14a8] sm:$0xff] }
 0x27a   :  { %8082 = vmatpush1.bf16.msra.mxu1 %v13641_v61  ;;  %7755 = vmatprep.subr.bf16.mxu0 %v13648_v62  ;;  %v2021_v61 = vld [vmem:[#allocation10 + $0x13e0] sm:$0xff]  ;;  %v2018_v62 = vld [vmem:[#allocation10 + $0x13c8] sm:$0xff] }
 0x27b   :  { %8083 = vmatprep.subr.bf16.mxu1 %v13650_v63  ;;  %v2022_v63 = vld [vmem:[#allocation10 + $0x13e8] sm:$0xff]  ;;  %v13688_v3 = vcombine.high %v2017_v60, %v2021_v61  ;;  %v13687_v5 = vcombine.low %v2017_v60, %v2021_v61  ;;  %v13711_v61 = vcombine.low %v2041_v39, %v2045_v42 }
 0x27c   :  { %v13689_v45 = vcombine.low %v2018_v62, %v2022_v63  ;;  %v2054_v60 = vld [vmem:[#allocation10 + $0x14e8] sm:$0xff] }
 0x27d   :  { %7756 = vmatpush1.bf16.msra.mxu0 %v13647_v9  ;;  %v13690_v9 = vcombine.high %v2018_v62, %v2022_v63  ;;  %v13713_v62 = vcombine.low %v2042_v51, %v2046_v54  ;;  %v2074_v32 = vld [vmem:[#allocation10 + $0x1588] sm:$0xff] }
 0x27e   :  { %8084 = vmatpush1.bf16.msra.mxu1 %v13649_v11  ;;  %7757 = vmatprep.subr.bf16.mxu0 %v13656_v16  ;;  %v2025_v11 = vld [vmem:[#allocation10 + $0x1400] sm:$0xff]  ;;  %v2078_v34 = vld [vmem:[#allocation10 + $0x15a8] sm:$0xff] }
 0x27f   :  { %8085 = vmatprep.subr.bf16.mxu1 %v13658_v49  ;;  %v2029_v16 = vld [vmem:[#allocation10 + $0x1420] sm:$0xff]  ;;  %v2026_v49 = vld [vmem:[#allocation10 + $0x1408] sm:$0xff] }
 0x280   :  { %v13696_v20 = vcombine.high %v2025_v11, %v2029_v16  ;;  %v13695_v31 = vcombine.low %v2025_v11, %v2029_v16 }
 0x281   :  { %7758 = vmatpush1.bf16.msra.mxu0 %v13655_v21  ;;  %v1361_v21 = vsel %vm1329_vm9, %v1192_v57, %v1345_v8  ;;  %v2053_v57 = vld [vmem:[#allocation10 + $0x14e0] sm:$0xff]  ;;  %v2058_v8 = vld [vmem:[#allocation10 + $0x1508] sm:$0xff] }
 0x282   :  { %8086 = vmatpush1.bf16.msra.mxu1 %v13657_v22  ;;  %7759 = vmatprep.subr.bf16.mxu0 %v13664_v27  ;;  %v13698_v22 = vcombine.high %v2026_v49, %v2030_v15  ;;  %v2033_v27 = vld [vmem:[#allocation10 + $0x1440] sm:$0xff] }
 0x283   :  { %8087 = vmatprep.subr.bf16.mxu1 %v13666_v28  ;;  %v2037_v28 = vld [vmem:[#allocation10 + $0x1460] sm:$0xff] }
 0x284   :  { %v13703_v0 = vcombine.low %v2033_v27, %v2037_v28 }
 0x285   :  { %7760 = vmatpush1.bf16.msra.mxu0 %v13663_v37  ;;  %v15321_v37 = vpack.c.bf16 %v1361_v21, %v1361_v21 }
 0x286   :  { %8088 = vmatpush1.bf16.msra.mxu1 %v13665_v38  ;;  %7761 = vmatprep.subr.bf16.mxu0 %v13672_v53  ;;  %v13697_v38 = vcombine.low %v2026_v49, %v2030_v15  ;;  %v13704_v53 = vcombine.high %v2033_v27, %v2037_v28 }
 0x287   :  { %8089 = vmatprep.subr.bf16.mxu1 %v13674_v44  ;;  %v15323_v44 = vpack.c.bf16 %v1364_v29, %v1364_v29  ;;  %v2073_v29 = vld [vmem:[#allocation10 + $0x1580] sm:$0xff] }
 0x289   :  { %7762 = vmatpush1.bf16.msra.mxu0 %v13671_v55  ;;  %v13712_v55 = vcombine.high %v2041_v39, %v2045_v42  ;;  %v13746_v42 = vcombine.high %v2074_v32, %v2078_v34 }
 0x28a   :  { %8090 = vmatpush1.bf16.msra.mxu1 %v13673_v56  ;;  %7763 = vmatprep.subr.bf16.mxu0 %v13680_v19  ;;  %v13714_v56 = vcombine.high %v2042_v51, %v2046_v54  ;;  %v2049_v19 = vld [vmem:[#allocation10 + $0x14c0] sm:$0xff]  ;;  %v2082_v54 = vld [vmem:[#allocation10 + $0x15c8] sm:$0xff] }
 0x28b   :  { %8091 = vmatprep.subr.bf16.mxu1 %v13682_v58  ;;  %v2050_v58 = vld [vmem:[#allocation10 + $0x14c8] sm:$0xff]  ;;  %v13720_v63 = vcombine.high %v2049_v19, %v2053_v57  ;;  %v13719_v11 = vcombine.low %v2049_v19, %v2053_v57  ;;  %v2085_v51 = vld [vmem:[#allocation10 + $0x15e0] sm:$0xff] }
 0x28c   :  { %v13721_v16 = vcombine.low %v2050_v58, %v2054_v60  ;;  %v2089_v57 = vld [vmem:[#allocation10 + $0x1600] sm:$0xff] }
 0x28d   :  { %7764 = vmatpush1.bf16.msra.mxu0 %v13679_v2  ;;  %v13722_v2 = vcombine.high %v2050_v58, %v2054_v60  ;;  %v2093_v58 = vld [vmem:[#allocation10 + $0x1620] sm:$0xff]  ;;  %v2090_v60 = vld [vmem:[#allocation10 + $0x1608] sm:$0xff] }
 0x28e   :  { %8092 = vmatpush1.bf16.msra.mxu1 %v13681_v25  ;;  %7765 = vmatprep.subr.bf16.mxu0 %v13688_v3  ;;  %v2057_v25 = vld [vmem:[#allocation10 + $0x1500] sm:$0xff] }
 0x28f   :  { %8093 = vmatprep.subr.bf16.mxu1 %v13690_v9  ;;  %v2061_v3 = vld [vmem:[#allocation10 + $0x1520] sm:$0xff]  ;;  %v2062_v9 = vld [vmem:[#allocation10 + $0x1528] sm:$0xff] }
 0x290   :  { %v13728_v49 = vcombine.high %v2057_v25, %v2061_v3  ;;  %v13730_v15 = vcombine.high %v2058_v8, %v2062_v9  ;;  %v13727_v21 = vcombine.low %v2057_v25, %v2061_v3  ;;  %v2097_v3 = vld [vmem:[#allocation10 + $0x1640] sm:$0xff] }
 0x291   :  { %7766 = vmatpush1.bf16.msra.mxu0 %v13687_v5  ;;  %v2069_v5 = vld [vmem:[#allocation10 + $0x1560] sm:$0xff] }
 0x292   :  { %8094 = vmatpush1.bf16.msra.mxu1 %v13689_v45  ;;  %7776 = vmatprep.subr.bf16.mxu0 %v13696_v20  ;;  %v2066_v45 = vld [vmem:[#allocation10 + $0x1548] sm:$0xff]  ;;  %v13736_v27 = vcombine.high %v2065_v18, %v2069_v5 }
 0x293   :  { %8104 = vmatprep.subr.bf16.mxu1 %v13698_v22  ;;  %v2070_v20 = vld [vmem:[#allocation10 + $0x1568] sm:$0xff]  ;;  %v13729_v22 = vcombine.low %v2058_v8, %v2062_v9  ;;  %v2101_v8 = vld [vmem:[#allocation10 + $0x1660] sm:$0xff] }
 0x294   :  { %7768 = vmatmul.mubr.bf16.vlgmr.msra.gmra.mrb[16].mxu0 %v15321_v37  ;;  %v13738_v28 = vcombine.high %v2066_v45, %v2070_v20  ;;  %v2098_v9 = vld [vmem:[#allocation10 + $0x1648] sm:$0xff] }
 0x295   :  { %8096 = vmatmul.mubr.bf16.vlgmr.msra.gmra.mrb[16].mxu1 %v15321_v37  ;;  %7777 = vmatpush1.bf16.msra.mxu0 %v13695_v31  ;;  %v2077_v31 = vld [vmem:[#allocation10 + $0x15a0] sm:$0xff] }
 0x296   :  { %7808 = vmatprep.mubr.bf16.mxu0 %v15323_v44  ;;  %8105 = vmatpush1.bf16.msra.mxu1 %v13697_v38  ;;  %v13735_v38 = vcombine.low %v2065_v18, %v2069_v5  ;;  %v13744_v39 = vcombine.high %v2073_v29, %v2077_v31  ;;  %v2105_v5 = vld [vmem:[#allocation10 + $0x1680] sm:$0xff] }
 0x297   :  { %8136 = vmatprep.mubr.bf16.mxu1 %v15323_v44  ;;  %7778 = vmatprep.subr.bf16.mxu0 %v13704_v53  ;;  %v13737_v53 = vcombine.low %v2066_v45, %v2070_v20  ;;  %v2109_v45 = vld [vmem:[#allocation10 + $0x16a0] sm:$0xff]  ;;  %v2106_v20 = vld [vmem:[#allocation10 + $0x1688] sm:$0xff] }
 0x298   :  { %8106 = vmatprep.subr.bf16.mxu1 %v13706_v48  ;;  %v2081_v48 = vld [vmem:[#allocation10 + $0x15c0] sm:$0xff] }
 0x299   :  { %7779 = vmatpush1.bf16.msra.mxu0 %v13703_v0  ;;  %v2086_v0 = vld [vmem:[#allocation10 + $0x15e8] sm:$0xff] }
 0x29a   :  { %8107 = vmatpush1.bf16.msra.mxu1 %v13705_v52  ;;  %7780 = vmatprep.subr.bf16.mxu0 %v13712_v55  ;;  %v13743_v52 = vcombine.low %v2073_v29, %v2077_v31  ;;  %v13745_v55 = vcombine.low %v2074_v32, %v2078_v34  ;;  %v13754_v19 = vcombine.high %v2082_v54, %v2086_v0  ;;  %v2113_v31 = vld [vmem:[#allocation10 + $0x16c0] sm:$0xff]  ;;  %v2114_v34 = vld [vmem:[#allocation10 + $0x16c8] sm:$0xff] }
 0x29b   :  { %8108 = vmatprep.subr.bf16.mxu1 %v13714_v56  ;;  %v13752_v56 = vcombine.high %v2081_v48, %v2085_v51  ;;  %v2117_v32 = vld [vmem:[#allocation10 + $0x16e0] sm:$0xff] }
 0x29d   :  { %7781 = vmatpush1.bf16.msra.mxu0 %v13711_v61  ;;  %v2094_v61 = vld [vmem:[#allocation10 + $0x1628] sm:$0xff] }
 0x29e   :  { %8109 = vmatpush1.bf16.msra.mxu1 %v13713_v62  ;;  %7782 = vmatprep.subr.bf16.mxu0 %v13720_v63  ;;  %v13751_v62 = vcombine.low %v2081_v48, %v2085_v51  ;;  %v13753_v63 = vcombine.low %v2082_v54, %v2086_v0  ;;  %v13762_v25 = vcombine.high %v2090_v60, %v2094_v61  ;;  %v2121_v51 = vld [vmem:[#allocation10 + $0x1700] sm:$0xff]  ;;  %v2122_v0 = vld [vmem:[#allocation10 + $0x1708] sm:$0xff] }
 0x29f   :  { %8110 = vmatprep.subr.bf16.mxu1 %v13722_v2  ;;  %v13760_v2 = vcombine.high %v2089_v57, %v2093_v58  ;;  %v2125_v54 = vld [vmem:[#allocation10 + $0x1720] sm:$0xff] }
 0x2a1   :  { %7783 = vmatpush1.bf16.msra.mxu0 %v13719_v11  ;;  %v2102_v11 = vld [vmem:[#allocation10 + $0x1668] sm:$0xff] }
 0x2a2   :  { %8111 = vmatpush1.bf16.msra.mxu1 %v13721_v16  ;;  %7784 = vmatprep.subr.bf16.mxu0 %v13728_v49  ;;  %v13759_v16 = vcombine.low %v2089_v57, %v2093_v58  ;;  %v13761_v49 = vcombine.low %v2090_v60, %v2094_v61  ;;  %v13770_v18 = vcombine.high %v2098_v9, %v2102_v11  ;;  %v2129_v58 = vld [vmem:[#allocation10 + $0x1740] sm:$0xff]  ;;  %v2130_v61 = vld [vmem:[#allocation10 + $0x1748] sm:$0xff] }
 0x2a3   :  { %8112 = vmatprep.subr.bf16.mxu1 %v13730_v15  ;;  %v13768_v15 = vcombine.high %v2097_v3, %v2101_v8  ;;  %v2133_v60 = vld [vmem:[#allocation10 + $0x1760] sm:$0xff] }
 0x2a5   :  { %7785 = vmatpush1.bf16.msra.mxu0 %v13727_v21  ;;  %v2110_v21 = vld [vmem:[#allocation10 + $0x16a8] sm:$0xff] }
 0x2a6   :  { %8113 = vmatpush1.bf16.msra.mxu1 %v13729_v22  ;;  %7786 = vmatprep.subr.bf16.mxu0 %v13736_v27  ;;  %v13767_v22 = vcombine.low %v2097_v3, %v2101_v8  ;;  %v13769_v27 = vcombine.low %v2098_v9, %v2102_v11  ;;  %v13778_v29 = vcombine.high %v2106_v20, %v2110_v21  ;;  %v2137_v8 = vld [vmem:[#allocation10 + $0x1780] sm:$0xff]  ;;  %v2138_v11 = vld [vmem:[#allocation10 + $0x1788] sm:$0xff] }
 0x2a7   :  { %8114 = vmatprep.subr.bf16.mxu1 %v13738_v28  ;;  %v13776_v28 = vcombine.high %v2105_v5, %v2109_v45  ;;  %v2141_v9 = vld [vmem:[#allocation10 + $0x17a0] sm:$0xff] }
 0x2a9   :  { %7787 = vmatpush1.bf16.msra.mxu0 %v13735_v38  ;;  %v2118_v38 = vld [vmem:[#allocation10 + $0x16e8] sm:$0xff] }
 0x2aa   :  { %8115 = vmatpush1.bf16.msra.mxu1 %v13737_v53  ;;  %7788 = vmatprep.subr.bf16.mxu0 %v13744_v39  ;;  %v13775_v53 = vcombine.low %v2105_v5, %v2109_v45  ;;  %v13777_v39 = vcombine.low %v2106_v20, %v2110_v21  ;;  %v13786_v48 = vcombine.high %v2114_v34, %v2118_v38  ;;  %v2145_v45 = vld [vmem:[#allocation10 + $0x17c0] sm:$0xff]  ;;  %v2146_v21 = vld [vmem:[#allocation10 + $0x17c8] sm:$0xff] }
 0x2ab   :  { %8116 = vmatprep.subr.bf16.mxu1 %v13746_v42  ;;  %v13784_v42 = vcombine.high %v2113_v31, %v2117_v32  ;;  %v2149_v20 = vld [vmem:[#allocation10 + $0x17e0] sm:$0xff] }
 0x2ad   :  { %7789 = vmatpush1.bf16.msra.mxu0 %v13743_v52  ;;  %v2126_v52 = vld [vmem:[#allocation10 + $0x1728] sm:$0xff] }
 0x2ae   :  { %8117 = vmatpush1.bf16.msra.mxu1 %v13745_v55  ;;  %7790 = vmatprep.subr.bf16.mxu0 %v13752_v56  ;;  %v13783_v55 = vcombine.low %v2113_v31, %v2117_v32  ;;  %v13785_v56 = vcombine.low %v2114_v34, %v2118_v38  ;;  %v13794_v57 = vcombine.high %v2122_v0, %v2126_v52  ;;  %v1347_v31 = vmul.f32 0.2, %v15252_v1  ;;  %v2153_v34 = vld [vmem:[#allocation10 + $0x1800] sm:$0xff] }
 0x2af   :  { %8118 = vmatprep.subr.bf16.mxu1 %v13754_v19  ;;  %v13792_v19 = vcombine.high %v2121_v51, %v2125_v54  ;;  %v2157_v38 = vld [vmem:[#allocation10 + $0x1820] sm:$0xff] }
 0x2b1   :  { %7791 = vmatpush1.bf16.msra.mxu0 %v13751_v62  ;;  %v2134_v62 = vld [vmem:[#allocation10 + $0x1768] sm:$0xff] }
 0x2b2   :  { %8119 = vmatpush1.bf16.msra.mxu1 %v13753_v63  ;;  %7792 = vmatprep.subr.bf16.mxu0 %v13760_v2  ;;  %v13791_v63 = vcombine.low %v2121_v51, %v2125_v54  ;;  %v13793_v2 = vcombine.low %v2122_v0, %v2126_v52  ;;  %v13802_v3 = vcombine.high %v2130_v61, %v2134_v62 }
 0x2b3   :  { %8120 = vmatprep.subr.bf16.mxu1 %v13762_v25  ;;  %v13800_v25 = vcombine.high %v2129_v58, %v2133_v60  ;;  %v13824_v54 = vcombine.high %v2153_v34, %v2157_v38  ;;  %v1363_v0 = vsel %vm1331_vm11, %v15252_v1, %v1347_v31  ;;  %v2186_v31 = vld [vmem:[#allocation10 + $0x1908] sm:$0xff] }
 0x2b5   :  { %7793 = vmatpush1.bf16.msra.mxu0 %v13759_v16  ;;  %v2142_v16 = vld [vmem:[#allocation10 + $0x17a8] sm:$0xff] }
 0x2b6   :  { %8121 = vmatpush1.bf16.msra.mxu1 %v13761_v49  ;;  %7794 = vmatprep.subr.bf16.mxu0 %v13768_v15  ;;  %v13799_v49 = vcombine.low %v2129_v58, %v2133_v60  ;;  %v13801_v15 = vcombine.low %v2130_v61, %v2134_v62  ;;  %v13810_v5 = vcombine.high %v2138_v11, %v2142_v16  ;;  %v2162_v58 = vld [vmem:[#allocation10 + $0x1848] sm:$0xff] }
 0x2b7   :  { %8122 = vmatprep.subr.bf16.mxu1 %v13770_v18  ;;  %v13808_v18 = vcombine.high %v2137_v8, %v2141_v9  ;;  %v2166_v60 = vld [vmem:[#allocation10 + $0x1868] sm:$0xff]  ;;  %v15335_v61 = vpack.c.bf16 %v1363_v0, %v1363_v0 }
 0x2b9   :  { %7795 = vmatpush1.bf16.msra.mxu0 %v13767_v22  ;;  %v2150_v22 = vld [vmem:[#allocation10 + $0x17e8] sm:$0xff] }
 0x2ba   :  { %8123 = vmatpush1.bf16.msra.mxu1 %v13769_v27  ;;  %7796 = vmatprep.subr.bf16.mxu0 %v13776_v28  ;;  %v13807_v27 = vcombine.low %v2137_v8, %v2141_v9  ;;  %v13809_v28 = vcombine.low %v2138_v11, %v2142_v16  ;;  %v13818_v32 = vcombine.high %v2146_v21, %v2150_v22  ;;  %v2170_v8 = vld [vmem:[#allocation10 + $0x1888] sm:$0xff] }
 0x2bb   :  { %8124 = vmatprep.subr.bf16.mxu1 %v13778_v29  ;;  %v13816_v29 = vcombine.high %v2145_v45, %v2149_v20  ;;  %v13817_v51 = vcombine.low %v2146_v21, %v2150_v22  ;;  %v13833_v11 = vcombine.low %v2162_v58, %v2166_v60 }
 0x2bd   :  { %7797 = vmatpush1.bf16.msra.mxu0 %v13775_v53  ;;  %v2154_v53 = vld [vmem:[#allocation10 + $0x1808] sm:$0xff] }
 0x2be   :  { %8125 = vmatpush1.bf16.msra.mxu1 %v13777_v39  ;;  %7798 = vmatprep.subr.bf16.mxu0 %v13784_v42  ;;  %v2158_v39 = vld [vmem:[#allocation10 + $0x1828] sm:$0xff]  ;;  %v1350_v42 = vmul.f32 0.2, %v15279_v13 }
 0x2bf   :  { %8126 = vmatprep.subr.bf16.mxu1 %v13786_v48  ;;  %v13815_v48 = vcombine.low %v2145_v45, %v2149_v20  ;;  %v13826_v52 = vcombine.high %v2154_v53, %v2158_v39  ;;  %v13825_v62 = vcombine.low %v2154_v53, %v2158_v39  ;;  %v2182_v45 = vld [vmem:[#allocation10 + $0x18e8] sm:$0xff] }
 0x2c1   :  { %7799 = vmatpush1.bf16.msra.mxu0 %v13783_v55  ;;  %v2161_v55 = vld [vmem:[#allocation10 + $0x1840] sm:$0xff] }
 0x2c2   :  { %8127 = vmatpush1.bf16.msra.mxu1 %v13785_v56  ;;  %7800 = vmatprep.subr.bf16.mxu0 %v13792_v19  ;;  %v2165_v56 = vld [vmem:[#allocation10 + $0x1860] sm:$0xff]  ;;  %v1366_v19 = vsel %vm1334_vm12, %v15279_v13, %v1350_v42  ;;  %v2174_v13 = vld [vmem:[#allocation10 + $0x18a8] sm:$0xff] }
 0x2c3   :  { %8128 = vmatprep.subr.bf16.mxu1 %v13794_v57  ;;  %v13823_v57 = vcombine.low %v2153_v34, %v2157_v38  ;;  %v15337_v1 = vpack.c.bf16 %v1366_v19, %v1366_v19  ;;  %v13831_v9 = vcombine.low %v2161_v55, %v2165_v56  ;;  %v13841_v21 = vcombine.low %v2170_v8, %v2174_v13  ;;  %v2193_v42 = vld [vmem:[#allocation10 + $0x1940] sm:$0xff] }
 0x2c4   :  { %v2201_v19 = vld [vmem:[#allocation10 + $0x1980] sm:$0xff] }
 0x2c5   :  { %7801 = vmatpush1.bf16.msra.mxu0 %v13791_v63  ;;  %v13832_v63 = vcombine.high %v2161_v55, %v2165_v56 }
 0x2c6   :  { %8129 = vmatpush1.bf16.msra.mxu1 %v13793_v2  ;;  %7802 = vmatprep.subr.bf16.mxu0 %v13800_v25  ;;  %v2169_v2 = vld [vmem:[#allocation10 + $0x1880] sm:$0xff] }
 0x2c7   :  { %8130 = vmatprep.subr.bf16.mxu1 %v13802_v3  ;;  %v2173_v25 = vld [vmem:[#allocation10 + $0x18a0] sm:$0xff]  ;;  %v13834_v3 = vcombine.high %v2162_v58, %v2166_v60  ;;  %v2202_v58 = vld [vmem:[#allocation10 + $0x1988] sm:$0xff] }
 0x2c8   :  { %v13840_v16 = vcombine.high %v2169_v2, %v2173_v25  ;;  %v13839_v20 = vcombine.low %v2169_v2, %v2173_v25  ;;  %v2206_v60 = vld [vmem:[#allocation10 + $0x19a8] sm:$0xff] }
 0x2c9   :  { %7803 = vmatpush1.bf16.msra.mxu0 %v13799_v49  ;;  %v13842_v49 = vcombine.high %v2170_v8, %v2174_v13  ;;  %v13874_v25 = vcombine.high %v2202_v58, %v2206_v60  ;;  %v2213_v8 = vld [vmem:[#allocation10 + $0x19e0] sm:$0xff]  ;;  %v2210_v13 = vld [vmem:[#allocation10 + $0x19c8] sm:$0xff] }
 0x2ca   :  { %8131 = vmatpush1.bf16.msra.mxu1 %v13801_v15  ;;  %7804 = vmatprep.subr.bf16.mxu0 %v13808_v18  ;;  %v2177_v15 = vld [vmem:[#allocation10 + $0x18c0] sm:$0xff] }
 0x2cb   :  { %8132 = vmatprep.subr.bf16.mxu1 %v13810_v5  ;;  %v2181_v18 = vld [vmem:[#allocation10 + $0x18e0] sm:$0xff]  ;;  %v2178_v5 = vld [vmem:[#allocation10 + $0x18c8] sm:$0xff] }
 0x2cc   :  { %v13848_v22 = vcombine.high %v2177_v15, %v2181_v18  ;;  %v13847_v34 = vcombine.low %v2177_v15, %v2181_v18  ;;  %v13849_v38 = vcombine.low %v2178_v5, %v2182_v45  ;;  %v2217_v18 = vld [vmem:[#allocation10 + $0x1a00] sm:$0xff] }
 0x2cd   :  { %7805 = vmatpush1.bf16.msra.mxu0 %v13807_v27  ;;  %v13850_v27 = vcombine.high %v2178_v5, %v2182_v45  ;;  %v2221_v5 = vld [vmem:[#allocation10 + $0x1a20] sm:$0xff]  ;;  %v2218_v45 = vld [vmem:[#allocation10 + $0x1a08] sm:$0xff] }
 0x2ce   :  { %8133 = vmatpush1.bf16.msra.mxu1 %v13809_v28  ;;  %7806 = vmatprep.subr.bf16.mxu0 %v13816_v29  ;;  %v2185_v28 = vld [vmem:[#allocation10 + $0x1900] sm:$0xff] }
 0x2cf   :  { %8134 = vmatprep.subr.bf16.mxu1 %v13818_v32  ;;  %v2189_v29 = vld [vmem:[#allocation10 + $0x1920] sm:$0xff]  ;;  %v2190_v32 = vld [vmem:[#allocation10 + $0x1928] sm:$0xff] }
 0x2d0   :  { %v13856_v53 = vcombine.high %v2185_v28, %v2189_v29  ;;  %v13858_v39 = vcombine.high %v2186_v31, %v2190_v32  ;;  %v13855_v0 = vcombine.low %v2185_v28, %v2189_v29  ;;  %v2225_v29 = vld [vmem:[#allocation10 + $0x1a40] sm:$0xff] }
 0x2d1   :  { %7807 = vmatpush1.bf16.msra.mxu0 %v13815_v48  ;;  %v2197_v48 = vld [vmem:[#allocation10 + $0x1960] sm:$0xff] }
 0x2d2   :  { %8135 = vmatpush1.bf16.msra.mxu1 %v13817_v51  ;;  %7817 = vmatprep.subr.bf16.mxu0 %v13824_v54  ;;  %v2194_v51 = vld [vmem:[#allocation10 + $0x1948] sm:$0xff]  ;;  %v13864_v55 = vcombine.high %v2193_v42, %v2197_v48 }
 0x2d3   :  { %8145 = vmatprep.subr.bf16.mxu1 %v13826_v52  ;;  %v2198_v54 = vld [vmem:[#allocation10 + $0x1968] sm:$0xff]  ;;  %v13857_v52 = vcombine.low %v2186_v31, %v2190_v32  ;;  %v2229_v31 = vld [vmem:[#allocation10 + $0x1a60] sm:$0xff] }
 0x2d4   :  { %7809 = vmatmul.mubr.bf16.vlgmr.msra.gmra.mrb[16].mxu0 %v15335_v61  ;;  %v13866_v56 = vcombine.high %v2194_v51, %v2198_v54  ;;  %v2226_v32 = vld [vmem:[#allocation10 + $0x1a48] sm:$0xff] }
 0x2d5   :  { %8137 = vmatmul.mubr.bf16.vlgmr.msra.gmra.mrb[16].mxu1 %v15335_v61  ;;  %7818 = vmatpush1.bf16.msra.mxu0 %v13823_v57  ;;  %v2205_v57 = vld [vmem:[#allocation10 + $0x19a0] sm:$0xff] }
 0x2d6   :  { %7849 = vmatprep.mubr.bf16.mxu0 %v15337_v1  ;;  %8146 = vmatpush1.bf16.msra.mxu1 %v13825_v62  ;;  %v13863_v62 = vcombine.low %v2193_v42, %v2197_v48  ;;  %v13872_v2 = vcombine.high %v2201_v19, %v2205_v57  ;;  %v2233_v48 = vld [vmem:[#allocation10 + $0x1a80] sm:$0xff] }
 0x2d7   :  { %8177 = vmatprep.mubr.bf16.mxu1 %v15337_v1  ;;  %7819 = vmatprep.subr.bf16.mxu0 %v13832_v63  ;;  %v13865_v63 = vcombine.low %v2194_v51, %v2198_v54  ;;  %v2237_v51 = vld [vmem:[#allocation10 + $0x1aa0] sm:$0xff]  ;;  %v2234_v54 = vld [vmem:[#allocation10 + $0x1a88] sm:$0xff] }
 0x2d8   :  { %8147 = vmatprep.subr.bf16.mxu1 %v13834_v3  ;;  %v2209_v3 = vld [vmem:[#allocation10 + $0x19c0] sm:$0xff] }
 0x2d9   :  { %7820 = vmatpush1.bf16.msra.mxu0 %v13831_v9  ;;  %v2214_v9 = vld [vmem:[#allocation10 + $0x19e8] sm:$0xff] }
 0x2da   :  { %8148 = vmatpush1.bf16.msra.mxu1 %v13833_v11  ;;  %7821 = vmatprep.subr.bf16.mxu0 %v13840_v16  ;;  %v13871_v11 = vcombine.low %v2201_v19, %v2205_v57  ;;  %v13873_v16 = vcombine.low %v2202_v58, %v2206_v60  ;;  %v13882_v15 = vcombine.high %v2210_v13, %v2214_v9  ;;  %v2241_v57 = vld [vmem:[#allocation10 + $0x1ac0] sm:$0xff]  ;;  %v2242_v60 = vld [vmem:[#allocation10 + $0x1ac8] sm:$0xff] }
 0x2db   :  { %8149 = vmatprep.subr.bf16.mxu1 %v13842_v49  ;;  %v13880_v49 = vcombine.high %v2209_v3, %v2213_v8  ;;  %v2245_v58 = vld [vmem:[#allocation10 + $0x1ae0] sm:$0xff] }
 0x2dd   :  { %7822 = vmatpush1.bf16.msra.mxu0 %v13839_v20  ;;  %v2222_v20 = vld [vmem:[#allocation10 + $0x1a28] sm:$0xff] }
 0x2de   :  { %8150 = vmatpush1.bf16.msra.mxu1 %v13841_v21  ;;  %7823 = vmatprep.subr.bf16.mxu0 %v13848_v22  ;;  %v13879_v21 = vcombine.low %v2209_v3, %v2213_v8  ;;  %v13881_v22 = vcombine.low %v2210_v13, %v2214_v9  ;;  %v13890_v28 = vcombine.high %v2218_v45, %v2222_v20  ;;  %v2249_v8 = vld [vmem:[#allocation10 + $0x1b00] sm:$0xff]  ;;  %v2250_v9 = vld [vmem:[#allocation10 + $0x1b08] sm:$0xff] }
 0x2df   :  { %8151 = vmatprep.subr.bf16.mxu1 %v13850_v27  ;;  %v13888_v27 = vcombine.high %v2217_v18, %v2221_v5  ;;  %v2253_v13 = vld [vmem:[#allocation10 + $0x1b20] sm:$0xff] }
 0x2e1   :  { %7824 = vmatpush1.bf16.msra.mxu0 %v13847_v34  ;;  %v2230_v34 = vld [vmem:[#allocation10 + $0x1a68] sm:$0xff] }
 0x2e2   :  { %8152 = vmatpush1.bf16.msra.mxu1 %v13849_v38  ;;  %7825 = vmatprep.subr.bf16.mxu0 %v13856_v53  ;;  %v13887_v38 = vcombine.low %v2217_v18, %v2221_v5  ;;  %v13889_v53 = vcombine.low %v2218_v45, %v2222_v20  ;;  %v13898_v42 = vcombine.high %v2226_v32, %v2230_v34  ;;  %v2257_v5 = vld [vmem:[#allocation10 + $0x1b40] sm:$0xff]  ;;  %v2258_v20 = vld [vmem:[#allocation10 + $0x1b48] sm:$0xff] }
 0x2e3   :  { %8153 = vmatprep.subr.bf16.mxu1 %v13858_v39  ;;  %v13896_v39 = vcombine.high %v2225_v29, %v2229_v31  ;;  %v2261_v45 = vld [vmem:[#allocation10 + $0x1b60] sm:$0xff] }
 0x2e5   :  { %7826 = vmatpush1.bf16.msra.mxu0 %v13855_v0  ;;  %v2238_v0 = vld [vmem:[#allocation10 + $0x1aa8] sm:$0xff] }
 0x2e6   :  { %8154 = vmatpush1.bf16.msra.mxu1 %v13857_v52  ;;  %7827 = vmatprep.subr.bf16.mxu0 %v13864_v55  ;;  %v13895_v52 = vcombine.low %v2225_v29, %v2229_v31  ;;  %v13897_v55 = vcombine.low %v2226_v32, %v2230_v34  ;;  %v13906_v19 = vcombine.high %v2234_v54, %v2238_v0  ;;  %v2265_v31 = vld [vmem:[#allocation10 + $0x1b80] sm:$0xff]  ;;  %v2266_v34 = vld [vmem:[#allocation10 + $0x1b88] sm:$0xff] }
 0x2e7   :  { %8155 = vmatprep.subr.bf16.mxu1 %v13866_v56  ;;  %v13904_v56 = vcombine.high %v2233_v48, %v2237_v51  ;;  %v2269_v32 = vld [vmem:[#allocation10 + $0x1ba0] sm:$0xff] }
 0x2e9   :  { %7828 = vmatpush1.bf16.msra.mxu0 %v13863_v62  ;;  %v2246_v62 = vld [vmem:[#allocation10 + $0x1ae8] sm:$0xff] }
 0x2ea   :  { %8156 = vmatpush1.bf16.msra.mxu1 %v13865_v63  ;;  %7829 = vmatprep.subr.bf16.mxu0 %v13872_v2  ;;  %v13903_v63 = vcombine.low %v2233_v48, %v2237_v51  ;;  %v13905_v2 = vcombine.low %v2234_v54, %v2238_v0  ;;  %v13914_v3 = vcombine.high %v2242_v60, %v2246_v62  ;;  %v2273_v51 = vld [vmem:[#allocation10 + $0x1bc0] sm:$0xff]  ;;  %v2274_v0 = vld [vmem:[#allocation10 + $0x1bc8] sm:$0xff] }
 0x2eb   :  { %8157 = vmatprep.subr.bf16.mxu1 %v13874_v25  ;;  %v13912_v25 = vcombine.high %v2241_v57, %v2245_v58  ;;  %v2277_v54 = vld [vmem:[#allocation10 + $0x1be0] sm:$0xff] }
 0x2ed   :  { %7830 = vmatpush1.bf16.msra.mxu0 %v13871_v11  ;;  %v2254_v11 = vld [vmem:[#allocation10 + $0x1b28] sm:$0xff] }
 0x2ee   :  { %8158 = vmatpush1.bf16.msra.mxu1 %v13873_v16  ;;  %7831 = vmatprep.subr.bf16.mxu0 %v13880_v49  ;;  %v13911_v16 = vcombine.low %v2241_v57, %v2245_v58  ;;  %v13913_v49 = vcombine.low %v2242_v60, %v2246_v62  ;;  %v13922_v18 = vcombine.high %v2250_v9, %v2254_v11  ;;  %v1349_v57 = vmul.f32 0.2, %v15274_v10  ;;  %v2281_v60 = vld [vmem:[#allocation10 + $0x1c00] sm:$0xff] }
 0x2ef   :  { %8159 = vmatprep.subr.bf16.mxu1 %v13882_v15  ;;  %v13920_v15 = vcombine.high %v2249_v8, %v2253_v13  ;;  %v2285_v62 = vld [vmem:[#allocation10 + $0x1c20] sm:$0xff] }
 0x2f1   :  { %7832 = vmatpush1.bf16.msra.mxu0 %v13879_v21  ;;  %v2262_v21 = vld [vmem:[#allocation10 + $0x1b68] sm:$0xff] }
 0x2f2   :  { %8160 = vmatpush1.bf16.msra.mxu1 %v13881_v22  ;;  %7833 = vmatprep.subr.bf16.mxu0 %v13888_v27  ;;  %v13919_v22 = vcombine.low %v2249_v8, %v2253_v13  ;;  %v13921_v27 = vcombine.low %v2250_v9, %v2254_v11  ;;  %v13930_v29 = vcombine.high %v2258_v20, %v2262_v21 }
 0x2f3   :  { %8161 = vmatprep.subr.bf16.mxu1 %v13890_v28  ;;  %v13928_v28 = vcombine.high %v2257_v5, %v2261_v45  ;;  %v13952_v13 = vcombine.high %v2281_v60, %v2285_v62  ;;  %v1365_v9 = vsel %vm1333_vm13, %v15274_v10, %v1349_v57  ;;  %v2314_v57 = vld [vmem:[#allocation10 + $0x1d08] sm:$0xff] }
 0x2f5   :  { %7834 = vmatpush1.bf16.msra.mxu0 %v13887_v38  ;;  %v2270_v38 = vld [vmem:[#allocation10 + $0x1ba8] sm:$0xff] }
 0x2f6   :  { %8162 = vmatpush1.bf16.msra.mxu1 %v13889_v53  ;;  %7835 = vmatprep.subr.bf16.mxu0 %v13896_v39  ;;  %v13927_v53 = vcombine.low %v2257_v5, %v2261_v45  ;;  %v13929_v39 = vcombine.low %v2258_v20, %v2262_v21  ;;  %v13938_v48 = vcombine.high %v2266_v34, %v2270_v38  ;;  %v2290_v5 = vld [vmem:[#allocation10 + $0x1c48] sm:$0xff] }
 0x2f7   :  { %8163 = vmatprep.subr.bf16.mxu1 %v13898_v42  ;;  %v13936_v42 = vcombine.high %v2265_v31, %v2269_v32  ;;  %v2294_v45 = vld [vmem:[#allocation10 + $0x1c68] sm:$0xff]  ;;  %v15349_v20 = vpack.c.bf16 %v1365_v9, %v1365_v9 }
 0x2f9   :  { %7836 = vmatpush1.bf16.msra.mxu0 %v13895_v52  ;;  %v2278_v52 = vld [vmem:[#allocation10 + $0x1be8] sm:$0xff] }
 0x2fa   :  { %8164 = vmatpush1.bf16.msra.mxu1 %v13897_v55  ;;  %7837 = vmatprep.subr.bf16.mxu0 %v13904_v56  ;;  %v13935_v55 = vcombine.low %v2265_v31, %v2269_v32  ;;  %v13937_v56 = vcombine.low %v2266_v34, %v2270_v38  ;;  %v13946_v58 = vcombine.high %v2274_v0, %v2278_v52  ;;  %v2298_v31 = vld [vmem:[#allocation10 + $0x1c88] sm:$0xff] }
 0x2fb   :  { %8165 = vmatprep.subr.bf16.mxu1 %v13906_v19  ;;  %v13944_v19 = vcombine.high %v2273_v51, %v2277_v54  ;;  %v13945_v8 = vcombine.low %v2274_v0, %v2278_v52  ;;  %v13961_v34 = vcombine.low %v2290_v5, %v2294_v45 }
 0x2fd   :  { %7838 = vmatpush1.bf16.msra.mxu0 %v13903_v63  ;;  %v2282_v63 = vld [vmem:[#allocation10 + $0x1c08] sm:$0xff] }
 0x2fe   :  { %8166 = vmatpush1.bf16.msra.mxu1 %v13905_v2  ;;  %7839 = vmatprep.subr.bf16.mxu0 %v13912_v25  ;;  %v2286_v2 = vld [vmem:[#allocation10 + $0x1c28] sm:$0xff]  ;;  %v1352_v25 = vmul.f32 0.2, %v15287_v43 }
 0x2ff   :  { %8167 = vmatprep.subr.bf16.mxu1 %v13914_v3  ;;  %v13943_v3 = vcombine.low %v2273_v51, %v2277_v54  ;;  %v13954_v11 = vcombine.high %v2282_v63, %v2286_v2  ;;  %v13953_v21 = vcombine.low %v2282_v63, %v2286_v2  ;;  %v2310_v51 = vld [vmem:[#allocation10 + $0x1ce8] sm:$0xff] }
 0x301   :  { %7840 = vmatpush1.bf16.msra.mxu0 %v13911_v16  ;;  %v2289_v16 = vld [vmem:[#allocation10 + $0x1c40] sm:$0xff] }
 0x302   :  { %8168 = vmatpush1.bf16.msra.mxu1 %v13913_v49  ;;  %7841 = vmatprep.subr.bf16.mxu0 %v13920_v15  ;;  %v2293_v49 = vld [vmem:[#allocation10 + $0x1c60] sm:$0xff]  ;;  %v1368_v15 = vsel %vm1336_vm14, %v15287_v43, %v1352_v25  ;;  %v2302_v43 = vld [vmem:[#allocation10 + $0x1ca8] sm:$0xff] }
 0x303   :  { %8169 = vmatprep.subr.bf16.mxu1 %v13922_v18  ;;  %v13951_v18 = vcombine.low %v2281_v60, %v2285_v62  ;;  %v15351_v10 = vpack.c.bf16 %v1368_v15, %v1368_v15  ;;  %v13959_v32 = vcombine.low %v2289_v16, %v2293_v49  ;;  %v13969_v0 = vcombine.low %v2298_v31, %v2302_v43  ;;  %v2321_v25 = vld [vmem:[#allocation10 + $0x1d40] sm:$0xff] }
 0x304   :  { %v2329_v15 = vld [vmem:[#allocation10 + $0x1d80] sm:$0xff] }
 0x305   :  { %7842 = vmatpush1.bf16.msra.mxu0 %v13919_v22  ;;  %v13960_v22 = vcombine.high %v2289_v16, %v2293_v49 }
 0x306   :  { %8170 = vmatpush1.bf16.msra.mxu1 %v13921_v27  ;;  %7843 = vmatprep.subr.bf16.mxu0 %v13928_v28  ;;  %v2297_v27 = vld [vmem:[#allocation10 + $0x1c80] sm:$0xff] }
 0x307   :  { %8171 = vmatprep.subr.bf16.mxu1 %v13930_v29  ;;  %v2301_v28 = vld [vmem:[#allocation10 + $0x1ca0] sm:$0xff]  ;;  %v13962_v29 = vcombine.high %v2290_v5, %v2294_v45  ;;  %v2330_v5 = vld [vmem:[#allocation10 + $0x1d88] sm:$0xff] }
 0x308   :  { %v13968_v38 = vcombine.high %v2297_v27, %v2301_v28  ;;  %v13967_v54 = vcombine.low %v2297_v27, %v2301_v28  ;;  %v2334_v45 = vld [vmem:[#allocation10 + $0x1da8] sm:$0xff] }
 0x309   :  { %7844 = vmatpush1.bf16.msra.mxu0 %v13927_v53  ;;  %v13970_v53 = vcombine.high %v2298_v31, %v2302_v43  ;;  %v14002_v28 = vcombine.high %v2330_v5, %v2334_v45  ;;  %v2341_v31 = vld [vmem:[#allocation10 + $0x1de0] sm:$0xff]  ;;  %v2338_v43 = vld [vmem:[#allocation10 + $0x1dc8] sm:$0xff] }
 0x30a   :  { %8172 = vmatpush1.bf16.msra.mxu1 %v13929_v39  ;;  %7845 = vmatprep.subr.bf16.mxu0 %v13936_v42  ;;  %v2305_v39 = vld [vmem:[#allocation10 + $0x1cc0] sm:$0xff] }
 0x30b   :  { %8173 = vmatprep.subr.bf16.mxu1 %v13938_v48  ;;  %v2309_v42 = vld [vmem:[#allocation10 + $0x1ce0] sm:$0xff]  ;;  %v2306_v48 = vld [vmem:[#allocation10 + $0x1cc8] sm:$0xff] }
 0x30c   :  { %v13976_v52 = vcombine.high %v2305_v39, %v2309_v42  ;;  %v13975_v60 = vcombine.low %v2305_v39, %v2309_v42  ;;  %v13977_v62 = vcombine.low %v2306_v48, %v2310_v51  ;;  %v2345_v42 = vld [vmem:[#allocation10 + $0x1e00] sm:$0xff] }
 0x30d   :  { %7846 = vmatpush1.bf16.msra.mxu0 %v13935_v55  ;;  %v13978_v55 = vcombine.high %v2306_v48, %v2310_v51  ;;  %v2349_v48 = vld [vmem:[#allocation10 + $0x1e20] sm:$0xff]  ;;  %v2346_v51 = vld [vmem:[#allocation10 + $0x1e08] sm:$0xff] }
 0x30e   :  { %8174 = vmatpush1.bf16.msra.mxu1 %v13937_v56  ;;  %7847 = vmatprep.subr.bf16.mxu0 %v13944_v19  ;;  %v2313_v56 = vld [vmem:[#allocation10 + $0x1d00] sm:$0xff] }
 0x30f   :  { %8175 = vmatprep.subr.bf16.mxu1 %v13946_v58  ;;  %v2317_v19 = vld [vmem:[#allocation10 + $0x1d20] sm:$0xff]  ;;  %v2318_v58 = vld [vmem:[#allocation10 + $0x1d28] sm:$0xff] }
 0x310   :  { %v13984_v63 = vcombine.high %v2313_v56, %v2317_v19  ;;  %v13986_v2 = vcombine.high %v2314_v57, %v2318_v58  ;;  %v13983_v9 = vcombine.low %v2313_v56, %v2317_v19  ;;  %v2353_v19 = vld [vmem:[#allocation10 + $0x1e40] sm:$0xff] }
 0x311   :  { %7848 = vmatpush1.bf16.msra.mxu0 %v13943_v3  ;;  %v2325_v3 = vld [vmem:[#allocation10 + $0x1d60] sm:$0xff] }
 0x312   :  { %8176 = vmatpush1.bf16.msra.mxu1 %v13945_v8  ;;  %7858 = vmatprep.subr.bf16.mxu0 %v13952_v13  ;;  %v2322_v8 = vld [vmem:[#allocation10 + $0x1d48] sm:$0xff]  ;;  %v13992_v16 = vcombine.high %v2321_v25, %v2325_v3 }
 0x313   :  { %8186 = vmatprep.subr.bf16.mxu1 %v13954_v11  ;;  %v2326_v13 = vld [vmem:[#allocation10 + $0x1d68] sm:$0xff]  ;;  %v13985_v11 = vcombine.low %v2314_v57, %v2318_v58  ;;  %v2357_v57 = vld [vmem:[#allocation10 + $0x1e60] sm:$0xff] }
 0x314   :  { %7850 = vmatmul.mubr.bf16.vlgmr.msra.gmra.mrb[16].mxu0 %v15349_v20  ;;  %v13994_v49 = vcombine.high %v2322_v8, %v2326_v13  ;;  %v2354_v58 = vld [vmem:[#allocation10 + $0x1e48] sm:$0xff] }
 0x315   :  { %8178 = vmatmul.mubr.bf16.vlgmr.msra.gmra.mrb[16].mxu1 %v15349_v20  ;;  %7859 = vmatpush1.bf16.msra.mxu0 %v13951_v18  ;;  %v2333_v18 = vld [vmem:[#allocation10 + $0x1da0] sm:$0xff] }
 0x316   :  { %7890 = vmatprep.mubr.bf16.mxu0 %v15351_v10  ;;  %8187 = vmatpush1.bf16.msra.mxu1 %v13953_v21  ;;  %v13991_v21 = vcombine.low %v2321_v25, %v2325_v3  ;;  %v14000_v27 = vcombine.high %v2329_v15, %v2333_v18  ;;  %v2361_v3 = vld [vmem:[#allocation10 + $0x1e80] sm:$0xff] }
 0x317   :  { %8218 = vmatprep.mubr.bf16.mxu1 %v15351_v10  ;;  %7860 = vmatprep.subr.bf16.mxu0 %v13960_v22  ;;  %v13993_v22 = vcombine.low %v2322_v8, %v2326_v13  ;;  %v2365_v8 = vld [vmem:[#allocation10 + $0x1ea0] sm:$0xff]  ;;  %v2362_v13 = vld [vmem:[#allocation10 + $0x1e88] sm:$0xff] }
 0x318   :  { %8188 = vmatprep.subr.bf16.mxu1 %v13962_v29  ;;  %v2337_v29 = vld [vmem:[#allocation10 + $0x1dc0] sm:$0xff] }
 0x319   :  { %7861 = vmatpush1.bf16.msra.mxu0 %v13959_v32  ;;  %v2342_v32 = vld [vmem:[#allocation10 + $0x1de8] sm:$0xff] }
 0x31a   :  { %8189 = vmatpush1.bf16.msra.mxu1 %v13961_v34  ;;  %7862 = vmatprep.subr.bf16.mxu0 %v13968_v38  ;;  %v13999_v34 = vcombine.low %v2329_v15, %v2333_v18  ;;  %v14001_v38 = vcombine.low %v2330_v5, %v2334_v45  ;;  %v14010_v39 = vcombine.high %v2338_v43, %v2342_v32  ;;  %v2369_v18 = vld [vmem:[#allocation10 + $0x1ec0] sm:$0xff]  ;;  %v2370_v45 = vld [vmem:[#allocation10 + $0x1ec8] sm:$0xff] }
 0x31b   :  { %8190 = vmatprep.subr.bf16.mxu1 %v13970_v53  ;;  %v14008_v53 = vcombine.high %v2337_v29, %v2341_v31  ;;  %v2373_v5 = vld [vmem:[#allocation10 + $0x1ee0] sm:$0xff] }
 0x31d   :  { %7863 = vmatpush1.bf16.msra.mxu0 %v13967_v54  ;;  %v2350_v54 = vld [vmem:[#allocation10 + $0x1e28] sm:$0xff] }
 0x31e   :  { %8191 = vmatpush1.bf16.msra.mxu1 %v13969_v0  ;;  %7864 = vmatprep.subr.bf16.mxu0 %v13976_v52  ;;  %v14007_v0 = vcombine.low %v2337_v29, %v2341_v31  ;;  %v14009_v52 = vcombine.low %v2338_v43, %v2342_v32  ;;  %v14018_v56 = vcombine.high %v2346_v51, %v2350_v54  ;;  %v2377_v31 = vld [vmem:[#allocation10 + $0x1f00] sm:$0xff]  ;;  %v2378_v32 = vld [vmem:[#allocation10 + $0x1f08] sm:$0xff] }
 0x31f   :  { %8192 = vmatprep.subr.bf16.mxu1 %v13978_v55  ;;  %v14016_v55 = vcombine.high %v2345_v42, %v2349_v48  ;;  %v2381_v43 = vld [vmem:[#allocation10 + $0x1f20] sm:$0xff] }
 0x321   :  { %7865 = vmatpush1.bf16.msra.mxu0 %v13975_v60  ;;  %v2358_v60 = vld [vmem:[#allocation10 + $0x1e68] sm:$0xff] }
 0x322   :  { %8193 = vmatpush1.bf16.msra.mxu1 %v13977_v62  ;;  %7866 = vmatprep.subr.bf16.mxu0 %v13984_v63  ;;  %v14015_v62 = vcombine.low %v2345_v42, %v2349_v48  ;;  %v14017_v63 = vcombine.low %v2346_v51, %v2350_v54  ;;  %v14026_v25 = vcombine.high %v2354_v58, %v2358_v60  ;;  %v2385_v48 = vld [vmem:[#allocation10 + $0x1f40] sm:$0xff]  ;;  %v2386_v54 = vld [vmem:[#allocation10 + $0x1f48] sm:$0xff] }
 0x323   :  { %8194 = vmatprep.subr.bf16.mxu1 %v13986_v2  ;;  %v14024_v2 = vcombine.high %v2353_v19, %v2357_v57  ;;  %v2389_v51 = vld [vmem:[#allocation10 + $0x1f60] sm:$0xff] }
 0x325   :  { %7867 = vmatpush1.bf16.msra.mxu0 %v13983_v9  ;;  %v2366_v9 = vld [vmem:[#allocation10 + $0x1ea8] sm:$0xff] }
 0x326   :  { %8195 = vmatpush1.bf16.msra.mxu1 %v13985_v11  ;;  %7868 = vmatprep.subr.bf16.mxu0 %v13992_v16  ;;  %v14023_v11 = vcombine.low %v2353_v19, %v2357_v57  ;;  %v14025_v16 = vcombine.low %v2354_v58, %v2358_v60  ;;  %v14034_v15 = vcombine.high %v2362_v13, %v2366_v9  ;;  %v2393_v57 = vld [vmem:[#allocation10 + $0x1f80] sm:$0xff]  ;;  %v2394_v60 = vld [vmem:[#allocation10 + $0x1f88] sm:$0xff] }
 0x327   :  { %8196 = vmatprep.subr.bf16.mxu1 %v13994_v49  ;;  %v14032_v49 = vcombine.high %v2361_v3, %v2365_v8  ;;  %v2397_v58 = vld [vmem:[#allocation10 + $0x1fa0] sm:$0xff] }
 0x329   :  { %7869 = vmatpush1.bf16.msra.mxu0 %v13991_v21  ;;  %v2374_v21 = vld [vmem:[#allocation10 + $0x1ee8] sm:$0xff] }
 0x32a   :  { %8197 = vmatpush1.bf16.msra.mxu1 %v13993_v22  ;;  %7870 = vmatprep.subr.bf16.mxu0 %v14000_v27  ;;  %v14031_v22 = vcombine.low %v2361_v3, %v2365_v8  ;;  %v14033_v27 = vcombine.low %v2362_v13, %v2366_v9  ;;  %v14042_v29 = vcombine.high %v2370_v45, %v2374_v21  ;;  %v2401_v8 = vld [vmem:[#allocation10 + $0x1fc0] sm:$0xff]  ;;  %v2402_v9 = vld [vmem:[#allocation10 + $0x1fc8] sm:$0xff] }
 0x32b   :  { %8198 = vmatprep.subr.bf16.mxu1 %v14002_v28  ;;  %v14040_v28 = vcombine.high %v2369_v18, %v2373_v5  ;;  %v2405_v13 = vld [vmem:[#allocation10 + $0x1fe0] sm:$0xff] }
 0x32d   :  { %7871 = vmatpush1.bf16.msra.mxu0 %v13999_v34  ;;  %v2382_v34 = vld [vmem:[#allocation10 + $0x1f28] sm:$0xff] }
 0x32e   :  { %8199 = vmatpush1.bf16.msra.mxu1 %v14001_v38  ;;  %7872 = vmatprep.subr.bf16.mxu0 %v14008_v53  ;;  %v14039_v38 = vcombine.low %v2369_v18, %v2373_v5  ;;  %v14041_v53 = vcombine.low %v2370_v45, %v2374_v21  ;;  %v14050_v42 = vcombine.high %v2378_v32, %v2382_v34  ;;  %v1351_v18 = vmul.f32 0.2, %v15285_v36  ;;  %v1387_v45 = vld [vmem:[#allocation10 + $0x10] sm:$0xff] }
 0x32f   :  { %8200 = vmatprep.subr.bf16.mxu1 %v14010_v39  ;;  %v14048_v39 = vcombine.high %v2377_v31, %v2381_v43  ;;  %v1391_v21 = vld [vmem:[#allocation10 + $0x30] sm:$0xff] }
 0x331   :  { %7873 = vmatpush1.bf16.msra.mxu0 %v14007_v0  ;;  %v2390_v0 = vld [vmem:[#allocation10 + $0x1f68] sm:$0xff] }
 0x332   :  { %8201 = vmatpush1.bf16.msra.mxu1 %v14009_v52  ;;  %7874 = vmatprep.subr.bf16.mxu0 %v14016_v55  ;;  %v14047_v52 = vcombine.low %v2377_v31, %v2381_v43  ;;  %v14049_v55 = vcombine.low %v2378_v32, %v2382_v34  ;;  %v14058_v19 = vcombine.high %v2386_v54, %v2390_v0  ;;  %v1395_v34 = vld [vmem:[#allocation10 + $0x50] sm:$0xff] }
 0x333   :  { %8202 = vmatprep.subr.bf16.mxu1 %v14018_v56  ;;  %v14056_v56 = vcombine.high %v2385_v48, %v2389_v51  ;;  %v13060_v31 = vcombine.high %v1387_v45, %v1391_v21  ;;  %v1367_v43 = vsel %vm1335_vm15, %v15285_v36, %v1351_v18 }
 0x335   :  { %7875 = vmatpush1.bf16.msra.mxu0 %v14015_v62  ;;  %v2398_v62 = vld [vmem:[#allocation10 + $0x1fa8] sm:$0xff] }
 0x336   :  { %8203 = vmatpush1.bf16.msra.mxu1 %v14017_v63  ;;  %7876 = vmatprep.subr.bf16.mxu0 %v14024_v2  ;;  %v14055_v63 = vcombine.low %v2385_v48, %v2389_v51  ;;  %v14057_v2 = vcombine.low %v2386_v54, %v2390_v0  ;;  %v14066_v3 = vcombine.high %v2394_v60, %v2398_v62  ;;  %v1403_v0 = vld [vmem:[#allocation10 + $0x90] sm:$0xff] }
 0x337   :  { %8204 = vmatprep.subr.bf16.mxu1 %v14026_v25  ;;  %v14064_v25 = vcombine.high %v2393_v57, %v2397_v58  ;;  %v15360_v48 = vpack.c.bf16 %v1367_v43, %v1367_v43 }
 0x339   :  { %7877 = vmatpush1.bf16.msra.mxu0 %v14023_v11  ;;  %v2406_v11 = vld [vmem:[#allocation10 + $0x1fe8] sm:$0xff] }
 0x33a   :  { %8205 = vmatpush1.bf16.msra.mxu1 %v14025_v16  ;;  %7878 = vmatprep.subr.bf16.mxu0 %v14032_v49  ;;  %v14063_v16 = vcombine.low %v2393_v57, %v2397_v58  ;;  %v14065_v49 = vcombine.low %v2394_v60, %v2398_v62  ;;  %v14074_v5 = vcombine.high %v2402_v9, %v2406_v11  ;;  %v1411_v62 = vld [vmem:[#allocation10 + $0xd0] sm:$0xff] }
 0x33b   :  { %8206 = vmatprep.subr.bf16.mxu1 %v14034_v15  ;;  %v14072_v15 = vcombine.high %v2401_v8, %v2405_v13 }
 0x33d   :  { %7879 = vmatpush1.bf16.msra.mxu0 %v14031_v22  ;;  %v1388_v22 = vld [vmem:[#allocation10 + $0x18] sm:$0xff] }
 0x33e   :  { %8207 = vmatpush1.bf16.msra.mxu1 %v14033_v27  ;;  %7880 = vmatprep.subr.bf16.mxu0 %v14040_v28  ;;  %v1392_v27 = vld [vmem:[#allocation10 + $0x38] sm:$0xff]  ;;  %v14071_v28 = vcombine.low %v2401_v8, %v2405_v13 }
 0x33f   :  { %8208 = vmatprep.subr.bf16.mxu1 %v14042_v29  ;;  %v14073_v29 = vcombine.low %v2402_v9, %v2406_v11  ;;  %v13062_v32 = vcombine.high %v1388_v22, %v1392_v27  ;;  %v13061_v51 = vcombine.low %v1388_v22, %v1392_v27  ;;  %v1419_v11 = vld [vmem:[#allocation10 + $0x110] sm:$0xff]  ;;  %v1428_v27 = vld [vmem:[#allocation10 + $0x158] sm:$0xff] }
 0x340   :  { %v1431_v22 = vld [vmem:[#allocation10 + $0x170] sm:$0xff] }
 0x341   :  { %7881 = vmatpush1.bf16.msra.mxu0 %v14039_v38  ;;  %v1399_v38 = vld [vmem:[#allocation10 + $0x70] sm:$0xff] }
 0x342   :  { %8209 = vmatpush1.bf16.msra.mxu1 %v14041_v53  ;;  %7882 = vmatprep.subr.bf16.mxu0 %v14048_v39  ;;  %v13059_v53 = vcombine.low %v1387_v45, %v1391_v21  ;;  %v1396_v39 = vld [vmem:[#allocation10 + $0x58] sm:$0xff]  ;;  %v13068_v54 = vcombine.high %v1395_v34, %v1399_v38  ;;  %v1427_v21 = vld [vmem:[#allocation10 + $0x150] sm:$0xff] }
 0x343   :  { %8210 = vmatprep.subr.bf16.mxu1 %v14050_v42  ;;  %v1400_v42 = vld [vmem:[#allocation10 + $0x78] sm:$0xff]  ;;  %v13100_v43 = vcombine.high %v1427_v21, %v1431_v22 }
 0x344   :  { %v13070_v36 = vcombine.high %v1396_v39, %v1400_v42  ;;  %v13069_v57 = vcombine.low %v1396_v39, %v1400_v42  ;;  %v1440_v39 = vld [vmem:[#allocation10 + $0x1b8] sm:$0xff]  ;;  %v13099_v42 = vcombine.low %v1427_v21, %v1431_v22  ;;  %v1467_v21 = vld [vmem:[#allocation10 + $0x290] sm:$0xff] }
 0x345   :  { %7883 = vmatpush1.bf16.msra.mxu0 %v14047_v52  ;;  %v1407_v52 = vld [vmem:[#allocation10 + $0xb0] sm:$0xff] }
 0x346   :  { %8211 = vmatpush1.bf16.msra.mxu1 %v14049_v55  ;;  %7884 = vmatprep.subr.bf16.mxu0 %v14056_v56  ;;  %v1404_v55 = vld [vmem:[#allocation10 + $0x98] sm:$0xff]  ;;  %v13076_v58 = vcombine.high %v1403_v0, %v1407_v52  ;;  %v1471_v22 = vld [vmem:[#allocation10 + $0x2b0] sm:$0xff] }
 0x347   :  { %8212 = vmatprep.subr.bf16.mxu1 %v14058_v19  ;;  %v1408_v56 = vld [vmem:[#allocation10 + $0xb8] sm:$0xff]  ;;  %v13067_v19 = vcombine.low %v1395_v34, %v1399_v38  ;;  %v1435_v34 = vld [vmem:[#allocation10 + $0x190] sm:$0xff] }
 0x348   :  { %v13078_v60 = vcombine.high %v1404_v55, %v1408_v56  ;;  %v13077_v8 = vcombine.low %v1404_v55, %v1408_v56  ;;  %v1439_v38 = vld [vmem:[#allocation10 + $0x1b0] sm:$0xff]  ;;  %v1444_v55 = vld [vmem:[#allocation10 + $0x1d8] sm:$0xff] }
 0x349   :  { %7885 = vmatpush1.bf16.msra.mxu0 %v14055_v63  ;;  %v1415_v63 = vld [vmem:[#allocation10 + $0xf0] sm:$0xff]  ;;  %v1448_v56 = vld [vmem:[#allocation10 + $0x1f8] sm:$0xff] }
 0x34a   :  { %8213 = vmatpush1.bf16.msra.mxu1 %v14057_v2  ;;  %7886 = vmatprep.subr.bf16.mxu0 %v14064_v25  ;;  %v1412_v2 = vld [vmem:[#allocation10 + $0xd8] sm:$0xff]  ;;  %v13084_v13 = vcombine.high %v1411_v62, %v1415_v63 }
 0x34b   :  { %8214 = vmatprep.subr.bf16.mxu1 %v14066_v3  ;;  %v1416_v25 = vld [vmem:[#allocation10 + $0xf8] sm:$0xff]  ;;  %v13075_v3 = vcombine.low %v1403_v0, %v1407_v52  ;;  %v1443_v52 = vld [vmem:[#allocation10 + $0x1d0] sm:$0xff] }
 0x34c   :  { %v13086_v9 = vcombine.high %v1412_v2, %v1416_v25  ;;  %v13085_v18 = vcombine.low %v1412_v2, %v1416_v25  ;;  %v1452_v2 = vld [vmem:[#allocation10 + $0x218] sm:$0xff] }
 0x34d   :  { %7887 = vmatpush1.bf16.msra.mxu0 %v14063_v16  ;;  %v1423_v16 = vld [vmem:[#allocation10 + $0x130] sm:$0xff]  ;;  %v1456_v25 = vld [vmem:[#allocation10 + $0x238] sm:$0xff] }
 0x34e   :  { %8215 = vmatpush1.bf16.msra.mxu1 %v14065_v49  ;;  %7888 = vmatprep.subr.bf16.mxu0 %v14072_v15  ;;  %v1420_v49 = vld [vmem:[#allocation10 + $0x118] sm:$0xff] }
 0x34f   :  { %8216 = vmatprep.subr.bf16.mxu1 %v14074_v5  ;;  %v1424_v15 = vld [vmem:[#allocation10 + $0x138] sm:$0xff]  ;;  %v13092_v5 = vcombine.high %v1419_v11, %v1423_v16 }
 0x350   :  { %v13094_v45 = vcombine.high %v1420_v49, %v1424_v15 }
 0x351   :  { %7889 = vmatpush1.bf16.msra.mxu0 %v14071_v28  ;;  %v1432_v28 = vld [vmem:[#allocation10 + $0x178] sm:$0xff] }
 0x352   :  { %8217 = vmatpush1.bf16.msra.mxu1 %v14073_v29  ;;  %8227 = vmatprep.subr.bf16.mxu0 %v13060_v31  ;;  %v13091_v29 = vcombine.low %v1419_v11, %v1423_v16  ;;  %v13093_v31 = vcombine.low %v1420_v49, %v1424_v15  ;;  %v1459_v11 = vld [vmem:[#allocation10 + $0x250] sm:$0xff]  ;;  %v1460_v49 = vld [vmem:[#allocation10 + $0x258] sm:$0xff] }
 0x353   :  { %8555 = vmatprep.subr.bf16.mxu1 %v13062_v32  ;;  %v13102_v32 = vcombine.high %v1428_v27, %v1432_v28  ;;  %v1463_v16 = vld [vmem:[#allocation10 + $0x270] sm:$0xff]  ;;  %v1464_v15 = vld [vmem:[#allocation10 + $0x278] sm:$0xff] }
 0x354   :  { %7891 = vmatmul.mubr.bf16.vlgmr.msra.gmra.mrb[16].mxu0 %v15360_v48 }
 0x355   :  { %8219 = vmatmul.mubr.bf16.vlgmr.msra.gmra.mrb[16].mxu1 %v15360_v48  ;;  %8228 = vmatpush1.bf16.msra.mxu0 %v13059_v53  ;;  %v1436_v53 = vld [vmem:[#allocation10 + $0x198] sm:$0xff] }
 0x356   :  { %8259 = vmatprep.mubr.bf16.mxu0 %v15206_v46  ;;  %8556 = vmatpush1.bf16.msra.mxu1 %v13061_v51  ;;  %v13101_v51 = vcombine.low %v1428_v27, %v1432_v28  ;;  %v13110_v0 = vcombine.high %v1436_v53, %v1440_v39  ;;  %v1468_v27 = vld [vmem:[#allocation10 + $0x298] sm:$0xff] }
 0x357   :  { %8587 = vmatprep.mubr.bf16.mxu1 %v15206_v46  ;;  %8229 = vmatprep.subr.bf16.mxu0 %v13068_v54  ;;  %v13083_v46 = vcombine.low %v1411_v62, %v1415_v63  ;;  %v13108_v54 = vcombine.high %v1435_v34, %v1439_v38  ;;  %v1451_v62 = vld [vmem:[#allocation10 + $0x210] sm:$0xff]  ;;  %v1472_v28 = vld [vmem:[#allocation10 + $0x2b8] sm:$0xff] }
 0x358   :  { %8557 = vmatprep.subr.bf16.mxu1 %v13070_v36  ;;  %v1447_v36 = vld [vmem:[#allocation10 + $0x1f0] sm:$0xff] }
 0x359   :  { %8230 = vmatpush1.bf16.msra.mxu0 %v13067_v19  ;;  %v13107_v19 = vcombine.low %v1435_v34, %v1439_v38  ;;  %v1455_v63 = vld [vmem:[#allocation10 + $0x230] sm:$0xff] }
 0x35a   :  { %8558 = vmatpush1.bf16.msra.mxu1 %v13069_v57  ;;  %8231 = vmatprep.subr.bf16.mxu0 %v13076_v58  ;;  %v13109_v57 = vcombine.low %v1436_v53, %v1440_v39  ;;  %v13116_v58 = vcombine.high %v1443_v52, %v1447_v36  ;;  %v1475_v34 = vld [vmem:[#allocation10 + $0x2d0] sm:$0xff]  ;;  %v1476_v53 = vld [vmem:[#allocation10 + $0x2d8] sm:$0xff] }
 0x35b   :  { %8559 = vmatprep.subr.bf16.mxu1 %v13078_v60  ;;  %v13118_v60 = vcombine.high %v1444_v55, %v1448_v56  ;;  %v1479_v38 = vld [vmem:[#allocation10 + $0x2f0] sm:$0xff]  ;;  %v1480_v39 = vld [vmem:[#allocation10 + $0x2f8] sm:$0xff] }
 0x35d   :  { %8232 = vmatpush1.bf16.msra.mxu0 %v13075_v3  ;;  %v13115_v3 = vcombine.low %v1443_v52, %v1447_v36  ;;  %v1483_v52 = vld [vmem:[#allocation10 + $0x310] sm:$0xff] }
 0x35e   :  { %8560 = vmatpush1.bf16.msra.mxu1 %v13077_v8  ;;  %8233 = vmatprep.subr.bf16.mxu0 %v13084_v13  ;;  %v13117_v8 = vcombine.low %v1444_v55, %v1448_v56  ;;  %v13124_v13 = vcombine.high %v1451_v62, %v1455_v63  ;;  %v1487_v36 = vld [vmem:[#allocation10 + $0x330] sm:$0xff]  ;;  %v1484_v55 = vld [vmem:[#allocation10 + $0x318] sm:$0xff] }
 0x35f   :  { %8561 = vmatprep.subr.bf16.mxu1 %v13086_v9  ;;  %v13126_v9 = vcombine.high %v1452_v2, %v1456_v25  ;;  %v1488_v56 = vld [vmem:[#allocation10 + $0x338] sm:$0xff] }
 0x361   :  { %8234 = vmatpush1.bf16.msra.mxu0 %v13083_v46  ;;  %v13123_v46 = vcombine.low %v1451_v62, %v1455_v63  ;;  %v1491_v62 = vld [vmem:[#allocation10 + $0x350] sm:$0xff] }
 0x362   :  { %8562 = vmatpush1.bf16.msra.mxu1 %v13085_v18  ;;  %8235 = vmatprep.subr.bf16.mxu0 %v13092_v5  ;;  %v13125_v18 = vcombine.low %v1452_v2, %v1456_v25  ;;  %v13132_v5 = vcombine.high %v1459_v11, %v1463_v16  ;;  %v1495_v63 = vld [vmem:[#allocation10 + $0x370] sm:$0xff]  ;;  %v1492_v2 = vld [vmem:[#allocation10 + $0x358] sm:$0xff] }
 0x363   :  { %8563 = vmatprep.subr.bf16.mxu1 %v13094_v45  ;;  %v13134_v45 = vcombine.high %v1460_v49, %v1464_v15  ;;  %v1496_v25 = vld [vmem:[#allocation10 + $0x378] sm:$0xff] }
 0x365   :  { %8236 = vmatpush1.bf16.msra.mxu0 %v13091_v29  ;;  %v13131_v29 = vcombine.low %v1459_v11, %v1463_v16  ;;  %v1499_v11 = vld [vmem:[#allocation10 + $0x390] sm:$0xff] }
 0x366   :  { %8564 = vmatpush1.bf16.msra.mxu1 %v13093_v31  ;;  %8237 = vmatprep.subr.bf16.mxu0 %v13100_v43  ;;  %v13133_v31 = vcombine.low %v1460_v49, %v1464_v15  ;;  %v13140_v43 = vcombine.high %v1467_v21, %v1471_v22  ;;  %v1503_v16 = vld [vmem:[#allocation10 + $0x3b0] sm:$0xff]  ;;  %v1500_v49 = vld [vmem:[#allocation10 + $0x398] sm:$0xff] }
 0x367   :  { %8565 = vmatprep.subr.bf16.mxu1 %v13102_v32  ;;  %v13142_v32 = vcombine.high %v1468_v27, %v1472_v28  ;;  %v1504_v15 = vld [vmem:[#allocation10 + $0x3b8] sm:$0xff] }
 0x369   :  { %8238 = vmatpush1.bf16.msra.mxu0 %v13099_v42  ;;  %v13139_v42 = vcombine.low %v1467_v21, %v1471_v22  ;;  %v1507_v21 = vld [vmem:[#allocation10 + $0x3d0] sm:$0xff] }
 0x36a   :  { %8566 = vmatpush1.bf16.msra.mxu1 %v13101_v51  ;;  %8239 = vmatprep.subr.bf16.mxu0 %v13108_v54  ;;  %v13141_v51 = vcombine.low %v1468_v27, %v1472_v28  ;;  %v13148_v54 = vcombine.high %v1475_v34, %v1479_v38  ;;  %v1511_v22 = vld [vmem:[#allocation10 + $0x3f0] sm:$0xff]  ;;  %v1508_v27 = vld [vmem:[#allocation10 + $0x3d8] sm:$0xff] }
 0x36b   :  { %8567 = vmatprep.subr.bf16.mxu1 %v13110_v0  ;;  %v13150_v0 = vcombine.high %v1476_v53, %v1480_v39  ;;  %v1512_v28 = vld [vmem:[#allocation10 + $0x3f8] sm:$0xff] }
 0x36d   :  { %8240 = vmatpush1.bf16.msra.mxu0 %v13107_v19  ;;  %v13147_v19 = vcombine.low %v1475_v34, %v1479_v38  ;;  %v1515_v34 = vld [vmem:[#allocation10 + $0x410] sm:$0xff] }
 0x36e   :  { %8568 = vmatpush1.bf16.msra.mxu1 %v13109_v57  ;;  %8241 = vmatprep.subr.bf16.mxu0 %v13116_v58  ;;  %v13149_v57 = vcombine.low %v1476_v53, %v1480_v39  ;;  %v13156_v58 = vcombine.high %v1483_v52, %v1487_v36  ;;  %v1519_v38 = vld [vmem:[#allocation10 + $0x430] sm:$0xff]  ;;  %v1516_v53 = vld [vmem:[#allocation10 + $0x418] sm:$0xff] }
 0x36f   :  { %8569 = vmatprep.subr.bf16.mxu1 %v13118_v60  ;;  %v13158_v60 = vcombine.high %v1484_v55, %v1488_v56  ;;  %v1520_v39 = vld [vmem:[#allocation10 + $0x438] sm:$0xff] }
 0x371   :  { %8242 = vmatpush1.bf16.msra.mxu0 %v13115_v3  ;;  %v13155_v3 = vcombine.low %v1483_v52, %v1487_v36  ;;  %v1523_v52 = vld [vmem:[#allocation10 + $0x450] sm:$0xff] }
 0x372   :  { %8570 = vmatpush1.bf16.msra.mxu1 %v13117_v8  ;;  %8243 = vmatprep.subr.bf16.mxu0 %v13124_v13  ;;  %v13157_v8 = vcombine.low %v1484_v55, %v1488_v56  ;;  %v13164_v13 = vcombine.high %v1491_v62, %v1495_v63  ;;  %v1527_v36 = vld [vmem:[#allocation10 + $0x470] sm:$0xff]  ;;  %v13187_v55 = vcombine.low %v1515_v34, %v1519_v38  ;;  %v1524_v56 = vld [vmem:[#allocation10 + $0x458] sm:$0xff] }
 0x373   :  { %8571 = vmatprep.subr.bf16.mxu1 %v13126_v9  ;;  %v13166_v9 = vcombine.high %v1492_v2, %v1496_v25 }
 0x375   :  { %8244 = vmatpush1.bf16.msra.mxu0 %v13123_v46  ;;  %v13163_v46 = vcombine.low %v1491_v62, %v1495_v63  ;;  %v1535_v62 = vld [vmem:[#allocation10 + $0x4b0] sm:$0xff] }
 0x376   :  { %8572 = vmatpush1.bf16.msra.mxu1 %v13125_v18  ;;  %8245 = vmatprep.subr.bf16.mxu0 %v13132_v5  ;;  %v13165_v18 = vcombine.low %v1492_v2, %v1496_v25  ;;  %v13172_v5 = vcombine.high %v1499_v11, %v1503_v16  ;;  %v1532_v2 = vld [vmem:[#allocation10 + $0x498] sm:$0xff] }
 0x377   :  { %8573 = vmatprep.subr.bf16.mxu1 %v13134_v45  ;;  %v13174_v45 = vcombine.high %v1500_v49, %v1504_v15  ;;  %v1536_v25 = vld [vmem:[#allocation10 + $0x4b8] sm:$0xff] }
 0x379   :  { %8246 = vmatpush1.bf16.msra.mxu0 %v13131_v29  ;;  %v13171_v29 = vcombine.low %v1499_v11, %v1503_v16  ;;  %v1539_v11 = vld [vmem:[#allocation10 + $0x4d0] sm:$0xff] }
 0x37a   :  { %8574 = vmatpush1.bf16.msra.mxu1 %v13133_v31  ;;  %8247 = vmatprep.subr.bf16.mxu0 %v13140_v43  ;;  %v13173_v31 = vcombine.low %v1500_v49, %v1504_v15  ;;  %v13180_v43 = vcombine.high %v1507_v21, %v1511_v22  ;;  %v1543_v16 = vld [vmem:[#allocation10 + $0x4f0] sm:$0xff]  ;;  %v1540_v49 = vld [vmem:[#allocation10 + $0x4d8] sm:$0xff] }
 0x37b   :  { %8575 = vmatprep.subr.bf16.mxu1 %v13142_v32  ;;  %v13182_v32 = vcombine.high %v1508_v27, %v1512_v28  ;;  %v1544_v15 = vld [vmem:[#allocation10 + $0x4f8] sm:$0xff] }
 0x37d   :  { %8248 = vmatpush1.bf16.msra.mxu0 %v13139_v42  ;;  %v13179_v42 = vcombine.low %v1507_v21, %v1511_v22  ;;  %v1551_v21 = vld [vmem:[#allocation10 + $0x530] sm:$0xff]  ;;  %v1548_v22 = vld [vmem:[#allocation10 + $0x518] sm:$0xff] }
 0x37e   :  { %8576 = vmatpush1.bf16.msra.mxu1 %v13141_v51  ;;  %8249 = vmatprep.subr.bf16.mxu0 %v13148_v54  ;;  %v13181_v51 = vcombine.low %v1508_v27, %v1512_v28  ;;  %v13188_v54 = vcombine.high %v1515_v34, %v1519_v38  ;;  %v1552_v27 = vld [vmem:[#allocation10 + $0x538] sm:$0xff]  ;;  %v13213_v28 = vcombine.low %v1540_v49, %v1544_v15 }
 0x37f   :  { %8577 = vmatprep.subr.bf16.mxu1 %v13150_v0  ;;  %v13190_v0 = vcombine.high %v1516_v53, %v1520_v39  ;;  %v1556_v34 = vld [vmem:[#allocation10 + $0x558] sm:$0xff] }
 0x380   :  { %v1560_v38 = vld [vmem:[#allocation10 + $0x578] sm:$0xff] }
 0x381   :  { %8250 = vmatpush1.bf16.msra.mxu0 %v13147_v19  ;;  %v1528_v19 = vld [vmem:[#allocation10 + $0x478] sm:$0xff] }
 0x382   :  { %8578 = vmatpush1.bf16.msra.mxu1 %v13149_v57  ;;  %8251 = vmatprep.subr.bf16.mxu0 %v13156_v58  ;;  %v13189_v57 = vcombine.low %v1516_v53, %v1520_v39  ;;  %v13196_v58 = vcombine.high %v1523_v52, %v1527_v36  ;;  %v13198_v63 = vcombine.high %v1524_v56, %v1528_v19 }
 0x383   :  { %8579 = vmatprep.subr.bf16.mxu1 %v13158_v60  ;;  %v1531_v60 = vld [vmem:[#allocation10 + $0x490] sm:$0xff]  ;;  %v13221_v39 = vcombine.low %v1548_v22, %v1552_v27 }
 0x385   :  { %8252 = vmatpush1.bf16.msra.mxu0 %v13155_v3  ;;  %v13195_v3 = vcombine.low %v1523_v52, %v1527_v36  ;;  %v1564_v52 = vld [vmem:[#allocation10 + $0x598] sm:$0xff] }
 0x386   :  { %8580 = vmatpush1.bf16.msra.mxu1 %v13157_v8  ;;  %8253 = vmatprep.subr.bf16.mxu0 %v13164_v13  ;;  %v13197_v8 = vcombine.low %v1524_v56, %v1528_v19  ;;  %v13204_v13 = vcombine.high %v1531_v60, %v1535_v62  ;;  %v1568_v36 = vld [vmem:[#allocation10 + $0x5b8] sm:$0xff]  ;;  %v13229_v56 = vcombine.low %v1556_v34, %v1560_v38 }
 0x387   :  { %8581 = vmatprep.subr.bf16.mxu1 %v13166_v9  ;;  %v13206_v9 = vcombine.high %v1532_v2, %v1536_v25 }
 0x389   :  { %8254 = vmatpush1.bf16.msra.mxu0 %v13163_v46  ;;  %v13203_v46 = vcombine.low %v1531_v60, %v1535_v62  ;;  %v1575_v60 = vld [vmem:[#allocation10 + $0x5f0] sm:$0xff]  ;;  %v1572_v62 = vld [vmem:[#allocation10 + $0x5d8] sm:$0xff] }
 0x38a   :  { %8582 = vmatpush1.bf16.msra.mxu1 %v13165_v18  ;;  %8255 = vmatprep.subr.bf16.mxu0 %v13172_v5  ;;  %v13212_v18 = vcombine.high %v1539_v11, %v1543_v16  ;;  %v13214_v5 = vcombine.high %v1540_v49, %v1544_v15 }
 0x38b   :  { %8583 = vmatprep.subr.bf16.mxu1 %v13174_v45  ;;  %v1547_v45 = vld [vmem:[#allocation10 + $0x510] sm:$0xff] }
 0x38c   :  { %v13219_v53 = vcombine.low %v1547_v45, %v1551_v21 }
 0x38d   :  { %8256 = vmatpush1.bf16.msra.mxu0 %v13171_v29  ;;  %v13220_v29 = vcombine.high %v1547_v45, %v1551_v21  ;;  %v1588_v45 = vld [vmem:[#allocation10 + $0x658] sm:$0xff] }
 0x38e   :  { %8584 = vmatpush1.bf16.msra.mxu1 %v13173_v31  ;;  %8257 = vmatprep.subr.bf16.mxu0 %v13180_v43  ;;  %v13222_v31 = vcombine.high %v1548_v22, %v1552_v27  ;;  %v1555_v43 = vld [vmem:[#allocation10 + $0x550] sm:$0xff]  ;;  %v1592_v21 = vld [vmem:[#allocation10 + $0x678] sm:$0xff] }
 0x38f   :  { %8585 = vmatprep.subr.bf16.mxu1 %v13182_v32  ;;  %v1559_v32 = vld [vmem:[#allocation10 + $0x570] sm:$0xff] }
 0x391   :  { %8258 = vmatpush1.bf16.msra.mxu0 %v13179_v42  ;;  %v13228_v42 = vcombine.high %v1555_v43, %v1559_v32 }
 0x392   :  { %8586 = vmatpush1.bf16.msra.mxu1 %v13181_v51  ;;  %8268 = vmatprep.subr.bf16.mxu0 %v13188_v54  ;;  %v13230_v51 = vcombine.high %v1556_v34, %v1560_v38  ;;  %v1563_v54 = vld [vmem:[#allocation10 + $0x590] sm:$0xff]  ;;  %v13261_v38 = vcombine.low %v1588_v45, %v1592_v21 }
 0x393   :  { %8596 = vmatprep.subr.bf16.mxu1 %v13190_v0  ;;  %v1567_v0 = vld [vmem:[#allocation10 + $0x5b0] sm:$0xff] }
 0x394   :  { %8260 = vmatmul.mubr.bf16.vlgmr.msra.gmra.mrb[20].mxu0 %v15208_v47  ;;  %v13236_v19 = vcombine.high %v1563_v54, %v1567_v0 }
 0x395   :  { %8588 = vmatmul.mubr.bf16.vlgmr.msra.gmra.mrb[20].mxu1 %v15208_v47  ;;  %8269 = vmatpush1.bf16.msra.mxu0 %v13187_v55  ;;  %v13205_v47 = vcombine.low %v1532_v2, %v1536_v25  ;;  %v13227_v55 = vcombine.low %v1555_v43, %v1559_v32  ;;  %v13235_v2 = vcombine.low %v1563_v54, %v1567_v0  ;;  %v1596_v43 = vld [vmem:[#allocation10 + $0x698] sm:$0xff] }
 0x396   :  { %8300 = vmatprep.mubr.bf16.mxu0 %v15217_v4  ;;  %8597 = vmatpush1.bf16.msra.mxu1 %v13189_v57  ;;  %v13238_v57 = vcombine.high %v1564_v52, %v1568_v36  ;;  %v13237_v25 = vcombine.low %v1564_v52, %v1568_v36  ;;  %v1600_v32 = vld [vmem:[#allocation10 + $0x6b8] sm:$0xff] }
 0x397   :  { %8628 = vmatprep.mubr.bf16.mxu1 %v15217_v4  ;;  %8270 = vmatprep.subr.bf16.mxu0 %v13196_v58  ;;  %v13211_v4 = vcombine.low %v1539_v11, %v1543_v16  ;;  %v1571_v58 = vld [vmem:[#allocation10 + $0x5d0] sm:$0xff]  ;;  %v1580_v11 = vld [vmem:[#allocation10 + $0x618] sm:$0xff]  ;;  %v13269_v36 = vcombine.low %v1596_v43, %v1600_v32 }
 0x398   :  { %8598 = vmatprep.subr.bf16.mxu1 %v13198_v63  ;;  %v1576_v63 = vld [vmem:[#allocation10 + $0x5f8] sm:$0xff]  ;;  %v13243_v49 = vcombine.low %v1571_v58, %v1575_v60 }
 0x399   :  { %8271 = vmatpush1.bf16.msra.mxu0 %v13195_v3  ;;  %v13244_v3 = vcombine.high %v1571_v58, %v1575_v60  ;;  %v1584_v16 = vld [vmem:[#allocation10 + $0x638] sm:$0xff]  ;;  %v13245_v15 = vcombine.low %v1572_v62, %v1576_v63 }
 0x39a   :  { %8599 = vmatpush1.bf16.msra.mxu1 %v13197_v8  ;;  %8272 = vmatprep.subr.bf16.mxu0 %v13204_v13  ;;  %v13246_v8 = vcombine.high %v1572_v62, %v1576_v63  ;;  %v1579_v13 = vld [vmem:[#allocation10 + $0x610] sm:$0xff]  ;;  %v13253_v27 = vcombine.low %v1580_v11, %v1584_v16  ;;  %v1604_v54 = vld [vmem:[#allocation10 + $0x6d8] sm:$0xff] }
 0x39b   :  { %8600 = vmatprep.subr.bf16.mxu1 %v13206_v9  ;;  %v1583_v9 = vld [vmem:[#allocation10 + $0x630] sm:$0xff]  ;;  %v1608_v0 = vld [vmem:[#allocation10 + $0x6f8] sm:$0xff] }
 0x39c   :  { %v13251_v22 = vcombine.low %v1579_v13, %v1583_v9  ;;  %v1612_v58 = vld [vmem:[#allocation10 + $0x718] sm:$0xff]  ;;  %v13277_v63 = vcombine.low %v1604_v54, %v1608_v0 }
 0x39d   :  { %8273 = vmatpush1.bf16.msra.mxu0 %v13203_v46  ;;  %v13252_v46 = vcombine.high %v1579_v13, %v1583_v9  ;;  %v1616_v60 = vld [vmem:[#allocation10 + $0x738] sm:$0xff] }
 0x39e   :  { %8601 = vmatpush1.bf16.msra.mxu1 %v13205_v47  ;;  %8274 = vmatprep.subr.bf16.mxu0 %v13212_v18  ;;  %v13254_v47 = vcombine.high %v1580_v11, %v1584_v16  ;;  %v1587_v18 = vld [vmem:[#allocation10 + $0x650] sm:$0xff]  ;;  %v1620_v13 = vld [vmem:[#allocation10 + $0x758] sm:$0xff]  ;;  %v13285_v16 = vcombine.low %v1612_v58, %v1616_v60 }
 0x39f   :  { %8602 = vmatprep.subr.bf16.mxu1 %v13214_v5  ;;  %v1591_v5 = vld [vmem:[#allocation10 + $0x670] sm:$0xff]  ;;  %v1624_v9 = vld [vmem:[#allocation10 + $0x778] sm:$0xff] }
 0x3a0   :  { %v13259_v34 = vcombine.low %v1587_v18, %v1591_v5 }
 0x3a1   :  { %8275 = vmatpush1.bf16.msra.mxu0 %v13211_v4  ;;  %v13260_v4 = vcombine.high %v1587_v18, %v1591_v5  ;;  %v1628_v18 = vld [vmem:[#allocation10 + $0x798] sm:$0xff] }
 0x3a2   :  { %8603 = vmatpush1.bf16.msra.mxu1 %v13213_v28  ;;  %8276 = vmatprep.subr.bf16.mxu0 %v13220_v29  ;;  %v13262_v28 = vcombine.high %v1588_v45, %v1592_v21  ;;  %v1595_v29 = vld [vmem:[#allocation10 + $0x690] sm:$0xff]  ;;  %v1632_v5 = vld [vmem:[#allocation10 + $0x7b8] sm:$0xff]  ;;  %v13293_v21 = vcombine.low %v1620_v13, %v1624_v9 }
 0x3a3   :  { %8604 = vmatprep.subr.bf16.mxu1 %v13222_v31  ;;  %v1599_v31 = vld [vmem:[#allocation10 + $0x6b0] sm:$0xff] }
 0x3a4   :  { %v13267_v52 = vcombine.low %v1595_v29, %v1599_v31 }
 0x3a5   :  { %8277 = vmatpush1.bf16.msra.mxu0 %v13219_v53  ;;  %v13268_v53 = vcombine.high %v1595_v29, %v1599_v31  ;;  %v1636_v29 = vld [vmem:[#allocation10 + $0x7d8] sm:$0xff] }
 0x3a6   :  { %8605 = vmatpush1.bf16.msra.mxu1 %v13221_v39  ;;  %8278 = vmatprep.subr.bf16.mxu0 %v13228_v42  ;;  %v13270_v39 = vcombine.high %v1596_v43, %v1600_v32  ;;  %v1603_v42 = vld [vmem:[#allocation10 + $0x6d0] sm:$0xff]  ;;  %v1640_v31 = vld [vmem:[#allocation10 + $0x7f8] sm:$0xff]  ;;  %v13301_v32 = vcombine.low %v1628_v18, %v1632_v5 }
 0x3a7   :  { %8606 = vmatprep.subr.bf16.mxu1 %v13230_v51  ;;  %v1607_v51 = vld [vmem:[#allocation10 + $0x6f0] sm:$0xff] }
 0x3a8   :  { %v13275_v62 = vcombine.low %v1603_v42, %v1607_v51 }
 0x3a9   :  { %8279 = vmatpush1.bf16.msra.mxu0 %v13227_v55  ;;  %v13276_v55 = vcombine.high %v1603_v42, %v1607_v51  ;;  %v1644_v42 = vld [vmem:[#allocation10 + $0x818] sm:$0xff] }
 0x3aa   :  { %8607 = vmatpush1.bf16.msra.mxu1 %v13229_v56  ;;  %8280 = vmatprep.subr.bf16.mxu0 %v13236_v19  ;;  %v13278_v56 = vcombine.high %v1604_v54, %v1608_v0  ;;  %v1611_v19 = vld [vmem:[#allocation10 + $0x710] sm:$0xff]  ;;  %v1648_v51 = vld [vmem:[#allocation10 + $0x838] sm:$0xff]  ;;  %v13309_v0 = vcombine.low %v1636_v29, %v1640_v31 }
 0x3ab   :  { %8608 = vmatprep.subr.bf16.mxu1 %v13238_v57  ;;  %v1615_v57 = vld [vmem:[#allocation10 + $0x730] sm:$0xff] }
 0x3ac   :  { %v13283_v11 = vcombine.low %v1611_v19, %v1615_v57 }
 0x3ad   :  { %8281 = vmatpush1.bf16.msra.mxu0 %v13235_v2  ;;  %v13284_v2 = vcombine.high %v1611_v19, %v1615_v57  ;;  %v1652_v57 = vld [vmem:[#allocation10 + $0x858] sm:$0xff] }
 0x3ae   :  { %8609 = vmatpush1.bf16.msra.mxu1 %v13237_v25  ;;  %8282 = vmatprep.subr.bf16.mxu0 %v13244_v3  ;;  %v13286_v25 = vcombine.high %v1612_v58, %v1616_v60  ;;  %v1619_v3 = vld [vmem:[#allocation10 + $0x750] sm:$0xff]  ;;  %v1656_v58 = vld [vmem:[#allocation10 + $0x878] sm:$0xff]  ;;  %v13317_v60 = vcombine.low %v1644_v42, %v1648_v51 }
 0x3af   :  { %8610 = vmatprep.subr.bf16.mxu1 %v13246_v8  ;;  %v1623_v8 = vld [vmem:[#allocation10 + $0x770] sm:$0xff] }
 0x3b0   :  { %v13291_v45 = vcombine.low %v1619_v3, %v1623_v8 }
 0x3b1   :  { %8283 = vmatpush1.bf16.msra.mxu0 %v13243_v49  ;;  %v13292_v49 = vcombine.high %v1619_v3, %v1623_v8  ;;  %v1660_v3 = vld [vmem:[#allocation10 + $0x898] sm:$0xff] }
 0x3b2   :  { %8611 = vmatpush1.bf16.msra.mxu1 %v13245_v15  ;;  %8284 = vmatprep.subr.bf16.mxu0 %v13252_v46  ;;  %v13294_v15 = vcombine.high %v1620_v13, %v1624_v9  ;;  %v1627_v46 = vld [vmem:[#allocation10 + $0x790] sm:$0xff]  ;;  %v1664_v8 = vld [vmem:[#allocation10 + $0x8b8] sm:$0xff]  ;;  %v13325_v9 = vcombine.low %v1652_v57, %v1656_v58 }
 0x3b3   :  { %8612 = vmatprep.subr.bf16.mxu1 %v13254_v47  ;;  %v1631_v47 = vld [vmem:[#allocation10 + $0x7b0] sm:$0xff] }
 0x3b4   :  { %v13299_v43 = vcombine.low %v1627_v46, %v1631_v47 }
 0x3b5   :  { %8285 = vmatpush1.bf16.msra.mxu0 %v13251_v22  ;;  %v13300_v22 = vcombine.high %v1627_v46, %v1631_v47  ;;  %v1668_v46 = vld [vmem:[#allocation10 + $0x8d8] sm:$0xff] }
 0x3b6   :  { %8613 = vmatpush1.bf16.msra.mxu1 %v13253_v27  ;;  %8286 = vmatprep.subr.bf16.mxu0 %v13260_v4  ;;  %v13302_v27 = vcombine.high %v1628_v18, %v1632_v5  ;;  %v1635_v4 = vld [vmem:[#allocation10 + $0x7d0] sm:$0xff]  ;;  %v1672_v47 = vld [vmem:[#allocation10 + $0x8f8] sm:$0xff] }
 0x3b7   :  { %8614 = vmatprep.subr.bf16.mxu1 %v13262_v28  ;;  %v1639_v28 = vld [vmem:[#allocation10 + $0x7f0] sm:$0xff] }
 0x3b8   :  { %v13307_v54 = vcombine.low %v1635_v4, %v1639_v28 }
 0x3b9   :  { %8287 = vmatpush1.bf16.msra.mxu0 %v13259_v34  ;;  %v13308_v34 = vcombine.high %v1635_v4, %v1639_v28  ;;  %v1680_v4 = vld [vmem:[#allocation10 + $0x938] sm:$0xff]  ;;  %v13341_v28 = vcombine.low %v1668_v46, %v1672_v47 }
 0x3ba   :  { %8615 = vmatpush1.bf16.msra.mxu1 %v13261_v38  ;;  %8288 = vmatprep.subr.bf16.mxu0 %v13268_v53  ;;  %v13310_v38 = vcombine.high %v1636_v29, %v1640_v31  ;;  %v1643_v53 = vld [vmem:[#allocation10 + $0x810] sm:$0xff] }
 0x3bb   :  { %8616 = vmatprep.subr.bf16.mxu1 %v13270_v39  ;;  %v1647_v39 = vld [vmem:[#allocation10 + $0x830] sm:$0xff] }
 0x3bc   :  { %v13315_v19 = vcombine.low %v1643_v53, %v1647_v39 }
 0x3bd   :  { %8289 = vmatpush1.bf16.msra.mxu0 %v13267_v52  ;;  %v13316_v52 = vcombine.high %v1643_v53, %v1647_v39 }
 0x3be   :  { %8617 = vmatpush1.bf16.msra.mxu1 %v13269_v36  ;;  %8290 = vmatprep.subr.bf16.mxu0 %v13276_v55  ;;  %v13318_v36 = vcombine.high %v1644_v42, %v1648_v51  ;;  %v1651_v55 = vld [vmem:[#allocation10 + $0x850] sm:$0xff] }
 0x3bf   :  { %8618 = vmatprep.subr.bf16.mxu1 %v13278_v56  ;;  %v1655_v56 = vld [vmem:[#allocation10 + $0x870] sm:$0xff] }
 0x3c0   :  { %v13323_v13 = vcombine.low %v1651_v55, %v1655_v56 }
 0x3c1   :  { %8291 = vmatpush1.bf16.msra.mxu0 %v13275_v62  ;;  %v13324_v62 = vcombine.high %v1651_v55, %v1655_v56 }
 0x3c2   :  { %8619 = vmatpush1.bf16.msra.mxu1 %v13277_v63  ;;  %8292 = vmatprep.subr.bf16.mxu0 %v13284_v2  ;;  %v1659_v63 = vld [vmem:[#allocation10 + $0x890] sm:$0xff] }
 0x3c3   :  { %8620 = vmatprep.subr.bf16.mxu1 %v13286_v25  ;;  %v1663_v2 = vld [vmem:[#allocation10 + $0x8b0] sm:$0xff]  ;;  %v13326_v25 = vcombine.high %v1652_v57, %v1656_v58 }
 0x3c4   :  { %v13331_v18 = vcombine.low %v1659_v63, %v1663_v2  ;;  %v1699_v58 = vld [vmem:[#allocation10 + $0x9d0] sm:$0xff] }
 0x3c5   :  { %8293 = vmatpush1.bf16.msra.mxu0 %v13283_v11  ;;  %v13332_v11 = vcombine.high %v1659_v63, %v1663_v2  ;;  %v1704_v63 = vld [vmem:[#allocation10 + $0x9f8] sm:$0xff] }
 0x3c6   :  { %8621 = vmatpush1.bf16.msra.mxu1 %v13285_v16  ;;  %8294 = vmatprep.subr.bf16.mxu0 %v13292_v49  ;;  %v13334_v16 = vcombine.high %v1660_v3, %v1664_v8  ;;  %v1667_v49 = vld [vmem:[#allocation10 + $0x8d0] sm:$0xff] }
 0x3c7   :  { %8622 = vmatprep.subr.bf16.mxu1 %v13294_v15  ;;  %v1671_v15 = vld [vmem:[#allocation10 + $0x8f0] sm:$0xff] }
 0x3c8   :  { %v13340_v5 = vcombine.high %v1667_v49, %v1671_v15 }
 0x3c9   :  { %8295 = vmatpush1.bf16.msra.mxu0 %v13291_v45  ;;  %v13342_v45 = vcombine.high %v1668_v46, %v1672_v47 }
 0x3ca   :  { %8623 = vmatpush1.bf16.msra.mxu1 %v13293_v21  ;;  %8296 = vmatprep.subr.bf16.mxu0 %v13300_v22  ;;  %v1675_v21 = vld [vmem:[#allocation10 + $0x910] sm:$0xff] }
 0x3cb   :  { %8624 = vmatprep.subr.bf16.mxu1 %v13302_v27  ;;  %v1679_v22 = vld [vmem:[#allocation10 + $0x930] sm:$0xff]  ;;  %v1676_v27 = vld [vmem:[#allocation10 + $0x918] sm:$0xff] }
 0x3cc   :  { %v13348_v29 = vcombine.high %v1675_v21, %v1679_v22  ;;  %v13350_v31 = vcombine.high %v1676_v27, %v1680_v4  ;;  %v13347_v53 = vcombine.low %v1675_v21, %v1679_v22  ;;  %v13349_v39 = vcombine.low %v1676_v27, %v1680_v4 }
 0x3cd   :  { %8297 = vmatpush1.bf16.msra.mxu0 %v13299_v43  ;;  %v1683_v43 = vld [vmem:[#allocation10 + $0x950] sm:$0xff] }
 0x3ce   :  { %8625 = vmatpush1.bf16.msra.mxu1 %v13301_v32  ;;  %8298 = vmatprep.subr.bf16.mxu0 %v13308_v34  ;;  %v1687_v32 = vld [vmem:[#allocation10 + $0x970] sm:$0xff]  ;;  %v1684_v34 = vld [vmem:[#allocation10 + $0x958] sm:$0xff] }
 0x3cf   :  { %8626 = vmatprep.subr.bf16.mxu1 %v13310_v38  ;;  %v1688_v38 = vld [vmem:[#allocation10 + $0x978] sm:$0xff]  ;;  %v13356_v42 = vcombine.high %v1683_v43, %v1687_v32  ;;  %v13355_v55 = vcombine.low %v1683_v43, %v1687_v32 }
 0x3d0   :  { %v13358_v51 = vcombine.high %v1684_v34, %v1688_v38  ;;  %v13357_v56 = vcombine.low %v1684_v34, %v1688_v38 }
 0x3d1   :  { %8299 = vmatpush1.bf16.msra.mxu0 %v13307_v54  ;;  %v1691_v54 = vld [vmem:[#allocation10 + $0x990] sm:$0xff] }
 0x3d2   :  { %8627 = vmatpush1.bf16.msra.mxu1 %v13309_v0  ;;  %8309 = vmatprep.subr.bf16.mxu0 %v13316_v52  ;;  %v1695_v0 = vld [vmem:[#allocation10 + $0x9b0] sm:$0xff]  ;;  %v1692_v52 = vld [vmem:[#allocation10 + $0x998] sm:$0xff] }
 0x3d3   :  { %8637 = vmatprep.subr.bf16.mxu1 %v13318_v36  ;;  %v1696_v36 = vld [vmem:[#allocation10 + $0x9b8] sm:$0xff]  ;;  %v13363_v2 = vcombine.low %v1691_v54, %v1695_v0 }
 0x3d4   :  { %8301 = vmatmul.mubr.bf16.vlgmr.msra.gmra.mrb[20].mxu0 %v15254_v50  ;;  %v13366_v57 = vcombine.high %v1692_v52, %v1696_v36 }
 0x3d5   :  { %8629 = vmatmul.mubr.bf16.vlgmr.msra.gmra.mrb[20].mxu1 %v15254_v50  ;;  %8310 = vmatpush1.bf16.msra.mxu0 %v13315_v19  ;;  %v13333_v50 = vcombine.low %v1660_v3, %v1664_v8  ;;  %v13364_v19 = vcombine.high %v1691_v54, %v1695_v0 }
 0x3d6   :  { %8341 = vmatprep.mubr.bf16.mxu0 %v15258_v59  ;;  %8638 = vmatpush1.bf16.msra.mxu1 %v13317_v60  ;;  %v1703_v60 = vld [vmem:[#allocation10 + $0x9f0] sm:$0xff] }
 0x3d7   :  { %8669 = vmatprep.mubr.bf16.mxu1 %v15258_v59  ;;  %8311 = vmatprep.subr.bf16.mxu0 %v13324_v62  ;;  %v13339_v59 = vcombine.low %v1667_v49, %v1671_v15  ;;  %v1700_v62 = vld [vmem:[#allocation10 + $0x9d8] sm:$0xff]  ;;  %v13372_v3 = vcombine.high %v1699_v58, %v1703_v60  ;;  %v13371_v49 = vcombine.low %v1699_v58, %v1703_v60 }
 0x3d8   :  { %8639 = vmatprep.subr.bf16.mxu1 %v13326_v25  ;;  %v13365_v25 = vcombine.low %v1692_v52, %v1696_v36  ;;  %v13374_v8 = vcombine.high %v1700_v62, %v1704_v63  ;;  %v13373_v15 = vcombine.low %v1700_v62, %v1704_v63 }
 0x3d9   :  { %8312 = vmatpush1.bf16.msra.mxu0 %v13323_v13  ;;  %v1707_v13 = vld [vmem:[#allocation10 + $0xa10] sm:$0xff] }
 0x3da   :  { %8640 = vmatpush1.bf16.msra.mxu1 %v13325_v9  ;;  %8313 = vmatprep.subr.bf16.mxu0 %v13332_v11  ;;  %v1711_v9 = vld [vmem:[#allocation10 + $0xa30] sm:$0xff]  ;;  %v1708_v11 = vld [vmem:[#allocation10 + $0xa18] sm:$0xff] }
 0x3db   :  { %8641 = vmatprep.subr.bf16.mxu1 %v13334_v16  ;;  %v1712_v16 = vld [vmem:[#allocation10 + $0xa38] sm:$0xff]  ;;  %v13380_v46 = vcombine.high %v1707_v13, %v1711_v9  ;;  %v13379_v21 = vcombine.low %v1707_v13, %v1711_v9 }
 0x3dc   :  { %v13382_v47 = vcombine.high %v1708_v11, %v1712_v16  ;;  %v13381_v22 = vcombine.low %v1708_v11, %v1712_v16 }
 0x3dd   :  { %8314 = vmatpush1.bf16.msra.mxu0 %v13331_v18  ;;  %v1715_v18 = vld [vmem:[#allocation10 + $0xa50] sm:$0xff] }
 0x3de   :  { %8642 = vmatpush1.bf16.msra.mxu1 %v13333_v50  ;;  %8315 = vmatprep.subr.bf16.mxu0 %v13340_v5  ;;  %v1719_v50 = vld [vmem:[#allocation10 + $0xa70] sm:$0xff]  ;;  %v1716_v5 = vld [vmem:[#allocation10 + $0xa58] sm:$0xff] }
 0x3df   :  { %8643 = vmatprep.subr.bf16.mxu1 %v13342_v45  ;;  %v1720_v45 = vld [vmem:[#allocation10 + $0xa78] sm:$0xff]  ;;  %v13388_v27 = vcombine.high %v1715_v18, %v1719_v50  ;;  %v13387_v43 = vcombine.low %v1715_v18, %v1719_v50 }
 0x3e0   :  { %v13390_v4 = vcombine.high %v1716_v5, %v1720_v45  ;;  %v13389_v32 = vcombine.low %v1716_v5, %v1720_v45 }
 0x3e1   :  { %8316 = vmatpush1.bf16.msra.mxu0 %v13339_v59  ;;  %v1723_v59 = vld [vmem:[#allocation10 + $0xa90] sm:$0xff] }
 0x3e2   :  { %8644 = vmatpush1.bf16.msra.mxu1 %v13341_v28  ;;  %8317 = vmatprep.subr.bf16.mxu0 %v13348_v29  ;;  %v1727_v28 = vld [vmem:[#allocation10 + $0xab0] sm:$0xff]  ;;  %v1724_v29 = vld [vmem:[#allocation10 + $0xa98] sm:$0xff] }
 0x3e3   :  { %8645 = vmatprep.subr.bf16.mxu1 %v13350_v31  ;;  %v1728_v31 = vld [vmem:[#allocation10 + $0xab8] sm:$0xff]  ;;  %v13396_v34 = vcombine.high %v1723_v59, %v1727_v28  ;;  %v13395_v54 = vcombine.low %v1723_v59, %v1727_v28 }
 0x3e4   :  { %v13398_v38 = vcombine.high %v1724_v29, %v1728_v31  ;;  %v13397_v0 = vcombine.low %v1724_v29, %v1728_v31 }
 0x3e5   :  { %8318 = vmatpush1.bf16.msra.mxu0 %v13347_v53  ;;  %v1731_v53 = vld [vmem:[#allocation10 + $0xad0] sm:$0xff] }
 0x3e6   :  { %8646 = vmatpush1.bf16.msra.mxu1 %v13349_v39  ;;  %8319 = vmatprep.subr.bf16.mxu0 %v13356_v42  ;;  %v1735_v39 = vld [vmem:[#allocation10 + $0xaf0] sm:$0xff]  ;;  %v1732_v42 = vld [vmem:[#allocation10 + $0xad8] sm:$0xff] }
 0x3e7   :  { %8647 = vmatprep.subr.bf16.mxu1 %v13358_v51  ;;  %v1736_v51 = vld [vmem:[#allocation10 + $0xaf8] sm:$0xff]  ;;  %v13404_v52 = vcombine.high %v1731_v53, %v1735_v39  ;;  %v13403_v58 = vcombine.low %v1731_v53, %v1735_v39 }
 0x3e8   :  { %v13406_v36 = vcombine.high %v1732_v42, %v1736_v51  ;;  %v13405_v60 = vcombine.low %v1732_v42, %v1736_v51 }
 0x3e9   :  { %8320 = vmatpush1.bf16.msra.mxu0 %v13355_v55  ;;  %v1739_v55 = vld [vmem:[#allocation10 + $0xb10] sm:$0xff] }
 0x3ea   :  { %8648 = vmatpush1.bf16.msra.mxu1 %v13357_v56  ;;  %8321 = vmatprep.subr.bf16.mxu0 %v13364_v19  ;;  %v1743_v56 = vld [vmem:[#allocation10 + $0xb30] sm:$0xff]  ;;  %v1740_v19 = vld [vmem:[#allocation10 + $0xb18] sm:$0xff] }
 0x3eb   :  { %8649 = vmatprep.subr.bf16.mxu1 %v13366_v57  ;;  %v1744_v57 = vld [vmem:[#allocation10 + $0xb38] sm:$0xff]  ;;  %v13412_v62 = vcombine.high %v1739_v55, %v1743_v56  ;;  %v13411_v13 = vcombine.low %v1739_v55, %v1743_v56 }
 0x3ec   :  { %v13414_v63 = vcombine.high %v1740_v19, %v1744_v57  ;;  %v13413_v9 = vcombine.low %v1740_v19, %v1744_v57  ;;  %v1784_v55 = vld [vmem:[#allocation10 + $0xc78] sm:$0xff]  ;;  %v1787_v57 = vld [vmem:[#allocation10 + $0xc90] sm:$0xff] }
 0x3ed   :  { %8322 = vmatpush1.bf16.msra.mxu0 %v13363_v2  ;;  %v1747_v2 = vld [vmem:[#allocation10 + $0xb50] sm:$0xff] }
 0x3ee   :  { %8650 = vmatpush1.bf16.msra.mxu1 %v13365_v25  ;;  %8323 = vmatprep.subr.bf16.mxu0 %v13372_v3  ;;  %v1751_v25 = vld [vmem:[#allocation10 + $0xb70] sm:$0xff]  ;;  %v1748_v3 = vld [vmem:[#allocation10 + $0xb58] sm:$0xff] }
 0x3ef   :  { %8651 = vmatprep.subr.bf16.mxu1 %v13374_v8  ;;  %v1752_v8 = vld [vmem:[#allocation10 + $0xb78] sm:$0xff]  ;;  %v13420_v11 = vcombine.high %v1747_v2, %v1751_v25  ;;  %v13419_v18 = vcombine.low %v1747_v2, %v1751_v25 }
 0x3f0   :  { %v13422_v16 = vcombine.high %v1748_v3, %v1752_v8  ;;  %v13421_v50 = vcombine.low %v1748_v3, %v1752_v8 }
 0x3f1   :  { %8324 = vmatpush1.bf16.msra.mxu0 %v13371_v49  ;;  %v1755_v49 = vld [vmem:[#allocation10 + $0xb90] sm:$0xff] }
 0x3f2   :  { %8652 = vmatpush1.bf16.msra.mxu1 %v13373_v15  ;;  %8325 = vmatprep.subr.bf16.mxu0 %v13380_v46  ;;  %v1759_v15 = vld [vmem:[#allocation10 + $0xbb0] sm:$0xff]  ;;  %v1756_v46 = vld [vmem:[#allocation10 + $0xb98] sm:$0xff] }
 0x3f3   :  { %8653 = vmatprep.subr.bf16.mxu1 %v13382_v47  ;;  %v1760_v47 = vld [vmem:[#allocation10 + $0xbb8] sm:$0xff]  ;;  %v13428_v5 = vcombine.high %v1755_v49, %v1759_v15  ;;  %v13427_v59 = vcombine.low %v1755_v49, %v1759_v15 }
 0x3f4   :  { %v13430_v45 = vcombine.high %v1756_v46, %v1760_v47  ;;  %v13429_v28 = vcombine.low %v1756_v46, %v1760_v47  ;;  %v1803_v47 = vld [vmem:[#allocation10 + $0xd10] sm:$0xff] }
 0x3f5   :  { %8326 = vmatpush1.bf16.msra.mxu0 %v13379_v21  ;;  %v1763_v21 = vld [vmem:[#allocation10 + $0xbd0] sm:$0xff] }
 0x3f6   :  { %8654 = vmatpush1.bf16.msra.mxu1 %v13381_v22  ;;  %8327 = vmatprep.subr.bf16.mxu0 %v13388_v27  ;;  %v1767_v22 = vld [vmem:[#allocation10 + $0xbf0] sm:$0xff]  ;;  %v1764_v27 = vld [vmem:[#allocation10 + $0xbd8] sm:$0xff] }
 0x3f7   :  { %8655 = vmatprep.subr.bf16.mxu1 %v13390_v4  ;;  %v1768_v4 = vld [vmem:[#allocation10 + $0xbf8] sm:$0xff]  ;;  %v13436_v29 = vcombine.high %v1763_v21, %v1767_v22  ;;  %v13435_v53 = vcombine.low %v1763_v21, %v1767_v22 }
 0x3f8   :  { %v13438_v31 = vcombine.high %v1764_v27, %v1768_v4  ;;  %v13437_v39 = vcombine.low %v1764_v27, %v1768_v4  ;;  %v1811_v27 = vld [vmem:[#allocation10 + $0xd50] sm:$0xff] }
 0x3f9   :  { %8328 = vmatpush1.bf16.msra.mxu0 %v13387_v43  ;;  %v1771_v43 = vld [vmem:[#allocation10 + $0xc10] sm:$0xff] }
 0x3fa   :  { %8656 = vmatpush1.bf16.msra.mxu1 %v13389_v32  ;;  %8329 = vmatprep.subr.bf16.mxu0 %v13396_v34  ;;  %v1775_v32 = vld [vmem:[#allocation10 + $0xc30] sm:$0xff]  ;;  %v1772_v34 = vld [vmem:[#allocation10 + $0xc18] sm:$0xff] }
 0x3fb   :  { %8657 = vmatprep.subr.bf16.mxu1 %v13398_v38  ;;  %v1776_v38 = vld [vmem:[#allocation10 + $0xc38] sm:$0xff]  ;;  %v13444_v42 = vcombine.high %v1771_v43, %v1775_v32  ;;  %v1815_v4 = vld [vmem:[#allocation10 + $0xd70] sm:$0xff] }
 0x3fc   :  { %v13446_v51 = vcombine.high %v1772_v34, %v1776_v38  ;;  %v13445_v56 = vcombine.low %v1772_v34, %v1776_v38  ;;  %v1819_v34 = vld [vmem:[#allocation10 + $0xd90] sm:$0xff] }
 0x3fd   :  { %8330 = vmatpush1.bf16.msra.mxu0 %v13395_v54  ;;  %v1779_v54 = vld [vmem:[#allocation10 + $0xc50] sm:$0xff] }
 0x3fe   :  { %8658 = vmatpush1.bf16.msra.mxu1 %v13397_v0  ;;  %8331 = vmatprep.subr.bf16.mxu0 %v13404_v52  ;;  %v1783_v0 = vld [vmem:[#allocation10 + $0xc70] sm:$0xff]  ;;  %v13443_v52 = vcombine.low %v1771_v43, %v1775_v32  ;;  %v13484_v43 = vcombine.high %v1811_v27, %v1815_v4 }
 0x3ff   :  { %8659 = vmatprep.subr.bf16.mxu1 %v13406_v36  ;;  %v1780_v36 = vld [vmem:[#allocation10 + $0xc58] sm:$0xff]  ;;  %v13452_v19 = vcombine.high %v1779_v54, %v1783_v0  ;;  %v13451_v2 = vcombine.low %v1779_v54, %v1783_v0  ;;  %v1823_v38 = vld [vmem:[#allocation10 + $0xdb0] sm:$0xff] }
 0x400   :  { %v13453_v25 = vcombine.low %v1780_v36, %v1784_v55  ;;  %v13492_v54 = vcombine.high %v1819_v34, %v1823_v38 }
 0x401   :  { %8332 = vmatpush1.bf16.msra.mxu0 %v13403_v58  ;;  %v1791_v58 = vld [vmem:[#allocation10 + $0xcb0] sm:$0xff] }
 0x402   :  { %8660 = vmatpush1.bf16.msra.mxu1 %v13405_v60  ;;  %8333 = vmatprep.subr.bf16.mxu0 %v13412_v62  ;;  %v13454_v60 = vcombine.high %v1780_v36, %v1784_v55  ;;  %v1788_v62 = vld [vmem:[#allocation10 + $0xc98] sm:$0xff]  ;;  %v13460_v3 = vcombine.high %v1787_v57, %v1791_v58  ;;  %v13459_v49 = vcombine.low %v1787_v57, %v1791_v58  ;;  %v1827_v36 = vld [vmem:[#allocation10 + $0xdd0] sm:$0xff] }
 0x403   :  { %8661 = vmatprep.subr.bf16.mxu1 %v13414_v63  ;;  %v1792_v63 = vld [vmem:[#allocation10 + $0xcb8] sm:$0xff]  ;;  %v1831_v55 = vld [vmem:[#allocation10 + $0xdf0] sm:$0xff] }
 0x404   :  { %v13462_v8 = vcombine.high %v1788_v62, %v1792_v63  ;;  %v1828_v57 = vld [vmem:[#allocation10 + $0xdd8] sm:$0xff] }
 0x405   :  { %8334 = vmatpush1.bf16.msra.mxu0 %v13411_v13  ;;  %v1795_v13 = vld [vmem:[#allocation10 + $0xcd0] sm:$0xff]  ;;  %v1832_v58 = vld [vmem:[#allocation10 + $0xdf8] sm:$0xff] }
 0x406   :  { %8662 = vmatpush1.bf16.msra.mxu1 %v13413_v9  ;;  %8335 = vmatprep.subr.bf16.mxu0 %v13420_v11  ;;  %v1799_v9 = vld [vmem:[#allocation10 + $0xcf0] sm:$0xff]  ;;  %v1796_v11 = vld [vmem:[#allocation10 + $0xcd8] sm:$0xff] }
 0x407   :  { %8663 = vmatprep.subr.bf16.mxu1 %v13422_v16  ;;  %v1800_v16 = vld [vmem:[#allocation10 + $0xcf8] sm:$0xff]  ;;  %v13468_v15 = vcombine.high %v1795_v13, %v1799_v9 }
 0x408   :  { %v13470_v46 = vcombine.high %v1796_v11, %v1800_v16 }
 0x409   :  { %8336 = vmatpush1.bf16.msra.mxu0 %v13419_v18  ;;  %v1807_v18 = vld [vmem:[#allocation10 + $0xd30] sm:$0xff] }
 0x40a   :  { %8664 = vmatpush1.bf16.msra.mxu1 %v13421_v50  ;;  %8337 = vmatprep.subr.bf16.mxu0 %v13428_v5  ;;  %v1804_v50 = vld [vmem:[#allocation10 + $0xd18] sm:$0xff]  ;;  %v13476_v21 = vcombine.high %v1803_v47, %v1807_v18 }
 0x40b   :  { %8665 = vmatprep.subr.bf16.mxu1 %v13430_v45  ;;  %v1808_v5 = vld [vmem:[#allocation10 + $0xd38] sm:$0xff]  ;;  %v13469_v45 = vcombine.low %v1796_v11, %v1800_v16  ;;  %v1839_v11 = vld [vmem:[#allocation10 + $0xe30] sm:$0xff] }
 0x40c   :  { %v13478_v22 = vcombine.high %v1804_v50, %v1808_v5 }
 0x40d   :  { %8338 = vmatpush1.bf16.msra.mxu0 %v13427_v59  ;;  %v1812_v59 = vld [vmem:[#allocation10 + $0xd58] sm:$0xff] }
 0x40e   :  { %8666 = vmatpush1.bf16.msra.mxu1 %v13429_v28  ;;  %8339 = vmatprep.subr.bf16.mxu0 %v13436_v29  ;;  %v1816_v28 = vld [vmem:[#allocation10 + $0xd78] sm:$0xff]  ;;  %v13475_v29 = vcombine.low %v1803_v47, %v1807_v18 }
 0x40f   :  { %8667 = vmatprep.subr.bf16.mxu1 %v13438_v31  ;;  %v13477_v31 = vcombine.low %v1804_v50, %v1808_v5  ;;  %v13486_v32 = vcombine.high %v1812_v59, %v1816_v28  ;;  %v1843_v50 = vld [vmem:[#allocation10 + $0xe50] sm:$0xff] }
 0x410   :  { %v1847_v5 = vld [vmem:[#allocation10 + $0xe70] sm:$0xff] }
 0x411   :  { %8340 = vmatpush1.bf16.msra.mxu0 %v13435_v53  ;;  %v1820_v53 = vld [vmem:[#allocation10 + $0xd98] sm:$0xff] }
 0x412   :  { %8668 = vmatpush1.bf16.msra.mxu1 %v13437_v39  ;;  %8350 = vmatprep.subr.bf16.mxu0 %v13444_v42  ;;  %v1824_v39 = vld [vmem:[#allocation10 + $0xdb8] sm:$0xff]  ;;  %v13483_v42 = vcombine.low %v1811_v27, %v1815_v4  ;;  %v13516_v27 = vcombine.high %v1843_v50, %v1847_v5 }
 0x413   :  { %8678 = vmatprep.subr.bf16.mxu1 %v13446_v51  ;;  %v13485_v51 = vcombine.low %v1812_v59, %v1816_v28  ;;  %v1851_v59 = vld [vmem:[#allocation10 + $0xe90] sm:$0xff] }
 0x414   :  { %8342 = vmatmul.mubr.bf16.vlgmr.msra.gmra.mrb[20].mxu0 %v15295_v33  ;;  %v1855_v28 = vld [vmem:[#allocation10 + $0xeb0] sm:$0xff] }
 0x415   :  { %8670 = vmatmul.mubr.bf16.vlgmr.msra.gmra.mrb[20].mxu1 %v15295_v33  ;;  %8351 = vmatpush1.bf16.msra.mxu0 %v13443_v52  ;;  %v13461_v33 = vcombine.low %v1788_v62, %v1792_v63  ;;  %v13494_v52 = vcombine.high %v1820_v53, %v1824_v39  ;;  %v13491_v63 = vcombine.low %v1819_v34, %v1823_v38 }
 0x416   :  { %8382 = vmatprep.mubr.bf16.mxu0 %v15297_v35  ;;  %8679 = vmatpush1.bf16.msra.mxu1 %v13445_v56  ;;  %v13524_v34 = vcombine.high %v1851_v59, %v1855_v28 }
 0x417   :  { %8710 = vmatprep.mubr.bf16.mxu1 %v15297_v35  ;;  %8352 = vmatprep.subr.bf16.mxu0 %v13452_v19  ;;  %v13467_v35 = vcombine.low %v1795_v13, %v1799_v9  ;;  %v13502_v13 = vcombine.high %v1828_v57, %v1832_v58  ;;  %v1835_v9 = vld [vmem:[#allocation10 + $0xe10] sm:$0xff] }
 0x418   :  { %8680 = vmatprep.subr.bf16.mxu1 %v13454_v60  ;;  %v13508_v47 = vcombine.high %v1835_v9, %v1839_v11 }
 0x419   :  { %8353 = vmatpush1.bf16.msra.mxu0 %v13451_v2 }
 0x41a   :  { %8681 = vmatpush1.bf16.msra.mxu1 %v13453_v25  ;;  %8354 = vmatprep.subr.bf16.mxu0 %v13460_v3  ;;  %v13493_v3 = vcombine.low %v1820_v53, %v1824_v39  ;;  %v1859_v53 = vld [vmem:[#allocation10 + $0xed0] sm:$0xff] }
 0x41b   :  { %8682 = vmatprep.subr.bf16.mxu1 %v13462_v8  ;;  %v13500_v8 = vcombine.high %v1827_v36, %v1831_v55  ;;  %v1863_v39 = vld [vmem:[#allocation10 + $0xef0] sm:$0xff] }
 0x41d   :  { %8355 = vmatpush1.bf16.msra.mxu0 %v13459_v49  ;;  %v1836_v49 = vld [vmem:[#allocation10 + $0xe18] sm:$0xff] }
 0x41e   :  { %8683 = vmatpush1.bf16.msra.mxu1 %v13461_v33  ;;  %8356 = vmatprep.subr.bf16.mxu0 %v13468_v15  ;;  %v1840_v33 = vld [vmem:[#allocation10 + $0xe38] sm:$0xff]  ;;  %v13499_v15 = vcombine.low %v1827_v36, %v1831_v55  ;;  %v13532_v36 = vcombine.high %v1859_v53, %v1863_v39 }
 0x41f   :  { %8684 = vmatprep.subr.bf16.mxu1 %v13470_v46  ;;  %v13501_v46 = vcombine.low %v1828_v57, %v1832_v58  ;;  %v13510_v18 = vcombine.high %v1836_v49, %v1840_v33  ;;  %v1867_v57 = vld [vmem:[#allocation10 + $0xf10] sm:$0xff] }
 0x420   :  { %v1871_v58 = vld [vmem:[#allocation10 + $0xf30] sm:$0xff] }
 0x421   :  { %8357 = vmatpush1.bf16.msra.mxu0 %v13467_v35  ;;  %v1844_v35 = vld [vmem:[#allocation10 + $0xe58] sm:$0xff] }
 0x422   :  { %8685 = vmatpush1.bf16.msra.mxu1 %v13469_v45  ;;  %8358 = vmatprep.subr.bf16.mxu0 %v13476_v21  ;;  %v1848_v45 = vld [vmem:[#allocation10 + $0xe78] sm:$0xff]  ;;  %v13507_v21 = vcombine.low %v1835_v9, %v1839_v11  ;;  %v1879_v9 = vld [vmem:[#allocation10 + $0xf70] sm:$0xff] }
 0x423   :  { %8686 = vmatprep.subr.bf16.mxu1 %v13478_v22  ;;  %v13509_v22 = vcombine.low %v1836_v49, %v1840_v33  ;;  %v13518_v4 = vcombine.high %v1844_v35, %v1848_v45  ;;  %v1876_v11 = vld [vmem:[#allocation10 + $0xf58] sm:$0xff]  ;;  %v13539_v49 = vcombine.low %v1867_v57, %v1871_v58 }
 0x425   :  { %8359 = vmatpush1.bf16.msra.mxu0 %v13475_v29  ;;  %v1852_v29 = vld [vmem:[#allocation10 + $0xe98] sm:$0xff] }
 0x426   :  { %8687 = vmatpush1.bf16.msra.mxu1 %v13477_v31  ;;  %8360 = vmatprep.subr.bf16.mxu0 %v13484_v43  ;;  %v1856_v31 = vld [vmem:[#allocation10 + $0xeb8] sm:$0xff]  ;;  %v13515_v43 = vcombine.low %v1843_v50, %v1847_v5 }
 0x427   :  { %v15378_v0 = vpop.f32.mrb[16].mxu0  ;;  %8688 = vmatprep.subr.bf16.mxu1 %v13486_v32  ;;  %v13517_v32 = vcombine.low %v1844_v35, %v1848_v45  ;;  %v13526_v38 = vcombine.high %v1852_v29, %v1856_v31  ;;  %v1884_v50 = vld [vmem:[#allocation10 + $0xf98] sm:$0xff] }
 0x428   :  { %v15380_v56 = vpop.f32.mrb[16].mxu1  ;;  %v15382_v19 = vpop.f32.mrb[17].mxu0  ;;  %v1888_v5 = vld [vmem:[#allocation10 + $0xfb8] sm:$0xff] }
 0x429   :  { %v15384_v60 = vpop.f32.mrb[17].mxu1  ;;  %v7896_v62 = vpop.f32.mrb[18].mxu0  ;;  %8361 = vmatpush1.bf16.msra.mxu0 %v13483_v42  ;;  %v1860_v42 = vld [vmem:[#allocation10 + $0xed8] sm:$0xff] }
 0x42a   :  { %v8224_v2 = vpop.f32.mrb[18].mxu1  ;;  %8689 = vmatpush1.bf16.msra.mxu1 %v13485_v51  ;;  %v7897_v25 = vpop.f32.mrb[19].mxu0  ;;  %8362 = vmatprep.subr.bf16.mxu0 %v13492_v54  ;;  %v1864_v51 = vld [vmem:[#allocation10 + $0xef8] sm:$0xff]  ;;  %v13523_v54 = vcombine.low %v1851_v59, %v1855_v28 }
 0x42b   :  { %8690 = vmatprep.subr.bf16.mxu1 %v13494_v52  ;;  %v8225_v16 = vpop.f32.mrb[19].mxu1  ;;  %v13525_v52 = vcombine.low %v1852_v29, %v1856_v31  ;;  %v13534_v55 = vcombine.high %v1860_v42, %v1864_v51  ;;  %v1868_v62 = vld [vmem:[#allocation10 + $0xf18] sm:$0xff]  ;;  %v13531_v2 = vcombine.low %v1859_v53, %v1863_v39  ;;  %v13533_v25 = vcombine.low %v1860_v42, %v1864_v51 }
 0x42c   :  { %v1880_v16 = vld [vmem:[#allocation10 + $0xf78] sm:$0xff]  ;;  %v13557_v31 = vcombine.low %v1884_v50, %v1888_v5 }
 0x42d   :  { %8363 = vmatpush1.bf16.msra.mxu0 %v13491_v63  ;;  %v1872_v63 = vld [vmem:[#allocation10 + $0xf38] sm:$0xff]  ;;  %v13549_v45 = vcombine.low %v1876_v11, %v1880_v16 }
 0x42e   :  { %8691 = vmatpush1.bf16.msra.mxu1 %v13493_v3  ;;  %8364 = vmatprep.subr.bf16.mxu0 %v13500_v8  ;;  %v13540_v3 = vcombine.high %v1867_v57, %v1871_v58  ;;  %v13542_v8 = vcombine.high %v1868_v62, %v1872_v63  ;;  %v13541_v33 = vcombine.low %v1868_v62, %v1872_v63  ;;  %v1892_v59 = vld [vmem:[#allocation10 + $0xfd8] sm:$0xff] }
 0x42f   :  { %8692 = vmatprep.subr.bf16.mxu1 %v13502_v13  ;;  %v1875_v13 = vld [vmem:[#allocation10 + $0xf50] sm:$0xff]  ;;  %v1896_v28 = vld [vmem:[#allocation10 + $0xff8] sm:$0xff] }
 0x430   :  { %v13547_v35 = vcombine.low %v1875_v13, %v1879_v9  ;;  %v1900_v53 = vld [vmem:[#allocation10 + $0x1018] sm:$0xff]  ;;  %v13565_v51 = vcombine.low %v1892_v59, %v1896_v28 }
 0x431   :  { %8365 = vmatpush1.bf16.msra.mxu0 %v13499_v15  ;;  %v13548_v15 = vcombine.high %v1875_v13, %v1879_v9  ;;  %v1904_v39 = vld [vmem:[#allocation10 + $0x1038] sm:$0xff] }
 0x432   :  { %8693 = vmatpush1.bf16.msra.mxu1 %v13501_v46  ;;  %8366 = vmatprep.subr.bf16.mxu0 %v13508_v47  ;;  %v13550_v46 = vcombine.high %v1876_v11, %v1880_v16  ;;  %v1883_v47 = vld [vmem:[#allocation10 + $0xf90] sm:$0xff]  ;;  %v1908_v58 = vld [vmem:[#allocation10 + $0x1058] sm:$0xff]  ;;  %v13573_v63 = vcombine.low %v1900_v53, %v1904_v39 }
 0x433   :  { %8694 = vmatprep.subr.bf16.mxu1 %v13510_v18  ;;  %v1887_v18 = vld [vmem:[#allocation10 + $0xfb0] sm:$0xff]  ;;  %v1912_v62 = vld [vmem:[#allocation10 + $0x1078] sm:$0xff] }
 0x434   :  { %v13555_v29 = vcombine.low %v1883_v47, %v1887_v18  ;;  %v1916_v13 = vld [vmem:[#allocation10 + $0x1098] sm:$0xff]  ;;  %v13581_v16 = vcombine.low %v1908_v58, %v1912_v62 }
 0x435   :  { %8367 = vmatpush1.bf16.msra.mxu0 %v13507_v21  ;;  %v13556_v21 = vcombine.high %v1883_v47, %v1887_v18  ;;  %v1920_v9 = vld [vmem:[#allocation10 + $0x10b8] sm:$0xff] }
 0x436   :  { %8695 = vmatpush1.bf16.msra.mxu1 %v13509_v22  ;;  %8368 = vmatprep.subr.bf16.mxu0 %v13516_v27  ;;  %v13558_v22 = vcombine.high %v1884_v50, %v1888_v5  ;;  %v1891_v27 = vld [vmem:[#allocation10 + $0xfd0] sm:$0xff]  ;;  %v1924_v47 = vld [vmem:[#allocation10 + $0x10d8] sm:$0xff] }
 0x437   :  { %8696 = vmatprep.subr.bf16.mxu1 %v13518_v4  ;;  %v1895_v4 = vld [vmem:[#allocation10 + $0xff0] sm:$0xff]  ;;  %v1928_v18 = vld [vmem:[#allocation10 + $0x10f8] sm:$0xff] }
 0x438   :  { %v13563_v42 = vcombine.low %v1891_v27, %v1895_v4 }
 0x439   :  { %8369 = vmatpush1.bf16.msra.mxu0 %v13515_v43  ;;  %v13564_v43 = vcombine.high %v1891_v27, %v1895_v4  ;;  %v1936_v27 = vld [vmem:[#allocation10 + $0x1138] sm:$0xff]  ;;  %v13597_v4 = vcombine.low %v1924_v47, %v1928_v18 }
 0x43a   :  { %8697 = vmatpush1.bf16.msra.mxu1 %v13517_v32  ;;  %8370 = vmatprep.subr.bf16.mxu0 %v13524_v34  ;;  %v13566_v32 = vcombine.high %v1892_v59, %v1896_v28  ;;  %v1899_v34 = vld [vmem:[#allocation10 + $0x1010] sm:$0xff] }
 0x43b   :  { %8698 = vmatprep.subr.bf16.mxu1 %v13526_v38  ;;  %v1903_v38 = vld [vmem:[#allocation10 + $0x1030] sm:$0xff] }
 0x43c   :  { %v13571_v57 = vcombine.low %v1899_v34, %v1903_v38 }
 0x43d   :  { %8371 = vmatpush1.bf16.msra.mxu0 %v13523_v54  ;;  %v13572_v54 = vcombine.high %v1899_v34, %v1903_v38 }
 0x43e   :  { %8699 = vmatpush1.bf16.msra.mxu1 %v13525_v52  ;;  %8372 = vmatprep.subr.bf16.mxu0 %v13532_v36  ;;  %v13574_v52 = vcombine.high %v1900_v53, %v1904_v39  ;;  %v1907_v36 = vld [vmem:[#allocation10 + $0x1050] sm:$0xff] }
 0x43f   :  { %8700 = vmatprep.subr.bf16.mxu1 %v13534_v55  ;;  %v1911_v55 = vld [vmem:[#allocation10 + $0x1070] sm:$0xff] }
 0x440   :  { %v13579_v11 = vcombine.low %v1907_v36, %v1911_v55 }
 0x441   :  { %8373 = vmatpush1.bf16.msra.mxu0 %v13531_v2  ;;  %v13580_v2 = vcombine.high %v1907_v36, %v1911_v55 }
 0x442   :  { %8701 = vmatpush1.bf16.msra.mxu1 %v13533_v25  ;;  %8374 = vmatprep.subr.bf16.mxu0 %v13540_v3  ;;  %v1915_v25 = vld [vmem:[#allocation10 + $0x1090] sm:$0xff] }
 0x443   :  { %8702 = vmatprep.subr.bf16.mxu1 %v13542_v8  ;;  %v1919_v3 = vld [vmem:[#allocation10 + $0x10b0] sm:$0xff]  ;;  %v13582_v8 = vcombine.high %v1908_v58, %v1912_v62 }
 0x444   :  { %v13587_v50 = vcombine.low %v1915_v25, %v1919_v3  ;;  %v1955_v62 = vld [vmem:[#allocation10 + $0x11d0] sm:$0xff] }
 0x445   :  { %8375 = vmatpush1.bf16.msra.mxu0 %v13539_v49  ;;  %v13588_v49 = vcombine.high %v1915_v25, %v1919_v3  ;;  %v1960_v25 = vld [vmem:[#allocation10 + $0x11f8] sm:$0xff] }
 0x446   :  { %8703 = vmatpush1.bf16.msra.mxu1 %v13541_v33  ;;  %8376 = vmatprep.subr.bf16.mxu0 %v13548_v15  ;;  %v13590_v33 = vcombine.high %v1916_v13, %v1920_v9  ;;  %v1923_v15 = vld [vmem:[#allocation10 + $0x10d0] sm:$0xff] }
 0x447   :  { %8704 = vmatprep.subr.bf16.mxu1 %v13550_v46  ;;  %v1927_v46 = vld [vmem:[#allocation10 + $0x10f0] sm:$0xff] }
 0x448   :  { %v13596_v5 = vcombine.high %v1923_v15, %v1927_v46 }
 0x449   :  { %8377 = vmatpush1.bf16.msra.mxu0 %v13547_v35  ;;  %v13598_v35 = vcombine.high %v1924_v47, %v1928_v18 }
 0x44a   :  { %8705 = vmatpush1.bf16.msra.mxu1 %v13549_v45  ;;  %8378 = vmatprep.subr.bf16.mxu0 %v13556_v21  ;;  %v1931_v45 = vld [vmem:[#allocation10 + $0x1110] sm:$0xff] }
 0x44b   :  { %8706 = vmatprep.subr.bf16.mxu1 %v13558_v22  ;;  %v1935_v21 = vld [vmem:[#allocation10 + $0x1130] sm:$0xff]  ;;  %v1932_v22 = vld [vmem:[#allocation10 + $0x1118] sm:$0xff] }
 0x44c   :  { %v13604_v59 = vcombine.high %v1931_v45, %v1935_v21  ;;  %v13606_v28 = vcombine.high %v1932_v22, %v1936_v27  ;;  %v13603_v34 = vcombine.low %v1931_v45, %v1935_v21  ;;  %v13605_v38 = vcombine.low %v1932_v22, %v1936_v27 }
 0x44d   :  { %8379 = vmatpush1.bf16.msra.mxu0 %v13555_v29  ;;  %v1939_v29 = vld [vmem:[#allocation10 + $0x1150] sm:$0xff] }
 0x44e   :  { %8707 = vmatpush1.bf16.msra.mxu1 %v13557_v31  ;;  %8380 = vmatprep.subr.bf16.mxu0 %v13564_v43  ;;  %v1943_v31 = vld [vmem:[#allocation10 + $0x1170] sm:$0xff]  ;;  %v1940_v43 = vld [vmem:[#allocation10 + $0x1158] sm:$0xff] }
 0x44f   :  { %8708 = vmatprep.subr.bf16.mxu1 %v13566_v32  ;;  %v1944_v32 = vld [vmem:[#allocation10 + $0x1178] sm:$0xff]  ;;  %v13612_v53 = vcombine.high %v1939_v29, %v1943_v31  ;;  %v13611_v36 = vcombine.low %v1939_v29, %v1943_v31 }
 0x450   :  { %v13614_v39 = vcombine.high %v1940_v43, %v1944_v32  ;;  %v13613_v55 = vcombine.low %v1940_v43, %v1944_v32 }
 0x451   :  { %8381 = vmatpush1.bf16.msra.mxu0 %v13563_v42  ;;  %v1947_v42 = vld [vmem:[#allocation10 + $0x1190] sm:$0xff] }
 0x452   :  { %8709 = vmatpush1.bf16.msra.mxu1 %v13565_v51  ;;  %8391 = vmatprep.subr.bf16.mxu0 %v13572_v54  ;;  %v1951_v51 = vld [vmem:[#allocation10 + $0x11b0] sm:$0xff]  ;;  %v1948_v54 = vld [vmem:[#allocation10 + $0x1198] sm:$0xff] }
 0x453   :  { %8719 = vmatprep.subr.bf16.mxu1 %v13574_v52  ;;  %v1952_v52 = vld [vmem:[#allocation10 + $0x11b8] sm:$0xff]  ;;  %v13619_v3 = vcombine.low %v1947_v42, %v1951_v51 }
 0x454   :  { %8383 = vmatmul.mubr.bf16.vlgmr.msra.gmra.mrb[20].mxu0 %v15308_v6  ;;  %v13622_v58 = vcombine.high %v1948_v54, %v1952_v52 }
 0x455   :  { %8711 = vmatmul.mubr.bf16.vlgmr.msra.gmra.mrb[20].mxu1 %v15308_v6  ;;  %8392 = vmatpush1.bf16.msra.mxu0 %v13571_v57  ;;  %v13589_v6 = vcombine.low %v1916_v13, %v1920_v9  ;;  %v13620_v57 = vcombine.high %v1947_v42, %v1951_v51 }
 0x456   :  { %8423 = vmatprep.mubr.bf16.mxu0 %v15310_v17  ;;  %8720 = vmatpush1.bf16.msra.mxu1 %v13573_v63  ;;  %v1959_v63 = vld [vmem:[#allocation10 + $0x11f0] sm:$0xff] }
 0x457   :  { %8751 = vmatprep.mubr.bf16.mxu1 %v15310_v17  ;;  %8393 = vmatprep.subr.bf16.mxu0 %v13580_v2  ;;  %v13595_v17 = vcombine.low %v1923_v15, %v1927_v46  ;;  %v1956_v2 = vld [vmem:[#allocation10 + $0x11d8] sm:$0xff]  ;;  %v13628_v13 = vcombine.high %v1955_v62, %v1959_v63  ;;  %v13627_v15 = vcombine.low %v1955_v62, %v1959_v63 }
 0x458   :  { %8721 = vmatprep.subr.bf16.mxu1 %v13582_v8  ;;  %v13621_v8 = vcombine.low %v1948_v54, %v1952_v52  ;;  %v13630_v9 = vcombine.high %v1956_v2, %v1960_v25  ;;  %v13629_v46 = vcombine.low %v1956_v2, %v1960_v25 }
 0x459   :  { %8394 = vmatpush1.bf16.msra.mxu0 %v13579_v11  ;;  %v1963_v11 = vld [vmem:[#allocation10 + $0x1210] sm:$0xff] }
 0x45a   :  { %8722 = vmatpush1.bf16.msra.mxu1 %v13581_v16  ;;  %8395 = vmatprep.subr.bf16.mxu0 %v13588_v49  ;;  %v1967_v16 = vld [vmem:[#allocation10 + $0x1230] sm:$0xff]  ;;  %v1964_v49 = vld [vmem:[#allocation10 + $0x1218] sm:$0xff] }
 0x45b   :  { %8723 = vmatprep.subr.bf16.mxu1 %v13590_v33  ;;  %v1968_v33 = vld [vmem:[#allocation10 + $0x1238] sm:$0xff]  ;;  %v13636_v47 = vcombine.high %v1963_v11, %v1967_v16  ;;  %v13635_v45 = vcombine.low %v1963_v11, %v1967_v16 }
 0x45c   :  { %v13638_v18 = vcombine.high %v1964_v49, %v1968_v33  ;;  %v13637_v21 = vcombine.low %v1964_v49, %v1968_v33 }
 0x45d   :  { %8396 = vmatpush1.bf16.msra.mxu0 %v13587_v50  ;;  %v1971_v50 = vld [vmem:[#allocation10 + $0x1250] sm:$0xff] }
 0x45e   :  { %8724 = vmatpush1.bf16.msra.mxu1 %v13589_v6  ;;  %8397 = vmatprep.subr.bf16.mxu0 %v13596_v5  ;;  %v1975_v6 = vld [vmem:[#allocation10 + $0x1270] sm:$0xff]  ;;  %v1972_v5 = vld [vmem:[#allocation10 + $0x1258] sm:$0xff] }
 0x45f   :  { %8725 = vmatprep.subr.bf16.mxu1 %v13598_v35  ;;  %v1976_v35 = vld [vmem:[#allocation10 + $0x1278] sm:$0xff]  ;;  %v13644_v22 = vcombine.high %v1971_v50, %v1975_v6  ;;  %v13643_v29 = vcombine.low %v1971_v50, %v1975_v6 }
 0x460   :  { %v13646_v27 = vcombine.high %v1972_v5, %v1976_v35  ;;  %v13645_v31 = vcombine.low %v1972_v5, %v1976_v35 }
 0x461   :  { %8398 = vmatpush1.bf16.msra.mxu0 %v13595_v17  ;;  %v1979_v17 = vld [vmem:[#allocation10 + $0x1290] sm:$0xff] }
 0x462   :  { %8726 = vmatpush1.bf16.msra.mxu1 %v13597_v4  ;;  %8399 = vmatprep.subr.bf16.mxu0 %v13604_v59  ;;  %v1983_v4 = vld [vmem:[#allocation10 + $0x12b0] sm:$0xff]  ;;  %v1980_v59 = vld [vmem:[#allocation10 + $0x1298] sm:$0xff] }
 0x463   :  { %8727 = vmatprep.subr.bf16.mxu1 %v13606_v28  ;;  %v1984_v28 = vld [vmem:[#allocation10 + $0x12b8] sm:$0xff]  ;;  %v13652_v43 = vcombine.high %v1979_v17, %v1983_v4  ;;  %v13651_v42 = vcombine.low %v1979_v17, %v1983_v4 }
 0x464   :  { %v13654_v32 = vcombine.high %v1980_v59, %v1984_v28  ;;  %v13653_v51 = vcombine.low %v1980_v59, %v1984_v28 }
 0x465   :  { %8400 = vmatpush1.bf16.msra.mxu0 %v13603_v34  ;;  %v1987_v34 = vld [vmem:[#allocation10 + $0x12d0] sm:$0xff] }
 0x466   :  { %8728 = vmatpush1.bf16.msra.mxu1 %v13605_v38  ;;  %8401 = vmatprep.subr.bf16.mxu0 %v13612_v53  ;;  %v1991_v38 = vld [vmem:[#allocation10 + $0x12f0] sm:$0xff]  ;;  %v1988_v53 = vld [vmem:[#allocation10 + $0x12d8] sm:$0xff] }
 0x467   :  { %8729 = vmatprep.subr.bf16.mxu1 %v13614_v39  ;;  %v1992_v39 = vld [vmem:[#allocation10 + $0x12f8] sm:$0xff]  ;;  %v13660_v54 = vcombine.high %v1987_v34, %v1991_v38  ;;  %v13659_v62 = vcombine.low %v1987_v34, %v1991_v38 }
 0x468   :  { %v13662_v52 = vcombine.high %v1988_v53, %v1992_v39  ;;  %v13661_v63 = vcombine.low %v1988_v53, %v1992_v39 }
 0x469   :  { %8402 = vmatpush1.bf16.msra.mxu0 %v13611_v36  ;;  %v1995_v36 = vld [vmem:[#allocation10 + $0x1310] sm:$0xff] }
 0x46a   :  { %8730 = vmatpush1.bf16.msra.mxu1 %v13613_v55  ;;  %8403 = vmatprep.subr.bf16.mxu0 %v13620_v57  ;;  %v1999_v55 = vld [vmem:[#allocation10 + $0x1330] sm:$0xff]  ;;  %v1996_v57 = vld [vmem:[#allocation10 + $0x1318] sm:$0xff] }
 0x46b   :  { %8731 = vmatprep.subr.bf16.mxu1 %v13622_v58  ;;  %v2000_v58 = vld [vmem:[#allocation10 + $0x1338] sm:$0xff]  ;;  %v13668_v2 = vcombine.high %v1995_v36, %v1999_v55  ;;  %v13667_v11 = vcombine.low %v1995_v36, %v1999_v55 }
 0x46c   :  { %v13670_v25 = vcombine.high %v1996_v57, %v2000_v58  ;;  %v13669_v16 = vcombine.low %v1996_v57, %v2000_v58  ;;  %v2040_v36 = vld [vmem:[#allocation10 + $0x1478] sm:$0xff]  ;;  %v2043_v58 = vld [vmem:[#allocation10 + $0x1490] sm:$0xff] }
 0x46d   :  { %8404 = vmatpush1.bf16.msra.mxu0 %v13619_v3  ;;  %v2003_v3 = vld [vmem:[#allocation10 + $0x1350] sm:$0xff] }
 0x46e   :  { %8732 = vmatpush1.bf16.msra.mxu1 %v13621_v8  ;;  %8405 = vmatprep.subr.bf16.mxu0 %v13628_v13  ;;  %v2007_v8 = vld [vmem:[#allocation10 + $0x1370] sm:$0xff]  ;;  %v2004_v13 = vld [vmem:[#allocation10 + $0x1358] sm:$0xff] }
 0x46f   :  { %8733 = vmatprep.subr.bf16.mxu1 %v13630_v9  ;;  %v2008_v9 = vld [vmem:[#allocation10 + $0x1378] sm:$0xff]  ;;  %v13676_v49 = vcombine.high %v2003_v3, %v2007_v8  ;;  %v13675_v50 = vcombine.low %v2003_v3, %v2007_v8 }
 0x470   :  { %v13678_v33 = vcombine.high %v2004_v13, %v2008_v9  ;;  %v13677_v6 = vcombine.low %v2004_v13, %v2008_v9 }
 0x471   :  { %8406 = vmatpush1.bf16.msra.mxu0 %v13627_v15  ;;  %v2011_v15 = vld [vmem:[#allocation10 + $0x1390] sm:$0xff] }
 0x472   :  { %8734 = vmatpush1.bf16.msra.mxu1 %v13629_v46  ;;  %8407 = vmatprep.subr.bf16.mxu0 %v13636_v47  ;;  %v2015_v46 = vld [vmem:[#allocation10 + $0x13b0] sm:$0xff]  ;;  %v2012_v47 = vld [vmem:[#allocation10 + $0x1398] sm:$0xff] }
 0x473   :  { %8735 = vmatprep.subr.bf16.mxu1 %v13638_v18  ;;  %v2016_v18 = vld [vmem:[#allocation10 + $0x13b8] sm:$0xff]  ;;  %v13684_v5 = vcombine.high %v2011_v15, %v2015_v46  ;;  %v13683_v17 = vcombine.low %v2011_v15, %v2015_v46 }
 0x474   :  { %v13686_v35 = vcombine.high %v2012_v47, %v2016_v18  ;;  %v13685_v4 = vcombine.low %v2012_v47, %v2016_v18  ;;  %v2059_v18 = vld [vmem:[#allocation10 + $0x1510] sm:$0xff] }
 0x475   :  { %8408 = vmatpush1.bf16.msra.mxu0 %v13635_v45  ;;  %v2019_v45 = vld [vmem:[#allocation10 + $0x13d0] sm:$0xff] }
 0x476   :  { %8736 = vmatpush1.bf16.msra.mxu1 %v13637_v21  ;;  %8409 = vmatprep.subr.bf16.mxu0 %v13644_v22  ;;  %v2023_v21 = vld [vmem:[#allocation10 + $0x13f0] sm:$0xff]  ;;  %v2020_v22 = vld [vmem:[#allocation10 + $0x13d8] sm:$0xff] }
 0x477   :  { %8737 = vmatprep.subr.bf16.mxu1 %v13646_v27  ;;  %v2024_v27 = vld [vmem:[#allocation10 + $0x13f8] sm:$0xff]  ;;  %v13692_v59 = vcombine.high %v2019_v45, %v2023_v21  ;;  %v13691_v34 = vcombine.low %v2019_v45, %v2023_v21 }
 0x478   :  { %v13694_v28 = vcombine.high %v2020_v22, %v2024_v27  ;;  %v13693_v38 = vcombine.low %v2020_v22, %v2024_v27  ;;  %v2067_v22 = vld [vmem:[#allocation10 + $0x1550] sm:$0xff] }
 0x479   :  { %8410 = vmatpush1.bf16.msra.mxu0 %v13643_v29  ;;  %v2027_v29 = vld [vmem:[#allocation10 + $0x1410] sm:$0xff] }
 0x47a   :  { %8738 = vmatpush1.bf16.msra.mxu1 %v13645_v31  ;;  %8411 = vmatprep.subr.bf16.mxu0 %v13652_v43  ;;  %v2031_v31 = vld [vmem:[#allocation10 + $0x1430] sm:$0xff]  ;;  %v2028_v43 = vld [vmem:[#allocation10 + $0x1418] sm:$0xff] }
 0x47b   :  { %8739 = vmatprep.subr.bf16.mxu1 %v13654_v32  ;;  %v2032_v32 = vld [vmem:[#allocation10 + $0x1438] sm:$0xff]  ;;  %v13700_v53 = vcombine.high %v2027_v29, %v2031_v31  ;;  %v2071_v27 = vld [vmem:[#allocation10 + $0x1570] sm:$0xff] }
 0x47c   :  { %v13702_v39 = vcombine.high %v2028_v43, %v2032_v32  ;;  %v13701_v55 = vcombine.low %v2028_v43, %v2032_v32  ;;  %v2075_v43 = vld [vmem:[#allocation10 + $0x1590] sm:$0xff] }
 0x47d   :  { %8412 = vmatpush1.bf16.msra.mxu0 %v13651_v42  ;;  %v2035_v42 = vld [vmem:[#allocation10 + $0x1450] sm:$0xff] }
 0x47e   :  { %8740 = vmatpush1.bf16.msra.mxu1 %v13653_v51  ;;  %8413 = vmatprep.subr.bf16.mxu0 %v13660_v54  ;;  %v2039_v51 = vld [vmem:[#allocation10 + $0x1470] sm:$0xff]  ;;  %v13699_v54 = vcombine.low %v2027_v29, %v2031_v31  ;;  %v13740_v29 = vcombine.high %v2067_v22, %v2071_v27 }
 0x47f   :  { %8741 = vmatprep.subr.bf16.mxu1 %v13662_v52  ;;  %v2036_v52 = vld [vmem:[#allocation10 + $0x1458] sm:$0xff]  ;;  %v13708_v57 = vcombine.high %v2035_v42, %v2039_v51  ;;  %v13707_v3 = vcombine.low %v2035_v42, %v2039_v51  ;;  %v2079_v32 = vld [vmem:[#allocation10 + $0x15b0] sm:$0xff] }
 0x480   :  { %v13709_v8 = vcombine.low %v2036_v52, %v2040_v36  ;;  %v13748_v42 = vcombine.high %v2075_v43, %v2079_v32 }
 0x481   :  { %8414 = vmatpush1.bf16.msra.mxu0 %v13659_v62  ;;  %v2047_v62 = vld [vmem:[#allocation10 + $0x14b0] sm:$0xff] }
 0x482   :  { %8742 = vmatpush1.bf16.msra.mxu1 %v13661_v63  ;;  %8415 = vmatprep.subr.bf16.mxu0 %v13668_v2  ;;  %v13710_v63 = vcombine.high %v2036_v52, %v2040_v36  ;;  %v2044_v2 = vld [vmem:[#allocation10 + $0x1498] sm:$0xff]  ;;  %v13716_v13 = vcombine.high %v2043_v58, %v2047_v62  ;;  %v13715_v15 = vcombine.low %v2043_v58, %v2047_v62  ;;  %v2087_v52 = vld [vmem:[#allocation10 + $0x15f0] sm:$0xff] }
 0x483   :  { %8743 = vmatprep.subr.bf16.mxu1 %v13670_v25  ;;  %v2048_v25 = vld [vmem:[#allocation10 + $0x14b8] sm:$0xff] }
 0x484   :  { %v13718_v9 = vcombine.high %v2044_v2, %v2048_v25  ;;  %v2084_v36 = vld [vmem:[#allocation10 + $0x15d8] sm:$0xff] }
 0x485   :  { %8416 = vmatpush1.bf16.msra.mxu0 %v13667_v11  ;;  %v2051_v11 = vld [vmem:[#allocation10 + $0x14d0] sm:$0xff] }
 0x486   :  { %8744 = vmatpush1.bf16.msra.mxu1 %v13669_v16  ;;  %8417 = vmatprep.subr.bf16.mxu0 %v13676_v49  ;;  %v2055_v16 = vld [vmem:[#allocation10 + $0x14f0] sm:$0xff]  ;;  %v2052_v49 = vld [vmem:[#allocation10 + $0x14d8] sm:$0xff] }
 0x487   :  { %8745 = vmatprep.subr.bf16.mxu1 %v13678_v33  ;;  %v2056_v33 = vld [vmem:[#allocation10 + $0x14f8] sm:$0xff]  ;;  %v13724_v46 = vcombine.high %v2051_v11, %v2055_v16 }
 0x488   :  { %v13726_v47 = vcombine.high %v2052_v49, %v2056_v33 }
 0x489   :  { %8418 = vmatpush1.bf16.msra.mxu0 %v13675_v50  ;;  %v2063_v50 = vld [vmem:[#allocation10 + $0x1530] sm:$0xff] }
 0x48a   :  { %8746 = vmatpush1.bf16.msra.mxu1 %v13677_v6  ;;  %8419 = vmatprep.subr.bf16.mxu0 %v13684_v5  ;;  %v2060_v6 = vld [vmem:[#allocation10 + $0x1518] sm:$0xff]  ;;  %v13732_v45 = vcombine.high %v2059_v18, %v2063_v50 }
 0x48b   :  { %8747 = vmatprep.subr.bf16.mxu1 %v13686_v35  ;;  %v2064_v5 = vld [vmem:[#allocation10 + $0x1538] sm:$0xff]  ;;  %v13725_v35 = vcombine.low %v2052_v49, %v2056_v33  ;;  %v2099_v49 = vld [vmem:[#allocation10 + $0x1650] sm:$0xff] }
 0x48c   :  { %v13734_v21 = vcombine.high %v2060_v6, %v2064_v5  ;;  %v2103_v33 = vld [vmem:[#allocation10 + $0x1670] sm:$0xff] }
 0x48d   :  { %8420 = vmatpush1.bf16.msra.mxu0 %v13683_v17  ;;  %v2068_v17 = vld [vmem:[#allocation10 + $0x1558] sm:$0xff] }
 0x48e   :  { %8748 = vmatpush1.bf16.msra.mxu1 %v13685_v4  ;;  %8421 = vmatprep.subr.bf16.mxu0 %v13692_v59  ;;  %v2072_v4 = vld [vmem:[#allocation10 + $0x1578] sm:$0xff]  ;;  %v13731_v59 = vcombine.low %v2059_v18, %v2063_v50  ;;  %v13772_v18 = vcombine.high %v2099_v49, %v2103_v33 }
 0x48f   :  { %8749 = vmatprep.subr.bf16.mxu1 %v13694_v28  ;;  %v13733_v28 = vcombine.low %v2060_v6, %v2064_v5  ;;  %v13742_v31 = vcombine.high %v2068_v17, %v2072_v4  ;;  %v2107_v6 = vld [vmem:[#allocation10 + $0x1690] sm:$0xff] }
 0x490   :  { %v2111_v5 = vld [vmem:[#allocation10 + $0x16b0] sm:$0xff] }
 0x491   :  { %8422 = vmatpush1.bf16.msra.mxu0 %v13691_v34  ;;  %v2076_v34 = vld [vmem:[#allocation10 + $0x1598] sm:$0xff] }
 0x492   :  { %8750 = vmatpush1.bf16.msra.mxu1 %v13693_v38  ;;  %8432 = vmatprep.subr.bf16.mxu0 %v13700_v53  ;;  %v2080_v38 = vld [vmem:[#allocation10 + $0x15b8] sm:$0xff]  ;;  %v13739_v53 = vcombine.low %v2067_v22, %v2071_v27  ;;  %v13780_v22 = vcombine.high %v2107_v6, %v2111_v5 }
 0x493   :  { %8760 = vmatprep.subr.bf16.mxu1 %v13702_v39  ;;  %v13741_v39 = vcombine.low %v2068_v17, %v2072_v4  ;;  %v13750_v51 = vcombine.high %v2076_v34, %v2080_v38  ;;  %v13749_v58 = vcombine.low %v2076_v34, %v2080_v38  ;;  %v2115_v17 = vld [vmem:[#allocation10 + $0x16d0] sm:$0xff] }
 0x494   :  { %8424 = vmatmul.mubr.bf16.vlgmr.msra.gmra.mrb[20].mxu0 %v15321_v37  ;;  %v2119_v4 = vld [vmem:[#allocation10 + $0x16f0] sm:$0xff] }
 0x495   :  { %8752 = vmatmul.mubr.bf16.vlgmr.msra.gmra.mrb[20].mxu1 %v15321_v37  ;;  %8433 = vmatpush1.bf16.msra.mxu0 %v13699_v54  ;;  %v13717_v37 = vcombine.low %v2044_v2, %v2048_v25  ;;  %v2083_v54 = vld [vmem:[#allocation10 + $0x15d0] sm:$0xff] }
 0x496   :  { %8464 = vmatprep.mubr.bf16.mxu0 %v15323_v44  ;;  %8761 = vmatpush1.bf16.msra.mxu1 %v13701_v55  ;;  %v2088_v55 = vld [vmem:[#allocation10 + $0x15f8] sm:$0xff]  ;;  %v13756_v62 = vcombine.high %v2083_v54, %v2087_v52  ;;  %v2091_v2 = vld [vmem:[#allocation10 + $0x1610] sm:$0xff] }
 0x497   :  { %8792 = vmatprep.mubr.bf16.mxu1 %v15323_v44  ;;  %8434 = vmatprep.subr.bf16.mxu0 %v13708_v57  ;;  %v13723_v44 = vcombine.low %v2051_v11, %v2055_v16  ;;  %v13747_v57 = vcombine.low %v2075_v43, %v2079_v32  ;;  %v2095_v25 = vld [vmem:[#allocation10 + $0x1630] sm:$0xff]  ;;  %v13788_v43 = vcombine.high %v2115_v17, %v2119_v4 }
 0x498   :  { %8762 = vmatprep.subr.bf16.mxu1 %v13710_v63  ;;  %v13758_v63 = vcombine.high %v2084_v36, %v2088_v55  ;;  %v13764_v11 = vcombine.high %v2091_v2, %v2095_v25  ;;  %v2123_v34 = vld [vmem:[#allocation10 + $0x1710] sm:$0xff] }
 0x499   :  { %8435 = vmatpush1.bf16.msra.mxu0 %v13707_v3  ;;  %v2092_v3 = vld [vmem:[#allocation10 + $0x1618] sm:$0xff]  ;;  %v2127_v38 = vld [vmem:[#allocation10 + $0x1730] sm:$0xff] }
 0x49a   :  { %8763 = vmatpush1.bf16.msra.mxu1 %v13709_v8  ;;  %8436 = vmatprep.subr.bf16.mxu0 %v13716_v13  ;;  %v2096_v8 = vld [vmem:[#allocation10 + $0x1638] sm:$0xff]  ;;  %v13755_v13 = vcombine.low %v2083_v54, %v2087_v52  ;;  %v13796_v54 = vcombine.high %v2123_v34, %v2127_v38 }
 0x49b   :  { %8764 = vmatprep.subr.bf16.mxu1 %v13718_v9  ;;  %v13757_v9 = vcombine.low %v2084_v36, %v2088_v55  ;;  %v13766_v16 = vcombine.high %v2092_v3, %v2096_v8  ;;  %v2131_v36 = vld [vmem:[#allocation10 + $0x1750] sm:$0xff] }
 0x49c   :  { %v2135_v55 = vld [vmem:[#allocation10 + $0x1770] sm:$0xff] }
 0x49d   :  { %8437 = vmatpush1.bf16.msra.mxu0 %v13715_v15  ;;  %v2100_v15 = vld [vmem:[#allocation10 + $0x1658] sm:$0xff] }
 0x49e   :  { %8765 = vmatpush1.bf16.msra.mxu1 %v13717_v37  ;;  %8438 = vmatprep.subr.bf16.mxu0 %v13724_v46  ;;  %v2104_v37 = vld [vmem:[#allocation10 + $0x1678] sm:$0xff]  ;;  %v13763_v46 = vcombine.low %v2091_v2, %v2095_v25  ;;  %v13804_v2 = vcombine.high %v2131_v36, %v2135_v55 }
 0x49f   :  { %8766 = vmatprep.subr.bf16.mxu1 %v13726_v47  ;;  %v13765_v47 = vcombine.low %v2092_v3, %v2096_v8  ;;  %v13774_v50 = vcombine.high %v2100_v15, %v2104_v37  ;;  %v2139_v3 = vld [vmem:[#allocation10 + $0x1790] sm:$0xff] }
 0x4a0   :  { %v2143_v8 = vld [vmem:[#allocation10 + $0x17b0] sm:$0xff] }
 0x4a1   :  { %8439 = vmatpush1.bf16.msra.mxu0 %v13723_v44  ;;  %v2108_v44 = vld [vmem:[#allocation10 + $0x1698] sm:$0xff] }
 0x4a2   :  { %8767 = vmatpush1.bf16.msra.mxu1 %v13725_v35  ;;  %8440 = vmatprep.subr.bf16.mxu0 %v13732_v45  ;;  %v2112_v35 = vld [vmem:[#allocation10 + $0x16b8] sm:$0xff]  ;;  %v13771_v45 = vcombine.low %v2099_v49, %v2103_v33  ;;  %v13812_v49 = vcombine.high %v2139_v3, %v2143_v8 }
 0x4a3   :  { %8768 = vmatprep.subr.bf16.mxu1 %v13734_v21  ;;  %v13773_v21 = vcombine.low %v2100_v15, %v2104_v37  ;;  %v13782_v27 = vcombine.high %v2108_v44, %v2112_v35  ;;  %v2147_v15 = vld [vmem:[#allocation10 + $0x17d0] sm:$0xff] }
 0x4a4   :  { %v2151_v37 = vld [vmem:[#allocation10 + $0x17f0] sm:$0xff] }
 0x4a5   :  { %8441 = vmatpush1.bf16.msra.mxu0 %v13731_v59  ;;  %v2116_v59 = vld [vmem:[#allocation10 + $0x16d8] sm:$0xff] }
 0x4a6   :  { %8769 = vmatpush1.bf16.msra.mxu1 %v13733_v28  ;;  %8442 = vmatprep.subr.bf16.mxu0 %v13740_v29  ;;  %v2120_v28 = vld [vmem:[#allocation10 + $0x16f8] sm:$0xff]  ;;  %v13779_v29 = vcombine.low %v2107_v6, %v2111_v5  ;;  %v13820_v6 = vcombine.high %v2147_v15, %v2151_v37 }
 0x4a7   :  { %8770 = vmatprep.subr.bf16.mxu1 %v13742_v31  ;;  %v13781_v31 = vcombine.low %v2108_v44, %v2112_v35  ;;  %v13790_v32 = vcombine.high %v2116_v59, %v2120_v28  ;;  %v2155_v44 = vld [vmem:[#allocation10 + $0x1810] sm:$0xff] }
 0x4a8   :  { %v2159_v35 = vld [vmem:[#allocation10 + $0x1830] sm:$0xff] }
 0x4a9   :  { %8443 = vmatpush1.bf16.msra.mxu0 %v13739_v53  ;;  %v2124_v53 = vld [vmem:[#allocation10 + $0x1718] sm:$0xff] }
 0x4aa   :  { %8771 = vmatpush1.bf16.msra.mxu1 %v13741_v39  ;;  %8444 = vmatprep.subr.bf16.mxu0 %v13748_v42  ;;  %v2128_v39 = vld [vmem:[#allocation10 + $0x1738] sm:$0xff]  ;;  %v13787_v42 = vcombine.low %v2115_v17, %v2119_v4  ;;  %v13828_v17 = vcombine.high %v2155_v44, %v2159_v35 }
 0x4ab   :  { %8772 = vmatprep.subr.bf16.mxu1 %v13750_v51  ;;  %v13789_v51 = vcombine.low %v2116_v59, %v2120_v28  ;;  %v13798_v52 = vcombine.high %v2124_v53, %v2128_v39  ;;  %v2163_v59 = vld [vmem:[#allocation10 + $0x1850] sm:$0xff] }
 0x4ac   :  { %v2167_v28 = vld [vmem:[#allocation10 + $0x1870] sm:$0xff] }
 0x4ad   :  { %8445 = vmatpush1.bf16.msra.mxu0 %v13747_v57  ;;  %v2132_v57 = vld [vmem:[#allocation10 + $0x1758] sm:$0xff] }
 0x4ae   :  { %8773 = vmatpush1.bf16.msra.mxu1 %v13749_v58  ;;  %8446 = vmatprep.subr.bf16.mxu0 %v13756_v62  ;;  %v2136_v58 = vld [vmem:[#allocation10 + $0x1778] sm:$0xff]  ;;  %v13795_v62 = vcombine.low %v2123_v34, %v2127_v38  ;;  %v13836_v34 = vcombine.high %v2163_v59, %v2167_v28  ;;  %v2171_v38 = vld [vmem:[#allocation10 + $0x1890] sm:$0xff] }
 0x4af   :  { %8774 = vmatprep.subr.bf16.mxu1 %v13758_v63  ;;  %v13797_v63 = vcombine.low %v2124_v53, %v2128_v39  ;;  %v13806_v25 = vcombine.high %v2132_v57, %v2136_v58  ;;  %v2175_v53 = vld [vmem:[#allocation10 + $0x18b0] sm:$0xff] }
 0x4b1   :  { %8447 = vmatpush1.bf16.msra.mxu0 %v13755_v13  ;;  %v2140_v13 = vld [vmem:[#allocation10 + $0x1798] sm:$0xff] }
 0x4b2   :  { %8775 = vmatpush1.bf16.msra.mxu1 %v13757_v9  ;;  %8448 = vmatprep.subr.bf16.mxu0 %v13764_v11  ;;  %v2144_v9 = vld [vmem:[#allocation10 + $0x17b8] sm:$0xff]  ;;  %v13803_v11 = vcombine.low %v2131_v36, %v2135_v55  ;;  %v13844_v36 = vcombine.high %v2171_v38, %v2175_v53 }
 0x4b3   :  { %8776 = vmatprep.subr.bf16.mxu1 %v13766_v16  ;;  %v13805_v16 = vcombine.low %v2132_v57, %v2136_v58  ;;  %v13814_v33 = vcombine.high %v2140_v13, %v2144_v9  ;;  %v2179_v57 = vld [vmem:[#allocation10 + $0x18d0] sm:$0xff] }
 0x4b4   :  { %v2183_v58 = vld [vmem:[#allocation10 + $0x18f0] sm:$0xff] }
 0x4b5   :  { %8449 = vmatpush1.bf16.msra.mxu0 %v13763_v46  ;;  %v2148_v46 = vld [vmem:[#allocation10 + $0x17d8] sm:$0xff] }
 0x4b6   :  { %8777 = vmatpush1.bf16.msra.mxu1 %v13765_v47  ;;  %8450 = vmatprep.subr.bf16.mxu0 %v13772_v18  ;;  %v2152_v47 = vld [vmem:[#allocation10 + $0x17f8] sm:$0xff]  ;;  %v13811_v18 = vcombine.low %v2139_v3, %v2143_v8  ;;  %v2187_v8 = vld [vmem:[#allocation10 + $0x1910] sm:$0xff] }
 0x4b7   :  { %8778 = vmatprep.subr.bf16.mxu1 %v13774_v50  ;;  %v13813_v50 = vcombine.low %v2140_v13, %v2144_v9  ;;  %v13822_v5 = vcombine.high %v2148_v46, %v2152_v47  ;;  %v2191_v13 = vld [vmem:[#allocation10 + $0x1930] sm:$0xff]  ;;  %v2188_v9 = vld [vmem:[#allocation10 + $0x1918] sm:$0xff] }
 0x4b9   :  { %8451 = vmatpush1.bf16.msra.mxu0 %v13771_v45  ;;  %v2156_v45 = vld [vmem:[#allocation10 + $0x1818] sm:$0xff] }
 0x4ba   :  { %8779 = vmatpush1.bf16.msra.mxu1 %v13773_v21  ;;  %8452 = vmatprep.subr.bf16.mxu0 %v13780_v22  ;;  %v2160_v21 = vld [vmem:[#allocation10 + $0x1838] sm:$0xff]  ;;  %v13819_v22 = vcombine.low %v2147_v15, %v2151_v37  ;;  %v2195_v15 = vld [vmem:[#allocation10 + $0x1950] sm:$0xff] }
 0x4bb   :  { %8780 = vmatprep.subr.bf16.mxu1 %v13782_v27  ;;  %v13821_v27 = vcombine.low %v2148_v46, %v2152_v47  ;;  %v13830_v4 = vcombine.high %v2156_v45, %v2160_v21  ;;  %v2199_v37 = vld [vmem:[#allocation10 + $0x1970] sm:$0xff]  ;;  %v2196_v46 = vld [vmem:[#allocation10 + $0x1958] sm:$0xff] }
 0x4bc   :  { %v2200_v47 = vld [vmem:[#allocation10 + $0x1978] sm:$0xff] }
 0x4bd   :  { %8453 = vmatpush1.bf16.msra.mxu0 %v13779_v29  ;;  %v13827_v29 = vcombine.low %v2155_v44, %v2159_v35  ;;  %v2203_v44 = vld [vmem:[#allocation10 + $0x1990] sm:$0xff] }
 0x4be   :  { %8781 = vmatpush1.bf16.msra.mxu1 %v13781_v31  ;;  %8454 = vmatprep.subr.bf16.mxu0 %v13788_v43  ;;  %v2164_v31 = vld [vmem:[#allocation10 + $0x1858] sm:$0xff]  ;;  %v2207_v35 = vld [vmem:[#allocation10 + $0x19b0] sm:$0xff] }
 0x4bf   :  { %8782 = vmatprep.subr.bf16.mxu1 %v13790_v32  ;;  %v2168_v43 = vld [vmem:[#allocation10 + $0x1878] sm:$0xff]  ;;  %v13829_v32 = vcombine.low %v2156_v45, %v2160_v21 }
 0x4c0   :  { %v13838_v39 = vcombine.high %v2164_v31, %v2168_v43  ;;  %v2204_v45 = vld [vmem:[#allocation10 + $0x1998] sm:$0xff] }
 0x4c1   :  { %8455 = vmatpush1.bf16.msra.mxu0 %v13787_v42  ;;  %v2172_v42 = vld [vmem:[#allocation10 + $0x1898] sm:$0xff] }
 0x4c2   :  { %8783 = vmatpush1.bf16.msra.mxu1 %v13789_v51  ;;  %8456 = vmatprep.subr.bf16.mxu0 %v13796_v54  ;;  %v2176_v51 = vld [vmem:[#allocation10 + $0x18b8] sm:$0xff]  ;;  %v13835_v54 = vcombine.low %v2163_v59, %v2167_v28  ;;  %v2211_v59 = vld [vmem:[#allocation10 + $0x19d0] sm:$0xff] }
 0x4c3   :  { %8784 = vmatprep.subr.bf16.mxu1 %v13798_v52  ;;  %v13837_v52 = vcombine.low %v2164_v31, %v2168_v43  ;;  %v13846_v55 = vcombine.high %v2172_v42, %v2176_v51  ;;  %v2208_v21 = vld [vmem:[#allocation10 + $0x19b8] sm:$0xff]  ;;  %v2215_v28 = vld [vmem:[#allocation10 + $0x19f0] sm:$0xff]  ;;  %v13875_v43 = vcombine.low %v2203_v44, %v2207_v35 }
 0x4c4   :  { %v2216_v31 = vld [vmem:[#allocation10 + $0x19f8] sm:$0xff] }
 0x4c5   :  { %8457 = vmatpush1.bf16.msra.mxu0 %v13795_v62  ;;  %v2180_v62 = vld [vmem:[#allocation10 + $0x18d8] sm:$0xff] }
 0x4c6   :  { %8785 = vmatpush1.bf16.msra.mxu1 %v13797_v63  ;;  %8458 = vmatprep.subr.bf16.mxu0 %v13804_v2  ;;  %v2184_v63 = vld [vmem:[#allocation10 + $0x18f8] sm:$0xff]  ;;  %v13843_v2 = vcombine.low %v2171_v38, %v2175_v53  ;;  %v2219_v53 = vld [vmem:[#allocation10 + $0x1a10] sm:$0xff] }
 0x4c7   :  { %8786 = vmatprep.subr.bf16.mxu1 %v13806_v25  ;;  %v13852_v25 = vcombine.high %v2179_v57, %v2183_v58  ;;  %v13854_v3 = vcombine.high %v2180_v62, %v2184_v63 }
 0x4c9   :  { %8459 = vmatpush1.bf16.msra.mxu0 %v13803_v11  ;;  %v2192_v11 = vld [vmem:[#allocation10 + $0x1938] sm:$0xff] }
 0x4ca   :  { %8787 = vmatpush1.bf16.msra.mxu1 %v13805_v16  ;;  %8460 = vmatprep.subr.bf16.mxu0 %v13812_v49  ;;  %v13853_v16 = vcombine.low %v2180_v62, %v2184_v63  ;;  %v13860_v49 = vcombine.high %v2187_v8, %v2191_v13  ;;  %v2228_v62 = vld [vmem:[#allocation10 + $0x1a58] sm:$0xff] }
 0x4cb   :  { %8788 = vmatprep.subr.bf16.mxu1 %v13814_v33  ;;  %v13862_v33 = vcombine.high %v2188_v9, %v2192_v11  ;;  %v2232_v63 = vld [vmem:[#allocation10 + $0x1a78] sm:$0xff] }
 0x4cd   :  { %8461 = vmatpush1.bf16.msra.mxu0 %v13811_v18  ;;  %v13859_v18 = vcombine.low %v2187_v8, %v2191_v13  ;;  %v2235_v8 = vld [vmem:[#allocation10 + $0x1a90] sm:$0xff] }
 0x4ce   :  { %8789 = vmatpush1.bf16.msra.mxu1 %v13813_v50  ;;  %8462 = vmatprep.subr.bf16.mxu0 %v13820_v6  ;;  %v13861_v50 = vcombine.low %v2188_v9, %v2192_v11  ;;  %v13868_v6 = vcombine.high %v2195_v15, %v2199_v37  ;;  %v2239_v13 = vld [vmem:[#allocation10 + $0x1ab0] sm:$0xff]  ;;  %v2236_v9 = vld [vmem:[#allocation10 + $0x1a98] sm:$0xff] }
 0x4cf   :  { %8790 = vmatprep.subr.bf16.mxu1 %v13822_v5  ;;  %v13870_v5 = vcombine.high %v2196_v46, %v2200_v47  ;;  %v2240_v11 = vld [vmem:[#allocation10 + $0x1ab8] sm:$0xff] }
 0x4d1   :  { %8463 = vmatpush1.bf16.msra.mxu0 %v13819_v22  ;;  %v13867_v22 = vcombine.low %v2195_v15, %v2199_v37  ;;  %v2243_v15 = vld [vmem:[#allocation10 + $0x1ad0] sm:$0xff] }
 0x4d2   :  { %8791 = vmatpush1.bf16.msra.mxu1 %v13821_v27  ;;  %8473 = vmatprep.subr.bf16.mxu0 %v13828_v17  ;;  %v13869_v27 = vcombine.low %v2196_v46, %v2200_v47  ;;  %v13876_v17 = vcombine.high %v2203_v44, %v2207_v35  ;;  %v2247_v37 = vld [vmem:[#allocation10 + $0x1af0] sm:$0xff]  ;;  %v2244_v46 = vld [vmem:[#allocation10 + $0x1ad8] sm:$0xff] }
 0x4d3   :  { %8801 = vmatprep.subr.bf16.mxu1 %v13830_v4  ;;  %v13878_v4 = vcombine.high %v2204_v45, %v2208_v21  ;;  %v2248_v47 = vld [vmem:[#allocation10 + $0x1af8] sm:$0xff]  ;;  %v2251_v44 = vld [vmem:[#allocation10 + $0x1b10] sm:$0xff] }
 0x4d4   :  { %8465 = vmatmul.mubr.bf16.vlgmr.msra.gmra.mrb[20].mxu0 %v15335_v61  ;;  %v2255_v35 = vld [vmem:[#allocation10 + $0x1b30] sm:$0xff] }
 0x4d5   :  { %8793 = vmatmul.mubr.bf16.vlgmr.msra.gmra.mrb[20].mxu1 %v15335_v61  ;;  %8474 = vmatpush1.bf16.msra.mxu0 %v13827_v29  ;;  %v13845_v61 = vcombine.low %v2172_v42, %v2176_v51  ;;  %v2212_v29 = vld [vmem:[#allocation10 + $0x19d8] sm:$0xff] }
 0x4d6   :  { %8505 = vmatprep.mubr.bf16.mxu0 %v15337_v1  ;;  %8802 = vmatpush1.bf16.msra.mxu1 %v13829_v32  ;;  %v13877_v32 = vcombine.low %v2204_v45, %v2208_v21  ;;  %v13886_v38 = vcombine.high %v2212_v29, %v2216_v31  ;;  %v2220_v42 = vld [vmem:[#allocation10 + $0x1a18] sm:$0xff] }
 0x4d7   :  { %8833 = vmatprep.mubr.bf16.mxu1 %v15337_v1  ;;  %8475 = vmatprep.subr.bf16.mxu0 %v13836_v34  ;;  %v13851_v1 = vcombine.low %v2179_v57, %v2183_v58  ;;  %v13884_v34 = vcombine.high %v2211_v59, %v2215_v28  ;;  %v2224_v51 = vld [vmem:[#allocation10 + $0x1a38] sm:$0xff]  ;;  %v2227_v57 = vld [vmem:[#allocation10 + $0x1a50] sm:$0xff] }
 0x4d8   :  { %8803 = vmatprep.subr.bf16.mxu1 %v13838_v39  ;;  %v2223_v39 = vld [vmem:[#allocation10 + $0x1a30] sm:$0xff]  ;;  %v2252_v45 = vld [vmem:[#allocation10 + $0x1b18] sm:$0xff] }
 0x4d9   :  { %8476 = vmatpush1.bf16.msra.mxu0 %v13835_v54  ;;  %v13883_v54 = vcombine.low %v2211_v59, %v2215_v28  ;;  %v2231_v58 = vld [vmem:[#allocation10 + $0x1a70] sm:$0xff]  ;;  %v2256_v21 = vld [vmem:[#allocation10 + $0x1b38] sm:$0xff] }
 0x4da   :  { %8804 = vmatpush1.bf16.msra.mxu1 %v13837_v52  ;;  %8477 = vmatprep.subr.bf16.mxu0 %v13844_v36  ;;  %v13885_v52 = vcombine.low %v2212_v29, %v2216_v31  ;;  %v13892_v36 = vcombine.high %v2219_v53, %v2223_v39  ;;  %v2259_v59 = vld [vmem:[#allocation10 + $0x1b50] sm:$0xff]  ;;  %v2260_v29 = vld [vmem:[#allocation10 + $0x1b58] sm:$0xff] }
 0x4db   :  { %8805 = vmatprep.subr.bf16.mxu1 %v13846_v55  ;;  %v13894_v55 = vcombine.high %v2220_v42, %v2224_v51  ;;  %v2263_v28 = vld [vmem:[#allocation10 + $0x1b70] sm:$0xff]  ;;  %v2264_v31 = vld [vmem:[#allocation10 + $0x1b78] sm:$0xff] }
 0x4dd   :  { %8478 = vmatpush1.bf16.msra.mxu0 %v13843_v2  ;;  %v13891_v2 = vcombine.low %v2219_v53, %v2223_v39  ;;  %v2267_v53 = vld [vmem:[#allocation10 + $0x1b90] sm:$0xff] }
 0x4de   :  { %8806 = vmatpush1.bf16.msra.mxu1 %v13845_v61  ;;  %8479 = vmatprep.subr.bf16.mxu0 %v13852_v25  ;;  %v13893_v61 = vcombine.low %v2220_v42, %v2224_v51  ;;  %v13900_v25 = vcombine.high %v2227_v57, %v2231_v58  ;;  %v2271_v39 = vld [vmem:[#allocation10 + $0x1bb0] sm:$0xff]  ;;  %v2268_v42 = vld [vmem:[#allocation10 + $0x1b98] sm:$0xff] }
 0x4df   :  { %8807 = vmatprep.subr.bf16.mxu1 %v13854_v3  ;;  %v13902_v3 = vcombine.high %v2228_v62, %v2232_v63  ;;  %v2272_v51 = vld [vmem:[#allocation10 + $0x1bb8] sm:$0xff] }
 0x4e1   :  { %8480 = vmatpush1.bf16.msra.mxu0 %v13851_v1  ;;  %v13899_v1 = vcombine.low %v2227_v57, %v2231_v58  ;;  %v2275_v57 = vld [vmem:[#allocation10 + $0x1bd0] sm:$0xff] }
 0x4e2   :  { %8808 = vmatpush1.bf16.msra.mxu1 %v13853_v16  ;;  %8481 = vmatprep.subr.bf16.mxu0 %v13860_v49  ;;  %v13901_v16 = vcombine.low %v2228_v62, %v2232_v63  ;;  %v13908_v49 = vcombine.high %v2235_v8, %v2239_v13  ;;  %v2279_v58 = vld [vmem:[#allocation10 + $0x1bf0] sm:$0xff]  ;;  %v2276_v62 = vld [vmem:[#allocation10 + $0x1bd8] sm:$0xff] }
 0x4e3   :  { %8809 = vmatprep.subr.bf16.mxu1 %v13862_v33  ;;  %v13910_v33 = vcombine.high %v2236_v9, %v2240_v11  ;;  %v2280_v63 = vld [vmem:[#allocation10 + $0x1bf8] sm:$0xff] }
 0x4e5   :  { %8482 = vmatpush1.bf16.msra.mxu0 %v13859_v18  ;;  %v13907_v18 = vcombine.low %v2235_v8, %v2239_v13  ;;  %v2283_v8 = vld [vmem:[#allocation10 + $0x1c10] sm:$0xff] }
 0x4e6   :  { %8810 = vmatpush1.bf16.msra.mxu1 %v13861_v50  ;;  %8483 = vmatprep.subr.bf16.mxu0 %v13868_v6  ;;  %v13909_v50 = vcombine.low %v2236_v9, %v2240_v11  ;;  %v13916_v6 = vcombine.high %v2243_v15, %v2247_v37  ;;  %v2287_v13 = vld [vmem:[#allocation10 + $0x1c30] sm:$0xff]  ;;  %v2284_v9 = vld [vmem:[#allocation10 + $0x1c18] sm:$0xff] }
 0x4e7   :  { %8811 = vmatprep.subr.bf16.mxu1 %v13870_v5  ;;  %v13918_v5 = vcombine.high %v2244_v46, %v2248_v47  ;;  %v2288_v11 = vld [vmem:[#allocation10 + $0x1c38] sm:$0xff] }
 0x4e9   :  { %8484 = vmatpush1.bf16.msra.mxu0 %v13867_v22  ;;  %v13915_v22 = vcombine.low %v2243_v15, %v2247_v37  ;;  %v2291_v15 = vld [vmem:[#allocation10 + $0x1c50] sm:$0xff] }
 0x4ea   :  { %8812 = vmatpush1.bf16.msra.mxu1 %v13869_v27  ;;  %8485 = vmatprep.subr.bf16.mxu0 %v13876_v17  ;;  %v13917_v27 = vcombine.low %v2244_v46, %v2248_v47  ;;  %v13924_v17 = vcombine.high %v2251_v44, %v2255_v35  ;;  %v2295_v37 = vld [vmem:[#allocation10 + $0x1c70] sm:$0xff]  ;;  %v13955_v46 = vcombine.low %v2283_v8, %v2287_v13  ;;  %v2292_v47 = vld [vmem:[#allocation10 + $0x1c58] sm:$0xff] }
 0x4eb   :  { %8813 = vmatprep.subr.bf16.mxu1 %v13878_v4  ;;  %v13926_v4 = vcombine.high %v2252_v45, %v2256_v21 }
 0x4ed   :  { %8486 = vmatpush1.bf16.msra.mxu0 %v13875_v43  ;;  %v13923_v43 = vcombine.low %v2251_v44, %v2255_v35  ;;  %v2303_v44 = vld [vmem:[#allocation10 + $0x1cb0] sm:$0xff] }
 0x4ee   :  { %8814 = vmatpush1.bf16.msra.mxu1 %v13877_v32  ;;  %8487 = vmatprep.subr.bf16.mxu0 %v13884_v34  ;;  %v13925_v32 = vcombine.low %v2252_v45, %v2256_v21  ;;  %v13932_v34 = vcombine.high %v2259_v59, %v2263_v28  ;;  %v2300_v45 = vld [vmem:[#allocation10 + $0x1c98] sm:$0xff] }
 0x4ef   :  { %8815 = vmatprep.subr.bf16.mxu1 %v13886_v38  ;;  %v13934_v38 = vcombine.high %v2260_v29, %v2264_v31  ;;  %v2304_v21 = vld [vmem:[#allocation10 + $0x1cb8] sm:$0xff] }
 0x4f1   :  { %8488 = vmatpush1.bf16.msra.mxu0 %v13883_v54  ;;  %v13931_v54 = vcombine.low %v2259_v59, %v2263_v28  ;;  %v2307_v59 = vld [vmem:[#allocation10 + $0x1cd0] sm:$0xff] }
 0x4f2   :  { %8816 = vmatpush1.bf16.msra.mxu1 %v13885_v52  ;;  %8489 = vmatprep.subr.bf16.mxu0 %v13892_v36  ;;  %v13933_v52 = vcombine.low %v2260_v29, %v2264_v31  ;;  %v13940_v36 = vcombine.high %v2267_v53, %v2271_v39  ;;  %v2311_v28 = vld [vmem:[#allocation10 + $0x1cf0] sm:$0xff]  ;;  %v2308_v29 = vld [vmem:[#allocation10 + $0x1cd8] sm:$0xff] }
 0x4f3   :  { %8817 = vmatprep.subr.bf16.mxu1 %v13894_v55  ;;  %v13942_v55 = vcombine.high %v2268_v42, %v2272_v51  ;;  %v2312_v31 = vld [vmem:[#allocation10 + $0x1cf8] sm:$0xff] }
 0x4f5   :  { %8490 = vmatpush1.bf16.msra.mxu0 %v13891_v2  ;;  %v13939_v2 = vcombine.low %v2267_v53, %v2271_v39  ;;  %v2319_v53 = vld [vmem:[#allocation10 + $0x1d30] sm:$0xff]  ;;  %v2316_v39 = vld [vmem:[#allocation10 + $0x1d18] sm:$0xff] }
 0x4f6   :  { %8818 = vmatpush1.bf16.msra.mxu1 %v13893_v61  ;;  %8491 = vmatprep.subr.bf16.mxu0 %v13900_v25  ;;  %v13941_v61 = vcombine.low %v2268_v42, %v2272_v51  ;;  %v13948_v25 = vcombine.high %v2275_v57, %v2279_v58  ;;  %v2320_v42 = vld [vmem:[#allocation10 + $0x1d38] sm:$0xff]  ;;  %v13981_v51 = vcombine.low %v2308_v29, %v2312_v31 }
 0x4f7   :  { %8819 = vmatprep.subr.bf16.mxu1 %v13902_v3  ;;  %v13950_v3 = vcombine.high %v2276_v62, %v2280_v63 }
 0x4f9   :  { %8492 = vmatpush1.bf16.msra.mxu0 %v13899_v1  ;;  %v13947_v1 = vcombine.low %v2275_v57, %v2279_v58  ;;  %v2324_v57 = vld [vmem:[#allocation10 + $0x1d58] sm:$0xff] }
 0x4fa   :  { %8820 = vmatpush1.bf16.msra.mxu1 %v13901_v16  ;;  %8493 = vmatprep.subr.bf16.mxu0 %v13908_v49  ;;  %v13949_v16 = vcombine.low %v2276_v62, %v2280_v63  ;;  %v13956_v49 = vcombine.high %v2283_v8, %v2287_v13  ;;  %v2328_v58 = vld [vmem:[#allocation10 + $0x1d78] sm:$0xff]  ;;  %v13989_v63 = vcombine.low %v2316_v39, %v2320_v42 }
 0x4fb   :  { %8821 = vmatprep.subr.bf16.mxu1 %v13910_v33  ;;  %v13958_v33 = vcombine.high %v2284_v9, %v2288_v11  ;;  %v2332_v8 = vld [vmem:[#allocation10 + $0x1d98] sm:$0xff] }
 0x4fc   :  { %v2336_v13 = vld [vmem:[#allocation10 + $0x1db8] sm:$0xff] }
 0x4fd   :  { %8494 = vmatpush1.bf16.msra.mxu0 %v13907_v18  ;;  %v2296_v18 = vld [vmem:[#allocation10 + $0x1c78] sm:$0xff] }
 0x4fe   :  { %8822 = vmatpush1.bf16.msra.mxu1 %v13909_v50  ;;  %8495 = vmatprep.subr.bf16.mxu0 %v13916_v6  ;;  %v13957_v50 = vcombine.low %v2284_v9, %v2288_v11  ;;  %v13964_v6 = vcombine.high %v2291_v15, %v2295_v37  ;;  %v13966_v35 = vcombine.high %v2292_v47, %v2296_v18 }
 0x4ff   :  { %8823 = vmatprep.subr.bf16.mxu1 %v13918_v5  ;;  %v2299_v5 = vld [vmem:[#allocation10 + $0x1c90] sm:$0xff]  ;;  %v13997_v11 = vcombine.low %v2324_v57, %v2328_v58 }
 0x501   :  { %8496 = vmatpush1.bf16.msra.mxu0 %v13915_v22  ;;  %v13963_v22 = vcombine.low %v2291_v15, %v2295_v37  ;;  %v2340_v15 = vld [vmem:[#allocation10 + $0x1dd8] sm:$0xff] }
 0x502   :  { %8824 = vmatpush1.bf16.msra.mxu1 %v13917_v27  ;;  %8497 = vmatprep.subr.bf16.mxu0 %v13924_v17  ;;  %v13965_v27 = vcombine.low %v2292_v47, %v2296_v18  ;;  %v13972_v17 = vcombine.high %v2299_v5, %v2303_v44  ;;  %v2344_v37 = vld [vmem:[#allocation10 + $0x1df8] sm:$0xff]  ;;  %v14005_v47 = vcombine.low %v2332_v8, %v2336_v13 }
 0x503   :  { %8825 = vmatprep.subr.bf16.mxu1 %v13926_v4  ;;  %v13974_v4 = vcombine.high %v2300_v45, %v2304_v21 }
 0x505   :  { %8498 = vmatpush1.bf16.msra.mxu0 %v13923_v43  ;;  %v13971_v43 = vcombine.low %v2299_v5, %v2303_v44  ;;  %v2351_v5 = vld [vmem:[#allocation10 + $0x1e30] sm:$0xff]  ;;  %v2348_v44 = vld [vmem:[#allocation10 + $0x1e18] sm:$0xff] }
 0x506   :  { %8826 = vmatpush1.bf16.msra.mxu1 %v13925_v32  ;;  %8499 = vmatprep.subr.bf16.mxu0 %v13932_v34  ;;  %v13980_v32 = vcombine.high %v2307_v59, %v2311_v28  ;;  %v13982_v34 = vcombine.high %v2308_v29, %v2312_v31 }
 0x507   :  { %8827 = vmatprep.subr.bf16.mxu1 %v13934_v38  ;;  %v2315_v38 = vld [vmem:[#allocation10 + $0x1d10] sm:$0xff] }
 0x508   :  { %v13987_v62 = vcombine.low %v2315_v38, %v2319_v53 }
 0x509   :  { %8500 = vmatpush1.bf16.msra.mxu0 %v13931_v54  ;;  %v13988_v54 = vcombine.high %v2315_v38, %v2319_v53  ;;  %v2364_v38 = vld [vmem:[#allocation10 + $0x1e98] sm:$0xff] }
 0x50a   :  { %8828 = vmatpush1.bf16.msra.mxu1 %v13933_v52  ;;  %8501 = vmatprep.subr.bf16.mxu0 %v13940_v36  ;;  %v13990_v52 = vcombine.high %v2316_v39, %v2320_v42  ;;  %v2323_v36 = vld [vmem:[#allocation10 + $0x1d50] sm:$0xff]  ;;  %v2368_v53 = vld [vmem:[#allocation10 + $0x1eb8] sm:$0xff] }
 0x50b   :  { %8829 = vmatprep.subr.bf16.mxu1 %v13942_v55  ;;  %v2327_v55 = vld [vmem:[#allocation10 + $0x1d70] sm:$0xff] }
 0x50c   :  { %v13995_v9 = vcombine.low %v2323_v36, %v2327_v55 }
 0x50d   :  { %8502 = vmatpush1.bf16.msra.mxu0 %v13939_v2  ;;  %v13996_v2 = vcombine.high %v2323_v36, %v2327_v55  ;;  %v2372_v36 = vld [vmem:[#allocation10 + $0x1ed8] sm:$0xff] }
 0x50e   :  { %8830 = vmatpush1.bf16.msra.mxu1 %v13941_v61  ;;  %8503 = vmatprep.subr.bf16.mxu0 %v13948_v25  ;;  %v13998_v61 = vcombine.high %v2324_v57, %v2328_v58  ;;  %v2331_v25 = vld [vmem:[#allocation10 + $0x1d90] sm:$0xff]  ;;  %v2376_v55 = vld [vmem:[#allocation10 + $0x1ef8] sm:$0xff]  ;;  %v14037_v58 = vcombine.low %v2364_v38, %v2368_v53 }
 0x50f   :  { %8831 = vmatprep.subr.bf16.mxu1 %v13950_v3  ;;  %v2335_v3 = vld [vmem:[#allocation10 + $0x1db0] sm:$0xff] }
 0x511   :  { %8504 = vmatpush1.bf16.msra.mxu0 %v13947_v1  ;;  %v14004_v1 = vcombine.high %v2331_v25, %v2335_v3 }
 0x512   :  { %8832 = vmatpush1.bf16.msra.mxu1 %v13949_v16  ;;  %8514 = vmatprep.subr.bf16.mxu0 %v13956_v49  ;;  %v14006_v16 = vcombine.high %v2332_v8, %v2336_v13  ;;  %v2339_v49 = vld [vmem:[#allocation10 + $0x1dd0] sm:$0xff]  ;;  %v14045_v13 = vcombine.low %v2372_v36, %v2376_v55 }
 0x513   :  { %8842 = vmatprep.subr.bf16.mxu1 %v13958_v33  ;;  %v2343_v33 = vld [vmem:[#allocation10 + $0x1df0] sm:$0xff] }
 0x514   :  { %8506 = vmatmul.mubr.bf16.vlgmr.msra.gmra.mrb[20].mxu0 %v15349_v20  ;;  %v14012_v18 = vcombine.high %v2339_v49, %v2343_v33 }
 0x515   :  { %8834 = vmatmul.mubr.bf16.vlgmr.msra.gmra.mrb[20].mxu1 %v15349_v20  ;;  %8515 = vmatpush1.bf16.msra.mxu0 %v13955_v46  ;;  %v13973_v20 = vcombine.low %v2300_v45, %v2304_v21  ;;  %v14003_v46 = vcombine.low %v2331_v25, %v2335_v3  ;;  %v14011_v45 = vcombine.low %v2339_v49, %v2343_v33  ;;  %v2380_v25 = vld [vmem:[#allocation10 + $0x1f18] sm:$0xff] }
 0x516   :  { %8546 = vmatprep.mubr.bf16.mxu0 %v15351_v10  ;;  %8843 = vmatpush1.bf16.msra.mxu1 %v13957_v50  ;;  %v14014_v50 = vcombine.high %v2340_v15, %v2344_v37  ;;  %v14013_v21 = vcombine.low %v2340_v15, %v2344_v37  ;;  %v2384_v3 = vld [vmem:[#allocation10 + $0x1f38] sm:$0xff]  ;;  %v15402_v37 = vld [vmem:[#allocation12] sm:$0xff] }
 0x517   :  { %8874 = vmatprep.mubr.bf16.mxu1 %v15351_v10  ;;  %8516 = vmatprep.subr.bf16.mxu0 %v13964_v6  ;;  %v13979_v10 = vcombine.low %v2307_v59, %v2311_v28  ;;  %v2347_v6 = vld [vmem:[#allocation10 + $0x1e10] sm:$0xff]  ;;  %v2356_v59 = vld [vmem:[#allocation10 + $0x1e58] sm:$0xff] }
 0x518   :  { %8844 = vmatprep.subr.bf16.mxu1 %v13966_v35  ;;  %v2352_v35 = vld [vmem:[#allocation10 + $0x1e38] sm:$0xff]  ;;  %v14019_v29 = vcombine.low %v2347_v6, %v2351_v5 }
 0x519   :  { %8517 = vmatpush1.bf16.msra.mxu0 %v13963_v22  ;;  %v14020_v22 = vcombine.high %v2347_v6, %v2351_v5  ;;  %v2360_v28 = vld [vmem:[#allocation10 + $0x1e78] sm:$0xff]  ;;  %v14021_v31 = vcombine.low %v2348_v44, %v2352_v35  ;;  %v2399_v6 = vld [vmem:[#allocation10 + $0x1fb0] sm:$0xff] }
 0x51a   :  { %8845 = vmatpush1.bf16.msra.mxu1 %v13965_v27  ;;  %8518 = vmatprep.subr.bf16.mxu0 %v13972_v17  ;;  %v14022_v27 = vcombine.high %v2348_v44, %v2352_v35  ;;  %v2355_v17 = vld [vmem:[#allocation10 + $0x1e50] sm:$0xff]  ;;  %v14029_v42 = vcombine.low %v2356_v59, %v2360_v28  ;;  %v2388_v49 = vld [vmem:[#allocation10 + $0x1f58] sm:$0xff]  ;;  %v2418_v35 = vrot.slane %v15402_v37, %v15193_v26 }
 0x51b   :  { %8846 = vmatprep.subr.bf16.mxu1 %v13974_v4  ;;  %v2359_v4 = vld [vmem:[#allocation10 + $0x1e70] sm:$0xff]  ;;  %v2392_v33 = vld [vmem:[#allocation10 + $0x1f78] sm:$0xff] }
 0x51c   :  { %v14027_v39 = vcombine.low %v2355_v17, %v2359_v4  ;;  %v2396_v5 = vld [vmem:[#allocation10 + $0x1f98] sm:$0xff] }
 0x51d   :  { %8519 = vmatpush1.bf16.msra.mxu0 %v13971_v43  ;;  %v14028_v43 = vcombine.high %v2355_v17, %v2359_v4  ;;  %v2400_v44 = vld [vmem:[#allocation10 + $0x1fb8] sm:$0xff]  ;;  %v2403_v17 = vld [vmem:[#allocation10 + $0x1fd0] sm:$0xff] }
 0x51e   :  { %8847 = vmatpush1.bf16.msra.mxu1 %v13973_v20  ;;  %8520 = vmatprep.subr.bf16.mxu0 %v13980_v32  ;;  %v14030_v20 = vcombine.high %v2356_v59, %v2360_v28  ;;  %v2363_v32 = vld [vmem:[#allocation10 + $0x1e90] sm:$0xff]  ;;  %v2404_v59 = vld [vmem:[#allocation10 + $0x1fd8] sm:$0xff] }
 0x51f   :  { %8848 = vmatprep.subr.bf16.mxu1 %v13982_v34  ;;  %v2367_v34 = vld [vmem:[#allocation10 + $0x1eb0] sm:$0xff]  ;;  %v2408_v28 = vld [vmem:[#allocation10 + $0x1ff8] sm:$0xff] }
 0x520   :  { %v14035_v57 = vcombine.low %v2363_v32, %v2367_v34  ;;  %v2407_v4 = vld [vmem:[#allocation10 + $0x1ff0] sm:$0xff] }
 0x521   :  { %8521 = vmatpush1.bf16.msra.mxu0 %v13979_v10  ;;  %v14036_v10 = vcombine.high %v2363_v32, %v2367_v34  ;;  %v14078_v32 = vcombine.high %v2404_v59, %v2408_v28  ;;  %v8915_v34 = vld [vmem:[#allocation13] sm:$0xff] }
 0x522   :  { %8849 = vmatpush1.bf16.msra.mxu1 %v13981_v51  ;;  %8522 = vmatprep.subr.bf16.mxu0 %v13988_v54  ;;  %v14038_v51 = vcombine.high %v2364_v38, %v2368_v53  ;;  %v2371_v54 = vld [vmem:[#allocation10 + $0x1ed0] sm:$0xff]  ;;  %v8919_v38 = vld [vmem:[#allocation13 + $0x20] sm:$0xff] }
 0x523   :  { %8850 = vmatprep.subr.bf16.mxu1 %v13990_v52  ;;  %v2375_v52 = vld [vmem:[#allocation10 + $0x1ef0] sm:$0xff] }
 0x524   :  { %v14043_v8 = vcombine.low %v2371_v54, %v2375_v52  ;;  %v8916_v53 = vld [vmem:[#allocation13 + $0x8] sm:$0xff] }
 0x525   :  { %8523 = vmatpush1.bf16.msra.mxu0 %v13987_v62  ;;  %v14044_v62 = vcombine.high %v2371_v54, %v2375_v52  ;;  %v8923_v52 = vld [vmem:[#allocation13 + $0x40] sm:$0xff] }
 0x526   :  { %8851 = vmatpush1.bf16.msra.mxu1 %v13989_v63  ;;  %8524 = vmatprep.subr.bf16.mxu0 %v13996_v2  ;;  %v14046_v63 = vcombine.high %v2372_v36, %v2376_v55  ;;  %v2379_v2 = vld [vmem:[#allocation10 + $0x1f10] sm:$0xff]  ;;  %v8927_v36 = vld [vmem:[#allocation13 + $0x60] sm:$0xff] }
 0x527   :  { %8852 = vmatprep.subr.bf16.mxu1 %v13998_v61  ;;  %v2383_v61 = vld [vmem:[#allocation10 + $0x1f30] sm:$0xff] }
 0x528   :  { %v14051_v15 = vcombine.low %v2379_v2, %v2383_v61 }
 0x529   :  { %8525 = vmatpush1.bf16.msra.mxu0 %v13995_v9  ;;  %v14052_v9 = vcombine.high %v2379_v2, %v2383_v61  ;;  %v14088_v2 = vcombine.high %v8923_v52, %v8927_v36  ;;  %v8931_v61 = vld [vmem:[#allocation13 + $0x80] sm:$0xff] }
 0x52a   :  { %8853 = vmatpush1.bf16.msra.mxu1 %v13997_v11  ;;  %8526 = vmatprep.subr.bf16.mxu0 %v14004_v1  ;;  %v14054_v11 = vcombine.high %v2380_v25, %v2384_v3  ;;  %v2387_v1 = vld [vmem:[#allocation10 + $0x1f50] sm:$0xff] }
 0x52b   :  { %8854 = vmatprep.subr.bf16.mxu1 %v14006_v16  ;;  %v2391_v16 = vld [vmem:[#allocation10 + $0x1f70] sm:$0xff] }
 0x52d   :  { %8527 = vmatpush1.bf16.msra.mxu0 %v14003_v46  ;;  %v14053_v46 = vcombine.low %v2380_v25, %v2384_v3  ;;  %v8935_v25 = vld [vmem:[#allocation13 + $0xa0] sm:$0xff] }
 0x52e   :  { %8855 = vmatpush1.bf16.msra.mxu1 %v14005_v47  ;;  %8528 = vmatprep.subr.bf16.mxu0 %v14012_v18  ;;  %v14060_v47 = vcombine.high %v2387_v1, %v2391_v16  ;;  %v14062_v18 = vcombine.high %v2388_v49, %v2392_v33 }
 0x52f   :  { %8856 = vmatprep.subr.bf16.mxu1 %v14014_v50  ;;  %v2395_v50 = vld [vmem:[#allocation10 + $0x1f90] sm:$0xff] }
 0x531   :  { %8529 = vmatpush1.bf16.msra.mxu0 %v14011_v45  ;;  %v14059_v45 = vcombine.low %v2387_v1, %v2391_v16  ;;  %v14096_v16 = vcombine.high %v8931_v61, %v8935_v25 }
 0x532   :  { %8857 = vmatpush1.bf16.msra.mxu1 %v14013_v21  ;;  %8530 = vmatprep.subr.bf16.mxu0 %v14020_v22  ;;  %v14061_v21 = vcombine.low %v2388_v49, %v2392_v33  ;;  %v14068_v22 = vcombine.high %v2395_v50, %v2399_v6  ;;  %v8939_v33 = vld [vmem:[#allocation13 + $0xc0] sm:$0xff] }
 0x533   :  { %8858 = vmatprep.subr.bf16.mxu1 %v14022_v27  ;;  %v14070_v27 = vcombine.high %v2396_v5, %v2400_v44 }
 0x535   :  { %8531 = vmatpush1.bf16.msra.mxu0 %v14019_v29  ;;  %v14592_v29 = vadd.f32 %v15382_v19, %v2418_v35  ;;  %v14080_v19 = vcombine.high %v8915_v34, %v8919_v38  ;;  %v8948_v35 = vld [vmem:[#allocation13 + $0x108] sm:$0xff] }
 0x536   :  { %8859 = vmatpush1.bf16.msra.mxu1 %v14021_v31  ;;  %8532 = vmatprep.subr.bf16.mxu0 %v14028_v43  ;;  %v14067_v31 = vcombine.low %v2395_v50, %v2399_v6  ;;  %v14069_v43 = vcombine.low %v2396_v5, %v2400_v44  ;;  %v8947_v5 = vld [vmem:[#allocation13 + $0x100] sm:$0xff] }
 0x537   :  { %8860 = vmatprep.subr.bf16.mxu1 %v14030_v20  ;;  %v14076_v20 = vcombine.high %v2403_v17, %v2407_v4  ;;  %vm8884_vm0 = vcmp.gt.f32.partialorder %v14592_v29, 0.0  ;;  %v8951_v44 = vld [vmem:[#allocation13 + $0x120] sm:$0xff] }
 0x539   :  { %8533 = vmatpush1.bf16.msra.mxu0 %v14027_v39  ;;  %v8920_v39 = vld [vmem:[#allocation13 + $0x28] sm:$0xff] }
 0x53a   :  { %8861 = vmatpush1.bf16.msra.mxu1 %v14029_v42  ;;  %8534 = vmatprep.subr.bf16.mxu0 %v14036_v10  ;;  %v8892_v42 = vmul.f32 0.2, %v14592_v29  ;;  %v14075_v10 = vcombine.low %v2403_v17, %v2407_v4  ;;  %v14082_v54 = vcombine.high %v8916_v53, %v8920_v39  ;;  %v8955_v4 = vld [vmem:[#allocation13 + $0x140] sm:$0xff] }
 0x53b   :  { %8862 = vmatprep.subr.bf16.mxu1 %v14038_v51  ;;  %v14077_v51 = vcombine.low %v2404_v59, %v2408_v28  ;;  %v8959_v59 = vld [vmem:[#allocation13 + $0x160] sm:$0xff]  ;;  %v8956_v28 = vld [vmem:[#allocation13 + $0x148] sm:$0xff] }
 0x53c   :  { %v8900_v55 = vsel %vm8884_vm0, %v14592_v29, %v8892_v42  ;;  %v8960_v29 = vld [vmem:[#allocation13 + $0x168] sm:$0xff]  ;;  %v14119_v42 = vcombine.low %v8955_v4, %v8959_v59  ;;  %vm12886_vm0 = vcmask 1040384  }
 0x53d   :  { %8535 = vmatpush1.bf16.msra.mxu0 %v14035_v57  ;;  %v14079_v57 = vcombine.low %v8915_v34, %v8919_v38  ;;  %v15407_v3 = vpack.c.bf16 %v8900_v55, %v8900_v55  ;;  %v8963_v34 = vld [vmem:[#allocation13 + $0x180] sm:$0xff]  ;;  %v8976_v55 = vld [vmem:[#allocation13 + $0x1e8] sm:$0xff] }
 0x53e   :  { %8863 = vmatpush1.bf16.msra.mxu1 %v14037_v58  ;;  %8536 = vmatprep.subr.bf16.mxu0 %v14044_v62  ;;  %v8924_v58 = vld [vmem:[#allocation13 + $0x48] sm:$0xff]  ;;  %v8967_v38 = vld [vmem:[#allocation13 + $0x1a0] sm:$0xff] }
 0x53f   :  { %8864 = vmatprep.subr.bf16.mxu1 %v14046_v63  ;;  %v8928_v62 = vld [vmem:[#allocation13 + $0x68] sm:$0xff]  ;;  %v14081_v63 = vcombine.low %v8916_v53, %v8920_v39 }
 0x540   :  { %v14089_v1 = vcombine.low %v8924_v58, %v8928_v62  ;;  %v8964_v53 = vld [vmem:[#allocation13 + $0x188] sm:$0xff] }
 0x541   :  { %8537 = vmatpush1.bf16.msra.mxu0 %v14043_v8  ;;  %v14090_v8 = vcombine.high %v8924_v58, %v8928_v62  ;;  %v8968_v39 = vld [vmem:[#allocation13 + $0x1a8] sm:$0xff] }
 0x542   :  { %8865 = vmatpush1.bf16.msra.mxu1 %v14045_v13  ;;  %8538 = vmatprep.subr.bf16.mxu0 %v14052_v9  ;;  %v8932_v13 = vld [vmem:[#allocation13 + $0x88] sm:$0xff]  ;;  %v14129_v58 = vcombine.low %v8964_v53, %v8968_v39 }
 0x543   :  { %8866 = vmatprep.subr.bf16.mxu1 %v14054_v11  ;;  %v8936_v9 = vld [vmem:[#allocation13 + $0xa8] sm:$0xff]  ;;  %v14087_v11 = vcombine.low %v8923_v52, %v8927_v36  ;;  %v8975_v52 = vld [vmem:[#allocation13 + $0x1e0] sm:$0xff] }
 0x544   :  { %v14098_v49 = vcombine.high %v8932_v13, %v8936_v9  ;;  %v8972_v36 = vld [vmem:[#allocation13 + $0x1c8] sm:$0xff] }
 0x545   :  { %8539 = vmatpush1.bf16.msra.mxu0 %v14051_v15  ;;  %v8943_v15 = vld [vmem:[#allocation13 + $0xe0] sm:$0xff] }
 0x546   :  { %8867 = vmatpush1.bf16.msra.mxu1 %v14053_v46  ;;  %8540 = vmatprep.subr.bf16.mxu0 %v14060_v47  ;;  %v8940_v46 = vld [vmem:[#allocation13 + $0xc8] sm:$0xff]  ;;  %v14104_v50 = vcombine.high %v8939_v33, %v8943_v15 }
 0x547   :  { %8868 = vmatprep.subr.bf16.mxu1 %v14062_v18  ;;  %v8944_v47 = vld [vmem:[#allocation13 + $0xe8] sm:$0xff]  ;;  %v14095_v18 = vcombine.low %v8931_v61, %v8935_v25  ;;  %v8983_v61 = vld [vmem:[#allocation13 + $0x220] sm:$0xff] }
 0x548   :  { %v14106_v6 = vcombine.high %v8940_v46, %v8944_v47  ;;  %v8980_v25 = vld [vmem:[#allocation13 + $0x208] sm:$0xff] }
 0x549   :  { %8541 = vmatpush1.bf16.msra.mxu0 %v14059_v45  ;;  %v8952_v45 = vld [vmem:[#allocation13 + $0x128] sm:$0xff] }
 0x54a   :  { %8869 = vmatpush1.bf16.msra.mxu1 %v14061_v21  ;;  %8542 = vmatprep.subr.bf16.mxu0 %v14068_v22  ;;  %v14103_v21 = vcombine.low %v8939_v33, %v8943_v15  ;;  %v14105_v22 = vcombine.low %v8940_v46, %v8944_v47  ;;  %v14114_v17 = vcombine.high %v8948_v35, %v8952_v45  ;;  %v8988_v33 = vld [vmem:[#allocation13 + $0x248] sm:$0xff] }
 0x54b   :  { %8870 = vmatprep.subr.bf16.mxu1 %v14070_v27  ;;  %v14112_v27 = vcombine.high %v8947_v5, %v8951_v44  ;;  %v8992_v15 = vld [vmem:[#allocation13 + $0x268] sm:$0xff] }
 0x54d   :  { %8543 = vmatpush1.bf16.msra.mxu0 %v14067_v31  ;;  %v14111_v31 = vcombine.low %v8947_v5, %v8951_v44  ;;  %v8996_v5 = vld [vmem:[#allocation13 + $0x288] sm:$0xff] }
 0x54e   :  { %8871 = vmatpush1.bf16.msra.mxu1 %v14069_v43  ;;  %8544 = vmatprep.subr.bf16.mxu0 %v14076_v20  ;;  %v14113_v43 = vcombine.low %v8948_v35, %v8952_v45  ;;  %v14120_v20 = vcombine.high %v8955_v4, %v8959_v59  ;;  %v9000_v44 = vld [vmem:[#allocation13 + $0x2a8] sm:$0xff]  ;;  %v14153_v45 = vcombine.low %v8988_v33, %v8992_v15 }
 0x54f   :  { %8872 = vmatprep.subr.bf16.mxu1 %v14078_v32  ;;  %v14122_v32 = vcombine.high %v8956_v28, %v8960_v29  ;;  %v9004_v4 = vld [vmem:[#allocation13 + $0x2c8] sm:$0xff] }
 0x550   :  { %v9008_v59 = vld [vmem:[#allocation13 + $0x2e8] sm:$0xff] }
 0x551   :  { %8545 = vmatpush1.bf16.msra.mxu0 %v14075_v10  ;;  %v14121_v10 = vcombine.low %v8956_v28, %v8960_v29  ;;  %v14161_v29 = vcombine.low %v8996_v5, %v9000_v44 }
 0x552   :  { %8873 = vmatpush1.bf16.msra.mxu1 %v14077_v51  ;;  %12029 = vmatprep.subr.bf16.mxu0 %v14080_v19  ;;  %v14128_v51 = vcombine.high %v8963_v34, %v8967_v38  ;;  %v14130_v19 = vcombine.high %v8964_v53, %v8968_v39  ;;  %v14169_v39 = vcombine.low %v9004_v4, %v9008_v59 }
 0x553   :  { %12193 = vmatprep.subr.bf16.mxu1 %v14082_v54  ;;  %v8971_v54 = vld [vmem:[#allocation13 + $0x1c0] sm:$0xff] }
 0x554   :  { %8547 = vmatmul.mubr.bf16.vlgmr.msra.gmra.mrb[20].mxu0 %v15360_v48  ;;  %v14136_v62 = vcombine.high %v8971_v54, %v8975_v52 }
 0x555   :  { %8875 = vmatmul.mubr.bf16.vlgmr.msra.gmra.mrb[20].mxu1 %v15360_v48  ;;  %12030 = vmatpush1.bf16.msra.mxu0 %v14079_v57  ;;  %v14097_v48 = vcombine.low %v8932_v13, %v8936_v9  ;;  %v14127_v57 = vcombine.low %v8963_v34, %v8967_v38  ;;  %v14135_v13 = vcombine.low %v8971_v54, %v8975_v52  ;;  %v9012_v34 = vld [vmem:[#allocation13 + $0x308] sm:$0xff] }
 0x556   :  { %12061 = vmatprep.mubr.bf16.mxu0 %v15407_v3  ;;  %12194 = vmatpush1.bf16.msra.mxu1 %v14081_v63  ;;  %v14138_v63 = vcombine.high %v8972_v36, %v8976_v55  ;;  %v14137_v9 = vcombine.low %v8972_v36, %v8976_v55  ;;  %v9016_v38 = vld [vmem:[#allocation13 + $0x328] sm:$0xff] }
 0x557   :  { %12225 = vmatprep.mubr.bf16.mxu1 %v15407_v3  ;;  %12031 = vmatprep.subr.bf16.mxu0 %v14088_v2  ;;  %v8979_v2 = vld [vmem:[#allocation13 + $0x200] sm:$0xff]  ;;  %v9020_v54 = vld [vmem:[#allocation13 + $0x348] sm:$0xff]  ;;  %v14177_v55 = vcombine.low %v9012_v34, %v9016_v38 }
 0x558   :  { %12195 = vmatprep.subr.bf16.mxu1 %v14090_v8  ;;  %v8984_v8 = vld [vmem:[#allocation13 + $0x228] sm:$0xff]  ;;  %v14143_v46 = vcombine.low %v8979_v2, %v8983_v61 }
 0x559   :  { %12032 = vmatpush1.bf16.msra.mxu0 %v14087_v11  ;;  %v14144_v11 = vcombine.high %v8979_v2, %v8983_v61  ;;  %v14145_v47 = vcombine.low %v8980_v25, %v8984_v8  ;;  %v9024_v52 = vld [vmem:[#allocation13 + $0x368] sm:$0xff]  ;;  %v9031_v2 = vld [vmem:[#allocation13 + $0x3a0] sm:$0xff] }
 0x55a   :  { %12196 = vmatpush1.bf16.msra.mxu1 %v14089_v1  ;;  %12033 = vmatprep.subr.bf16.mxu0 %v14096_v16  ;;  %v14146_v1 = vcombine.high %v8980_v25, %v8984_v8  ;;  %v8987_v16 = vld [vmem:[#allocation13 + $0x240] sm:$0xff]  ;;  %v9028_v61 = vld [vmem:[#allocation13 + $0x388] sm:$0xff]  ;;  %v2426_v8 = vrot.slane %v15402_v37, %v15200_v30 }
 0x55b   :  { %12197 = vmatprep.subr.bf16.mxu1 %v14098_v49  ;;  %v8991_v49 = vld [vmem:[#allocation13 + $0x260] sm:$0xff]  ;;  %v9032_v25 = vld [vmem:[#allocation13 + $0x3a8] sm:$0xff] }
 0x55c   :  { %v14151_v35 = vcombine.low %v8987_v16, %v8991_v49 }
 0x55d   :  { %12034 = vmatpush1.bf16.msra.mxu0 %v14095_v18  ;;  %v14152_v18 = vcombine.high %v8987_v16, %v8991_v49  ;;  %v14194_v16 = vcombine.high %v9028_v61, %v9032_v25  ;;  %v9035_v49 = vld [vmem:[#allocation13 + $0x3c0] sm:$0xff] }
 0x55e   :  { %12198 = vmatpush1.bf16.msra.mxu1 %v14097_v48  ;;  %12035 = vmatprep.subr.bf16.mxu0 %v14104_v50  ;;  %v14154_v48 = vcombine.high %v8988_v33, %v8992_v15  ;;  %v8995_v50 = vld [vmem:[#allocation13 + $0x280] sm:$0xff]  ;;  %v9036_v15 = vld [vmem:[#allocation13 + $0x3c8] sm:$0xff] }
 0x55f   :  { %12199 = vmatprep.subr.bf16.mxu1 %v14106_v6  ;;  %v8999_v6 = vld [vmem:[#allocation13 + $0x2a0] sm:$0xff] }
 0x560   :  { %v14159_v28 = vcombine.low %v8995_v50, %v8999_v6  ;;  %v9039_v33 = vld [vmem:[#allocation13 + $0x3e0] sm:$0xff] }
 0x561   :  { %12036 = vmatpush1.bf16.msra.mxu0 %v14103_v21  ;;  %v14160_v21 = vcombine.high %v8995_v50, %v8999_v6  ;;  %v14200_v50 = vcombine.high %v9035_v49, %v9039_v33 }
 0x562   :  { %12200 = vmatpush1.bf16.msra.mxu1 %v14105_v22  ;;  %12037 = vmatprep.subr.bf16.mxu0 %v14112_v27  ;;  %v14162_v22 = vcombine.high %v8996_v5, %v9000_v44  ;;  %v9003_v27 = vld [vmem:[#allocation13 + $0x2c0] sm:$0xff] }
 0x563   :  { %12201 = vmatprep.subr.bf16.mxu1 %v14114_v17  ;;  %v9007_v17 = vld [vmem:[#allocation13 + $0x2e0] sm:$0xff] }
 0x564   :  { %v14167_v53 = vcombine.low %v9003_v27, %v9007_v17  ;;  %v9043_v44 = vld [vmem:[#allocation13 + $0x400] sm:$0xff] }
 0x565   :  { %12038 = vmatpush1.bf16.msra.mxu0 %v14111_v31  ;;  %v14168_v31 = vcombine.high %v9003_v27, %v9007_v17 }
 0x566   :  { %12202 = vmatpush1.bf16.msra.mxu1 %v14113_v43  ;;  %12039 = vmatprep.subr.bf16.mxu0 %v14120_v20  ;;  %v14170_v43 = vcombine.high %v9004_v4, %v9008_v59  ;;  %v9011_v20 = vld [vmem:[#allocation13 + $0x300] sm:$0xff] }
 0x567   :  { %12203 = vmatprep.subr.bf16.mxu1 %v14122_v32  ;;  %v9015_v32 = vld [vmem:[#allocation13 + $0x320] sm:$0xff] }
 0x568   :  { %v14175_v36 = vcombine.low %v9011_v20, %v9015_v32  ;;  %v9051_v59 = vld [vmem:[#allocation13 + $0x440] sm:$0xff] }
 0x569   :  { %12040 = vmatpush1.bf16.msra.mxu0 %v14119_v42  ;;  %v14176_v42 = vcombine.high %v9011_v20, %v9015_v32  ;;  %v9056_v20 = vld [vmem:[#allocation13 + $0x468] sm:$0xff] }
 0x56a   :  { %12204 = vmatpush1.bf16.msra.mxu1 %v14121_v10  ;;  %12041 = vmatprep.subr.bf16.mxu0 %v14128_v51  ;;  %v14178_v10 = vcombine.high %v9012_v34, %v9016_v38  ;;  %v9019_v51 = vld [vmem:[#allocation13 + $0x340] sm:$0xff] }
 0x56b   :  { %12205 = vmatprep.subr.bf16.mxu1 %v14130_v19  ;;  %v9023_v19 = vld [vmem:[#allocation13 + $0x360] sm:$0xff] }
 0x56d   :  { %12042 = vmatpush1.bf16.msra.mxu0 %v14127_v57  ;;  %v14184_v57 = vcombine.high %v9019_v51, %v9023_v19 }
 0x56e   :  { %12206 = vmatpush1.bf16.msra.mxu1 %v14129_v58  ;;  %12043 = vmatprep.subr.bf16.mxu0 %v14136_v62  ;;  %v2414_v58 = vrot.slane %v15402_v37, %v15188_v24  ;;  %v14186_v62 = vcombine.high %v9020_v54, %v9024_v52 }
 0x56f   :  { %12207 = vmatprep.subr.bf16.mxu1 %v14138_v63  ;;  %v9027_v63 = vld [vmem:[#allocation13 + $0x380] sm:$0xff] }
 0x571   :  { %12044 = vmatpush1.bf16.msra.mxu0 %v14135_v13  ;;  %v14183_v13 = vcombine.low %v9019_v51, %v9023_v19  ;;  %v9060_v51 = vld [vmem:[#allocation13 + $0x488] sm:$0xff] }
 0x572   :  { %12208 = vmatpush1.bf16.msra.mxu1 %v14137_v9  ;;  %12045 = vmatprep.subr.bf16.mxu0 %v14144_v11  ;;  %v14185_v9 = vcombine.low %v9020_v54, %v9024_v52  ;;  %v14192_v11 = vcombine.high %v9027_v63, %v9031_v2  ;;  %v9064_v19 = vld [vmem:[#allocation13 + $0x4a8] sm:$0xff] }
 0x573   :  { %12209 = vmatprep.subr.bf16.mxu1 %v14146_v1  ;;  %v14591_v1 = vadd.f32 %v15378_v0, %v2414_v58  ;;  %v9044_v0 = vld [vmem:[#allocation13 + $0x408] sm:$0xff]  ;;  %v9071_v58 = vld [vmem:[#allocation13 + $0x4e0] sm:$0xff] }
 0x575   :  { %12046 = vmatpush1.bf16.msra.mxu0 %v14143_v46  ;;  %v9040_v46 = vld [vmem:[#allocation13 + $0x3e8] sm:$0xff]  ;;  %v8891_v6 = vmul.f32 0.2, %v14591_v1  ;;  %vm8883_vm1 = vcmp.gt.f32.partialorder %v14591_v1, 0.0 }
 0x576   :  { %12210 = vmatpush1.bf16.msra.mxu1 %v14145_v47  ;;  %12047 = vmatprep.subr.bf16.mxu0 %v14152_v18  ;;  %v14594_v47 = vadd.f32 %v15384_v60, %v2426_v8  ;;  %v14191_v18 = vcombine.low %v9027_v63, %v9031_v2  ;;  %v14202_v5 = vcombine.high %v9036_v15, %v9040_v46  ;;  %v9072_v63 = vld [vmem:[#allocation13 + $0x4e8] sm:$0xff] }
 0x577   :  { %12211 = vmatprep.subr.bf16.mxu1 %v14154_v48  ;;  %v14193_v48 = vcombine.low %v9028_v61, %v9032_v25  ;;  %v14201_v60 = vcombine.low %v9036_v15, %v9040_v46  ;;  %v8899_v17 = vsel %vm8883_vm1, %v14591_v1, %v8891_v6  ;;  %v14225_v61 = vcombine.low %v9060_v51, %v9064_v19  ;;  %v9080_v1 = vld [vmem:[#allocation13 + $0x528] sm:$0xff]  ;;  %v9083_v46 = vld [vmem:[#allocation13 + $0x540] sm:$0xff] }
 0x578   :  { %vm8886_vm2 = vcmp.gt.f32.partialorder %v14594_v47, 0.0  ;;  %v15419_v32 = vpack.c.bf16 %v8899_v17, %v8899_v17  ;;  %vm12906_vm1 = vcmask 0  }
 0x579   :  { %12048 = vmatpush1.bf16.msra.mxu0 %v14151_v35  ;;  %v9047_v35 = vld [vmem:[#allocation13 + $0x420] sm:$0xff] }
 0x57a   :  { %12212 = vmatpush1.bf16.msra.mxu1 %v14153_v45  ;;  %12049 = vmatprep.subr.bf16.mxu0 %v14160_v21  ;;  %v9048_v45 = vld [vmem:[#allocation13 + $0x428] sm:$0xff]  ;;  %v8894_v21 = vmul.f32 0.2, %v14594_v47  ;;  %v14208_v27 = vcombine.high %v9043_v44, %v9047_v35 }
 0x57b   :  { %12213 = vmatprep.subr.bf16.mxu1 %v14162_v22  ;;  %v14199_v22 = vcombine.low %v9035_v49, %v9039_v33  ;;  %v14210_v4 = vcombine.high %v9044_v0, %v9048_v45  ;;  %v14209_v34 = vcombine.low %v9044_v0, %v9048_v45  ;;  %v9095_v0 = vld [vmem:[#allocation13 + $0x5a0] sm:$0xff]  ;;  %v9092_v45 = vld [vmem:[#allocation13 + $0x588] sm:$0xff] }
 0x57d   :  { %12050 = vmatpush1.bf16.msra.mxu0 %v14159_v28  ;;  %v9055_v28 = vld [vmem:[#allocation13 + $0x460] sm:$0xff] }
 0x57e   :  { %12214 = vmatpush1.bf16.msra.mxu1 %v14161_v29  ;;  %12051 = vmatprep.subr.bf16.mxu0 %v14168_v31  ;;  %v8902_v29 = vsel %vm8886_vm2, %v14594_v47, %v8894_v21  ;;  %v14207_v31 = vcombine.low %v9043_v44, %v9047_v35  ;;  %v14216_v38 = vcombine.high %v9051_v59, %v9055_v28  ;;  %v9087_v47 = vld [vmem:[#allocation13 + $0x560] sm:$0xff]  ;;  %v9096_v21 = vld [vmem:[#allocation13 + $0x5a8] sm:$0xff] }
 0x57f   :  { %12215 = vmatprep.subr.bf16.mxu1 %v14170_v43  ;;  %v9052_v43 = vld [vmem:[#allocation13 + $0x448] sm:$0xff]  ;;  %v14215_v54 = vcombine.low %v9051_v59, %v9055_v28  ;;  %v9091_v35 = vld [vmem:[#allocation13 + $0x580] sm:$0xff]  ;;  %v14258_v17 = vcombine.high %v9092_v45, %v9096_v21 }
 0x580   :  { %v14217_v52 = vcombine.low %v9052_v43, %v9056_v20  ;;  %v9103_v59 = vld [vmem:[#allocation13 + $0x5e0] sm:$0xff]  ;;  %v9100_v28 = vld [vmem:[#allocation13 + $0x5c8] sm:$0xff] }
 0x581   :  { %12052 = vmatpush1.bf16.msra.mxu0 %v14167_v53  ;;  %v9059_v53 = vld [vmem:[#allocation13 + $0x480] sm:$0xff] }
 0x582   :  { %12216 = vmatpush1.bf16.msra.mxu1 %v14169_v39  ;;  %12053 = vmatprep.subr.bf16.mxu0 %v14176_v42  ;;  %v9063_v39 = vld [vmem:[#allocation13 + $0x4a0] sm:$0xff]  ;;  %v15421_v42 = vpack.c.bf16 %v8902_v29, %v8902_v29  ;;  %v9104_v29 = vld [vmem:[#allocation13 + $0x5e8] sm:$0xff] }
 0x583   :  { %12217 = vmatprep.subr.bf16.mxu1 %v14178_v10  ;;  %v14218_v10 = vcombine.high %v9052_v43, %v9056_v20  ;;  %v14223_v2 = vcombine.low %v9059_v53, %v9063_v39  ;;  %v14257_v43 = vcombine.low %v9092_v45, %v9096_v21 }
 0x585   :  { %12054 = vmatpush1.bf16.msra.mxu0 %v14175_v36  ;;  %v14224_v36 = vcombine.high %v9059_v53, %v9063_v39  ;;  %v9111_v53 = vld [vmem:[#allocation13 + $0x620] sm:$0xff]  ;;  %v9108_v39 = vld [vmem:[#allocation13 + $0x608] sm:$0xff] }
 0x586   :  { %12218 = vmatpush1.bf16.msra.mxu1 %v14177_v55  ;;  %12055 = vmatprep.subr.bf16.mxu0 %v14184_v57  ;;  %v14226_v55 = vcombine.high %v9060_v51, %v9064_v19  ;;  %v9067_v57 = vld [vmem:[#allocation13 + $0x4c0] sm:$0xff]  ;;  %v14265_v19 = vcombine.low %v9100_v28, %v9104_v29 }
 0x587   :  { %12219 = vmatprep.subr.bf16.mxu1 %v14186_v62  ;;  %v9068_v62 = vld [vmem:[#allocation13 + $0x4c8] sm:$0xff]  ;;  %v14232_v25 = vcombine.high %v9067_v57, %v9071_v58 }
 0x588   :  { %v14234_v8 = vcombine.high %v9068_v62, %v9072_v63  ;;  %v14233_v49 = vcombine.low %v9068_v62, %v9072_v63 }
 0x589   :  { %12056 = vmatpush1.bf16.msra.mxu0 %v14183_v13  ;;  %v9075_v13 = vld [vmem:[#allocation13 + $0x500] sm:$0xff] }
 0x58a   :  { %12220 = vmatpush1.bf16.msra.mxu1 %v14185_v9  ;;  %12057 = vmatprep.subr.bf16.mxu0 %v14192_v11  ;;  %v9079_v9 = vld [vmem:[#allocation13 + $0x520] sm:$0xff]  ;;  %v9076_v11 = vld [vmem:[#allocation13 + $0x508] sm:$0xff] }
 0x58b   :  { %12221 = vmatprep.subr.bf16.mxu1 %v14194_v16  ;;  %v14231_v16 = vcombine.low %v9067_v57, %v9071_v58  ;;  %v14240_v33 = vcombine.high %v9075_v13, %v9079_v9  ;;  %v14242_v15 = vcombine.high %v9076_v11, %v9080_v1  ;;  %v14241_v6 = vcombine.low %v9076_v11, %v9080_v1  ;;  %v9116_v57 = vld [vmem:[#allocation13 + $0x648] sm:$0xff] }
 0x58c   :  { %v9120_v58 = vld [vmem:[#allocation13 + $0x668] sm:$0xff] }
 0x58d   :  { %12058 = vmatpush1.bf16.msra.mxu0 %v14191_v18  ;;  %v9084_v18 = vld [vmem:[#allocation13 + $0x548] sm:$0xff]  ;;  %v14281_v1 = vcombine.low %v9116_v57, %v9120_v58 }
 0x58e   :  { %12222 = vmatpush1.bf16.msra.mxu1 %v14193_v48  ;;  %12059 = vmatprep.subr.bf16.mxu0 %v14200_v50  ;;  %v9088_v48 = vld [vmem:[#allocation13 + $0x568] sm:$0xff]  ;;  %v14239_v50 = vcombine.low %v9075_v13, %v9079_v9 }
 0x58f   :  { %12223 = vmatprep.subr.bf16.mxu1 %v14202_v5  ;;  %v14248_v5 = vcombine.high %v9083_v46, %v9087_v47  ;;  %v14250_v44 = vcombine.high %v9084_v18, %v9088_v48  ;;  %v9124_v13 = vld [vmem:[#allocation13 + $0x688] sm:$0xff] }
 0x590   :  { %v9128_v9 = vld [vmem:[#allocation13 + $0x6a8] sm:$0xff] }
 0x591   :  { %12060 = vmatpush1.bf16.msra.mxu0 %v14199_v22  ;;  %v14247_v22 = vcombine.low %v9083_v46, %v9087_v47  ;;  %v9132_v46 = vld [vmem:[#allocation13 + $0x6c8] sm:$0xff] }
 0x592   :  { %12224 = vmatpush1.bf16.msra.mxu1 %v14201_v60  ;;  %12070 = vmatprep.subr.bf16.mxu0 %v14208_v27  ;;  %v14249_v60 = vcombine.low %v9084_v18, %v9088_v48  ;;  %v14256_v27 = vcombine.high %v9091_v35, %v9095_v0  ;;  %v9136_v47 = vld [vmem:[#allocation13 + $0x6e8] sm:$0xff]  ;;  %v14289_v48 = vcombine.low %v9124_v13, %v9128_v9 }
 0x593   :  { %12234 = vmatprep.subr.bf16.mxu1 %v14210_v4  ;;  %v9099_v4 = vld [vmem:[#allocation13 + $0x5c0] sm:$0xff]  ;;  %v14297_v21 = vcombine.low %v9132_v46, %v9136_v47 }
 0x594   :  { %12062 = vmatmul.mubr.bf16.vlgmr.msra.gmra.mrb[24].mxu0 %v15419_v32  ;;  %v14264_v20 = vcombine.high %v9099_v4, %v9103_v59  ;;  %v14263_v51 = vcombine.low %v9099_v4, %v9103_v59  ;;  %v9148_v4 = vld [vmem:[#allocation13 + $0x748] sm:$0xff] }
 0x595   :  { %12226 = vmatmul.mubr.bf16.vlgmr.msra.gmra.mrb[24].mxu1 %v15419_v32  ;;  %12071 = vmatpush1.bf16.msra.mxu0 %v14207_v31  ;;  %v14255_v31 = vcombine.low %v9091_v35, %v9095_v0  ;;  %v9140_v35 = vld [vmem:[#allocation13 + $0x708] sm:$0xff] }
 0x596   :  { %12102 = vmatprep.mubr.bf16.mxu0 %v15421_v42  ;;  %12235 = vmatpush1.bf16.msra.mxu1 %v14209_v34  ;;  %v14266_v34 = vcombine.high %v9100_v28, %v9104_v29  ;;  %v9144_v0 = vld [vmem:[#allocation13 + $0x728] sm:$0xff] }
 0x597   :  { %12266 = vmatprep.mubr.bf16.mxu1 %v15421_v42  ;;  %12072 = vmatprep.subr.bf16.mxu0 %v14216_v38  ;;  %v9107_v38 = vld [vmem:[#allocation13 + $0x600] sm:$0xff]  ;;  %v9152_v59 = vld [vmem:[#allocation13 + $0x768] sm:$0xff]  ;;  %v14305_v29 = vcombine.low %v9140_v35, %v9144_v0 }
 0x598   :  { %12236 = vmatprep.subr.bf16.mxu1 %v14218_v10  ;;  %v9112_v10 = vld [vmem:[#allocation13 + $0x628] sm:$0xff]  ;;  %v14271_v62 = vcombine.low %v9107_v38, %v9111_v53 }
 0x599   :  { %12073 = vmatpush1.bf16.msra.mxu0 %v14215_v54  ;;  %v14272_v54 = vcombine.high %v9107_v38, %v9111_v53  ;;  %v14273_v63 = vcombine.low %v9108_v39, %v9112_v10  ;;  %v9159_v38 = vld [vmem:[#allocation13 + $0x7a0] sm:$0xff]  ;;  %v9156_v53 = vld [vmem:[#allocation13 + $0x788] sm:$0xff] }
 0x59a   :  { %12237 = vmatpush1.bf16.msra.mxu1 %v14217_v52  ;;  %12074 = vmatprep.subr.bf16.mxu0 %v14224_v36  ;;  %v14274_v52 = vcombine.high %v9108_v39, %v9112_v10  ;;  %v9115_v36 = vld [vmem:[#allocation13 + $0x640] sm:$0xff]  ;;  %v9160_v39 = vld [vmem:[#allocation13 + $0x7a8] sm:$0xff] }
 0x59b   :  { %12238 = vmatprep.subr.bf16.mxu1 %v14226_v55  ;;  %v9119_v55 = vld [vmem:[#allocation13 + $0x660] sm:$0xff] }
 0x59c   :  { %v14279_v11 = vcombine.low %v9115_v36, %v9119_v55 }
 0x59d   :  { %12075 = vmatpush1.bf16.msra.mxu0 %v14223_v2  ;;  %v14280_v2 = vcombine.high %v9115_v36, %v9119_v55  ;;  %v9163_v36 = vld [vmem:[#allocation13 + $0x7c0] sm:$0xff] }
 0x59e   :  { %12239 = vmatpush1.bf16.msra.mxu1 %v14225_v61  ;;  %12076 = vmatprep.subr.bf16.mxu0 %v14232_v25  ;;  %v14282_v61 = vcombine.high %v9116_v57, %v9120_v58  ;;  %v9123_v25 = vld [vmem:[#allocation13 + $0x680] sm:$0xff]  ;;  %v9164_v57 = vld [vmem:[#allocation13 + $0x7c8] sm:$0xff] }
 0x59f   :  { %12240 = vmatprep.subr.bf16.mxu1 %v14234_v8  ;;  %v9127_v8 = vld [vmem:[#allocation13 + $0x6a0] sm:$0xff] }
 0x5a0   :  { %v14287_v18 = vcombine.low %v9123_v25, %v9127_v8  ;;  %v9167_v55 = vld [vmem:[#allocation13 + $0x7e0] sm:$0xff] }
 0x5a1   :  { %12077 = vmatpush1.bf16.msra.mxu0 %v14231_v16  ;;  %v14288_v16 = vcombine.high %v9123_v25, %v9127_v8  ;;  %v9171_v25 = vld [vmem:[#allocation13 + $0x800] sm:$0xff] }
 0x5a2   :  { %12241 = vmatpush1.bf16.msra.mxu1 %v14233_v49  ;;  %12078 = vmatprep.subr.bf16.mxu0 %v14240_v33  ;;  %v14290_v49 = vcombine.high %v9124_v13, %v9128_v9  ;;  %v9131_v33 = vld [vmem:[#allocation13 + $0x6c0] sm:$0xff]  ;;  %v9172_v13 = vld [vmem:[#allocation13 + $0x808] sm:$0xff]  ;;  %v14327_v9 = vcombine.low %v9163_v36, %v9167_v55 }
 0x5a3   :  { %12242 = vmatprep.subr.bf16.mxu1 %v14242_v15  ;;  %v9135_v15 = vld [vmem:[#allocation13 + $0x6e0] sm:$0xff] }
 0x5a4   :  { %v14295_v45 = vcombine.low %v9131_v33, %v9135_v15  ;;  %v9175_v8 = vld [vmem:[#allocation13 + $0x820] sm:$0xff] }
 0x5a5   :  { %12079 = vmatpush1.bf16.msra.mxu0 %v14239_v50  ;;  %v14296_v50 = vcombine.high %v9131_v33, %v9135_v15  ;;  %v9179_v33 = vld [vmem:[#allocation13 + $0x840] sm:$0xff] }
 0x5a6   :  { %12243 = vmatpush1.bf16.msra.mxu1 %v14241_v6  ;;  %12080 = vmatprep.subr.bf16.mxu0 %v14248_v5  ;;  %v14298_v6 = vcombine.high %v9132_v46, %v9136_v47  ;;  %v9139_v5 = vld [vmem:[#allocation13 + $0x700] sm:$0xff]  ;;  %v9180_v46 = vld [vmem:[#allocation13 + $0x848] sm:$0xff] }
 0x5a7   :  { %12244 = vmatprep.subr.bf16.mxu1 %v14250_v44  ;;  %v9143_v44 = vld [vmem:[#allocation13 + $0x720] sm:$0xff]  ;;  %v9184_v47 = vld [vmem:[#allocation13 + $0x868] sm:$0xff] }
 0x5a8   :  { %v14303_v28 = vcombine.low %v9139_v5, %v9143_v44  ;;  %v9183_v15 = vld [vmem:[#allocation13 + $0x860] sm:$0xff] }
 0x5a9   :  { %12081 = vmatpush1.bf16.msra.mxu0 %v14247_v22  ;;  %v14304_v22 = vcombine.high %v9139_v5, %v9143_v44  ;;  %v14346_v5 = vcombine.high %v9180_v46, %v9184_v47  ;;  %v9187_v44 = vld [vmem:[#allocation13 + $0x880] sm:$0xff] }
 0x5aa   :  { %12245 = vmatpush1.bf16.msra.mxu1 %v14249_v60  ;;  %12082 = vmatprep.subr.bf16.mxu0 %v14256_v27  ;;  %v14306_v60 = vcombine.high %v9140_v35, %v9144_v0  ;;  %v9147_v27 = vld [vmem:[#allocation13 + $0x740] sm:$0xff]  ;;  %v9188_v0 = vld [vmem:[#allocation13 + $0x888] sm:$0xff] }
 0x5ab   :  { %12246 = vmatprep.subr.bf16.mxu1 %v14258_v17  ;;  %v9151_v17 = vld [vmem:[#allocation13 + $0x760] sm:$0xff] }
 0x5ac   :  { %v14311_v10 = vcombine.low %v9147_v27, %v9151_v17  ;;  %v9191_v35 = vld [vmem:[#allocation13 + $0x8a0] sm:$0xff] }
 0x5ad   :  { %12083 = vmatpush1.bf16.msra.mxu0 %v14255_v31  ;;  %v14312_v31 = vcombine.high %v9147_v27, %v9151_v17  ;;  %v9195_v17 = vld [vmem:[#allocation13 + $0x8c0] sm:$0xff] }
 0x5ae   :  { %12247 = vmatpush1.bf16.msra.mxu1 %v14257_v43  ;;  %12084 = vmatprep.subr.bf16.mxu0 %v14264_v20  ;;  %v2422_v43 = vrot.slane %v15402_v37, %v15230_v41  ;;  %v14314_v20 = vcombine.high %v9148_v4, %v9152_v59  ;;  %v9168_v37 = vld [vmem:[#allocation13 + $0x7e8] sm:$0xff] }
 0x5af   :  { %12248 = vmatprep.subr.bf16.mxu1 %v14266_v34  ;;  %v9155_v34 = vld [vmem:[#allocation13 + $0x780] sm:$0xff] }
 0x5b0   :  { %v14319_v58 = vcombine.low %v9155_v34, %v9159_v38 }
 0x5b1   :  { %12085 = vmatpush1.bf16.msra.mxu0 %v14263_v51  ;;  %v14313_v51 = vcombine.low %v9148_v4, %v9152_v59  ;;  %v9199_v4 = vld [vmem:[#allocation13 + $0x8e0] sm:$0xff]  ;;  %v9196_v59 = vld [vmem:[#allocation13 + $0x8c8] sm:$0xff] }
 0x5b2   :  { %12249 = vmatpush1.bf16.msra.mxu1 %v14265_v19  ;;  %12086 = vmatprep.subr.bf16.mxu0 %v14272_v54  ;;  %v14320_v19 = vcombine.high %v9155_v34, %v9159_v38  ;;  %v14593_v54 = vadd.f32 %v15380_v56, %v2422_v43  ;;  %v9176_v56 = vld [vmem:[#allocation13 + $0x828] sm:$0xff]  ;;  %v14360_v43 = vcombine.high %v9195_v17, %v9199_v4  ;;  %v9203_v34 = vld [vmem:[#allocation13 + $0x900] sm:$0xff] }
 0x5b3   :  { %12250 = vmatprep.subr.bf16.mxu1 %v14274_v52  ;;  %v14322_v52 = vcombine.high %v9156_v53, %v9160_v39  ;;  %v9207_v38 = vld [vmem:[#allocation13 + $0x920] sm:$0xff] }
 0x5b4   :  { %vm8885_vm3 = vcmp.gt.f32.partialorder %v14593_v54, 0.0 }
 0x5b5   :  { %12087 = vmatpush1.bf16.msra.mxu0 %v14271_v62  ;;  %v14321_v62 = vcombine.low %v9156_v53, %v9160_v39  ;;  %v9204_v53 = vld [vmem:[#allocation13 + $0x908] sm:$0xff] }
 0x5b6   :  { %12251 = vmatpush1.bf16.msra.mxu1 %v14273_v63  ;;  %12088 = vmatprep.subr.bf16.mxu0 %v14280_v2  ;;  %v14328_v63 = vcombine.high %v9163_v36, %v9167_v55  ;;  %v8893_v2 = vmul.f32 0.2, %v14593_v54  ;;  %v9208_v39 = vld [vmem:[#allocation13 + $0x928] sm:$0xff]  ;;  %v9215_v36 = vld [vmem:[#allocation13 + $0x960] sm:$0xff] }
 0x5b7   :  { %12252 = vmatprep.subr.bf16.mxu1 %v14282_v61  ;;  %v14330_v61 = vcombine.high %v9164_v57, %v9168_v37  ;;  %v9212_v55 = vld [vmem:[#allocation13 + $0x948] sm:$0xff] }
 0x5b9   :  { %12089 = vmatpush1.bf16.msra.mxu0 %v14279_v11  ;;  %v14329_v11 = vcombine.low %v9164_v57, %v9168_v37  ;;  %v9216_v57 = vld [vmem:[#allocation13 + $0x968] sm:$0xff]  ;;  %v14367_v37 = vcombine.low %v9203_v34, %v9207_v38 }
 0x5ba   :  { %12253 = vmatpush1.bf16.msra.mxu1 %v14281_v1  ;;  %12090 = vmatprep.subr.bf16.mxu0 %v14288_v16  ;;  %v14336_v1 = vcombine.high %v9171_v25, %v9175_v8  ;;  %v8901_v16 = vsel %vm8885_vm3, %v14593_v54, %v8893_v2  ;;  %v14370_v54 = vcombine.high %v9204_v53, %v9208_v39  ;;  %v9219_v2 = vld [vmem:[#allocation13 + $0x980] sm:$0xff] }
 0x5bb   :  { %12254 = vmatprep.subr.bf16.mxu1 %v14290_v49  ;;  %v14338_v49 = vcombine.high %v9172_v13, %v9176_v56 }
 0x5bd   :  { %12091 = vmatpush1.bf16.msra.mxu0 %v14287_v18  ;;  %v14335_v18 = vcombine.low %v9171_v25, %v9175_v8  ;;  %v9220_v25 = vld [vmem:[#allocation13 + $0x988] sm:$0xff] }
 0x5be   :  { %12255 = vmatpush1.bf16.msra.mxu1 %v14289_v48  ;;  %12092 = vmatprep.subr.bf16.mxu0 %v14296_v50  ;;  %v15430_v48 = vpack.c.bf16 %v8901_v16, %v8901_v16  ;;  %v14337_v50 = vcombine.low %v9172_v13, %v9176_v56  ;;  %v9224_v8 = vld [vmem:[#allocation13 + $0x9a8] sm:$0xff]  ;;  %v14377_v56 = vcombine.low %v9212_v55, %v9216_v57  ;;  %v9231_v16 = vld [vmem:[#allocation13 + $0x9e0] sm:$0xff] }
 0x5bf   :  { %12256 = vmatprep.subr.bf16.mxu1 %v14298_v6  ;;  %v14344_v6 = vcombine.high %v9179_v33, %v9183_v15 }
 0x5c1   :  { %12093 = vmatpush1.bf16.msra.mxu0 %v14295_v45  ;;  %v9192_v45 = vld [vmem:[#allocation13 + $0x8a8] sm:$0xff] }
 0x5c2   :  { %12257 = vmatpush1.bf16.msra.mxu1 %v14297_v21  ;;  %12094 = vmatprep.subr.bf16.mxu0 %v14304_v22  ;;  %v14343_v21 = vcombine.low %v9179_v33, %v9183_v15  ;;  %v14345_v22 = vcombine.low %v9180_v46, %v9184_v47  ;;  %v14354_v27 = vcombine.high %v9188_v0, %v9192_v45  ;;  %v9232_v33 = vld [vmem:[#allocation13 + $0x9e8] sm:$0xff] }
 0x5c3   :  { %12258 = vmatprep.subr.bf16.mxu1 %v14306_v60  ;;  %v14352_v60 = vcombine.high %v9187_v44, %v9191_v35  ;;  %v14385_v46 = vcombine.low %v9220_v25, %v9224_v8 }
 0x5c5   :  { %12095 = vmatpush1.bf16.msra.mxu0 %v14303_v28  ;;  %v9200_v28 = vld [vmem:[#allocation13 + $0x8e8] sm:$0xff] }
 0x5c6   :  { %12259 = vmatpush1.bf16.msra.mxu1 %v14305_v29  ;;  %12096 = vmatprep.subr.bf16.mxu0 %v14312_v31  ;;  %v14351_v29 = vcombine.low %v9187_v44, %v9191_v35  ;;  %v14353_v31 = vcombine.low %v9188_v0, %v9192_v45  ;;  %v9240_v44 = vld [vmem:[#allocation13 + $0xa28] sm:$0xff] }
 0x5c7   :  { %12260 = vmatprep.subr.bf16.mxu1 %v14314_v20  ;;  %v14362_v20 = vcombine.high %v9196_v59, %v9200_v28 }
 0x5c9   :  { %12097 = vmatpush1.bf16.msra.mxu0 %v14311_v10  ;;  %v14359_v10 = vcombine.low %v9195_v17, %v9199_v4  ;;  %v9248_v17 = vld [vmem:[#allocation13 + $0xa68] sm:$0xff] }
 0x5ca   :  { %12261 = vmatpush1.bf16.msra.mxu1 %v14313_v51  ;;  %12098 = vmatprep.subr.bf16.mxu0 %v14320_v19  ;;  %v14361_v51 = vcombine.low %v9196_v59, %v9200_v28  ;;  %v14368_v19 = vcombine.high %v9203_v34, %v9207_v38  ;;  %v9256_v34 = vld [vmem:[#allocation13 + $0xaa8] sm:$0xff] }
 0x5cb   :  { %12262 = vmatprep.subr.bf16.mxu1 %v14322_v52  ;;  %v9211_v52 = vld [vmem:[#allocation13 + $0x940] sm:$0xff] }
 0x5cc   :  { %v14375_v13 = vcombine.low %v9211_v52, %v9215_v36 }
 0x5cd   :  { %12099 = vmatpush1.bf16.msra.mxu0 %v14319_v58  ;;  %v14369_v58 = vcombine.low %v9204_v53, %v9208_v39 }
 0x5ce   :  { %12263 = vmatpush1.bf16.msra.mxu1 %v14321_v62  ;;  %12100 = vmatprep.subr.bf16.mxu0 %v14328_v63  ;;  %v14376_v62 = vcombine.high %v9211_v52, %v9215_v36  ;;  %v14378_v63 = vcombine.high %v9212_v55, %v9216_v57  ;;  %v9264_v52 = vld [vmem:[#allocation13 + $0xae8] sm:$0xff] }
 0x5cf   :  { %12264 = vmatprep.subr.bf16.mxu1 %v14330_v61  ;;  %v9223_v61 = vld [vmem:[#allocation13 + $0x9a0] sm:$0xff] }
 0x5d0   :  { %v14383_v15 = vcombine.low %v9219_v2, %v9223_v61 }
 0x5d1   :  { %12101 = vmatpush1.bf16.msra.mxu0 %v14327_v9  ;;  %v14384_v9 = vcombine.high %v9219_v2, %v9223_v61  ;;  %v9272_v2 = vld [vmem:[#allocation13 + $0xb28] sm:$0xff] }
 0x5d2   :  { %12265 = vmatpush1.bf16.msra.mxu1 %v14329_v11  ;;  %12111 = vmatprep.subr.bf16.mxu0 %v14336_v1  ;;  %v14386_v11 = vcombine.high %v9220_v25, %v9224_v8  ;;  %v9227_v1 = vld [vmem:[#allocation13 + $0x9c0] sm:$0xff] }
 0x5d3   :  { %12275 = vmatprep.subr.bf16.mxu1 %v14338_v49  ;;  %v9228_v49 = vld [vmem:[#allocation13 + $0x9c8] sm:$0xff]  ;;  %v14392_v47 = vcombine.high %v9227_v1, %v9231_v16  ;;  %v14391_v35 = vcombine.low %v9227_v1, %v9231_v16 }
 0x5d4   :  { %12103 = vmatmul.mubr.bf16.vlgmr.msra.gmra.mrb[24].mxu0 %v15430_v48  ;;  %v14393_v0 = vcombine.low %v9228_v49, %v9232_v33  ;;  %v9280_v1 = vld [vmem:[#allocation13 + $0xb68] sm:$0xff] }
 0x5d5   :  { %12267 = vmatmul.mubr.bf16.vlgmr.msra.gmra.mrb[24].mxu1 %v15430_v48  ;;  %12112 = vmatpush1.bf16.msra.mxu0 %v14335_v18  ;;  %v14394_v18 = vcombine.high %v9228_v49, %v9232_v33 }
 0x5d6   :  { %12276 = vmatpush1.bf16.msra.mxu1 %v14337_v50  ;;  %12113 = vmatprep.subr.bf16.mxu0 %v14344_v6  ;;  %v9235_v50 = vld [vmem:[#allocation13 + $0xa00] sm:$0xff] }
 0x5d7   :  { %12277 = vmatprep.subr.bf16.mxu1 %v14346_v5  ;;  %v9239_v6 = vld [vmem:[#allocation13 + $0xa20] sm:$0xff]  ;;  %v9236_v5 = vld [vmem:[#allocation13 + $0xa08] sm:$0xff] }
 0x5d8   :  { %v14400_v45 = vcombine.high %v9235_v50, %v9239_v6  ;;  %v14399_v4 = vcombine.low %v9235_v50, %v9239_v6  ;;  %v14401_v59 = vcombine.low %v9236_v5, %v9240_v44  ;;  %v9288_v50 = vld [vmem:[#allocation13 + $0xba8] sm:$0xff] }
 0x5d9   :  { %12114 = vmatpush1.bf16.msra.mxu0 %v14343_v21  ;;  %v14402_v21 = vcombine.high %v9236_v5, %v9240_v44 }
 0x5da   :  { %12278 = vmatpush1.bf16.msra.mxu1 %v14345_v22  ;;  %12115 = vmatprep.subr.bf16.mxu0 %v14352_v60  ;;  %v9243_v22 = vld [vmem:[#allocation13 + $0xa40] sm:$0xff] }
 0x5db   :  { %12279 = vmatprep.subr.bf16.mxu1 %v14354_v27  ;;  %v9247_v60 = vld [vmem:[#allocation13 + $0xa60] sm:$0xff]  ;;  %v9244_v27 = vld [vmem:[#allocation13 + $0xa48] sm:$0xff] }
 0x5dc   :  { %v14408_v28 = vcombine.high %v9243_v22, %v9247_v60  ;;  %v14407_v38 = vcombine.low %v9243_v22, %v9247_v60  ;;  %v14409_v53 = vcombine.low %v9244_v27, %v9248_v17  ;;  %v9296_v22 = vld [vmem:[#allocation13 + $0xbe8] sm:$0xff] }
 0x5dd   :  { %12116 = vmatpush1.bf16.msra.mxu0 %v14351_v29  ;;  %v14410_v29 = vcombine.high %v9244_v27, %v9248_v17 }
 0x5de   :  { %12280 = vmatpush1.bf16.msra.mxu1 %v14353_v31  ;;  %12117 = vmatprep.subr.bf16.mxu0 %v14360_v43  ;;  %v9251_v31 = vld [vmem:[#allocation13 + $0xa80] sm:$0xff] }
 0x5df   :  { %12281 = vmatprep.subr.bf16.mxu1 %v14362_v20  ;;  %v9255_v43 = vld [vmem:[#allocation13 + $0xaa0] sm:$0xff]  ;;  %v9252_v20 = vld [vmem:[#allocation13 + $0xa88] sm:$0xff] }
 0x5e0   :  { %v14416_v39 = vcombine.high %v9251_v31, %v9255_v43  ;;  %v14415_v36 = vcombine.low %v9251_v31, %v9255_v43  ;;  %v14417_v55 = vcombine.low %v9252_v20, %v9256_v34  ;;  %v9304_v31 = vld [vmem:[#allocation13 + $0xc28] sm:$0xff] }
 0x5e1   :  { %12118 = vmatpush1.bf16.msra.mxu0 %v14359_v10  ;;  %v14418_v10 = vcombine.high %v9252_v20, %v9256_v34 }
 0x5e2   :  { %12282 = vmatpush1.bf16.msra.mxu1 %v14361_v51  ;;  %12119 = vmatprep.subr.bf16.mxu0 %v14368_v19  ;;  %v9259_v51 = vld [vmem:[#allocation13 + $0xac0] sm:$0xff] }
 0x5e3   :  { %12283 = vmatprep.subr.bf16.mxu1 %v14370_v54  ;;  %v9263_v19 = vld [vmem:[#allocation13 + $0xae0] sm:$0xff]  ;;  %v9260_v54 = vld [vmem:[#allocation13 + $0xac8] sm:$0xff] }
 0x5e4   :  { %v14424_v57 = vcombine.high %v9259_v51, %v9263_v19  ;;  %v14423_v61 = vcombine.low %v9259_v51, %v9263_v19  ;;  %v14425_v25 = vcombine.low %v9260_v54, %v9264_v52 }
 0x5e5   :  { %12120 = vmatpush1.bf16.msra.mxu0 %v14367_v37  ;;  %v14426_v37 = vcombine.high %v9260_v54, %v9264_v52 }
 0x5e6   :  { %12284 = vmatpush1.bf16.msra.mxu1 %v14369_v58  ;;  %12121 = vmatprep.subr.bf16.mxu0 %v14376_v62  ;;  %v9267_v58 = vld [vmem:[#allocation13 + $0xb00] sm:$0xff] }
 0x5e7   :  { %12285 = vmatprep.subr.bf16.mxu1 %v14378_v63  ;;  %v9271_v62 = vld [vmem:[#allocation13 + $0xb20] sm:$0xff]  ;;  %v9268_v63 = vld [vmem:[#allocation13 + $0xb08] sm:$0xff] }
 0x5e8   :  { %v14432_v8 = vcombine.high %v9267_v58, %v9271_v62  ;;  %v14431_v16 = vcombine.low %v9267_v58, %v9271_v62  ;;  %v14433_v49 = vcombine.low %v9268_v63, %v9272_v2 }
 0x5e9   :  { %12122 = vmatpush1.bf16.msra.mxu0 %v14375_v13  ;;  %v14434_v13 = vcombine.high %v9268_v63, %v9272_v2 }
 0x5ea   :  { %12286 = vmatpush1.bf16.msra.mxu1 %v14377_v56  ;;  %12123 = vmatprep.subr.bf16.mxu0 %v14384_v9  ;;  %v9275_v56 = vld [vmem:[#allocation13 + $0xb40] sm:$0xff] }
 0x5eb   :  { %12287 = vmatprep.subr.bf16.mxu1 %v14386_v11  ;;  %v9279_v9 = vld [vmem:[#allocation13 + $0xb60] sm:$0xff]  ;;  %v9276_v11 = vld [vmem:[#allocation13 + $0xb48] sm:$0xff] }
 0x5ec   :  { %v14440_v33 = vcombine.high %v9275_v56, %v9279_v9  ;;  %v14439_v6 = vcombine.low %v9275_v56, %v9279_v9  ;;  %v14441_v5 = vcombine.low %v9276_v11, %v9280_v1  ;;  %v9307_v56 = vld [vmem:[#allocation13 + $0xc40] sm:$0xff] }
 0x5ed   :  { %12124 = vmatpush1.bf16.msra.mxu0 %v14383_v15  ;;  %v14442_v15 = vcombine.high %v9276_v11, %v9280_v1  ;;  %v9311_v11 = vld [vmem:[#allocation13 + $0xc60] sm:$0xff]  ;;  %v9308_v1 = vld [vmem:[#allocation13 + $0xc48] sm:$0xff] }
 0x5ee   :  { %12288 = vmatpush1.bf16.msra.mxu1 %v14385_v46  ;;  %12125 = vmatprep.subr.bf16.mxu0 %v14392_v47  ;;  %v9283_v46 = vld [vmem:[#allocation13 + $0xb80] sm:$0xff] }
 0x5ef   :  { %12289 = vmatprep.subr.bf16.mxu1 %v14394_v18  ;;  %v9287_v47 = vld [vmem:[#allocation13 + $0xba0] sm:$0xff]  ;;  %v9284_v18 = vld [vmem:[#allocation13 + $0xb88] sm:$0xff] }
 0x5f0   :  { %v14448_v44 = vcombine.high %v9283_v46, %v9287_v47  ;;  %v14447_v60 = vcombine.low %v9283_v46, %v9287_v47  ;;  %v14449_v27 = vcombine.low %v9284_v18, %v9288_v50 }
 0x5f1   :  { %12126 = vmatpush1.bf16.msra.mxu0 %v14391_v35  ;;  %v14450_v35 = vcombine.high %v9284_v18, %v9288_v50  ;;  %v9315_v18 = vld [vmem:[#allocation13 + $0xc80] sm:$0xff]  ;;  %v14472_v50 = vcombine.high %v9307_v56, %v9311_v11 }
 0x5f2   :  { %12290 = vmatpush1.bf16.msra.mxu1 %v14393_v0  ;;  %12127 = vmatprep.subr.bf16.mxu0 %v14400_v45  ;;  %v9291_v0 = vld [vmem:[#allocation13 + $0xbc0] sm:$0xff] }
 0x5f3   :  { %12291 = vmatprep.subr.bf16.mxu1 %v14402_v21  ;;  %v9295_v45 = vld [vmem:[#allocation13 + $0xbe0] sm:$0xff]  ;;  %v9292_v21 = vld [vmem:[#allocation13 + $0xbc8] sm:$0xff] }
 0x5f4   :  { %v14456_v17 = vcombine.high %v9291_v0, %v9295_v45  ;;  %v14455_v43 = vcombine.low %v9291_v0, %v9295_v45  ;;  %v14457_v20 = vcombine.low %v9292_v21, %v9296_v22  ;;  %v14471_v45 = vcombine.low %v9307_v56, %v9311_v11 }
 0x5f5   :  { %12128 = vmatpush1.bf16.msra.mxu0 %v14399_v4  ;;  %v14458_v4 = vcombine.high %v9292_v21, %v9296_v22 }
 0x5f6   :  { %12292 = vmatpush1.bf16.msra.mxu1 %v14401_v59  ;;  %12129 = vmatprep.subr.bf16.mxu0 %v14408_v28  ;;  %v9299_v59 = vld [vmem:[#allocation13 + $0xc00] sm:$0xff] }
 0x5f7   :  { %12293 = vmatprep.subr.bf16.mxu1 %v14410_v29  ;;  %v9303_v28 = vld [vmem:[#allocation13 + $0xc20] sm:$0xff]  ;;  %v9300_v29 = vld [vmem:[#allocation13 + $0xc08] sm:$0xff] }
 0x5f8   :  { %v14464_v34 = vcombine.high %v9299_v59, %v9303_v28  ;;  %v14465_v46 = vcombine.low %v9300_v29, %v9304_v31 }
 0x5f9   :  { %12130 = vmatpush1.bf16.msra.mxu0 %v14407_v38  ;;  %v14466_v38 = vcombine.high %v9300_v29, %v9304_v31 }
 0x5fa   :  { %12294 = vmatpush1.bf16.msra.mxu1 %v14409_v53  ;;  %12131 = vmatprep.subr.bf16.mxu0 %v14416_v39  ;;  %v15434_v53 = vld [vmem:[#allocation12] sm:$0xff] }
 0x5fb   :  { %12295 = vmatprep.subr.bf16.mxu1 %v14418_v10  ;;  %v2430_v39 = vrot.slane %v15434_v53, %v15265_v40  ;;  %v2434_v10 = vrot.slane %v15434_v53, %v15233_v7  ;;  %v2442_v51 = vrot.slane %v15434_v53, %v15277_v12 }
 0x5fd   :  { %12132 = vmatpush1.bf16.msra.mxu0 %v14415_v36 }
 0x5fe   :  { %12296 = vmatpush1.bf16.msra.mxu1 %v14417_v55  ;;  %12133 = vmatprep.subr.bf16.mxu0 %v14424_v57 }
 0x5ff   :  { %12297 = vmatprep.subr.bf16.mxu1 %v14426_v37 }
 0x601   :  { %12134 = vmatpush1.bf16.msra.mxu0 %v14423_v61 }
 0x602   :  { %12298 = vmatpush1.bf16.msra.mxu1 %v14425_v25  ;;  %12135 = vmatprep.subr.bf16.mxu0 %v14432_v8 }
 0x603   :  { %12299 = vmatprep.subr.bf16.mxu1 %v14434_v13 }
 0x605   :  { %12136 = vmatpush1.bf16.msra.mxu0 %v14431_v16  ;;  %v9312_v16 = vld [vmem:[#allocation13 + $0xc68] sm:$0xff] }
 0x606   :  { %12300 = vmatpush1.bf16.msra.mxu1 %v14433_v49  ;;  %12137 = vmatprep.subr.bf16.mxu0 %v14440_v33  ;;  %v14473_v21 = vcombine.low %v9308_v1, %v9312_v16 }
 0x607   :  { %12301 = vmatprep.subr.bf16.mxu1 %v14442_v15  ;;  %v14463_v15 = vcombine.low %v9299_v59, %v9303_v28  ;;  %v9328_v59 = vld [vmem:[#allocation13 + $0xce8] sm:$0xff] }
 0x609   :  { %12138 = vmatpush1.bf16.msra.mxu0 %v14439_v6  ;;  %v14474_v6 = vcombine.high %v9308_v1, %v9312_v16  ;;  %v9355_v16 = vld [vmem:[#allocation13 + $0xdc0] sm:$0xff] }
 0x60a   :  { %12302 = vmatpush1.bf16.msra.mxu1 %v14441_v5  ;;  %12139 = vmatprep.subr.bf16.mxu0 %v14448_v44  ;;  %v9319_v5 = vld [vmem:[#allocation13 + $0xca0] sm:$0xff]  ;;  %v9316_v44 = vld [vmem:[#allocation13 + $0xc88] sm:$0xff] }
 0x60b   :  { %12303 = vmatprep.subr.bf16.mxu1 %v14450_v35  ;;  %v9320_v35 = vld [vmem:[#allocation13 + $0xca8] sm:$0xff]  ;;  %v14480_v22 = vcombine.high %v9315_v18, %v9319_v5  ;;  %v14479_v28 = vcombine.low %v9315_v18, %v9319_v5 }
 0x60c   :  { %v14481_v29 = vcombine.low %v9316_v44, %v9320_v35 }
 0x60d   :  { %12140 = vmatpush1.bf16.msra.mxu0 %v14447_v60  ;;  %v14482_v60 = vcombine.high %v9316_v44, %v9320_v35  ;;  %v9363_v44 = vld [vmem:[#allocation13 + $0xe00] sm:$0xff] }
 0x60e   :  { %12304 = vmatpush1.bf16.msra.mxu1 %v14449_v27  ;;  %12141 = vmatprep.subr.bf16.mxu0 %v14456_v17  ;;  %v9323_v27 = vld [vmem:[#allocation13 + $0xcc0] sm:$0xff] }
 0x60f   :  { %12305 = vmatprep.subr.bf16.mxu1 %v14458_v4  ;;  %v9327_v17 = vld [vmem:[#allocation13 + $0xce0] sm:$0xff]  ;;  %v9324_v4 = vld [vmem:[#allocation13 + $0xcc8] sm:$0xff] }
 0x610   :  { %v14488_v31 = vcombine.high %v9323_v27, %v9327_v17  ;;  %v9367_v35 = vld [vmem:[#allocation13 + $0xe20] sm:$0xff] }
 0x611   :  { %12142 = vmatpush1.bf16.msra.mxu0 %v14455_v43  ;;  %v14490_v43 = vcombine.high %v9324_v4, %v9328_v59 }
 0x612   :  { %12306 = vmatpush1.bf16.msra.mxu1 %v14457_v20  ;;  %12152 = vmatprep.subr.bf16.mxu0 %v14464_v34  ;;  %v9331_v20 = vld [vmem:[#allocation13 + $0xd00] sm:$0xff] }
 0x613   :  { %12316 = vmatprep.subr.bf16.mxu1 %v14466_v38  ;;  %v9335_v34 = vld [vmem:[#allocation13 + $0xd20] sm:$0xff]  ;;  %v9332_v38 = vld [vmem:[#allocation13 + $0xd08] sm:$0xff] }
 0x627   :  { %v8548_v19 = vpop.f32.mrb[20].mxu0 }
 0x628   :  { %v14595_v54 = vadd.f32 %v8548_v19, %v2430_v39  ;;  %v15442_v52 = vpop.f32.mrb[20].mxu1  ;;  %v8550_v36 = vpop.f32.mrb[21].mxu0  ;;  %v9336_v39 = vld [vmem:[#allocation13 + $0xd28] sm:$0xff]  ;;  %v14496_v19 = vcombine.high %v9331_v20, %v9335_v34 }
 0x629   :  { %v14596_v55 = vadd.f32 %v8550_v36, %v2434_v10  ;;  %v8878_v57 = vpop.f32.mrb[21].mxu1  ;;  %v8552_v37 = vpop.f32.mrb[22].mxu0  ;;  %v14487_v10 = vcombine.low %v9323_v27, %v9327_v17  ;;  %v9339_v36 = vld [vmem:[#allocation13 + $0xd40] sm:$0xff]  ;;  %v14528_v27 = vcombine.high %v9363_v44, %v9367_v35 }
 0x62a   :  { %vm8887_vm4 = vcmp.gt.f32.partialorder %v14595_v54, 0.0  ;;  %v8895_v58 = vmul.f32 0.2, %v14595_v54  ;;  %v14598_v62 = vadd.f32 %v8878_v57, %v2442_v51  ;;  %v8880_v63 = vpop.f32.mrb[22].mxu1  ;;  %v8553_v2 = vpop.f32.mrb[23].mxu0  ;;  %v14489_v51 = vcombine.low %v9324_v4, %v9328_v59  ;;  %v9340_v57 = vld [vmem:[#allocation13 + $0xd48] sm:$0xff] }
 0x62b   :  { %vm8888_vm5 = vcmp.gt.f32.partialorder %v14596_v55, 0.0  ;;  %v8896_v61 = vmul.f32 0.2, %v14596_v55  ;;  %v8881_v13 = vpop.f32.mrb[23].mxu1  ;;  %v9344_v37 = vld [vmem:[#allocation13 + $0xd68] sm:$0xff]  ;;  %v9371_v4 = vld [vmem:[#allocation13 + $0xe40] sm:$0xff] }
 0x62c   :  { %v8903_v25 = vsel %vm8887_vm4, %v14595_v54, %v8895_v58  ;;  %vm8890_vm6 = vcmp.gt.f32.partialorder %v14598_v62, 0.0  ;;  %v8898_v8 = vmul.f32 0.2, %v14598_v62  ;;  %v14498_v54 = vcombine.high %v9332_v38, %v9336_v39  ;;  %v9352_v13 = vld [vmem:[#allocation13 + $0xda8] sm:$0xff]  ;;  %v9375_v59 = vld [vmem:[#allocation13 + $0xe60] sm:$0xff] }
 0x62d   :  { %v8904_v9 = vsel %vm8888_vm5, %v14596_v55, %v8896_v61  ;;  %v15446_v47 = vpack.c.bf16 %v8903_v25, %v8903_v25  ;;  %v9343_v55 = vld [vmem:[#allocation13 + $0xd60] sm:$0xff]  ;;  %v14495_v58 = vcombine.low %v9331_v20, %v9335_v34  ;;  %v14506_v2 = vcombine.high %v9340_v57, %v9344_v37 }
 0x62e   :  { %v15444_v49 = vpack.c.bf16 %v8904_v9, %v8904_v9  ;;  %v8906_v33 = vsel %vm8890_vm6, %v14598_v62, %v8898_v8  ;;  %v14497_v62 = vcombine.low %v9332_v38, %v9336_v39  ;;  %v14504_v63 = vcombine.high %v9339_v36, %v9343_v55  ;;  %v9347_v61 = vld [vmem:[#allocation13 + $0xd80] sm:$0xff]  ;;  %v9348_v8 = vld [vmem:[#allocation13 + $0xd88] sm:$0xff] }
 0x62f   :  { %v15450_v0 = vpack.c.bf16 %v8906_v33, %v8906_v33  ;;  %v9351_v25 = vld [vmem:[#allocation13 + $0xda0] sm:$0xff]  ;;  %v14503_v56 = vcombine.low %v9339_v36, %v9343_v55  ;;  %v14505_v9 = vcombine.low %v9340_v57, %v9344_v37  ;;  %v14514_v1 = vcombine.high %v9348_v8, %v9352_v13 }
 0x630   :  { %12143 = vmatprep.mubr.bf16.mxu0 %v15444_v49  ;;  %12307 = vmatprep.mubr.bf16.mxu1 %v15444_v49  ;;  %v14512_v11 = vcombine.high %v9347_v61, %v9351_v25  ;;  %v9359_v33 = vld [vmem:[#allocation13 + $0xde0] sm:$0xff]  ;;  %v14511_v18 = vcombine.low %v9347_v61, %v9351_v25  ;;  %v14536_v20 = vcombine.high %v9371_v4, %v9375_v59 }
 0x631   :  { %12144 = vmatmul.mubr.bf16.vlgmr.msra.gmra.mrb[24].mxu0 %v15446_v47  ;;  %12308 = vmatmul.mubr.bf16.vlgmr.msra.gmra.mrb[24].mxu1 %v15446_v47  ;;  %v9379_v38 = vld [vmem:[#allocation13 + $0xe80] sm:$0xff] }
 0x632   :  { %12153 = vmatpush1.bf16.msra.mxu0 %v14463_v15  ;;  %12317 = vmatpush1.bf16.msra.mxu1 %v14465_v46  ;;  %v9356_v15 = vld [vmem:[#allocation13 + $0xdc8] sm:$0xff]  ;;  %v9383_v39 = vld [vmem:[#allocation13 + $0xea0] sm:$0xff] }
 0x633   :  { %12184 = vmatprep.mubr.bf16.mxu0 %v15450_v0  ;;  %12348 = vmatprep.mubr.bf16.mxu1 %v15450_v0  ;;  %v9360_v46 = vld [vmem:[#allocation13 + $0xde8] sm:$0xff]  ;;  %v14544_v36 = vcombine.high %v9379_v38, %v9383_v39  ;;  %v9387_v57 = vld [vmem:[#allocation13 + $0xec0] sm:$0xff] }
 0x634   :  { %12154 = vmatprep.subr.bf16.mxu0 %v14472_v50  ;;  %12318 = vmatprep.subr.bf16.mxu1 %v14474_v6  ;;  %v14513_v50 = vcombine.low %v9348_v8, %v9352_v13  ;;  %v14520_v6 = vcombine.high %v9355_v16, %v9359_v33  ;;  %v14522_v5 = vcombine.high %v9356_v15, %v9360_v46  ;;  %v9391_v37 = vld [vmem:[#allocation13 + $0xee0] sm:$0xff] }
 0x635   :  { %v14552_v61 = vcombine.high %v9387_v57, %v9391_v37  ;;  %v9395_v8 = vld [vmem:[#allocation13 + $0xf00] sm:$0xff] }
 0x636   :  { %12155 = vmatpush1.bf16.msra.mxu0 %v14471_v45  ;;  %12319 = vmatpush1.bf16.msra.mxu1 %v14473_v21  ;;  %v9364_v45 = vld [vmem:[#allocation13 + $0xe08] sm:$0xff]  ;;  %v9399_v13 = vld [vmem:[#allocation13 + $0xf20] sm:$0xff] }
 0x637   :  { %12156 = vmatprep.subr.bf16.mxu0 %v14480_v22  ;;  %12320 = vmatprep.subr.bf16.mxu1 %v14482_v60  ;;  %v9368_v21 = vld [vmem:[#allocation13 + $0xe28] sm:$0xff]  ;;  %v14519_v22 = vcombine.low %v9355_v16, %v9359_v33  ;;  %v14521_v60 = vcombine.low %v9356_v15, %v9360_v46  ;;  %v14560_v16 = vcombine.high %v9395_v8, %v9399_v13  ;;  %v9403_v15 = vld [vmem:[#allocation13 + $0xf40] sm:$0xff] }
 0x638   :  { %v14530_v17 = vcombine.high %v9364_v45, %v9368_v21  ;;  %v9407_v46 = vld [vmem:[#allocation13 + $0xf60] sm:$0xff] }
 0x63a   :  { %12157 = vmatpush1.bf16.msra.mxu0 %v14479_v28  ;;  %12321 = vmatpush1.bf16.msra.mxu1 %v14481_v29  ;;  %v9372_v28 = vld [vmem:[#allocation13 + $0xe48] sm:$0xff] }
 0x63b   :  { %12158 = vmatprep.subr.bf16.mxu0 %v14488_v31  ;;  %12322 = vmatprep.subr.bf16.mxu1 %v14490_v43  ;;  %v9376_v29 = vld [vmem:[#allocation13 + $0xe68] sm:$0xff]  ;;  %v14527_v31 = vcombine.low %v9363_v44, %v9367_v35  ;;  %v14529_v43 = vcombine.low %v9364_v45, %v9368_v21  ;;  %v14568_v44 = vcombine.high %v9403_v15, %v9407_v46  ;;  %v9411_v45 = vld [vmem:[#allocation13 + $0xf80] sm:$0xff] }
 0x63c   :  { %v14538_v34 = vcombine.high %v9372_v28, %v9376_v29  ;;  %v2438_v21 = vrot.slane %v15434_v53, %v15272_v14 }
 0x63e   :  { %12159 = vmatpush1.bf16.msra.mxu0 %v14487_v10  ;;  %12323 = vmatpush1.bf16.msra.mxu1 %v14489_v51  ;;  %v9380_v10 = vld [vmem:[#allocation13 + $0xe88] sm:$0xff] }
 0x63f   :  { %12160 = vmatprep.subr.bf16.mxu0 %v14496_v19  ;;  %12324 = vmatprep.subr.bf16.mxu1 %v14498_v54  ;;  %v9384_v51 = vld [vmem:[#allocation13 + $0xea8] sm:$0xff]  ;;  %v14535_v19 = vcombine.low %v9371_v4, %v9375_v59  ;;  %v14537_v54 = vcombine.low %v9372_v28, %v9376_v29  ;;  %v9419_v29 = vld [vmem:[#allocation13 + $0xfc0] sm:$0xff] }
 0x640   :  { %v14546_v55 = vcombine.high %v9380_v10, %v9384_v51 }
 0x642   :  { %12161 = vmatpush1.bf16.msra.mxu0 %v14495_v58  ;;  %12325 = vmatpush1.bf16.msra.mxu1 %v14497_v62  ;;  %v9388_v58 = vld [vmem:[#allocation13 + $0xec8] sm:$0xff] }
 0x643   :  { %12162 = vmatprep.subr.bf16.mxu0 %v14504_v63  ;;  %12326 = vmatprep.subr.bf16.mxu1 %v14506_v2  ;;  %v9392_v62 = vld [vmem:[#allocation13 + $0xee8] sm:$0xff]  ;;  %v14543_v63 = vcombine.low %v9379_v38, %v9383_v39  ;;  %v14545_v2 = vcombine.low %v9380_v10, %v9384_v51  ;;  %v8917_v51 = vld [vmem:[#allocation13 + $0x10] sm:$0xff] }
 0x644   :  { %v14554_v25 = vcombine.high %v9388_v58, %v9392_v62 }
 0x646   :  { %12163 = vmatpush1.bf16.msra.mxu0 %v14503_v56  ;;  %12327 = vmatpush1.bf16.msra.mxu1 %v14505_v9  ;;  %v9396_v56 = vld [vmem:[#allocation13 + $0xf08] sm:$0xff] }
 0x647   :  { %12164 = vmatprep.subr.bf16.mxu0 %v14512_v11  ;;  %12328 = vmatprep.subr.bf16.mxu1 %v14514_v1  ;;  %v9400_v9 = vld [vmem:[#allocation13 + $0xf28] sm:$0xff]  ;;  %v14551_v11 = vcombine.low %v9387_v57, %v9391_v37  ;;  %v14553_v1 = vcombine.low %v9388_v58, %v9392_v62 }
 0x648   :  { %v14562_v33 = vcombine.high %v9396_v56, %v9400_v9 }
 0x64a   :  { %12165 = vmatpush1.bf16.msra.mxu0 %v14511_v18  ;;  %12329 = vmatpush1.bf16.msra.mxu1 %v14513_v50  ;;  %v9404_v18 = vld [vmem:[#allocation13 + $0xf48] sm:$0xff] }
 0x64b   :  { %12166 = vmatprep.subr.bf16.mxu0 %v14520_v6  ;;  %12330 = vmatprep.subr.bf16.mxu1 %v14522_v5  ;;  %v9408_v50 = vld [vmem:[#allocation13 + $0xf68] sm:$0xff]  ;;  %v14559_v6 = vcombine.low %v9395_v8, %v9399_v13  ;;  %v14561_v5 = vcombine.low %v9396_v56, %v9400_v9 }
 0x64c   :  { %v14570_v35 = vcombine.high %v9404_v18, %v9408_v50  ;;  %v14569_v4 = vcombine.low %v9404_v18, %v9408_v50 }
 0x64e   :  { %12167 = vmatpush1.bf16.msra.mxu0 %v14519_v22  ;;  %12331 = vmatpush1.bf16.msra.mxu1 %v14521_v60  ;;  %v9415_v22 = vld [vmem:[#allocation13 + $0xfa0] sm:$0xff]  ;;  %v9412_v60 = vld [vmem:[#allocation13 + $0xf88] sm:$0xff] }
 0x64f   :  { %12168 = vmatprep.subr.bf16.mxu0 %v14528_v27  ;;  %12332 = vmatprep.subr.bf16.mxu1 %v14530_v17  ;;  %v9416_v27 = vld [vmem:[#allocation13 + $0xfa8] sm:$0xff]  ;;  %v14567_v17 = vcombine.low %v9403_v15, %v9407_v46  ;;  %v14576_v59 = vcombine.high %v9411_v45, %v9415_v22  ;;  %v14575_v53 = vcombine.low %v9411_v45, %v9415_v22  ;;  %v8938_v15 = vld [vmem:[#allocation13 + $0xb8] sm:$0xff] }
 0x650   :  { %v14578_v28 = vcombine.high %v9412_v60, %v9416_v27  ;;  %v14577_v38 = vcombine.low %v9412_v60, %v9416_v27  ;;  %v8946_v45 = vld [vmem:[#allocation13 + $0xf8] sm:$0xff] }
 0x652   :  { %12169 = vmatpush1.bf16.msra.mxu0 %v14527_v31  ;;  %12333 = vmatpush1.bf16.msra.mxu1 %v14529_v43  ;;  %v14597_v31 = vadd.f32 %v15442_v52, %v2438_v21  ;;  %v9423_v43 = vld [vmem:[#allocation13 + $0xfe0] sm:$0xff] }
 0x653   :  { %12170 = vmatprep.subr.bf16.mxu0 %v14536_v20  ;;  %12334 = vmatprep.subr.bf16.mxu1 %v14538_v34  ;;  %v9420_v20 = vld [vmem:[#allocation13 + $0xfc8] sm:$0xff]  ;;  %v14584_v39 = vcombine.high %v9419_v29, %v9423_v43  ;;  %v14583_v52 = vcombine.low %v9419_v29, %v9423_v43 }
 0x654   :  { %v9424_v34 = vld [vmem:[#allocation13 + $0xfe8] sm:$0xff]  ;;  %vm8889_vm7 = vcmp.gt.f32.partialorder %v14597_v31, 0.0 }
 0x655   :  { %v14586_v10 = vcombine.high %v9420_v20, %v9424_v34  ;;  %v14585_v57 = vcombine.low %v9420_v20, %v9424_v34  ;;  %v8957_v20 = vld [vmem:[#allocation13 + $0x150] sm:$0xff] }
 0x656   :  { %12171 = vmatpush1.bf16.msra.mxu0 %v14535_v19  ;;  %12335 = vmatpush1.bf16.msra.mxu1 %v14537_v54  ;;  %v8897_v19 = vmul.f32 0.2, %v14597_v31  ;;  %v8921_v54 = vld [vmem:[#allocation13 + $0x30] sm:$0xff] }
 0x657   :  { %12172 = vmatprep.subr.bf16.mxu0 %v14544_v36  ;;  %12336 = vmatprep.subr.bf16.mxu1 %v14546_v55  ;;  %v8918_v36 = vld [vmem:[#allocation13 + $0x18] sm:$0xff]  ;;  %v14084_v37 = vcombine.high %v8917_v51, %v8921_v54  ;;  %v14083_v8 = vcombine.low %v8917_v51, %v8921_v54  ;;  %v8961_v34 = vld [vmem:[#allocation13 + $0x170] sm:$0xff] }
 0x658   :  { %v8922_v55 = vld [vmem:[#allocation13 + $0x38] sm:$0xff]  ;;  %v8905_v62 = vsel %vm8889_vm7, %v14597_v31, %v8897_v19  ;;  %v14124_v51 = vcombine.high %v8957_v20, %v8961_v34  ;;  %v8965_v54 = vld [vmem:[#allocation13 + $0x190] sm:$0xff] }
 0x659   :  { %v14086_v58 = vcombine.high %v8918_v36, %v8922_v55  ;;  %v15459_v13 = vpack.c.bf16 %v8905_v62, %v8905_v62  ;;  %v14085_v56 = vcombine.low %v8918_v36, %v8922_v55  ;;  %v8969_v36 = vld [vmem:[#allocation13 + $0x1b0] sm:$0xff]  ;;  %v8966_v55 = vld [vmem:[#allocation13 + $0x198] sm:$0xff] }
 0x65a   :  { %12173 = vmatpush1.bf16.msra.mxu0 %v14543_v63  ;;  %12337 = vmatpush1.bf16.msra.mxu1 %v14545_v2  ;;  %v8925_v63 = vld [vmem:[#allocation13 + $0x50] sm:$0xff] }
 0x65b   :  { %12174 = vmatprep.subr.bf16.mxu0 %v14552_v61  ;;  %12338 = vmatprep.subr.bf16.mxu1 %v14554_v25  ;;  %v8929_v2 = vld [vmem:[#allocation13 + $0x70] sm:$0xff]  ;;  %v8926_v61 = vld [vmem:[#allocation13 + $0x58] sm:$0xff] }
 0x65c   :  { %v8930_v25 = vld [vmem:[#allocation13 + $0x78] sm:$0xff]  ;;  %v14092_v9 = vcombine.high %v8925_v63, %v8929_v2  ;;  %v14091_v46 = vcombine.low %v8925_v63, %v8929_v2  ;;  %v8973_v63 = vld [vmem:[#allocation13 + $0x1d0] sm:$0xff] }
 0x65d   :  { %v14093_v18 = vcombine.low %v8926_v61, %v8930_v25  ;;  %v8977_v2 = vld [vmem:[#allocation13 + $0x1f0] sm:$0xff] }
 0x65e   :  { %12175 = vmatpush1.bf16.msra.mxu0 %v14551_v11  ;;  %12339 = vmatpush1.bf16.msra.mxu1 %v14553_v1  ;;  %v14094_v11 = vcombine.high %v8926_v61, %v8930_v25  ;;  %v8933_v1 = vld [vmem:[#allocation13 + $0x90] sm:$0xff]  ;;  %v8974_v61 = vld [vmem:[#allocation13 + $0x1d8] sm:$0xff] }
 0x65f   :  { %12176 = vmatprep.subr.bf16.mxu0 %v14560_v16  ;;  %12340 = vmatprep.subr.bf16.mxu1 %v14562_v33  ;;  %v8937_v16 = vld [vmem:[#allocation13 + $0xb0] sm:$0xff]  ;;  %v8934_v33 = vld [vmem:[#allocation13 + $0x98] sm:$0xff] }
 0x660   :  { %v14100_v50 = vcombine.high %v8933_v1, %v8937_v16  ;;  %v14099_v21 = vcombine.low %v8933_v1, %v8937_v16  ;;  %v14101_v22 = vcombine.low %v8934_v33, %v8938_v15  ;;  %v8978_v25 = vld [vmem:[#allocation13 + $0x1f8] sm:$0xff]  ;;  %v8981_v1 = vld [vmem:[#allocation13 + $0x210] sm:$0xff] }
 0x661   :  { %v8985_v16 = vld [vmem:[#allocation13 + $0x230] sm:$0xff] }
 0x662   :  { %12177 = vmatpush1.bf16.msra.mxu0 %v14559_v6  ;;  %12341 = vmatpush1.bf16.msra.mxu1 %v14561_v5  ;;  %v14102_v6 = vcombine.high %v8934_v33, %v8938_v15  ;;  %v8941_v5 = vld [vmem:[#allocation13 + $0xd0] sm:$0xff]  ;;  %v8982_v33 = vld [vmem:[#allocation13 + $0x218] sm:$0xff] }
 0x663   :  { %12178 = vmatprep.subr.bf16.mxu0 %v14568_v44  ;;  %12342 = vmatprep.subr.bf16.mxu1 %v14570_v35  ;;  %v8945_v44 = vld [vmem:[#allocation13 + $0xf0] sm:$0xff]  ;;  %v8942_v35 = vld [vmem:[#allocation13 + $0xd8] sm:$0xff] }
 0x664   :  { %v14108_v60 = vcombine.high %v8941_v5, %v8945_v44  ;;  %v14110_v27 = vcombine.high %v8942_v35, %v8946_v45  ;;  %v14109_v29 = vcombine.low %v8942_v35, %v8946_v45  ;;  %v8986_v15 = vld [vmem:[#allocation13 + $0x238] sm:$0xff] }
 0x665   :  { %v8990_v35 = vld [vmem:[#allocation13 + $0x258] sm:$0xff] }
 0x666   :  { %12179 = vmatpush1.bf16.msra.mxu0 %v14567_v17  ;;  %12343 = vmatpush1.bf16.msra.mxu1 %v14569_v4  ;;  %v8949_v17 = vld [vmem:[#allocation13 + $0x110] sm:$0xff]  ;;  %v8994_v45 = vld [vmem:[#allocation13 + $0x278] sm:$0xff] }
 0x667   :  { %12180 = vmatprep.subr.bf16.mxu0 %v14576_v59  ;;  %12344 = vmatprep.subr.bf16.mxu1 %v14578_v28  ;;  %v8953_v4 = vld [vmem:[#allocation13 + $0x130] sm:$0xff]  ;;  %v8954_v59 = vld [vmem:[#allocation13 + $0x138] sm:$0xff]  ;;  %v14107_v28 = vcombine.low %v8941_v5, %v8945_v44 }
 0x668   :  { %v14116_v31 = vcombine.high %v8949_v17, %v8953_v4  ;;  %v8989_v5 = vld [vmem:[#allocation13 + $0x250] sm:$0xff] }
 0x669   :  { %v8993_v44 = vld [vmem:[#allocation13 + $0x270] sm:$0xff] }
 0x66a   :  { %12181 = vmatpush1.bf16.msra.mxu0 %v14575_v53  ;;  %12345 = vmatpush1.bf16.msra.mxu1 %v14577_v38  ;;  %v8958_v53 = vld [vmem:[#allocation13 + $0x158] sm:$0xff] }
 0x66b   :  { %12182 = vmatprep.subr.bf16.mxu0 %v14584_v39  ;;  %12346 = vmatprep.subr.bf16.mxu1 %v14586_v10  ;;  %v8962_v38 = vld [vmem:[#allocation13 + $0x178] sm:$0xff]  ;;  %v14115_v39 = vcombine.low %v8949_v17, %v8953_v4  ;;  %v8997_v17 = vld [vmem:[#allocation13 + $0x290] sm:$0xff] }
 0x66c   :  { %v14126_v19 = vcombine.high %v8958_v53, %v8962_v38  ;;  %v9001_v4 = vld [vmem:[#allocation13 + $0x2b0] sm:$0xff] }
 0x66e   :  { %12183 = vmatpush1.bf16.msra.mxu0 %v14583_v52  ;;  %12347 = vmatpush1.bf16.msra.mxu1 %v14585_v57  ;;  %v8970_v52 = vld [vmem:[#allocation13 + $0x1b8] sm:$0xff]  ;;  %v14123_v57 = vcombine.low %v8957_v20, %v8961_v34  ;;  %v9005_v20 = vld [vmem:[#allocation13 + $0x2d0] sm:$0xff] }
 0x66f   :  { %12357 = vmatprep.subr.bf16.mxu0 %v14084_v37  ;;  %12521 = vmatprep.subr.bf16.mxu1 %v14086_v58  ;;  %v14125_v37 = vcombine.low %v8958_v53, %v8962_v38  ;;  %v14132_v58 = vcombine.high %v8965_v54, %v8969_v36  ;;  %v14134_v62 = vcombine.high %v8966_v55, %v8970_v52  ;;  %v9009_v34 = vld [vmem:[#allocation13 + $0x2f0] sm:$0xff]  ;;  %v9006_v53 = vld [vmem:[#allocation13 + $0x2d8] sm:$0xff] }
 0x670   :  { %v9010_v38 = vld [vmem:[#allocation13 + $0x2f8] sm:$0xff] }
 0x671   :  { %12185 = vmatmul.mubr.bf16.vlgmr.msra.gmra.mrb[24].mxu0 %v15459_v13  ;;  %12349 = vmatmul.mubr.bf16.vlgmr.msra.gmra.mrb[24].mxu1 %v15459_v13 }
 0x672   :  { %12358 = vmatpush1.bf16.msra.mxu0 %v14083_v8  ;;  %12389 = vmatprep.mubr.bf16.mxu0 %v15407_v3  ;;  %v14131_v8 = vcombine.low %v8965_v54, %v8969_v36  ;;  %v9013_v54 = vld [vmem:[#allocation13 + $0x310] sm:$0xff] }
 0x673   :  { %12522 = vmatpush1.bf16.msra.mxu1 %v14085_v56  ;;  %12553 = vmatprep.mubr.bf16.mxu1 %v15407_v3  ;;  %v8950_v3 = vld [vmem:[#allocation13 + $0x118] sm:$0xff]  ;;  %v14133_v56 = vcombine.low %v8966_v55, %v8970_v52  ;;  %v9017_v36 = vld [vmem:[#allocation13 + $0x330] sm:$0xff] }
 0x674   :  { %12359 = vmatprep.subr.bf16.mxu0 %v14092_v9  ;;  %12523 = vmatprep.subr.bf16.mxu1 %v14094_v11  ;;  %v14118_v43 = vcombine.high %v8950_v3, %v8954_v59  ;;  %v14117_v10 = vcombine.low %v8950_v3, %v8954_v59  ;;  %v14140_v9 = vcombine.high %v8973_v63, %v8977_v2  ;;  %v8998_v3 = vld [vmem:[#allocation13 + $0x298] sm:$0xff] }
 0x675   :  { %v14142_v11 = vcombine.high %v8974_v61, %v8978_v25  ;;  %v9002_v59 = vld [vmem:[#allocation13 + $0x2b8] sm:$0xff] }
 0x676   :  { %12360 = vmatpush1.bf16.msra.mxu0 %v14091_v46  ;;  %v14139_v46 = vcombine.low %v8973_v63, %v8977_v2  ;;  %v9014_v55 = vld [vmem:[#allocation13 + $0x318] sm:$0xff]  ;;  %v9021_v63 = vld [vmem:[#allocation13 + $0x350] sm:$0xff] }
 0x677   :  { %12524 = vmatpush1.bf16.msra.mxu1 %v14093_v18  ;;  %12361 = vmatprep.subr.bf16.mxu0 %v14100_v50  ;;  %v14141_v18 = vcombine.low %v8974_v61, %v8978_v25  ;;  %v14148_v50 = vcombine.high %v8981_v1, %v8985_v16  ;;  %v9018_v52 = vld [vmem:[#allocation13 + $0x338] sm:$0xff]  ;;  %v9025_v2 = vld [vmem:[#allocation13 + $0x370] sm:$0xff] }
 0x678   :  { %12525 = vmatprep.subr.bf16.mxu1 %v14102_v6  ;;  %v14150_v6 = vcombine.high %v8982_v33, %v8986_v15  ;;  %v9022_v61 = vld [vmem:[#allocation13 + $0x358] sm:$0xff] }
 0x679   :  { %v9026_v25 = vld [vmem:[#allocation13 + $0x378] sm:$0xff] }
 0x67a   :  { %12362 = vmatpush1.bf16.msra.mxu0 %v14099_v21  ;;  %v14147_v21 = vcombine.low %v8981_v1, %v8985_v16  ;;  %v9029_v1 = vld [vmem:[#allocation13 + $0x390] sm:$0xff] }
 0x67b   :  { %12526 = vmatpush1.bf16.msra.mxu1 %v14101_v22  ;;  %12363 = vmatprep.subr.bf16.mxu0 %v14108_v60  ;;  %v14149_v22 = vcombine.low %v8982_v33, %v8986_v15  ;;  %v14156_v60 = vcombine.high %v8989_v5, %v8993_v44  ;;  %v9033_v16 = vld [vmem:[#allocation13 + $0x3b0] sm:$0xff]  ;;  %v9030_v33 = vld [vmem:[#allocation13 + $0x398] sm:$0xff] }
 0x67c   :  { %12527 = vmatprep.subr.bf16.mxu1 %v14110_v27  ;;  %v14158_v27 = vcombine.high %v8990_v35, %v8994_v45  ;;  %v9034_v15 = vld [vmem:[#allocation13 + $0x3b8] sm:$0xff] }
 0x67e   :  { %12364 = vmatpush1.bf16.msra.mxu0 %v14107_v28  ;;  %v14155_v28 = vcombine.low %v8989_v5, %v8993_v44  ;;  %v9037_v5 = vld [vmem:[#allocation13 + $0x3d0] sm:$0xff] }
 0x67f   :  { %12528 = vmatpush1.bf16.msra.mxu1 %v14109_v29  ;;  %12365 = vmatprep.subr.bf16.mxu0 %v14116_v31  ;;  %v14157_v29 = vcombine.low %v8990_v35, %v8994_v45  ;;  %v14164_v31 = vcombine.high %v8997_v17, %v9001_v4  ;;  %v9041_v44 = vld [vmem:[#allocation13 + $0x3f0] sm:$0xff]  ;;  %v9038_v35 = vld [vmem:[#allocation13 + $0x3d8] sm:$0xff] }
 0x680   :  { %12529 = vmatprep.subr.bf16.mxu1 %v14118_v43  ;;  %v14166_v43 = vcombine.high %v8998_v3, %v9002_v59  ;;  %v9042_v45 = vld [vmem:[#allocation13 + $0x3f8] sm:$0xff] }
 0x682   :  { %12366 = vmatpush1.bf16.msra.mxu0 %v14115_v39  ;;  %v14163_v39 = vcombine.low %v8997_v17, %v9001_v4  ;;  %v9045_v17 = vld [vmem:[#allocation13 + $0x410] sm:$0xff] }
 0x683   :  { %12530 = vmatpush1.bf16.msra.mxu1 %v14117_v10  ;;  %12367 = vmatprep.subr.bf16.mxu0 %v14124_v51  ;;  %v14165_v10 = vcombine.low %v8998_v3, %v9002_v59  ;;  %v14172_v51 = vcombine.high %v9005_v20, %v9009_v34  ;;  %v9049_v4 = vld [vmem:[#allocation13 + $0x430] sm:$0xff]  ;;  %v9046_v3 = vld [vmem:[#allocation13 + $0x418] sm:$0xff] }
 0x684   :  { %12531 = vmatprep.subr.bf16.mxu1 %v14126_v19  ;;  %v14174_v19 = vcombine.high %v9006_v53, %v9010_v38  ;;  %v9050_v59 = vld [vmem:[#allocation13 + $0x438] sm:$0xff] }
 0x686   :  { %12368 = vmatpush1.bf16.msra.mxu0 %v14123_v57  ;;  %v14171_v57 = vcombine.low %v9005_v20, %v9009_v34  ;;  %v9053_v20 = vld [vmem:[#allocation13 + $0x450] sm:$0xff] }
 0x687   :  { %12532 = vmatpush1.bf16.msra.mxu1 %v14125_v37  ;;  %12369 = vmatprep.subr.bf16.mxu0 %v14132_v58  ;;  %v14173_v37 = vcombine.low %v9006_v53, %v9010_v38  ;;  %v14180_v58 = vcombine.high %v9013_v54, %v9017_v36  ;;  %v9057_v34 = vld [vmem:[#allocation13 + $0x470] sm:$0xff]  ;;  %v14211_v53 = vcombine.low %v9045_v17, %v9049_v4  ;;  %v9054_v38 = vld [vmem:[#allocation13 + $0x458] sm:$0xff] }
 0x688   :  { %12533 = vmatprep.subr.bf16.mxu1 %v14134_v62  ;;  %v14182_v62 = vcombine.high %v9014_v55, %v9018_v52 }
 0x68a   :  { %12370 = vmatpush1.bf16.msra.mxu0 %v14131_v8  ;;  %v14179_v8 = vcombine.low %v9013_v54, %v9017_v36  ;;  %v9065_v54 = vld [vmem:[#allocation13 + $0x4b0] sm:$0xff] }
 0x68b   :  { %12534 = vmatpush1.bf16.msra.mxu1 %v14133_v56  ;;  %12371 = vmatprep.subr.bf16.mxu0 %v14140_v9  ;;  %v14181_v56 = vcombine.low %v9014_v55, %v9018_v52  ;;  %v14188_v9 = vcombine.high %v9021_v63, %v9025_v2  ;;  %v9062_v55 = vld [vmem:[#allocation13 + $0x498] sm:$0xff] }
 0x68c   :  { %12535 = vmatprep.subr.bf16.mxu1 %v14142_v11  ;;  %v14190_v11 = vcombine.high %v9022_v61, %v9026_v25  ;;  %v9066_v52 = vld [vmem:[#allocation13 + $0x4b8] sm:$0xff] }
 0x68e   :  { %12372 = vmatpush1.bf16.msra.mxu0 %v14139_v46  ;;  %v14187_v46 = vcombine.low %v9021_v63, %v9025_v2  ;;  %v9069_v63 = vld [vmem:[#allocation13 + $0x4d0] sm:$0xff] }
 0x68f   :  { %12536 = vmatpush1.bf16.msra.mxu1 %v14141_v18  ;;  %12373 = vmatprep.subr.bf16.mxu0 %v14148_v50  ;;  %v14189_v18 = vcombine.low %v9022_v61, %v9026_v25  ;;  %v14196_v50 = vcombine.high %v9029_v1, %v9033_v16  ;;  %v9073_v2 = vld [vmem:[#allocation13 + $0x4f0] sm:$0xff]  ;;  %v9070_v61 = vld [vmem:[#allocation13 + $0x4d8] sm:$0xff] }
 0x690   :  { %12537 = vmatprep.subr.bf16.mxu1 %v14150_v6  ;;  %v14198_v6 = vcombine.high %v9030_v33, %v9034_v15  ;;  %v9074_v25 = vld [vmem:[#allocation13 + $0x4f8] sm:$0xff] }
 0x692   :  { %12374 = vmatpush1.bf16.msra.mxu0 %v14147_v21  ;;  %v14195_v21 = vcombine.low %v9029_v1, %v9033_v16  ;;  %v9081_v1 = vld [vmem:[#allocation13 + $0x530] sm:$0xff]  ;;  %v9078_v16 = vld [vmem:[#allocation13 + $0x518] sm:$0xff] }
 0x693   :  { %12538 = vmatpush1.bf16.msra.mxu1 %v14149_v22  ;;  %12375 = vmatprep.subr.bf16.mxu0 %v14156_v60  ;;  %v14197_v22 = vcombine.low %v9030_v33, %v9034_v15  ;;  %v14204_v60 = vcombine.high %v9037_v5, %v9041_v44  ;;  %v9082_v33 = vld [vmem:[#allocation13 + $0x538] sm:$0xff]  ;;  %v14237_v15 = vcombine.low %v9070_v61, %v9074_v25 }
 0x694   :  { %12539 = vmatprep.subr.bf16.mxu1 %v14158_v27  ;;  %v14206_v27 = vcombine.high %v9038_v35, %v9042_v45 }
 0x696   :  { %12376 = vmatpush1.bf16.msra.mxu0 %v14155_v28  ;;  %v14203_v28 = vcombine.low %v9037_v5, %v9041_v44  ;;  %v9086_v5 = vld [vmem:[#allocation13 + $0x558] sm:$0xff] }
 0x697   :  { %12540 = vmatpush1.bf16.msra.mxu1 %v14157_v29  ;;  %12377 = vmatprep.subr.bf16.mxu0 %v14164_v31  ;;  %v14205_v29 = vcombine.low %v9038_v35, %v9042_v45  ;;  %v14212_v31 = vcombine.high %v9045_v17, %v9049_v4  ;;  %v9090_v44 = vld [vmem:[#allocation13 + $0x578] sm:$0xff]  ;;  %v14245_v45 = vcombine.low %v9078_v16, %v9082_v33 }
 0x698   :  { %12541 = vmatprep.subr.bf16.mxu1 %v14166_v43  ;;  %v14214_v43 = vcombine.high %v9046_v3, %v9050_v59  ;;  %v9094_v17 = vld [vmem:[#allocation13 + $0x598] sm:$0xff] }
 0x699   :  { %v9098_v4 = vld [vmem:[#allocation13 + $0x5b8] sm:$0xff] }
 0x69a   :  { %12378 = vmatpush1.bf16.msra.mxu0 %v14163_v39  ;;  %v9058_v39 = vld [vmem:[#allocation13 + $0x478] sm:$0xff] }
 0x69b   :  { %12542 = vmatpush1.bf16.msra.mxu1 %v14165_v10  ;;  %12379 = vmatprep.subr.bf16.mxu0 %v14172_v51  ;;  %v14213_v10 = vcombine.low %v9046_v3, %v9050_v59  ;;  %v14220_v51 = vcombine.high %v9053_v20, %v9057_v34  ;;  %v14222_v36 = vcombine.high %v9054_v38, %v9058_v39 }
 0x69c   :  { %12543 = vmatprep.subr.bf16.mxu1 %v14174_v19  ;;  %v9061_v19 = vld [vmem:[#allocation13 + $0x490] sm:$0xff]  ;;  %v14253_v59 = vcombine.low %v9086_v5, %v9090_v44 }
 0x69e   :  { %12380 = vmatpush1.bf16.msra.mxu0 %v14171_v57  ;;  %v14219_v57 = vcombine.low %v9053_v20, %v9057_v34  ;;  %v9102_v20 = vld [vmem:[#allocation13 + $0x5d8] sm:$0xff] }
 0x69f   :  { %12544 = vmatpush1.bf16.msra.mxu1 %v14173_v37  ;;  %12381 = vmatprep.subr.bf16.mxu0 %v14180_v58  ;;  %v14221_v37 = vcombine.low %v9054_v38, %v9058_v39  ;;  %v14228_v58 = vcombine.high %v9061_v19, %v9065_v54  ;;  %v9106_v34 = vld [vmem:[#allocation13 + $0x5f8] sm:$0xff]  ;;  %v14261_v38 = vcombine.low %v9094_v17, %v9098_v4 }
 0x6a0   :  { %12545 = vmatprep.subr.bf16.mxu1 %v14182_v62  ;;  %v14230_v62 = vcombine.high %v9062_v55, %v9066_v52 }
 0x6a2   :  { %12382 = vmatpush1.bf16.msra.mxu0 %v14179_v8  ;;  %v14227_v8 = vcombine.low %v9061_v19, %v9065_v54  ;;  %v9113_v19 = vld [vmem:[#allocation13 + $0x630] sm:$0xff]  ;;  %v9110_v54 = vld [vmem:[#allocation13 + $0x618] sm:$0xff] }
 0x6a3   :  { %12546 = vmatpush1.bf16.msra.mxu1 %v14181_v56  ;;  %12383 = vmatprep.subr.bf16.mxu0 %v14188_v9  ;;  %v14236_v56 = vcombine.high %v9069_v63, %v9073_v2  ;;  %v14238_v9 = vcombine.high %v9070_v61, %v9074_v25 }
 0x6a4   :  { %12547 = vmatprep.subr.bf16.mxu1 %v14190_v11  ;;  %v9077_v11 = vld [vmem:[#allocation13 + $0x510] sm:$0xff] }
 0x6a5   :  { %v14243_v35 = vcombine.low %v9077_v11, %v9081_v1 }
 0x6a6   :  { %12384 = vmatpush1.bf16.msra.mxu0 %v14187_v46  ;;  %v14244_v46 = vcombine.high %v9077_v11, %v9081_v1  ;;  %v9126_v11 = vld [vmem:[#allocation13 + $0x698] sm:$0xff] }
 0x6a7   :  { %12548 = vmatpush1.bf16.msra.mxu1 %v14189_v18  ;;  %12385 = vmatprep.subr.bf16.mxu0 %v14196_v50  ;;  %v14246_v18 = vcombine.high %v9078_v16, %v9082_v33  ;;  %v9085_v50 = vld [vmem:[#allocation13 + $0x550] sm:$0xff]  ;;  %v9130_v1 = vld [vmem:[#allocation13 + $0x6b8] sm:$0xff] }
 0x6a8   :  { %12549 = vmatprep.subr.bf16.mxu1 %v14198_v6  ;;  %v9089_v6 = vld [vmem:[#allocation13 + $0x570] sm:$0xff] }
 0x6a9   :  { %v14251_v3 = vcombine.low %v9085_v50, %v9089_v6 }
 0x6aa   :  { %12386 = vmatpush1.bf16.msra.mxu0 %v14195_v21  ;;  %v14252_v21 = vcombine.high %v9085_v50, %v9089_v6  ;;  %v9134_v50 = vld [vmem:[#allocation13 + $0x6d8] sm:$0xff] }
 0x6ab   :  { %12550 = vmatpush1.bf16.msra.mxu1 %v14197_v22  ;;  %12387 = vmatprep.subr.bf16.mxu0 %v14204_v60  ;;  %v14254_v22 = vcombine.high %v9086_v5, %v9090_v44  ;;  %v9093_v60 = vld [vmem:[#allocation13 + $0x590] sm:$0xff]  ;;  %v9138_v6 = vld [vmem:[#allocation13 + $0x6f8] sm:$0xff]  ;;  %v14293_v44 = vcombine.low %v9126_v11, %v9130_v1 }
 0x6ac   :  { %12551 = vmatprep.subr.bf16.mxu1 %v14206_v27  ;;  %v9097_v27 = vld [vmem:[#allocation13 + $0x5b0] sm:$0xff] }
 0x6ae   :  { %12388 = vmatpush1.bf16.msra.mxu0 %v14203_v28  ;;  %v14260_v28 = vcombine.high %v9093_v60, %v9097_v27 }
 0x6af   :  { %12552 = vmatpush1.bf16.msra.mxu1 %v14205_v29  ;;  %12398 = vmatprep.subr.bf16.mxu0 %v14212_v31  ;;  %v14262_v29 = vcombine.high %v9094_v17, %v9098_v4  ;;  %v9101_v31 = vld [vmem:[#allocation13 + $0x5d0] sm:$0xff]  ;;  %v14301_v4 = vcombine.low %v9134_v50, %v9138_v6 }
 0x6b0   :  { %12562 = vmatprep.subr.bf16.mxu1 %v14214_v43  ;;  %v9105_v43 = vld [vmem:[#allocation13 + $0x5f0] sm:$0xff] }
 0x6b1   :  { %12390 = vmatmul.mubr.bf16.vlgmr.msra.gmra.mrb[28].mxu0 %v15419_v32  ;;  %v14268_v39 = vcombine.high %v9101_v31, %v9105_v43 }
 0x6b2   :  { %12554 = vmatmul.mubr.bf16.vlgmr.msra.gmra.mrb[28].mxu1 %v15419_v32  ;;  %12399 = vmatpush1.bf16.msra.mxu0 %v14211_v53  ;;  %v14229_v32 = vcombine.low %v9062_v55, %v9066_v52  ;;  %v14259_v53 = vcombine.low %v9093_v60, %v9097_v27  ;;  %v14267_v55 = vcombine.low %v9101_v31, %v9105_v43  ;;  %v9142_v60 = vld [vmem:[#allocation13 + $0x718] sm:$0xff] }
 0x6b3   :  { %12430 = vmatprep.mubr.bf16.mxu0 %v15421_v42  ;;  %12563 = vmatpush1.bf16.msra.mxu1 %v14213_v10  ;;  %v14270_v10 = vcombine.high %v9102_v20, %v9106_v34  ;;  %v14269_v52 = vcombine.low %v9102_v20, %v9106_v34  ;;  %v9146_v27 = vld [vmem:[#allocation13 + $0x738] sm:$0xff] }
 0x6b4   :  { %12594 = vmatprep.mubr.bf16.mxu1 %v15421_v42  ;;  %12400 = vmatprep.subr.bf16.mxu0 %v14220_v51  ;;  %v14235_v42 = vcombine.low %v9069_v63, %v9073_v2  ;;  %v9109_v51 = vld [vmem:[#allocation13 + $0x610] sm:$0xff]  ;;  %v9118_v63 = vld [vmem:[#allocation13 + $0x658] sm:$0xff]  ;;  %v14309_v34 = vcombine.low %v9142_v60, %v9146_v27 }
 0x6b5   :  { %12564 = vmatprep.subr.bf16.mxu1 %v14222_v36  ;;  %v9114_v36 = vld [vmem:[#allocation13 + $0x638] sm:$0xff]  ;;  %v14275_v61 = vcombine.low %v9109_v51, %v9113_v19 }
 0x6b6   :  { %12401 = vmatpush1.bf16.msra.mxu0 %v14219_v57  ;;  %v14276_v57 = vcombine.high %v9109_v51, %v9113_v19  ;;  %v9122_v2 = vld [vmem:[#allocation13 + $0x678] sm:$0xff]  ;;  %v14277_v25 = vcombine.low %v9110_v54, %v9114_v36 }
 0x6b7   :  { %12565 = vmatpush1.bf16.msra.mxu1 %v14221_v37  ;;  %12402 = vmatprep.subr.bf16.mxu0 %v14228_v58  ;;  %v14278_v37 = vcombine.high %v9110_v54, %v9114_v36  ;;  %v9117_v58 = vld [vmem:[#allocation13 + $0x650] sm:$0xff]  ;;  %v14285_v33 = vcombine.low %v9118_v63, %v9122_v2  ;;  %v9150_v31 = vld [vmem:[#allocation13 + $0x758] sm:$0xff] }
 0x6b8   :  { %12566 = vmatprep.subr.bf16.mxu1 %v14230_v62  ;;  %v9121_v62 = vld [vmem:[#allocation13 + $0x670] sm:$0xff]  ;;  %v9154_v43 = vld [vmem:[#allocation13 + $0x778] sm:$0xff] }
 0x6b9   :  { %v14283_v16 = vcombine.low %v9117_v58, %v9121_v62  ;;  %v9158_v51 = vld [vmem:[#allocation13 + $0x798] sm:$0xff]  ;;  %v14317_v36 = vcombine.low %v9150_v31, %v9154_v43 }
 0x6ba   :  { %12403 = vmatpush1.bf16.msra.mxu0 %v14227_v8  ;;  %v14284_v8 = vcombine.high %v9117_v58, %v9121_v62  ;;  %v9162_v19 = vld [vmem:[#allocation13 + $0x7b8] sm:$0xff] }
 0x6bb   :  { %12567 = vmatpush1.bf16.msra.mxu1 %v14229_v32  ;;  %12404 = vmatprep.subr.bf16.mxu0 %v14236_v56  ;;  %v14286_v32 = vcombine.high %v9118_v63, %v9122_v2  ;;  %v9125_v56 = vld [vmem:[#allocation13 + $0x690] sm:$0xff]  ;;  %v9166_v58 = vld [vmem:[#allocation13 + $0x7d8] sm:$0xff]  ;;  %v14325_v2 = vcombine.low %v9158_v51, %v9162_v19 }
 0x6bc   :  { %12568 = vmatprep.subr.bf16.mxu1 %v14238_v9  ;;  %v9129_v9 = vld [vmem:[#allocation13 + $0x6b0] sm:$0xff]  ;;  %v9170_v62 = vld [vmem:[#allocation13 + $0x7f8] sm:$0xff] }
 0x6bd   :  { %v14291_v5 = vcombine.low %v9125_v56, %v9129_v9 }
 0x6be   :  { %12405 = vmatpush1.bf16.msra.mxu0 %v14235_v42  ;;  %v14292_v42 = vcombine.high %v9125_v56, %v9129_v9  ;;  %v9174_v56 = vld [vmem:[#allocation13 + $0x818] sm:$0xff] }
 0x6bf   :  { %12569 = vmatpush1.bf16.msra.mxu1 %v14237_v15  ;;  %12406 = vmatprep.subr.bf16.mxu0 %v14244_v46  ;;  %v14294_v15 = vcombine.high %v9126_v11, %v9130_v1  ;;  %v9133_v46 = vld [vmem:[#allocation13 + $0x6d0] sm:$0xff]  ;;  %v9178_v9 = vld [vmem:[#allocation13 + $0x838] sm:$0xff]  ;;  %v14333_v1 = vcombine.low %v9166_v58, %v9170_v62 }
 0x6c0   :  { %12570 = vmatprep.subr.bf16.mxu1 %v14246_v18  ;;  %v9137_v18 = vld [vmem:[#allocation13 + $0x6f0] sm:$0xff] }
 0x6c1   :  { %v14299_v17 = vcombine.low %v9133_v46, %v9137_v18 }
 0x6c2   :  { %12407 = vmatpush1.bf16.msra.mxu0 %v14243_v35  ;;  %v14300_v35 = vcombine.high %v9133_v46, %v9137_v18  ;;  %v9182_v18 = vld [vmem:[#allocation13 + $0x858] sm:$0xff] }
 0x6c3   :  { %12571 = vmatpush1.bf16.msra.mxu1 %v14245_v45  ;;  %12408 = vmatprep.subr.bf16.mxu0 %v14252_v21  ;;  %v14302_v45 = vcombine.high %v9134_v50, %v9138_v6  ;;  %v9141_v21 = vld [vmem:[#allocation13 + $0x710] sm:$0xff]  ;;  %v9186_v50 = vld [vmem:[#allocation13 + $0x878] sm:$0xff]  ;;  %v14341_v6 = vcombine.low %v9174_v56, %v9178_v9 }
 0x6c4   :  { %12572 = vmatprep.subr.bf16.mxu1 %v14254_v22  ;;  %v9145_v22 = vld [vmem:[#allocation13 + $0x730] sm:$0xff] }
 0x6c5   :  { %v14307_v20 = vcombine.low %v9141_v21, %v9145_v22 }
 0x6c6   :  { %12409 = vmatpush1.bf16.msra.mxu0 %v14251_v3  ;;  %v14308_v3 = vcombine.high %v9141_v21, %v9145_v22  ;;  %v9190_v21 = vld [vmem:[#allocation13 + $0x898] sm:$0xff] }
 0x6c7   :  { %12573 = vmatpush1.bf16.msra.mxu1 %v14253_v59  ;;  %12410 = vmatprep.subr.bf16.mxu0 %v14260_v28  ;;  %v14310_v59 = vcombine.high %v9142_v60, %v9146_v27  ;;  %v9149_v28 = vld [vmem:[#allocation13 + $0x750] sm:$0xff]  ;;  %v9194_v22 = vld [vmem:[#allocation13 + $0x8b8] sm:$0xff]  ;;  %v14349_v27 = vcombine.low %v9182_v18, %v9186_v50 }
 0x6c8   :  { %12574 = vmatprep.subr.bf16.mxu1 %v14262_v29  ;;  %v9153_v29 = vld [vmem:[#allocation13 + $0x770] sm:$0xff] }
 0x6c9   :  { %v14315_v54 = vcombine.low %v9149_v28, %v9153_v29 }
 0x6ca   :  { %12411 = vmatpush1.bf16.msra.mxu0 %v14259_v53  ;;  %v14316_v53 = vcombine.high %v9149_v28, %v9153_v29  ;;  %v9198_v28 = vld [vmem:[#allocation13 + $0x8d8] sm:$0xff] }
 0x6cb   :  { %12575 = vmatpush1.bf16.msra.mxu1 %v14261_v38  ;;  %12412 = vmatprep.subr.bf16.mxu0 %v14268_v39  ;;  %v14318_v38 = vcombine.high %v9150_v31, %v9154_v43  ;;  %v9157_v39 = vld [vmem:[#allocation13 + $0x790] sm:$0xff]  ;;  %v9202_v29 = vld [vmem:[#allocation13 + $0x8f8] sm:$0xff] }
 0x6cc   :  { %12576 = vmatprep.subr.bf16.mxu1 %v14270_v10  ;;  %v9161_v10 = vld [vmem:[#allocation13 + $0x7b0] sm:$0xff] }
 0x6cd   :  { %v14323_v63 = vcombine.low %v9157_v39, %v9161_v10 }
 0x6ce   :  { %12413 = vmatpush1.bf16.msra.mxu0 %v14267_v55  ;;  %v14324_v55 = vcombine.high %v9157_v39, %v9161_v10  ;;  %v9210_v39 = vld [vmem:[#allocation13 + $0x938] sm:$0xff]  ;;  %v14365_v10 = vcombine.low %v9198_v28, %v9202_v29 }
 0x6cf   :  { %12577 = vmatpush1.bf16.msra.mxu1 %v14269_v52  ;;  %12414 = vmatprep.subr.bf16.mxu0 %v14276_v57  ;;  %v14326_v52 = vcombine.high %v9158_v51, %v9162_v19  ;;  %v9165_v57 = vld [vmem:[#allocation13 + $0x7d0] sm:$0xff] }
 0x6d0   :  { %12578 = vmatprep.subr.bf16.mxu1 %v14278_v37  ;;  %v9169_v37 = vld [vmem:[#allocation13 + $0x7f0] sm:$0xff] }
 0x6d1   :  { %v14331_v11 = vcombine.low %v9165_v57, %v9169_v37 }
 0x6d2   :  { %12415 = vmatpush1.bf16.msra.mxu0 %v14275_v61  ;;  %v14332_v61 = vcombine.high %v9165_v57, %v9169_v37 }
 0x6d3   :  { %12579 = vmatpush1.bf16.msra.mxu1 %v14277_v25  ;;  %12416 = vmatprep.subr.bf16.mxu0 %v14284_v8  ;;  %v14334_v25 = vcombine.high %v9166_v58, %v9170_v62  ;;  %v9173_v8 = vld [vmem:[#allocation13 + $0x810] sm:$0xff] }
 0x6d4   :  { %12580 = vmatprep.subr.bf16.mxu1 %v14286_v32  ;;  %v9177_v32 = vld [vmem:[#allocation13 + $0x830] sm:$0xff] }
 0x6d5   :  { %v14339_v46 = vcombine.low %v9173_v8, %v9177_v32 }
 0x6d6   :  { %12417 = vmatpush1.bf16.msra.mxu0 %v14283_v16  ;;  %v14340_v16 = vcombine.high %v9173_v8, %v9177_v32 }
 0x6d7   :  { %12581 = vmatpush1.bf16.msra.mxu1 %v14285_v33  ;;  %12418 = vmatprep.subr.bf16.mxu0 %v14292_v42  ;;  %v14342_v33 = vcombine.high %v9174_v56, %v9178_v9  ;;  %v9181_v42 = vld [vmem:[#allocation13 + $0x850] sm:$0xff] }
 0x6d8   :  { %12582 = vmatprep.subr.bf16.mxu1 %v14294_v15  ;;  %v9185_v15 = vld [vmem:[#allocation13 + $0x870] sm:$0xff] }
 0x6d9   :  { %v14347_v60 = vcombine.low %v9181_v42, %v9185_v15 }
 0x6da   :  { %12419 = vmatpush1.bf16.msra.mxu0 %v14291_v5  ;;  %v14348_v5 = vcombine.high %v9181_v42, %v9185_v15 }
 0x6db   :  { %12583 = vmatpush1.bf16.msra.mxu1 %v14293_v44  ;;  %12420 = vmatprep.subr.bf16.mxu0 %v14300_v35  ;;  %v9189_v44 = vld [vmem:[#allocation13 + $0x890] sm:$0xff] }
 0x6dc   :  { %12584 = vmatprep.subr.bf16.mxu1 %v14302_v45  ;;  %v9193_v35 = vld [vmem:[#allocation13 + $0x8b0] sm:$0xff]  ;;  %v14350_v45 = vcombine.high %v9182_v18, %v9186_v50 }
 0x6dd   :  { %v14355_v31 = vcombine.low %v9189_v44, %v9193_v35  ;;  %v9237_v50 = vld [vmem:[#allocation13 + $0xa10] sm:$0xff] }
 0x6de   :  { %12421 = vmatpush1.bf16.msra.mxu0 %v14299_v17  ;;  %v14356_v17 = vcombine.high %v9189_v44, %v9193_v35  ;;  %v9242_v44 = vld [vmem:[#allocation13 + $0xa38] sm:$0xff] }
 0x6df   :  { %12585 = vmatpush1.bf16.msra.mxu1 %v14301_v4  ;;  %12422 = vmatprep.subr.bf16.mxu0 %v14308_v3  ;;  %v14358_v4 = vcombine.high %v9190_v21, %v9194_v22  ;;  %v9197_v3 = vld [vmem:[#allocation13 + $0x8d0] sm:$0xff] }
 0x6e0   :  { %12586 = vmatprep.subr.bf16.mxu1 %v14310_v59  ;;  %v9201_v59 = vld [vmem:[#allocation13 + $0x8f0] sm:$0xff] }
 0x6e1   :  { %v14364_v43 = vcombine.high %v9197_v3, %v9201_v59 }
 0x6e2   :  { %12423 = vmatpush1.bf16.msra.mxu0 %v14307_v20  ;;  %v14366_v20 = vcombine.high %v9198_v28, %v9202_v29 }
 0x6e3   :  { %12587 = vmatpush1.bf16.msra.mxu1 %v14309_v34  ;;  %12424 = vmatprep.subr.bf16.mxu0 %v14316_v53  ;;  %v9205_v34 = vld [vmem:[#allocation13 + $0x910] sm:$0xff] }
 0x6e4   :  { %12588 = vmatprep.subr.bf16.mxu1 %v14318_v38  ;;  %v9209_v53 = vld [vmem:[#allocation13 + $0x930] sm:$0xff]  ;;  %v9206_v38 = vld [vmem:[#allocation13 + $0x918] sm:$0xff] }
 0x6e5   :  { %v14372_v51 = vcombine.high %v9205_v34, %v9209_v53  ;;  %v14374_v19 = vcombine.high %v9206_v38, %v9210_v39  ;;  %v14371_v57 = vcombine.low %v9205_v34, %v9209_v53  ;;  %v14373_v37 = vcombine.low %v9206_v38, %v9210_v39 }
 0x6e6   :  { %12425 = vmatpush1.bf16.msra.mxu0 %v14315_v54  ;;  %v9213_v54 = vld [vmem:[#allocation13 + $0x950] sm:$0xff] }
 0x6e7   :  { %12589 = vmatpush1.bf16.msra.mxu1 %v14317_v36  ;;  %12426 = vmatprep.subr.bf16.mxu0 %v14324_v55  ;;  %v9217_v36 = vld [vmem:[#allocation13 + $0x970] sm:$0xff]  ;;  %v9214_v55 = vld [vmem:[#allocation13 + $0x958] sm:$0xff] }
 0x6e8   :  { %12590 = vmatprep.subr.bf16.mxu1 %v14326_v52  ;;  %v9218_v52 = vld [vmem:[#allocation13 + $0x978] sm:$0xff]  ;;  %v14380_v58 = vcombine.high %v9213_v54, %v9217_v36  ;;  %v14379_v8 = vcombine.low %v9213_v54, %v9217_v36 }
 0x6e9   :  { %v14382_v62 = vcombine.high %v9214_v55, %v9218_v52  ;;  %v14381_v32 = vcombine.low %v9214_v55, %v9218_v52 }
 0x6ea   :  { %12427 = vmatpush1.bf16.msra.mxu0 %v14323_v63  ;;  %v9221_v63 = vld [vmem:[#allocation13 + $0x990] sm:$0xff] }
 0x6eb   :  { %12591 = vmatpush1.bf16.msra.mxu1 %v14325_v2  ;;  %12428 = vmatprep.subr.bf16.mxu0 %v14332_v61  ;;  %v9225_v2 = vld [vmem:[#allocation13 + $0x9b0] sm:$0xff]  ;;  %v9222_v61 = vld [vmem:[#allocation13 + $0x998] sm:$0xff] }
 0x6ec   :  { %12592 = vmatprep.subr.bf16.mxu1 %v14334_v25  ;;  %v9226_v25 = vld [vmem:[#allocation13 + $0x9b8] sm:$0xff]  ;;  %v14388_v56 = vcombine.high %v9221_v63, %v9225_v2  ;;  %v14387_v42 = vcombine.low %v9221_v63, %v9225_v2 }
 0x6ed   :  { %v14390_v9 = vcombine.high %v9222_v61, %v9226_v25  ;;  %v14389_v15 = vcombine.low %v9222_v61, %v9226_v25 }
 0x6ee   :  { %12429 = vmatpush1.bf16.msra.mxu0 %v14331_v11  ;;  %v9229_v11 = vld [vmem:[#allocation13 + $0x9d0] sm:$0xff] }
 0x6ef   :  { %12593 = vmatpush1.bf16.msra.mxu1 %v14333_v1  ;;  %12439 = vmatprep.subr.bf16.mxu0 %v14340_v16  ;;  %v9233_v1 = vld [vmem:[#allocation13 + $0x9f0] sm:$0xff]  ;;  %v9230_v16 = vld [vmem:[#allocation13 + $0x9d8] sm:$0xff] }
 0x6f0   :  { %12603 = vmatprep.subr.bf16.mxu1 %v14342_v33  ;;  %v9234_v33 = vld [vmem:[#allocation13 + $0x9f8] sm:$0xff]  ;;  %v14395_v35 = vcombine.low %v9229_v11, %v9233_v1 }
 0x6f1   :  { %12431 = vmatmul.mubr.bf16.vlgmr.msra.gmra.mrb[28].mxu0 %v15430_v48  ;;  %v14398_v18 = vcombine.high %v9230_v16, %v9234_v33 }
 0x6f2   :  { %12595 = vmatmul.mubr.bf16.vlgmr.msra.gmra.mrb[28].mxu1 %v15430_v48  ;;  %12440 = vmatpush1.bf16.msra.mxu0 %v14339_v46  ;;  %v14357_v48 = vcombine.low %v9190_v21, %v9194_v22  ;;  %v14396_v46 = vcombine.high %v9229_v11, %v9233_v1 }
 0x6f3   :  { %12471 = vmatprep.mubr.bf16.mxu0 %v15444_v49  ;;  %12604 = vmatpush1.bf16.msra.mxu1 %v14341_v6  ;;  %v9241_v6 = vld [vmem:[#allocation13 + $0xa30] sm:$0xff] }
 0x6f4   :  { %12635 = vmatprep.mubr.bf16.mxu1 %v15444_v49  ;;  %12441 = vmatprep.subr.bf16.mxu0 %v14348_v5  ;;  %v14363_v49 = vcombine.low %v9197_v3, %v9201_v59  ;;  %v9238_v5 = vld [vmem:[#allocation13 + $0xa18] sm:$0xff]  ;;  %v14404_v21 = vcombine.high %v9237_v50, %v9241_v6  ;;  %v14403_v3 = vcombine.low %v9237_v50, %v9241_v6 }
 0x6f5   :  { %12605 = vmatprep.subr.bf16.mxu1 %v14350_v45  ;;  %v14397_v45 = vcombine.low %v9230_v16, %v9234_v33  ;;  %v14406_v22 = vcombine.high %v9238_v5, %v9242_v44  ;;  %v14405_v59 = vcombine.low %v9238_v5, %v9242_v44 }
 0x6f6   :  { %12442 = vmatpush1.bf16.msra.mxu0 %v14347_v60  ;;  %v9245_v60 = vld [vmem:[#allocation13 + $0xa50] sm:$0xff] }
 0x6f7   :  { %12606 = vmatpush1.bf16.msra.mxu1 %v14349_v27  ;;  %12443 = vmatprep.subr.bf16.mxu0 %v14356_v17  ;;  %v9249_v27 = vld [vmem:[#allocation13 + $0xa70] sm:$0xff]  ;;  %v9246_v17 = vld [vmem:[#allocation13 + $0xa58] sm:$0xff] }
 0x6f8   :  { %12607 = vmatprep.subr.bf16.mxu1 %v14358_v4  ;;  %v9250_v4 = vld [vmem:[#allocation13 + $0xa78] sm:$0xff]  ;;  %v14412_v28 = vcombine.high %v9245_v60, %v9249_v27  ;;  %v14411_v34 = vcombine.low %v9245_v60, %v9249_v27 }
 0x6f9   :  { %v14414_v29 = vcombine.high %v9246_v17, %v9250_v4  ;;  %v14413_v53 = vcombine.low %v9246_v17, %v9250_v4 }
 0x6fa   :  { %12444 = vmatpush1.bf16.msra.mxu0 %v14355_v31  ;;  %v9253_v31 = vld [vmem:[#allocation13 + $0xa90] sm:$0xff] }
 0x6fb   :  { %12608 = vmatpush1.bf16.msra.mxu1 %v14357_v48  ;;  %12445 = vmatprep.subr.bf16.mxu0 %v14364_v43  ;;  %v9257_v48 = vld [vmem:[#allocation13 + $0xab0] sm:$0xff]  ;;  %v9254_v43 = vld [vmem:[#allocation13 + $0xa98] sm:$0xff] }
 0x6fc   :  { %12609 = vmatprep.subr.bf16.mxu1 %v14366_v20  ;;  %v9258_v20 = vld [vmem:[#allocation13 + $0xab8] sm:$0xff]  ;;  %v14420_v38 = vcombine.high %v9253_v31, %v9257_v48  ;;  %v14419_v54 = vcombine.low %v9253_v31, %v9257_v48 }
 0x6fd   :  { %v14422_v39 = vcombine.high %v9254_v43, %v9258_v20  ;;  %v14421_v36 = vcombine.low %v9254_v43, %v9258_v20 }
 0x6fe   :  { %12446 = vmatpush1.bf16.msra.mxu0 %v14363_v49  ;;  %v9261_v49 = vld [vmem:[#allocation13 + $0xad0] sm:$0xff] }
 0x6ff   :  { %12610 = vmatpush1.bf16.msra.mxu1 %v14365_v10  ;;  %12447 = vmatprep.subr.bf16.mxu0 %v14372_v51  ;;  %v9265_v10 = vld [vmem:[#allocation13 + $0xaf0] sm:$0xff]  ;;  %v9262_v51 = vld [vmem:[#allocation13 + $0xad8] sm:$0xff] }
 0x700   :  { %12611 = vmatprep.subr.bf16.mxu1 %v14374_v19  ;;  %v9266_v19 = vld [vmem:[#allocation13 + $0xaf8] sm:$0xff]  ;;  %v14428_v55 = vcombine.high %v9261_v49, %v9265_v10  ;;  %v14427_v63 = vcombine.low %v9261_v49, %v9265_v10 }
 0x701   :  { %v14430_v52 = vcombine.high %v9262_v51, %v9266_v19  ;;  %v14429_v2 = vcombine.low %v9262_v51, %v9266_v19  ;;  %v9314_v49 = vld [vmem:[#allocation13 + $0xc78] sm:$0xff]  ;;  %v9317_v19 = vld [vmem:[#allocation13 + $0xc90] sm:$0xff] }
 0x702   :  { %12448 = vmatpush1.bf16.msra.mxu0 %v14371_v57  ;;  %v9269_v57 = vld [vmem:[#allocation13 + $0xb10] sm:$0xff] }
 0x703   :  { %12612 = vmatpush1.bf16.msra.mxu1 %v14373_v37  ;;  %12449 = vmatprep.subr.bf16.mxu0 %v14380_v58  ;;  %v9273_v37 = vld [vmem:[#allocation13 + $0xb30] sm:$0xff]  ;;  %v9270_v58 = vld [vmem:[#allocation13 + $0xb18] sm:$0xff] }
 0x704   :  { %12613 = vmatprep.subr.bf16.mxu1 %v14382_v62  ;;  %v9274_v62 = vld [vmem:[#allocation13 + $0xb38] sm:$0xff]  ;;  %v14436_v61 = vcombine.high %v9269_v57, %v9273_v37  ;;  %v14435_v11 = vcombine.low %v9269_v57, %v9273_v37 }
 0x705   :  { %v14438_v25 = vcombine.high %v9270_v58, %v9274_v62  ;;  %v14437_v1 = vcombine.low %v9270_v58, %v9274_v62 }
 0x706   :  { %12450 = vmatpush1.bf16.msra.mxu0 %v14379_v8  ;;  %v9277_v8 = vld [vmem:[#allocation13 + $0xb50] sm:$0xff] }
 0x707   :  { %12614 = vmatpush1.bf16.msra.mxu1 %v14381_v32  ;;  %12451 = vmatprep.subr.bf16.mxu0 %v14388_v56  ;;  %v9281_v32 = vld [vmem:[#allocation13 + $0xb70] sm:$0xff]  ;;  %v9278_v56 = vld [vmem:[#allocation13 + $0xb58] sm:$0xff] }
 0x708   :  { %12615 = vmatprep.subr.bf16.mxu1 %v14390_v9  ;;  %v9282_v9 = vld [vmem:[#allocation13 + $0xb78] sm:$0xff]  ;;  %v14444_v16 = vcombine.high %v9277_v8, %v9281_v32  ;;  %v14443_v50 = vcombine.low %v9277_v8, %v9281_v32 }
 0x709   :  { %v14446_v33 = vcombine.high %v9278_v56, %v9282_v9  ;;  %v14445_v6 = vcombine.low %v9278_v56, %v9282_v9  ;;  %v9333_v9 = vld [vmem:[#allocation13 + $0xd10] sm:$0xff] }
 0x70a   :  { %12452 = vmatpush1.bf16.msra.mxu0 %v14387_v42  ;;  %v9285_v42 = vld [vmem:[#allocation13 + $0xb90] sm:$0xff] }
 0x70b   :  { %12616 = vmatpush1.bf16.msra.mxu1 %v14389_v15  ;;  %12453 = vmatprep.subr.bf16.mxu0 %v14396_v46  ;;  %v9289_v15 = vld [vmem:[#allocation13 + $0xbb0] sm:$0xff]  ;;  %v9286_v46 = vld [vmem:[#allocation13 + $0xb98] sm:$0xff] }
 0x70c   :  { %12617 = vmatprep.subr.bf16.mxu1 %v14398_v18  ;;  %v9290_v18 = vld [vmem:[#allocation13 + $0xbb8] sm:$0xff]  ;;  %v14452_v5 = vcombine.high %v9285_v42, %v9289_v15  ;;  %v14451_v60 = vcombine.low %v9285_v42, %v9289_v15 }
 0x70d   :  { %v14454_v44 = vcombine.high %v9286_v46, %v9290_v18  ;;  %v14453_v27 = vcombine.low %v9286_v46, %v9290_v18  ;;  %v9341_v46 = vld [vmem:[#allocation13 + $0xd50] sm:$0xff] }
 0x70e   :  { %12454 = vmatpush1.bf16.msra.mxu0 %v14395_v35  ;;  %v9293_v35 = vld [vmem:[#allocation13 + $0xbd0] sm:$0xff] }
 0x70f   :  { %12618 = vmatpush1.bf16.msra.mxu1 %v14397_v45  ;;  %12455 = vmatprep.subr.bf16.mxu0 %v14404_v21  ;;  %v9297_v45 = vld [vmem:[#allocation13 + $0xbf0] sm:$0xff]  ;;  %v9294_v21 = vld [vmem:[#allocation13 + $0xbd8] sm:$0xff] }
 0x710   :  { %12619 = vmatprep.subr.bf16.mxu1 %v14406_v22  ;;  %v9298_v22 = vld [vmem:[#allocation13 + $0xbf8] sm:$0xff]  ;;  %v14460_v17 = vcombine.high %v9293_v35, %v9297_v45  ;;  %v14459_v31 = vcombine.low %v9293_v35, %v9297_v45  ;;  %v9345_v18 = vld [vmem:[#allocation13 + $0xd70] sm:$0xff] }
 0x711   :  { %v14462_v4 = vcombine.high %v9294_v21, %v9298_v22  ;;  %v14461_v48 = vcombine.low %v9294_v21, %v9298_v22  ;;  %v14508_v45 = vcombine.high %v9341_v46, %v9345_v18  ;;  %v9349_v22 = vld [vmem:[#allocation13 + $0xd90] sm:$0xff] }
 0x712   :  { %12456 = vmatpush1.bf16.msra.mxu0 %v14403_v3  ;;  %v9301_v3 = vld [vmem:[#allocation13 + $0xc10] sm:$0xff] }
 0x713   :  { %12620 = vmatpush1.bf16.msra.mxu1 %v14405_v59  ;;  %12457 = vmatprep.subr.bf16.mxu0 %v14412_v28  ;;  %v9305_v59 = vld [vmem:[#allocation13 + $0xc30] sm:$0xff]  ;;  %v9302_v28 = vld [vmem:[#allocation13 + $0xc18] sm:$0xff] }
 0x714   :  { %12621 = vmatprep.subr.bf16.mxu1 %v14414_v29  ;;  %v9306_v29 = vld [vmem:[#allocation13 + $0xc38] sm:$0xff]  ;;  %v14468_v43 = vcombine.high %v9301_v3, %v9305_v59 }
 0x715   :  { %v14470_v20 = vcombine.high %v9302_v28, %v9306_v29  ;;  %v14469_v10 = vcombine.low %v9302_v28, %v9306_v29  ;;  %v14507_v29 = vcombine.low %v9341_v46, %v9345_v18 }
 0x716   :  { %12458 = vmatpush1.bf16.msra.mxu0 %v14411_v34  ;;  %v9309_v34 = vld [vmem:[#allocation13 + $0xc50] sm:$0xff] }
 0x717   :  { %12622 = vmatpush1.bf16.msra.mxu1 %v14413_v53  ;;  %12459 = vmatprep.subr.bf16.mxu0 %v14420_v38  ;;  %v9313_v53 = vld [vmem:[#allocation13 + $0xc70] sm:$0xff]  ;;  %v14467_v38 = vcombine.low %v9301_v3, %v9305_v59  ;;  %v9354_v3 = vld [vmem:[#allocation13 + $0xdb8] sm:$0xff] }
 0x718   :  { %12623 = vmatprep.subr.bf16.mxu1 %v14422_v39  ;;  %v9310_v39 = vld [vmem:[#allocation13 + $0xc58] sm:$0xff]  ;;  %v14476_v51 = vcombine.high %v9309_v34, %v9313_v53  ;;  %v14475_v57 = vcombine.low %v9309_v34, %v9313_v53 }
 0x719   :  { %v14477_v37 = vcombine.low %v9310_v39, %v9314_v49  ;;  %v15491_v34 = vld [vmem:[#allocation13 + $0xdd8] sm:$0xff] }
 0x71a   :  { %12460 = vmatpush1.bf16.msra.mxu0 %v14419_v54  ;;  %v9321_v54 = vld [vmem:[#allocation13 + $0xcb0] sm:$0xff]  ;;  %v15493_v53 = vld [vmem:[#allocation13 + $0xdf8] sm:$0xff] }
 0x71b   :  { %12624 = vmatpush1.bf16.msra.mxu1 %v14421_v36  ;;  %12461 = vmatprep.subr.bf16.mxu0 %v14428_v55  ;;  %v14478_v36 = vcombine.high %v9310_v39, %v9314_v49  ;;  %v9318_v55 = vld [vmem:[#allocation13 + $0xc98] sm:$0xff]  ;;  %v14484_v58 = vcombine.high %v9317_v19, %v9321_v54  ;;  %v14483_v8 = vcombine.low %v9317_v19, %v9321_v54 }
 0x71c   :  { %12625 = vmatprep.subr.bf16.mxu1 %v14430_v52  ;;  %v9322_v52 = vld [vmem:[#allocation13 + $0xcb8] sm:$0xff] }
 0x71d   :  { %v14486_v62 = vcombine.high %v9318_v55, %v9322_v52 }
 0x71e   :  { %12462 = vmatpush1.bf16.msra.mxu0 %v14427_v63  ;;  %v9325_v63 = vld [vmem:[#allocation13 + $0xcd0] sm:$0xff] }
 0x71f   :  { %12626 = vmatpush1.bf16.msra.mxu1 %v14429_v2  ;;  %12463 = vmatprep.subr.bf16.mxu0 %v14436_v61  ;;  %v9329_v2 = vld [vmem:[#allocation13 + $0xcf0] sm:$0xff]  ;;  %v9326_v61 = vld [vmem:[#allocation13 + $0xcd8] sm:$0xff] }
 0x720   :  { %12627 = vmatprep.subr.bf16.mxu1 %v14438_v25  ;;  %v9330_v25 = vld [vmem:[#allocation13 + $0xcf8] sm:$0xff]  ;;  %v14492_v32 = vcombine.high %v9325_v63, %v9329_v2 }
 0x721   :  { %v14494_v56 = vcombine.high %v9326_v61, %v9330_v25 }
 0x722   :  { %12464 = vmatpush1.bf16.msra.mxu0 %v14435_v11  ;;  %v9337_v11 = vld [vmem:[#allocation13 + $0xd30] sm:$0xff] }
 0x723   :  { %12628 = vmatpush1.bf16.msra.mxu1 %v14437_v1  ;;  %12465 = vmatprep.subr.bf16.mxu0 %v14444_v16  ;;  %v9334_v1 = vld [vmem:[#allocation13 + $0xd18] sm:$0xff]  ;;  %v14500_v42 = vcombine.high %v9333_v9, %v9337_v11 }
 0x724   :  { %12629 = vmatprep.subr.bf16.mxu1 %v14446_v33  ;;  %v9338_v16 = vld [vmem:[#allocation13 + $0xd38] sm:$0xff]  ;;  %v14493_v33 = vcombine.low %v9326_v61, %v9330_v25  ;;  %v15501_v61 = vld [vmem:[#allocation13 + $0xe30] sm:$0xff] }
 0x725   :  { %v14502_v15 = vcombine.high %v9334_v1, %v9338_v16  ;;  %v14501_v35 = vcombine.low %v9334_v1, %v9338_v16 }
 0x726   :  { %12466 = vmatpush1.bf16.msra.mxu0 %v14443_v50  ;;  %v9342_v50 = vld [vmem:[#allocation13 + $0xd58] sm:$0xff] }
 0x727   :  { %12630 = vmatpush1.bf16.msra.mxu1 %v14445_v6  ;;  %12467 = vmatprep.subr.bf16.mxu0 %v14452_v5  ;;  %v9346_v6 = vld [vmem:[#allocation13 + $0xd78] sm:$0xff]  ;;  %v14499_v5 = vcombine.low %v9333_v9, %v9337_v11 }
 0x728   :  { %12631 = vmatprep.subr.bf16.mxu1 %v14454_v44  ;;  %v15477_v44 = vld [vmem:[#allocation15] sm:$0xff]  ;;  %v14510_v21 = vcombine.high %v9342_v50, %v9346_v6 }
 0x729   :  { %v9436_v59 = vrot.slane %v15477_v44, %v15193_v26  ;;  %v9444_v28 = vrot.slane %v15477_v44, %v15200_v30 }
 0x72a   :  { %12468 = vmatpush1.bf16.msra.mxu0 %v14451_v60  ;;  %v9353_v60 = vld [vmem:[#allocation13 + $0xdb0] sm:$0xff] }
 0x72b   :  { %12632 = vmatpush1.bf16.msra.mxu1 %v14453_v27  ;;  %12469 = vmatprep.subr.bf16.mxu0 %v14460_v17  ;;  %v9432_v27 = vrot.slane %v15477_v44, %v15188_v24  ;;  %v9440_v17 = vrot.slane %v15477_v44, %v15230_v41 }
 0x72c   :  { %12633 = vmatprep.subr.bf16.mxu1 %v14462_v4  ;;  %v9350_v4 = vld [vmem:[#allocation13 + $0xd98] sm:$0xff] }
 0x72d   :  { %v14518_v49 = vcombine.high %v9350_v4, %v9354_v3 }
 0x72e   :  { %12470 = vmatpush1.bf16.msra.mxu0 %v14459_v31  ;;  %v15487_v31 = vld [vmem:[#allocation13 + $0xdd0] sm:$0xff] }
 0x72f   :  { %12634 = vmatpush1.bf16.msra.mxu1 %v14461_v48  ;;  %12480 = vmatprep.subr.bf16.mxu0 %v14468_v43  ;;  %v14509_v48 = vcombine.low %v9342_v50, %v9346_v6  ;;  %v14516_v43 = vcombine.high %v9349_v22, %v9353_v60 }
 0x730   :  { %12644 = vmatprep.subr.bf16.mxu1 %v14470_v20  ;;  %v15489_v20 = vld [vmem:[#allocation13 + $0xdf0] sm:$0xff] }
 0x731   :  { %12472 = vmatmul.mubr.bf16.vlgmr.msra.gmra.mrb[28].mxu0 %v15446_v47  ;;  %v14523_v16 = vcombine.low %v15487_v31, %v15489_v20 }
 0x732   :  { %12636 = vmatmul.mubr.bf16.vlgmr.msra.gmra.mrb[28].mxu1 %v15446_v47  ;;  %12481 = vmatpush1.bf16.msra.mxu0 %v14467_v38  ;;  %v14485_v47 = vcombine.low %v9318_v55, %v9322_v52  ;;  %v14517_v55 = vcombine.low %v9350_v4, %v9354_v3  ;;  %v15008_v4 = vmov 1966171168  }
 0x733   :  { %12512 = vmatprep.mubr.bf16.mxu0 %v15450_v0  ;;  %12645 = vmatpush1.bf16.msra.mxu1 %v14469_v10  ;;  %v12771_v3 = vunpack.c.l.s4 %v15008_v4 }
 0x734   :  { %12676 = vmatprep.mubr.bf16.mxu1 %v15450_v0  ;;  %12482 = vmatprep.subr.bf16.mxu0 %v14476_v51  ;;  %v14491_v0 = vcombine.low %v9325_v63, %v9329_v2  ;;  %v14526_v63 = vcombine.high %v15491_v34, %v15493_v53  ;;  %v15499_v2 = vld [vmem:[#allocation13 + $0xe10] sm:$0xff] }
 0x735   :  { %12646 = vmatprep.subr.bf16.mxu1 %v14478_v36  ;;  %v14515_v36 = vcombine.low %v9349_v22, %v9353_v60  ;;  %v9373_v60 = vld [vmem:[#allocation13 + $0xe50] sm:$0xff] }
 0x736   :  { %12483 = vmatpush1.bf16.msra.mxu0 %v14475_v57 }
 0x737   :  { %12647 = vmatpush1.bf16.msra.mxu1 %v14477_v37  ;;  %12484 = vmatprep.subr.bf16.mxu0 %v14484_v58 }
 0x738   :  { %12648 = vmatprep.subr.bf16.mxu1 %v14486_v62  ;;  %v14524_v62 = vcombine.high %v15487_v31, %v15489_v20 }
 0x73a   :  { %12485 = vmatpush1.bf16.msra.mxu0 %v14483_v8 }
 0x73b   :  { %12649 = vmatpush1.bf16.msra.mxu1 %v14485_v47  ;;  %12486 = vmatprep.subr.bf16.mxu0 %v14492_v32 }
 0x73c   :  { %12650 = vmatprep.subr.bf16.mxu1 %v14494_v56 }
 0x73e   :  { %12487 = vmatpush1.bf16.msra.mxu0 %v14491_v0  ;;  %v9366_v0 = vld [vmem:[#allocation13 + $0xe18] sm:$0xff] }
 0x73f   :  { %12651 = vmatpush1.bf16.msra.mxu1 %v14493_v33  ;;  %12488 = vmatprep.subr.bf16.mxu0 %v14500_v42  ;;  %v9370_v33 = vld [vmem:[#allocation13 + $0xe38] sm:$0xff] }
 0x740   :  { %12652 = vmatprep.subr.bf16.mxu1 %v14502_v15  ;;  %v14534_v22 = vcombine.high %v9366_v0, %v9370_v33 }
 0x742   :  { %12489 = vmatpush1.bf16.msra.mxu0 %v14499_v5  ;;  %v14525_v5 = vcombine.low %v15491_v34, %v15493_v53  ;;  %v14533_v53 = vcombine.low %v9366_v0, %v9370_v33  ;;  %v9390_v0 = vld [vmem:[#allocation13 + $0xed8] sm:$0xff] }
 0x743   :  { %12653 = vmatpush1.bf16.msra.mxu1 %v14501_v35  ;;  %12490 = vmatprep.subr.bf16.mxu0 %v14508_v45  ;;  %v14532_v35 = vcombine.high %v15499_v2, %v15501_v61  ;;  %v9394_v33 = vld [vmem:[#allocation13 + $0xef8] sm:$0xff] }
 0x744   :  { %v12186_v38 = vpop.f32.mrb[24].mxu0  ;;  %v12350_v39 = vpop.f32.mrb[24].mxu1  ;;  %12654 = vmatprep.subr.bf16.mxu1 %v14510_v21 }
 0x745   :  { %v14599_v10 = vadd.f32 %v12186_v38, %v9432_v27  ;;  %v14601_v51 = vadd.f32 %v12350_v39, %v9440_v17  ;;  %v12188_v19 = vpop.f32.mrb[25].mxu0  ;;  %v12352_v54 = vpop.f32.mrb[25].mxu1  ;;  %v9377_v27 = vld [vmem:[#allocation13 + $0xe70] sm:$0xff] }
 0x746   :  { %v14600_v52 = vadd.f32 %v12188_v19, %v9436_v59  ;;  %v14602_v57 = vadd.f32 %v12352_v54, %v9444_v28  ;;  %v12190_v37 = vpop.f32.mrb[26].mxu0  ;;  %v12354_v58 = vpop.f32.mrb[26].mxu1  ;;  %12491 = vmatpush1.bf16.msra.mxu0 %v14507_v29  ;;  %v9374_v28 = vld [vmem:[#allocation13 + $0xe58] sm:$0xff]  ;;  %v14540_v38 = vcombine.high %v9373_v60, %v9377_v27  ;;  %v9385_v19 = vld [vmem:[#allocation13 + $0xeb0] sm:$0xff] }
 0x747   :  { %vm12685_vm8 = vcmp.gt.f32.partialorder %v14599_v10, 0.0  ;;  %v12693_v25 = vmul.f32 0.2, %v14599_v10  ;;  %vm12687_vm9 = vcmp.gt.f32.partialorder %v14601_v51, 0.0  ;;  %v12695_v8 = vmul.f32 0.2, %v14601_v51  ;;  %12655 = vmatpush1.bf16.msra.mxu1 %v14509_v48  ;;  %12492 = vmatprep.subr.bf16.mxu0 %v14516_v43 }
 0x748   :  { %vm12686_vm10 = vcmp.gt.f32.partialorder %v14600_v52, 0.0  ;;  %v12694_v47 = vmul.f32 0.2, %v14600_v52  ;;  %vm12688_vm11 = vcmp.gt.f32.partialorder %v14602_v57, 0.0  ;;  %v12696_v32 = vmul.f32 0.2, %v14602_v57  ;;  %12656 = vmatprep.subr.bf16.mxu1 %v14518_v49 }
 0x749   :  { %v12701_v56 = vsel %vm12685_vm8, %v14599_v10, %v12693_v25  ;;  %v12703_v9 = vsel %vm12687_vm9, %v14601_v51, %v12695_v8  ;;  %v12191_v11 = vpop.f32.mrb[27].mxu0  ;;  %v12355_v1 = vpop.f32.mrb[27].mxu1  ;;  %v9378_v29 = vld [vmem:[#allocation13 + $0xe78] sm:$0xff]  ;;  %v14531_v43 = vcombine.low %v15499_v2, %v15501_v61  ;;  %v9381_v51 = vld [vmem:[#allocation13 + $0xe90] sm:$0xff] }
 0x74a   :  { %v12710_v42 = vrot.slane %v12701_v56, 4  ;;  %v12722_v15 = vrot.slane %v12703_v9, 4  ;;  %v12702_v46 = vsel %vm12686_vm10, %v14600_v52, %v12694_v47  ;;  %v12704_v18 = vsel %vm12688_vm11, %v14602_v57, %v12696_v32  ;;  %12493 = vmatpush1.bf16.msra.mxu0 %v14515_v36  ;;  %v9382_v52 = vld [vmem:[#allocation13 + $0xe98] sm:$0xff] }
 0x74b   :  { %v12716_v50 = vrot.slane %v12702_v46, 4  ;;  %v12728_v6 = vrot.slane %v12704_v18, 4  ;;  %12657 = vmatpush1.bf16.msra.mxu1 %v14517_v55  ;;  %12494 = vmatprep.subr.bf16.mxu0 %v14524_v62  ;;  %v14542_v10 = vcombine.high %v9374_v28, %v9378_v29  ;;  %v12772_v36 = vunpack.c.0.s8 %v12771_v3  ;;  %v9386_v57 = vld [vmem:[#allocation13 + $0xeb8] sm:$0xff] }
 0x74c   :  { %v12711_v45 = vadd.f32 %v12710_v42, %v12701_v56  ;;  %v12723_v21 = vadd.f32 %v12722_v15, %v12703_v9  ;;  %12658 = vmatprep.subr.bf16.mxu1 %v14526_v63  ;;  %v14539_v62 = vcombine.low %v9373_v60, %v9377_v27  ;;  %v14541_v61 = vcombine.low %v9374_v28, %v9378_v29  ;;  %v9389_v56 = vld [vmem:[#allocation13 + $0xed0] sm:$0xff]  ;;  %v9406_v29 = vld [vmem:[#allocation13 + $0xf58] sm:$0xff] }
 0x74d   :  { %v12717_v17 = vadd.f32 %v12716_v50, %v12702_v46  ;;  %v12729_v59 = vadd.f32 %v12728_v6, %v12704_v18  ;;  %v14548_v25 = vcombine.high %v9381_v51, %v9385_v19  ;;  %v14550_v32 = vcombine.high %v9382_v52, %v9386_v57  ;;  %v9393_v9 = vld [vmem:[#allocation13 + $0xef0] sm:$0xff] }
 0x74e   :  { %v12712_v31 = vrot.slane %v12711_v45, 2  ;;  %v12724_v48 = vrot.slane %v12723_v21, 2  ;;  %12495 = vmatpush1.bf16.msra.mxu0 %v14523_v16  ;;  %v15512_v1 = vsub.s32 %v12772_v36, %v15185_v23  ;;  %v14547_v42 = vcombine.low %v9381_v51, %v9385_v19  ;;  %v9409_v28 = vld [vmem:[#allocation13 + $0xf70] sm:$0xff] }
 0x74f   :  { %v12718_v20 = vrot.slane %v12717_v17, 2  ;;  %v12730_v34 = vrot.slane %v12729_v59, 2  ;;  %12659 = vmatpush1.bf16.msra.mxu1 %v14525_v5  ;;  %12496 = vmatprep.subr.bf16.mxu0 %v14532_v35  ;;  %v14549_v15 = vcombine.low %v9382_v52, %v9386_v57  ;;  %v14556_v50 = vcombine.high %v9389_v56, %v9393_v9  ;;  %v9397_v5 = vld [vmem:[#allocation13 + $0xf10] sm:$0xff]  ;;  %v9422_v52 = vld [vmem:[#allocation13 + $0xfd8] sm:$0xff] }
 0x750   :  { %v12713_v39 = vadd.f32 %v12712_v31, %v12711_v45  ;;  %v12725_v49 = vadd.f32 %v12724_v48, %v12723_v21  ;;  %12660 = vmatprep.subr.bf16.mxu1 %v14534_v22  ;;  %v14558_v6 = vcombine.high %v9390_v0, %v9394_v33  ;;  %v9401_v35 = vld [vmem:[#allocation13 + $0xf30] sm:$0xff]  ;;  %v9398_v21 = vld [vmem:[#allocation13 + $0xf18] sm:$0xff]  ;;  %v14555_v60 = vcombine.low %v9389_v56, %v9393_v9 }
 0x751   :  { %v12719_v54 = vadd.f32 %v12718_v20, %v12717_v17  ;;  %v12731_v55 = vadd.f32 %v12730_v34, %v12729_v59  ;;  %v9402_v22 = vld [vmem:[#allocation13 + $0xf38] sm:$0xff]  ;;  %v14557_v17 = vcombine.low %v9390_v0, %v9394_v33  ;;  %v14564_v4 = vcombine.high %v9397_v5, %v9401_v35  ;;  %v9405_v59 = vld [vmem:[#allocation13 + $0xf50] sm:$0xff] }
 0x752   :  { %v12714_v37 = vrot.slane %v12713_v39, 1  ;;  %v12726_v58 = vrot.slane %v12725_v49, 1  ;;  %12497 = vmatpush1.bf16.msra.mxu0 %v14531_v43  ;;  %v14566_v3 = vcombine.high %v9398_v21, %v9402_v22  ;;  %v9410_v31 = vld [vmem:[#allocation13 + $0xf78] sm:$0xff]  ;;  %v14563_v48 = vcombine.low %v9397_v5, %v9401_v35  ;;  %v9421_v36 = vld [vmem:[#allocation13 + $0xfd0] sm:$0xff] }
 0x753   :  { %v12720_v63 = vrot.slane %v12719_v54, 1  ;;  %v12732_v2 = vrot.slane %v12731_v55, 1  ;;  %12661 = vmatpush1.bf16.msra.mxu1 %v14533_v53  ;;  %12498 = vmatprep.subr.bf16.mxu0 %v14540_v38  ;;  %v14565_v43 = vcombine.low %v9398_v21, %v9402_v22  ;;  %v14572_v20 = vcombine.high %v9405_v59, %v9409_v28  ;;  %v9413_v53 = vld [vmem:[#allocation13 + $0xf90] sm:$0xff]  ;;  %v9426_v57 = vld [vmem:[#allocation13 + $0xff8] sm:$0xff] }
 0x754   :  { %v12715_v8 = vadd.f32 %v12714_v37, %v12713_v39  ;;  %v12727_v47 = vadd.f32 %v12726_v58, %v12725_v49  ;;  %12662 = vmatprep.subr.bf16.mxu1 %v14542_v10  ;;  %v14574_v34 = vcombine.high %v9406_v29, %v9410_v31  ;;  %v9417_v38 = vld [vmem:[#allocation13 + $0xfb0] sm:$0xff]  ;;  %v9414_v39 = vld [vmem:[#allocation13 + $0xf98] sm:$0xff]  ;;  %v14571_v10 = vcombine.low %v9405_v59, %v9409_v28 }
 0x755   :  { %v12721_v11 = vadd.f32 %v12720_v63, %v12719_v54  ;;  %v12733_v16 = vadd.f32 %v12732_v2, %v12731_v55  ;;  %v9418_v49 = vld [vmem:[#allocation13 + $0xfb8] sm:$0xff]  ;;  %v14573_v51 = vcombine.low %v9406_v29, %v9410_v31  ;;  %v14580_v19 = vcombine.high %v9413_v53, %v9417_v38  ;;  %v9425_v55 = vld [vmem:[#allocation13 + $0xff0] sm:$0xff] }
 0x756   :  { %12499 = vmatpush1.bf16.msra.mxu0 %v14539_v62  ;;  %v14582_v54 = vcombine.high %v9414_v39, %v9418_v49  ;;  %v14579_v37 = vcombine.low %v9413_v53, %v9417_v38  ;;  %v14581_v58 = vcombine.low %v9414_v39, %v9418_v49  ;;  %v14588_v62 = vcombine.high %v9421_v36, %v9425_v55 }
 0x757   :  { %v12766_v46 = vcombine.low %v12715_v8, %v12721_v11  ;;  %v12767_v18 = vcombine.low %v12727_v47, %v12733_v16  ;;  %12663 = vmatpush1.bf16.msra.mxu1 %v14541_v61  ;;  %12500 = vmatprep.subr.bf16.mxu0 %v14548_v25  ;;  %v14590_v63 = vcombine.high %v9422_v52, %v9426_v57 }
 0x758   :  { %12664 = vmatprep.subr.bf16.mxu1 %v14550_v32  ;;  %v14587_v2 = vcombine.low %v9421_v36, %v9425_v55  ;;  %v14589_v61 = vcombine.low %v9422_v52, %v9426_v57  ;;  %v9448_v25 = vrot.slane %v15477_v44, %v15265_v40  ;;  %v9456_v8 = vrot.slane %v15477_v44, %v15272_v14 }
 0x759   :  { %v15515_v45 = vrot.slane %v12766_v46, %v15512_v1  ;;  %v15518_v23 = vrot.slane %v12767_v18, %v15512_v1  ;;  %v9452_v47 = vrot.slane %v15477_v44, %v15233_v7  ;;  %v9460_v32 = vrot.slane %v15477_v44, %v15277_v12 }
 0x75a   :  { %12501 = vmatpush1.bf16.msra.mxu0 %v14547_v42 }
 0x75b   :  { %v12798_v27 = vcombine.low %v15515_v45, %v15518_v23  ;;  %12665 = vmatpush1.bf16.msra.mxu1 %v14549_v15  ;;  %12502 = vmatprep.subr.bf16.mxu0 %v14556_v50 }
 0x75c   :  { %12666 = vmatprep.subr.bf16.mxu1 %v14558_v6 }
 0x75e   :  { %12503 = vmatpush1.bf16.msra.mxu0 %v14555_v60 }
 0x75f   :  { %12667 = vmatpush1.bf16.msra.mxu1 %v14557_v17  ;;  %12504 = vmatprep.subr.bf16.mxu0 %v14564_v4 }
 0x760   :  { %12668 = vmatprep.subr.bf16.mxu1 %v14566_v3 }
 0x762   :  { %12505 = vmatpush1.bf16.msra.mxu0 %v14563_v48 }
 0x763   :  { %12669 = vmatpush1.bf16.msra.mxu1 %v14565_v43  ;;  %12506 = vmatprep.subr.bf16.mxu0 %v14572_v20 }
 0x764   :  { %12670 = vmatprep.subr.bf16.mxu1 %v14574_v34 }
 0x766   :  { %12507 = vmatpush1.bf16.msra.mxu0 %v14571_v10 }
 0x767   :  { %12671 = vmatpush1.bf16.msra.mxu1 %v14573_v51  ;;  %12508 = vmatprep.subr.bf16.mxu0 %v14580_v19 }
 0x768   :  { %12672 = vmatprep.subr.bf16.mxu1 %v14582_v54 }
 0x76a   :  { %12509 = vmatpush1.bf16.msra.mxu0 %v14579_v37 }
 0x76b   :  { %12673 = vmatpush1.bf16.msra.mxu1 %v14581_v58  ;;  %12510 = vmatprep.subr.bf16.mxu0 %v14588_v62  ;;  %v12823_v58 = vld [vmem:[#allocation16] sm:$0xff] }
 0x76c   :  { %12674 = vmatprep.subr.bf16.mxu1 %v14590_v63 }
 0x76e   :  { %12511 = vmatpush1.bf16.msra.mxu0 %v14587_v2 }
 0x76f   :  { %12675 = vmatpush1.bf16.msra.mxu1 %v14589_v61  ;;  %v12824_v61 = vunpack.c.l.bf16 %v12823_v58 }
 0x771   :  { %12513 = vmatmul.mubr.bf16.vlgmr.msra.gmra.mrb[28].mxu0 %v15459_v13 }
 0x772   :  { %12677 = vmatmul.mubr.bf16.vlgmr.msra.gmra.mrb[28].mxu1 %v15459_v13 }
 0x844   :  { %v12514_v56 = vpop.f32.mrb[28].mxu0 }
 0x845   :  { %v14603_v9 = vadd.f32 %v12514_v56, %v9448_v25  ;;  %v12678_v11 = vpop.f32.mrb[28].mxu1  ;;  %v12516_v16 = vpop.f32.mrb[29].mxu0  ;;  %v12825_v25 = vunpack.c.h.bf16 %v12823_v58  ;;  %v12834_v56 = vrot.slane %v12824_v61, %v15512_v1 }
 0x846   :  { %v14605_v0 = vadd.f32 %v12678_v11, %v9456_v8  ;;  %v14604_v33 = vadd.f32 %v12516_v16, %v9452_v47  ;;  %v12680_v42 = vpop.f32.mrb[29].mxu1  ;;  %v12518_v13 = vpop.f32.mrb[30].mxu0  ;;  %v12806_v11 = vrot.slane %v12798_v27, %v15512_v1 }
 0x847   :  { %vm12689_vm12 = vcmp.gt.f32.partialorder %v14603_v9, 0.0  ;;  %v12697_v15 = vmul.f32 0.2, %v14603_v9  ;;  %v14606_v46 = vadd.f32 %v12680_v42, %v9460_v32  ;;  %v12682_v18 = vpop.f32.mrb[30].mxu1  ;;  %v12519_v50 = vpop.f32.mrb[31].mxu0 }
 0x848   :  { %vm12691_vm13 = vcmp.gt.f32.partialorder %v14605_v0, 0.0  ;;  %v12699_v6 = vmul.f32 0.2, %v14605_v0  ;;  %vm12690_vm14 = vcmp.gt.f32.partialorder %v14604_v33, 0.0  ;;  %v12698_v5 = vmul.f32 0.2, %v14604_v33 }
 0x849   :  { %v12705_v35 = vsel %vm12689_vm12, %v14603_v9, %v12697_v15  ;;  %vm12692_vm15 = vcmp.gt.f32.partialorder %v14606_v46, 0.0  ;;  %v12700_v44 = vmul.f32 0.2, %v14606_v46  ;;  %v12683_v21 = vpop.f32.mrb[31].mxu1  ;;  %v12841_v9 = vrot.slane %v12825_v25, %v15512_v1 }
 0x84a   :  { %v12734_v22 = vrot.slane %v12705_v35, 4  ;;  %v12707_v60 = vsel %vm12691_vm13, %v14605_v0, %v12699_v6  ;;  %v12706_v17 = vsel %vm12690_vm14, %v14604_v33, %v12698_v5 }
 0x84b   :  { %v12746_v4 = vrot.slane %v12707_v60, 4  ;;  %v12740_v3 = vrot.slane %v12706_v17, 4  ;;  %v12708_v59 = vsel %vm12692_vm15, %v14606_v46, %v12700_v44  ;;  %v12842_v33 = vcombine.low %v12834_v56, %v12841_v9 }
 0x84c   :  { %v12735_v28 = vadd.f32 %v12734_v22, %v12705_v35  ;;  %v12752_v29 = vrot.slane %v12708_v59, 4 }
 0x84d   :  { %v12747_v31 = vadd.f32 %v12746_v4, %v12707_v60  ;;  %v12741_v48 = vadd.f32 %v12740_v3, %v12706_v17 }
 0x84e   :  { %v12736_v43 = vrot.slane %v12735_v28, 2  ;;  %v12753_v20 = vadd.f32 %v12752_v29, %v12708_v59 }
 0x84f   :  { %v12748_v34 = vrot.slane %v12747_v31, 2  ;;  %v12742_v53 = vrot.slane %v12741_v48, 2 }
 0x850   :  { %v12737_v38 = vadd.f32 %v12736_v43, %v12735_v28  ;;  %v12754_v39 = vrot.slane %v12753_v20, 2 }
 0x851   :  { %v12749_v49 = vadd.f32 %v12748_v34, %v12747_v31  ;;  %v12743_v10 = vadd.f32 %v12742_v53, %v12741_v48 }
 0x852   :  { %v12738_v51 = vrot.slane %v12737_v38, 1  ;;  %v12755_v19 = vadd.f32 %v12754_v39, %v12753_v20 }
 0x853   :  { %v12750_v54 = vrot.slane %v12749_v49, 1  ;;  %v12744_v36 = vrot.slane %v12743_v10, 1 }
 0x854   :  { %v12739_v55 = vadd.f32 %v12738_v51, %v12737_v38  ;;  %v12756_v52 = vrot.slane %v12755_v19, 1 }
 0x855   :  { %v12751_v57 = vadd.f32 %v12750_v54, %v12749_v49  ;;  %v12745_v37 = vadd.f32 %v12744_v36, %v12743_v10 }
 0x856   :  { %v12757_v62 = vadd.f32 %v12756_v52, %v12755_v19 }
 0x857   :  { %v12768_v63 = vcombine.low %v12739_v55, %v12745_v37 }
 0x858   :  { %v12769_v2 = vcombine.low %v12751_v57, %v12757_v62 }
 0x859   :  { %v12790_v8 = vrot.slane %v12768_v63, %v15512_v1 }
 0x85a   :  { %v12797_v47 = vrot.slane %v12769_v2, %v15512_v1 }
 0x85c   :  { %v12799_v32 = vcombine.low %v12790_v8, %v12797_v47 }
 0x85e   :  { %v12813_v16 = vrot.slane %v12799_v32, %v15512_v1 }
 0x860   :  { %v12814_v0 = vcombine.low %v12806_v11, %v12813_v16 }
 0x862   :  { %v12822_v42 = vmul.f32 0.125, %v12814_v0 }
 0x864   :  { %v12844_v13 = vmul.f32 %v12842_v33, %v12822_v42 }
 0x866   :  { %v12849_v15 = vrot.slane %v12844_v13, %v15188_v24  ;;  %v12853_v46 = vrot.slane %v12844_v13, %v15193_v26  ;;  %v12857_v18 = vrot.slane %v12844_v13, %v15230_v41  ;;  %v12861_v50 = vrot.slane %v12844_v13, %v15200_v30 }
 0x867   :  { %v12865_v1 = vrot.slane %v12844_v13, %v15265_v40  ;;  %v12869_v35 = vrot.slane %v12844_v13, %v15233_v7  ;;  %v12873_v26 = vrot.slane %v12844_v13, %v15272_v14  ;;  %v12877_v21 = vrot.slane %v12844_v13, %v15277_v12  ;;  %v12904_v7 = vld [vmem:[#allocation3] sm:$0x1] }
 0x868   :  { %v12887_v6 = vsel %vm12886_vm0, %v12849_v15, 0.0  ;;  %v12888_v45 = vsel %vm12886_vm0, %v12853_v46, 0.0  ;;  %v12890_v27 = vsel %vm12886_vm0, %v12857_v18, 0.0  ;;  %v12892_v24 = vsel %vm12886_vm0, %v12861_v50, 0.0 }
 0x869   :  { %v12889_v23 = vadd.f32 %v12888_v45, %v12887_v6  ;;  %v12894_v41 = vsel %vm12886_vm0, %v12865_v1, 0.0  ;;  %v12896_v22 = vsel %vm12886_vm0, %v12869_v35, 0.0  ;;  %v12898_v40 = vsel %vm12886_vm0, %v12873_v26, 0.0 }
 0x86a   :  { %v12900_v4 = vsel %vm12886_vm0, %v12877_v21, 0.0 }
 0x86b   :  { %v12891_v5 = vadd.f32 %v12890_v27, %v12889_v23 }
 0x86d   :  { %v12893_v44 = vadd.f32 %v12892_v24, %v12891_v5 }
 0x86f   :  { %v12895_v30 = vadd.f32 %v12894_v41, %v12893_v44 }
 0x871   :  { %v12897_v60 = vadd.f32 %v12896_v22, %v12895_v30 }
 0x873   :  { %v12899_v17 = vadd.f32 %v12898_v40, %v12897_v60 }
 0x875   :  { %v12901_v3 = vadd.f32 %v12900_v4, %v12899_v17 }
 0x877   :  { %12902 = vadd.xlane.f32.xlu0 %v12901_v3 }
 0x904   :  { %v12903_v59 = vpop.xlane.xlu0 %12902 }
 0x905   :  { %v12905_v14 = vadd.f32 %v12904_v7, %v12903_v59 }
 0x907   :  { %12907 = vst.msk [vmem:[#allocation18] sm:$0x1] %vm12906_vm1, %v12905_v14 }
 0x908   :  { %14972 = shalt.err (!%p14969_p12)
}
 0x909   :  { %s14973_s15 = scalar_lea.hbm %s15578_s9, 16 }
 0x90a   :  { %p14974_p13 = scmp.ne.s32.totalorder %s15578_s9, %s14973_s15  ;;  %p14977_p0 = scmp.lt.u32.totalorder %s14973_s15, %s15578_s9 }
 0x90c   :  { %p14979_p1 = pnand %p14977_p0, %p14974_p13 }
 0x90e   :  { %14982 = shalt.err (!%p14979_p1)
}
 0x90f   :  { %12917 = dma.vmem_to_hbm [thread:$0]  %s12915_s10, 16, %s15578_s9, [#allocation6]  }
 0x910   :  { %14993 = dma.done.wait [#allocation6], 16  }
 0x911   :  { %14994 = vsyncadd [#allocation6], 4294967280 }
 0x912   :  { %12921 = vsyncpa [#allocation5], 1 }
 0x913   :  { %12922 = vsyncpa [#allocation8], 1 }
 0x914   :  { %12923 = vsyncpa [#allocation11], 1 }
 0x915   :  { %12924 = vsyncpa [#allocation14], 1 }
 0x916   :  { %12925 = vsyncpa [#allocation17], 1 }
 0x917   :  { %12926 = vsyncpa [#allocation6], 1 }

</bundles_post_ra>
